<compile_context>
chip_gen: v7x
topology: tpu7x:2x2x1
jax: 0.10.0
libtpu: 0.0.40
codegen_flags: <defaults>
</compile_context>

<pallas_src>
import functools

import jax
import jax.numpy as jnp
from jax.experimental import pallas as pl
from jax.experimental.pallas import tpu as pltpu

IN_FEATURES = 64 * 64 * 3  # 12288
H1 = 512
H2 = 256
OUT = 1
TK = 6144                  # contraction tile for the first matmul (12288 / 6144 = 2)


def _leaky_relu(x, slope=0.2):
    return jnp.where(x > 0, x, slope * x)


def disc_kernel(x_ref, w1_ref, b1_ref, w2_ref, b2_ref, w3_ref, b3_ref,
                o_ref, acc_ref):
    k = pl.program_id(0)

    @pl.when(k == 0)
    def _():
        acc_ref[...] = jnp.zeros_like(acc_ref)

    # Hot path: (B, TK)bf16 @ (TK, 512)bf16 partial product, accumulated in f32.
    acc_ref[...] += jnp.dot(x_ref[...], w1_ref[...],
                            preferred_element_type=jnp.float32)

    @pl.when(k == pl.num_programs(0) - 1)
    def _():
        h1 = _leaky_relu(acc_ref[...] + b1_ref[...])
        h2 = _leaky_relu(
            jnp.dot(h1.astype(jnp.bfloat16), w2_ref[...],
                    preferred_element_type=jnp.float32) + b2_ref[...])
        # Final 256 -> 1 projection on the VPU (multiply + lane reduction)
        # instead of an MXU matmul with a single output lane.
        h3 = jnp.sum(h2 * w3_ref[...], axis=-1, keepdims=True) + b3_ref[...]
        o_ref[...] = jax.nn.sigmoid(h3).astype(o_ref.dtype)


@functools.partial(jax.jit, static_argnames=())
def discriminator_forward(x_img, w1, b1, w2, b2, w3, b3):
    # Flatten NCHW -> (B, 12288), matching torch's .view(-1, 64*64*3).
    B = x_img.shape[0]
    x = x_img.reshape(B, IN_FEATURES)

    # bf16 for the bandwidth-dominant weights; f32 accumulation in-kernel.
    x_bf16 = x.astype(jnp.bfloat16)
    w1_bf16 = w1.astype(jnp.bfloat16)
    w2_bf16 = w2.astype(jnp.bfloat16)
    # Present w3 as a (1, 256) row so the epilogue can do a VPU mul + reduce.
    w3_row = w3.reshape(1, H2)

    n_k = IN_FEATURES // TK  # 2
    grid_spec = pltpu.PrefetchScalarGridSpec(
        num_scalar_prefetch=0,
        grid=(n_k,),
        in_specs=[
            pl.BlockSpec((B, TK), lambda k: (0, k)),        # x chunk (bf16)
            pl.BlockSpec((TK, H1), lambda k: (k, 0)),       # W1 chunk (bf16)
            pl.BlockSpec((1, H1), lambda k: (0, 0)),        # b1 (f32)
            pl.BlockSpec((H1, H2), lambda k: (0, 0)),       # W2 (bf16)
            pl.BlockSpec((1, H2), lambda k: (0, 0)),        # b2 (f32)
            pl.BlockSpec((1, H2), lambda k: (0, 0)),        # w3 row (f32)
            pl.BlockSpec((1, OUT), lambda k: (0, 0)),       # b3 (f32)
        ],
        out_specs=pl.BlockSpec((B, OUT), lambda k: (0, 0)),
        scratch_shapes=[pltpu.VMEM((B, H1), jnp.float32)],
    )

    return pl.pallas_call(
        disc_kernel,
        out_shape=jax.ShapeDtypeStruct((B, OUT), jnp.float32),
        grid_spec=grid_spec,
        compiler_params=pltpu.CompilerParams(
            dimension_semantics=("arbitrary",),
            vmem_limit_bytes=32 * 1024 * 1024),
    )(x_bf16, w1_bf16, b1, w2_bf16, b2, w3_row, b3)


def init_params(key):
    """Deterministic parameter init (uniform, nn.Linear-style bounds)."""
    ks = jax.random.split(key, 6)

    def lin(kw, kb, fan_in, fan_out):
        bound = 1.0 / jnp.sqrt(fan_in)
        # stored as (in, out) so kernel does x @ W + b
        w = jax.random.uniform(kw, (fan_in, fan_out), jnp.float32, -bound, bound)
        b = jax.random.uniform(kb, (1, fan_out), jnp.float32, -bound, bound)
        return w, b

    w1, b1 = lin(ks[0], ks[1], IN_FEATURES, H1)
    w2, b2 = lin(ks[2], ks[3], H1, H2)
    w3, b3 = lin(ks[4], ks[5], H2, OUT)
    return w1, b1, w2, b2, w3, b3


def reference_forward(x_img, w1, b1, w2, b2, w3, b3):
    x = x_img.reshape(x_img.shape[0], IN_FEATURES)
    h1 = _leaky_relu(x @ w1 + b1)
    h2 = _leaky_relu(h1 @ w2 + b2)
    return jax.nn.sigmoid(h2 @ w3 + b3)


if __name__ == "__main__":
    key = jax.random.PRNGKey(0)
    k_x, k_p = jax.random.split(key)

    B = 2
    x_img = jax.random.normal(k_x, (B, 3, 64, 64), jnp.float32)  # NCHW
    params = init_params(k_p)

    out = discriminator_forward(x_img, *params)
    out = jax.block_until_ready(out)

    ref = reference_forward(x_img, *params)
    assert out.shape == (B, 1)
    # Tolerance loosened vs. a pure-f32 kernel: W1/W2/x are streamed as bf16
    # (accumulation is still f32), which perturbs the pre-sigmoid logits by
    # ~1e-2; post-sigmoid differences stay well under 2e-2.
    assert jnp.allclose(out, ref, atol=2e-2, rtol=2e-2), (out, ref)

    print("KERNEL_OK")
</pallas_src>

<mosaic_0001>
module attributes {stable_mosaic.version = 11 : i64} {
  func.func @disc_kernel(%arg0: i32, %arg1: memref<2x6144xbf16, #tpu.memory_space<vmem>>, %arg2: memref<6144x512xbf16, #tpu.memory_space<vmem>>, %arg3: memref<1x512xf32, #tpu.memory_space<vmem>>, %arg4: memref<512x256xbf16, #tpu.memory_space<vmem>>, %arg5: memref<1x256xf32, #tpu.memory_space<vmem>>, %arg6: memref<1x256xf32, #tpu.memory_space<vmem>>, %arg7: memref<1x1xf32, #tpu.memory_space<vmem>>, %arg8: memref<2x1xf32, #tpu.memory_space<vmem>>, %arg9: memref<2x512xf32, #tpu.memory_space<vmem>>) attributes {dimension_semantics = [#tpu.dimension_semantics<arbitrary>], iteration_bounds = array<i64: 2>, scalar_prefetch = 0 : i64, scratch_operands = 1 : i64, tpu.core_type = #tpu.core_type<tc>, window_params = [{transform_indices = @transform_0, window_bounds = array<i64: 2, 6144>}, {transform_indices = @transform_1, window_bounds = array<i64: 6144, 512>}, {pipeline_mode = #tpu.pipeline_mode<synchronous>, transform_indices = @transform_2, window_bounds = array<i64: 1, 512>}, {pipeline_mode = #tpu.pipeline_mode<synchronous>, transform_indices = @transform_3, window_bounds = array<i64: 512, 256>}, {pipeline_mode = #tpu.pipeline_mode<synchronous>, transform_indices = @transform_4, window_bounds = array<i64: 1, 256>}, {pipeline_mode = #tpu.pipeline_mode<synchronous>, transform_indices = @transform_5, window_bounds = array<i64: 1, 256>}, {pipeline_mode = #tpu.pipeline_mode<synchronous>, transform_indices = @transform_6, window_bounds = array<i64: 1, 1>}, {pipeline_mode = #tpu.pipeline_mode<synchronous>, transform_indices = @transform_7, window_bounds = array<i64: 2, 1>}]} {
    %c0_i32 = arith.constant 0 : i32
    %0 = arith.cmpi eq, %arg0, %c0_i32 : i32
    %1 = arith.extui %0 : i1 to i32
    %c0_i32_0 = arith.constant 0 : i32
    %2 = arith.cmpi ne, %1, %c0_i32_0 : i32
    scf.if %2 {
      %cst_9 = arith.constant 0.000000e+00 : f32
      %12 = vector.broadcast %cst_9 : f32 to vector<2x512xf32>
      %c0_10 = arith.constant 0 : index
      %c0_11 = arith.constant 0 : index
      %13 = vector.load %arg9[%c0_10, %c0_11] : memref<2x512xf32, #tpu.memory_space<vmem>>, vector<2x512xf32>
      tpu.vector_store %arg9[%c0_10, %c0_11], %12 {strides = array<i32>} : memref<2x512xf32, #tpu.memory_space<vmem>>, vector<2x512xf32>,
    } else {
    }
    %c0 = arith.constant 0 : index
    %c0_1 = arith.constant 0 : index
    %3 = vector.load %arg9[%c0, %c0_1] : memref<2x512xf32, #tpu.memory_space<vmem>>, vector<2x512xf32>
    %c0_2 = arith.constant 0 : index
    %c0_3 = arith.constant 0 : index
    %4 = vector.load %arg1[%c0_2, %c0_3] : memref<2x6144xbf16, #tpu.memory_space<vmem>>, vector<2x6144xbf16>
    %c0_4 = arith.constant 0 : index
    %c0_5 = arith.constant 0 : index
    %5 = vector.load %arg2[%c0_4, %c0_5] : memref<6144x512xbf16, #tpu.memory_space<vmem>>, vector<6144x512xbf16>
    %cst = arith.constant dense<0.000000e+00> : vector<2x512xf32>
    %6 = tpu.matmul %4, %5, %cst {dimension_numbers = #tpu.dot_dimension_numbers<[1], [0], [0], [1], [0, 0, 1, 1], [], []>} : vector<2x6144xbf16>, vector<6144x512xbf16>, vector<2x512xf32> -> vector<2x512xf32>
    %7 = arith.addf %3, %6 : vector<2x512xf32>
    %c0_6 = arith.constant 0 : index
    %c0_7 = arith.constant 0 : index
    %8 = vector.load %arg9[%c0_6, %c0_7] : memref<2x512xf32, #tpu.memory_space<vmem>>, vector<2x512xf32>
    tpu.vector_store %arg9[%c0_6, %c0_7], %7 {strides = array<i32>} : memref<2x512xf32, #tpu.memory_space<vmem>>, vector<2x512xf32>,
    %c1_i32 = arith.constant 1 : i32
    %9 = arith.cmpi eq, %arg0, %c1_i32 : i32
    %10 = arith.extui %9 : i1 to i32
    %c0_i32_8 = arith.constant 0 : i32
    %11 = arith.cmpi ne, %10, %c0_i32_8 : i32
    scf.if %11 {
      %c0_9 = arith.constant 0 : index
      %c0_10 = arith.constant 0 : index
      %12 = vector.load %arg9[%c0_9, %c0_10] : memref<2x512xf32, #tpu.memory_space<vmem>>, vector<2x512xf32>
      %c0_11 = arith.constant 0 : index
      %c0_12 = arith.constant 0 : index
      %13 = vector.load %arg3[%c0_11, %c0_12] : memref<1x512xf32, #tpu.memory_space<vmem>>, vector<1x512xf32>
      %14 = vector.broadcast %13 : vector<1x512xf32> to vector<2x512xf32>
      %15 = arith.addf %12, %14 : vector<2x512xf32>
      %cst_13 = arith.constant 0.000000e+00 : f32
      %16 = vector.broadcast %cst_13 : f32 to vector<2x512xf32>
      %17 = arith.cmpf ogt, %15, %16 : vector<2x512xf32>
      %cst_14 = arith.constant 2.000000e-01 : f32
      %18 = vector.broadcast %cst_14 : f32 to vector<2x512xf32>
      %19 = arith.mulf %18, %15 : vector<2x512xf32>
      %20 = arith.select %17, %15, %19 : vector<2x512xi1>, vector<2x512xf32>
      %21 = arith.truncf %20 : vector<2x512xf32> to vector<2x512xbf16>
      %c0_15 = arith.constant 0 : index
      %c0_16 = arith.constant 0 : index
      %22 = vector.load %arg4[%c0_15, %c0_16] : memref<512x256xbf16, #tpu.memory_space<vmem>>, vector<512x256xbf16>
      %cst_17 = arith.constant dense<0.000000e+00> : vector<2x256xf32>
      %23 = tpu.matmul %21, %22, %cst_17 {dimension_numbers = #tpu.dot_dimension_numbers<[1], [0], [0], [1], [0, 0, 1, 1], [], []>} : vector<2x512xbf16>, vector<512x256xbf16>, vector<2x256xf32> -> vector<2x256xf32>
      %c0_18 = arith.constant 0 : index
      %c0_19 = arith.constant 0 : index
      %24 = vector.load %arg5[%c0_18, %c0_19] : memref<1x256xf32, #tpu.memory_space<vmem>>, vector<1x256xf32>
      %25 = vector.broadcast %24 : vector<1x256xf32> to vector<2x256xf32>
      %26 = arith.addf %23, %25 : vector<2x256xf32>
      %cst_20 = arith.constant 0.000000e+00 : f32
      %27 = vector.broadcast %cst_20 : f32 to vector<2x256xf32>
      %28 = arith.cmpf ogt, %26, %27 : vector<2x256xf32>
      %cst_21 = arith.constant 2.000000e-01 : f32
      %29 = vector.broadcast %cst_21 : f32 to vector<2x256xf32>
      %30 = arith.mulf %29, %26 : vector<2x256xf32>
      %31 = arith.select %28, %26, %30 : vector<2x256xi1>, vector<2x256xf32>
      %c0_22 = arith.constant 0 : index
      %c0_23 = arith.constant 0 : index
      %32 = vector.load %arg6[%c0_22, %c0_23] : memref<1x256xf32, #tpu.memory_space<vmem>>, vector<1x256xf32>
      %33 = vector.broadcast %32 : vector<1x256xf32> to vector<2x256xf32>
      %34 = arith.mulf %31, %33 : vector<2x256xf32>
      %cst_24 = arith.constant dense<0.000000e+00> : vector<2xf32>
      %35 = vector.multi_reduction <add>, %34, %cst_24 [1] : vector<2x256xf32> to vector<2xf32>
      %36 = vector.shape_cast %35 : vector<2xf32> to vector<2x1xf32>
      %c0_25 = arith.constant 0 : index
      %c0_26 = arith.constant 0 : index
      %37 = vector.load %arg7[%c0_25, %c0_26] : memref<1x1xf32, #tpu.memory_space<vmem>>, vector<1x1xf32>
      %38 = vector.broadcast %37 : vector<1x1xf32> to vector<2x1xf32>
      %39 = arith.addf %36, %38 : vector<2x1xf32>
      %40 = arith.negf %39 : vector<2x1xf32>
      %41 = math.exp %40 : vector<2x1xf32>
      %cst_27 = arith.constant 1.000000e+00 : f32
      %42 = vector.broadcast %cst_27 : f32 to vector<2x1xf32>
      %43 = arith.addf %42, %41 : vector<2x1xf32>
      %44 = arith.divf %42, %43 : vector<2x1xf32>
      %c0_28 = arith.constant 0 : index
      %c0_29 = arith.constant 0 : index
      %45 = vector.load %arg8[%c0_28, %c0_29] : memref<2x1xf32, #tpu.memory_space<vmem>>, vector<2x1xf32>
      tpu.vector_store %arg8[%c0_28, %c0_29], %44 {strides = array<i32>} : memref<2x1xf32, #tpu.memory_space<vmem>>, vector<2x1xf32>,
    } else {
    }
    return
  }
  func.func @transform_0(%arg0: i32) -> (i32, i32) {
    %c0_i32 = arith.constant 0 : i32
    %c0_i32_0 = arith.constant 0 : i32
    return %c0_i32, %arg0 : i32, i32
  }
  func.func @transform_1(%arg0: i32) -> (i32, i32) {
    %c0_i32 = arith.constant 0 : i32
    %c0_i32_0 = arith.constant 0 : i32
    return %arg0, %c0_i32 : i32, i32
  }
  func.func @transform_2(%arg0: i32) -> (i32, i32) {
    %c0_i32 = arith.constant 0 : i32
    %c0_i32_0 = arith.constant 0 : i32
    %c0_i32_1 = arith.constant 0 : i32
    return %c0_i32, %c0_i32_0 : i32, i32
  }
  func.func @transform_3(%arg0: i32) -> (i32, i32) {
    %c0_i32 = arith.constant 0 : i32
    %c0_i32_0 = arith.constant 0 : i32
    %c0_i32_1 = arith.constant 0 : i32
    return %c0_i32, %c0_i32_0 : i32, i32
  }
  func.func @transform_4(%arg0: i32) -> (i32, i32) {
    %c0_i32 = arith.constant 0 : i32
    %c0_i32_0 = arith.constant 0 : i32
    %c0_i32_1 = arith.constant 0 : i32
    return %c0_i32, %c0_i32_0 : i32, i32
  }
  func.func @transform_5(%arg0: i32) -> (i32, i32) {
    %c0_i32 = arith.constant 0 : i32
    %c0_i32_0 = arith.constant 0 : i32
    %c0_i32_1 = arith.constant 0 : i32
    return %c0_i32, %c0_i32_0 : i32, i32
  }
  func.func @transform_6(%arg0: i32) -> (i32, i32) {
    %c0_i32 = arith.constant 0 : i32
    %c0_i32_0 = arith.constant 0 : i32
    %c0_i32_1 = arith.constant 0 : i32
    return %c0_i32, %c0_i32_0 : i32, i32
  }
  func.func @transform_7(%arg0: i32) -> (i32, i32) {
    %c0_i32 = arith.constant 0 : i32
    %c0_i32_0 = arith.constant 0 : i32
    %c0_i32_1 = arith.constant 0 : i32
    return %c0_i32, %c0_i32_0 : i32, i32
  }
}

</mosaic_0001>

<bundles_post_ra>
// kernel: discriminator_forward.1
= control target key start
LH: loop header
LB: loop body
LE: loop exit
PB: predicated region body
PF: predicated region fallthrough
CT: control target
= control target key end

     0   :  { %s16766_s26 = smov 0   ;;  %s18816_s0 = inlined_call_operand.vmem [shape: bf16[2,12288], index: 0, kind: input, shape index: {}]   ;;  %s18817_s1 = inlined_call_operand.vmem [shape: bf16[12288,512], index: 1, kind: input, shape index: {}]   ;;  %s18818_s2 = inlined_call_operand.vmem [shape: f32[1,512], index: 2, kind: input, shape index: {}]   ;;  %s18819_s3 = inlined_call_operand.vmem [shape: bf16[512,256], index: 3, kind: input, shape index: {}]   ;;  %s18820_s4 = inlined_call_operand.vmem [shape: f32[1,256], index: 4, kind: input, shape index: {}]   ;;  %s18821_s5 = inlined_call_operand.vmem [shape: f32[1,256], index: 5, kind: input, shape index: {}]   ;;  %s18822_s6 = inlined_call_operand.<no memory space> [shape: f32[1,1], index: 6, kind: input, shape index: {}]   ;;  %s18823_s7 = inlined_call_operand.vmem [shape: f32[2,1], index: 7, kind: output, shape index: {}]  }
   0x1   :  { %v12_v0 = vstv %s18822_s6 }
   0x2   :  { %13 = vst [vmem:[#allocation3] sm:$0x1] %v12_v0 }
   0x3 LB: > { %s16772_s27 = sadd.s32 4294967295, %s16718_s26   ;;  %p12489_p0 = scmp.ge.s32.totalorder %s16718_s26, 1  ;;  %s16718_s26 = sphi %s16766_s26, %s19_s26  }
   0x4   : > { %p246_p1 = scmp.lt.s32.totalorder %s16718_s26, 3 }
   0x6   : > { %p247_p2 = pnand %p12489_p0, %p246_p1 }
   0x7   : > { %s278_s6 = smul.u32 (!%p247_p2), 48, %s16772_s27  ;;  %p12492_p5 = scmp.ne.s32.totalorder (!%p247_p2), %s16772_s27, 0 }
   0x8   : > { %250 = sbr.rel (%p247_p2) target bundleno = 2198 (0x896), region = 48 }
   0x9   : > { %s283_s28 = smul.u32 (!%p247_p2), 768, %s16772_s27  ;;  %p279_p3 = scmp.lt.s32.totalorder (!%p247_p2), %s278_s6, 95 }
   0xb   : > { %p284_p4 = scmp.lt.s32.totalorder (!%p247_p2), %s283_s28, 1535 }
   0xf   : > { %s18825_s6 = smov (!%p279_p3, %s278_s6), 95  ;;  %s18827_s28 = smov (!%p284_p4, %s283_s28), 1535 }
  0x10   : > { %s16781_s8 = scalar_lea.vmem %s18816_s0, %s18825_s6  ;;  %s14098_s9 = sshll.u32 %s18827_s28, 4  ;;  %v16720_v1 = vmov (!%p12492_p5), 0.0  }
  0x11   : > { %s16786_s12 = scalar_lea.vmem %s18817_s1, %s14098_s9  ;;  %293 = sbr.rel (%p12492_p5) target bundleno = 24 (0x18), region = 52  ;;  %294 = vst [vmem:[#allocation2] sm:$0xff] (!%p12492_p5), %v16720_v1 }
  0x18 PF: > { %v14298_v2 = vld [vmem:[%s16786_s12 + $0x4] ss:$16 sps:$4 sm:$0xff]   ;;  %v14300_v3 = vld [vmem:[%s16786_s12 + $0xc] ss:$16 sps:$4 sm:$0xff]   ;;  %v14302_v4 = vld [vmem:[%s16786_s12] ss:$16 sps:$4 sm:$0xff]   ;;  %v1848_v40 = vlaneseq }
  0x19   : > { %9866 = vmatprep.subr.bf16.mxu0 %v14298_v2  ;;  %v14303_v5 = vld [vmem:[%s16786_s12 + $0x8] ss:$16 sps:$4 sm:$0xff]   ;;  %10850 = vmatprep.subr.bf16.mxu1 %v14300_v3  ;;  %v14304_v6 = vld [vmem:[%s16786_s12 + $0x24] ss:$16 sps:$4 sm:$0xff]   ;;  %v14306_v7 = vld [vmem:[%s16786_s12 + $0x2c] ss:$16 sps:$4 sm:$0xff]  }
  0x1a   : > { %9867 = vmatpush1.bf16.msra.mxu0 %v14302_v4  ;;  %10851 = vmatpush1.bf16.msra.mxu1 %v14303_v5  ;;  %v14308_v8 = vld [vmem:[%s16786_s12 + $0x20] ss:$16 sps:$4 sm:$0xff]   ;;  %v14309_v9 = vld [vmem:[%s16786_s12 + $0x28] ss:$16 sps:$4 sm:$0xff]   ;;  %v14310_v10 = vld [vmem:[%s16786_s12 + $0x44] ss:$16 sps:$4 sm:$0xff]  }
  0x1b   : > { %9868 = vmatprep.subr.bf16.mxu0 %v14304_v6  ;;  %10852 = vmatprep.subr.bf16.mxu1 %v14306_v7  ;;  %v14312_v11 = vld [vmem:[%s16786_s12 + $0x4c] ss:$16 sps:$4 sm:$0xff]   ;;  %v14314_v12 = vld [vmem:[%s16786_s12 + $0x40] ss:$16 sps:$4 sm:$0xff]   ;;  %v14315_v13 = vld [vmem:[%s16786_s12 + $0x48] ss:$16 sps:$4 sm:$0xff]  }
  0x1c   : > { %v14316_v14 = vld [vmem:[%s16786_s12 + $0x64] ss:$16 sps:$4 sm:$0xff]   ;;  %v14318_v15 = vld [vmem:[%s16786_s12 + $0x6c] ss:$16 sps:$4 sm:$0xff]   ;;  %v14320_v16 = vld [vmem:[%s16786_s12 + $0x60] ss:$16 sps:$4 sm:$0xff]  }
  0x1d   : > { %v14321_v17 = vld [vmem:[%s16786_s12 + $0x68] ss:$16 sps:$4 sm:$0xff]   ;;  %v14322_v18 = vld [vmem:[%s16786_s12 + $0x84] ss:$16 sps:$4 sm:$0xff]   ;;  %v14324_v19 = vld [vmem:[%s16786_s12 + $0x8c] ss:$16 sps:$4 sm:$0xff]  }
  0x1e   : > { %9869 = vmatpush1.bf16.msra.mxu0 %v14308_v8  ;;  %10853 = vmatpush1.bf16.msra.mxu1 %v14309_v9  ;;  %v14326_v20 = vld [vmem:[%s16786_s12 + $0x80] ss:$16 sps:$4 sm:$0xff]   ;;  %v14327_v21 = vld [vmem:[%s16786_s12 + $0x88] ss:$16 sps:$4 sm:$0xff]   ;;  %v14328_v22 = vld [vmem:[%s16786_s12 + $0xa4] ss:$16 sps:$4 sm:$0xff]  }
  0x1f   : > { %9870 = vmatprep.subr.bf16.mxu0 %v14310_v10  ;;  %10854 = vmatprep.subr.bf16.mxu1 %v14312_v11  ;;  %v14330_v23 = vld [vmem:[%s16786_s12 + $0xac] ss:$16 sps:$4 sm:$0xff]   ;;  %v14332_v24 = vld [vmem:[%s16786_s12 + $0xa0] ss:$16 sps:$4 sm:$0xff]   ;;  %v14333_v25 = vld [vmem:[%s16786_s12 + $0xa8] ss:$16 sps:$4 sm:$0xff]  }
  0x20   : > { %v14334_v26 = vld [vmem:[%s16786_s12 + $0xc4] ss:$16 sps:$4 sm:$0xff]   ;;  %v14336_v27 = vld [vmem:[%s16786_s12 + $0xcc] ss:$16 sps:$4 sm:$0xff]   ;;  %v14338_v28 = vld [vmem:[%s16786_s12 + $0xc0] ss:$16 sps:$4 sm:$0xff]  }
  0x21   : > { %v14339_v29 = vld [vmem:[%s16786_s12 + $0xc8] ss:$16 sps:$4 sm:$0xff]   ;;  %v14340_v30 = vld [vmem:[%s16786_s12 + $0xe4] ss:$16 sps:$4 sm:$0xff]   ;;  %v14342_v31 = vld [vmem:[%s16786_s12 + $0xec] ss:$16 sps:$4 sm:$0xff]  }
  0x22   : > { %9871 = vmatpush1.bf16.msra.mxu0 %v14314_v12  ;;  %10855 = vmatpush1.bf16.msra.mxu1 %v14315_v13  ;;  %v14344_v32 = vld [vmem:[%s16786_s12 + $0xe0] ss:$16 sps:$4 sm:$0xff]   ;;  %v14345_v33 = vld [vmem:[%s16786_s12 + $0xe8] ss:$16 sps:$4 sm:$0xff]   ;;  %v14346_v34 = vld [vmem:[%s16786_s12 + $0x104] ss:$16 sps:$4 sm:$0xff]  }
  0x23   : > { %9872 = vmatprep.subr.bf16.mxu0 %v14316_v14  ;;  %10856 = vmatprep.subr.bf16.mxu1 %v14318_v15  ;;  %v14348_v35 = vld [vmem:[%s16786_s12 + $0x10c] ss:$16 sps:$4 sm:$0xff]   ;;  %v14350_v36 = vld [vmem:[%s16786_s12 + $0x100] ss:$16 sps:$4 sm:$0xff]   ;;  %v14351_v37 = vld [vmem:[%s16786_s12 + $0x108] ss:$16 sps:$4 sm:$0xff]  }
  0x24   : > { %v16721_v38 = vmov 1966171168   ;;  %v14352_v41 = vld [vmem:[%s16786_s12 + $0x124] ss:$16 sps:$4 sm:$0xff]   ;;  %v14354_v42 = vld [vmem:[%s16786_s12 + $0x12c] ss:$16 sps:$4 sm:$0xff]  }
  0x25   : > { %v1846_v39 = vunpack.c.l.s4 %v16721_v38  ;;  %v14356_v43 = vld [vmem:[%s16786_s12 + $0x120] ss:$16 sps:$4 sm:$0xff]   ;;  %v16828_v45 = vshrl.u32 %v1848_v40, 7  ;;  %v14357_v46 = vld [vmem:[%s16786_s12 + $0x128] ss:$16 sps:$4 sm:$0xff]   ;;  %p14029_p6 = scmp.ne.s32.totalorder %s16772_s27, 1 }
  0x26   : > { %9873 = vmatpush1.bf16.msra.mxu0 %v14320_v16  ;;  %10857 = vmatpush1.bf16.msra.mxu1 %v14321_v17  ;;  %v14358_v47 = vld [vmem:[%s16786_s12 + $0x144] ss:$16 sps:$4 sm:$0xff]   ;;  %v14360_v48 = vld [vmem:[%s16786_s12 + $0x14c] ss:$16 sps:$4 sm:$0xff]   ;;  %v14362_v49 = vld [vmem:[%s16786_s12 + $0x140] ss:$16 sps:$4 sm:$0xff]  }
  0x27   : > { %9874 = vmatprep.subr.bf16.mxu0 %v14322_v18  ;;  %10858 = vmatprep.subr.bf16.mxu1 %v14324_v19  ;;  %v1847_v44 = vunpack.c.0.s8 %v1846_v39  ;;  %v14363_v50 = vld [vmem:[%s16786_s12 + $0x148] ss:$16 sps:$4 sm:$0xff]   ;;  %v14364_v52 = vld [vmem:[%s16786_s12 + $0x164] ss:$16 sps:$4 sm:$0xff]   ;;  %v14366_v53 = vld [vmem:[%s16786_s12 + $0x16c] ss:$16 sps:$4 sm:$0xff]  }
  0x28   : > { %v16841_v54 = vld [vmem:[%s16781_s8] sm:$0xff]  ;;  %v14369_v57 = vld [vmem:[%s16786_s12 + $0x168] ss:$16 sps:$4 sm:$0xff]   ;;  %v14372_v59 = vld [vmem:[%s16786_s12 + $0x18c] ss:$16 sps:$4 sm:$0xff]   ;;  %vm12427_vm3 = vcmask (!%p14029_p6), 1041408  }
  0x29   : > { %v16836_v51 = vsub.s32 %v1847_v44, %v16828_v45  ;;  %v14368_v55 = vld [vmem:[%s16786_s12 + $0x160] ss:$16 sps:$4 sm:$0xff]   ;;  %v14370_v58 = vld [vmem:[%s16786_s12 + $0x184] ss:$16 sps:$4 sm:$0xff]   ;;  %v14375_v63 = vld [vmem:[%s16786_s12 + $0x188] ss:$16 sps:$4 sm:$0xff]  }
  0x2a   : > { %9875 = vmatpush1.bf16.msra.mxu0 %v14326_v20  ;;  %10859 = vmatpush1.bf16.msra.mxu1 %v14327_v21  ;;  %v14374_v61 = vld [vmem:[%s16786_s12 + $0x180] ss:$16 sps:$4 sm:$0xff]   ;;  %v14376_v0 = vld [vmem:[%s16786_s12 + $0x1a4] ss:$16 sps:$4 sm:$0xff]   ;;  %v14378_v1 = vld [vmem:[%s16786_s12 + $0x1ac] ss:$16 sps:$4 sm:$0xff]  }
  0x2b   : > { %9876 = vmatprep.subr.bf16.mxu0 %v14328_v22  ;;  %10860 = vmatprep.subr.bf16.mxu1 %v14330_v23  ;;  %v1851_v56 = vrot.slane %v16841_v54, %v16836_v51  ;;  %v14380_v2 = vld [vmem:[%s16786_s12 + $0x1a0] ss:$16 sps:$4 sm:$0xff]   ;;  %v14381_v3 = vld [vmem:[%s16786_s12 + $0x1a8] ss:$16 sps:$4 sm:$0xff]   ;;  %v14382_v4 = vld [vmem:[%s16786_s12 + $0x1c4] ss:$16 sps:$4 sm:$0xff]  }
  0x2c   : > { %v14384_v5 = vld [vmem:[%s16786_s12 + $0x1cc] ss:$16 sps:$4 sm:$0xff]   ;;  %v14386_v6 = vld [vmem:[%s16786_s12 + $0x1c0] ss:$16 sps:$4 sm:$0xff]   ;;  %v14387_v7 = vld [vmem:[%s16786_s12 + $0x1c8] ss:$16 sps:$4 sm:$0xff]  }
  0x2d   : > { %v1859_v60 = vcombine.high %v1851_v56, %v1851_v56  ;;  %v14388_v8 = vld [vmem:[%s16786_s12 + $0x1e4] ss:$16 sps:$4 sm:$0xff]   ;;  %v14390_v9 = vld [vmem:[%s16786_s12 + $0x1ec] ss:$16 sps:$4 sm:$0xff]   ;;  %v14392_v10 = vld [vmem:[%s16786_s12 + $0x1e0] ss:$16 sps:$4 sm:$0xff]   ;;  %v16868_v15 = vrot.slane %v1851_v56, %v16836_v51 }
  0x2e   : > { %9877 = vmatpush1.bf16.msra.mxu0 %v14332_v24  ;;  %10861 = vmatpush1.bf16.msra.mxu1 %v14333_v25  ;;  %v14393_v11 = vld [vmem:[%s16786_s12 + $0x1e8] ss:$16 sps:$4 sm:$0xff]   ;;  %v14396_v12 = vld [vmem:[%s16786_s12 + $0x204] ss:$16 sps:$4 sm:$0xff]   ;;  %v14399_v13 = vld [vmem:[%s16786_s12 + $0x20c] ss:$16 sps:$4 sm:$0xff]  }
  0x2f   : > { %9878 = vmatprep.subr.bf16.mxu0 %v14334_v26  ;;  %10862 = vmatprep.subr.bf16.mxu1 %v14336_v27  ;;  %v1881_v62 = vrot.slane %v1859_v60, %v16836_v51  ;;  %v14394_v14 = vld [vmem:[%s16786_s12 + $0x200] ss:$16 sps:$4 sm:$0xff]   ;;  %v14397_v16 = vld [vmem:[%s16786_s12 + $0x208] ss:$16 sps:$4 sm:$0xff]   ;;  %v14402_v17 = vld [vmem:[%s16786_s12 + $0x224] ss:$16 sps:$4 sm:$0xff]  }
  0x30   : > { %v14405_v18 = vld [vmem:[%s16786_s12 + $0x22c] ss:$16 sps:$4 sm:$0xff]   ;;  %v14400_v20 = vld [vmem:[%s16786_s12 + $0x220] ss:$16 sps:$4 sm:$0xff]   ;;  %v14403_v21 = vld [vmem:[%s16786_s12 + $0x228] ss:$16 sps:$4 sm:$0xff]  }
  0x31   : > { %9898 = vmatprep.mubr.bf16.mxu0 %v1881_v62  ;;  %10882 = vmatprep.mubr.bf16.mxu1 %v1881_v62  ;;  %v1891_v19 = vcombine.high %v1881_v62, %v1881_v62  ;;  %v14408_v22 = vld [vmem:[%s16786_s12 + $0x244] ss:$16 sps:$4 sm:$0xff]   ;;  %v14411_v23 = vld [vmem:[%s16786_s12 + $0x24c] ss:$16 sps:$4 sm:$0xff]   ;;  %v14406_v24 = vld [vmem:[%s16786_s12 + $0x240] ss:$16 sps:$4 sm:$0xff]  }
  0x32   : > { %9879 = vmatpush1.bf16.msra.mxu0 %v14338_v28  ;;  %10863 = vmatpush1.bf16.msra.mxu1 %v14339_v29  ;;  %v14409_v25 = vld [vmem:[%s16786_s12 + $0x248] ss:$16 sps:$4 sm:$0xff]   ;;  %v14414_v26 = vld [vmem:[%s16786_s12 + $0x264] ss:$16 sps:$4 sm:$0xff]   ;;  %v14417_v27 = vld [vmem:[%s16786_s12 + $0x26c] ss:$16 sps:$4 sm:$0xff]  }
  0x33   : > { %9880 = vmatprep.subr.bf16.mxu0 %v14340_v30  ;;  %10864 = vmatprep.subr.bf16.mxu1 %v14342_v31  ;;  %v14412_v28 = vld [vmem:[%s16786_s12 + $0x260] ss:$16 sps:$4 sm:$0xff]   ;;  %v14415_v29 = vld [vmem:[%s16786_s12 + $0x268] ss:$16 sps:$4 sm:$0xff]   ;;  %v14420_v30 = vld [vmem:[%s16786_s12 + $0x284] ss:$16 sps:$4 sm:$0xff]  }
  0x34   : > { %v14423_v31 = vld [vmem:[%s16786_s12 + $0x28c] ss:$16 sps:$4 sm:$0xff]   ;;  %v14432_v38 = vld [vmem:[%s16786_s12 + $0x2c4] ss:$16 sps:$4 sm:$0xff]   ;;  %v14430_v40 = vld [vmem:[%s16786_s12 + $0x2c0] ss:$16 sps:$4 sm:$0xff]  }
  0x35   : > { %v14435_v39 = vld [vmem:[%s16786_s12 + $0x2cc] ss:$16 sps:$4 sm:$0xff]   ;;  %v14436_v44 = vld [vmem:[%s16786_s12 + $0x2e0] ss:$16 sps:$4 sm:$0xff]   ;;  %v14451_v56 = vld [vmem:[%s16786_s12 + $0x328] ss:$16 sps:$4 sm:$0xff]  }
  0x36   : > { %9881 = vmatpush1.bf16.msra.mxu0 %v14344_v32  ;;  %10865 = vmatpush1.bf16.msra.mxu1 %v14345_v33  ;;  %v14418_v32 = vld [vmem:[%s16786_s12 + $0x280] ss:$16 sps:$4 sm:$0xff]   ;;  %v14421_v33 = vld [vmem:[%s16786_s12 + $0x288] ss:$16 sps:$4 sm:$0xff]   ;;  %v14465_v62 = vld [vmem:[%s16786_s12 + $0x36c] ss:$16 sps:$4 sm:$0xff]  }
  0x37   : > { %9882 = vmatprep.subr.bf16.mxu0 %v14346_v34  ;;  %10866 = vmatprep.subr.bf16.mxu1 %v14348_v35  ;;  %v14426_v34 = vld [vmem:[%s16786_s12 + $0x2a4] ss:$16 sps:$4 sm:$0xff]   ;;  %v14429_v35 = vld [vmem:[%s16786_s12 + $0x2ac] ss:$16 sps:$4 sm:$0xff]   ;;  %v14457_v60 = vld [vmem:[%s16786_s12 + $0x348] ss:$16 sps:$4 sm:$0xff]  }
  0x38   : > { %vm12447_vm4 = vcmask (!%p14029_p6), 1024  }
  0x3a   : > { %9883 = vmatpush1.bf16.msra.mxu0 %v14350_v36  ;;  %10867 = vmatpush1.bf16.msra.mxu1 %v14351_v37  ;;  %v14424_v36 = vld [vmem:[%s16786_s12 + $0x2a0] ss:$16 sps:$4 sm:$0xff]   ;;  %v14427_v37 = vld [vmem:[%s16786_s12 + $0x2a8] ss:$16 sps:$4 sm:$0xff]  }
  0x3b   : > { %9884 = vmatprep.subr.bf16.mxu0 %v14352_v41  ;;  %10868 = vmatprep.subr.bf16.mxu1 %v14354_v42  ;;  %v14433_v41 = vld [vmem:[%s16786_s12 + $0x2c8] ss:$16 sps:$4 sm:$0xff]   ;;  %v14438_v42 = vld [vmem:[%s16786_s12 + $0x2e4] ss:$16 sps:$4 sm:$0xff]  }
  0x3e   : > { %9885 = vmatpush1.bf16.msra.mxu0 %v14356_v43  ;;  %10869 = vmatpush1.bf16.msra.mxu1 %v14357_v46  ;;  %v14441_v43 = vld [vmem:[%s16786_s12 + $0x2ec] ss:$16 sps:$4 sm:$0xff]   ;;  %v14439_v46 = vld [vmem:[%s16786_s12 + $0x2e8] ss:$16 sps:$4 sm:$0xff]  }
  0x3f   : > { %9886 = vmatprep.subr.bf16.mxu0 %v14358_v47  ;;  %10870 = vmatprep.subr.bf16.mxu1 %v14360_v48  ;;  %v14444_v47 = vld [vmem:[%s16786_s12 + $0x304] ss:$16 sps:$4 sm:$0xff]   ;;  %v14447_v48 = vld [vmem:[%s16786_s12 + $0x30c] ss:$16 sps:$4 sm:$0xff]  }
  0x42   : > { %9887 = vmatpush1.bf16.msra.mxu0 %v14362_v49  ;;  %10871 = vmatpush1.bf16.msra.mxu1 %v14363_v50  ;;  %v14442_v49 = vld [vmem:[%s16786_s12 + $0x300] ss:$16 sps:$4 sm:$0xff]   ;;  %v14445_v50 = vld [vmem:[%s16786_s12 + $0x308] ss:$16 sps:$4 sm:$0xff]  }
  0x43   : > { %9888 = vmatprep.subr.bf16.mxu0 %v14364_v52  ;;  %10872 = vmatprep.subr.bf16.mxu1 %v14366_v53  ;;  %v14450_v52 = vld [vmem:[%s16786_s12 + $0x324] ss:$16 sps:$4 sm:$0xff]   ;;  %v14453_v53 = vld [vmem:[%s16786_s12 + $0x32c] ss:$16 sps:$4 sm:$0xff]  }
  0x46   : > { %9889 = vmatpush1.bf16.msra.mxu0 %v14368_v55  ;;  %10873 = vmatpush1.bf16.msra.mxu1 %v14369_v57  ;;  %v14448_v55 = vld [vmem:[%s16786_s12 + $0x320] ss:$16 sps:$4 sm:$0xff]   ;;  %v14456_v57 = vld [vmem:[%s16786_s12 + $0x344] ss:$16 sps:$4 sm:$0xff]  }
  0x47   : > { %9890 = vmatprep.subr.bf16.mxu0 %v14370_v58  ;;  %10874 = vmatprep.subr.bf16.mxu1 %v14372_v59  ;;  %v14459_v58 = vld [vmem:[%s16786_s12 + $0x34c] ss:$16 sps:$4 sm:$0xff]   ;;  %v14454_v59 = vld [vmem:[%s16786_s12 + $0x340] ss:$16 sps:$4 sm:$0xff]  }
  0x4a   : > { %9891 = vmatpush1.bf16.msra.mxu0 %v14374_v61  ;;  %10875 = vmatpush1.bf16.msra.mxu1 %v14375_v63  ;;  %v14462_v61 = vld [vmem:[%s16786_s12 + $0x364] ss:$16 sps:$4 sm:$0xff]   ;;  %v14460_v63 = vld [vmem:[%s16786_s12 + $0x360] ss:$16 sps:$4 sm:$0xff]  }
  0x4b   : > { %9892 = vmatprep.subr.bf16.mxu0 %v14376_v0  ;;  %10876 = vmatprep.subr.bf16.mxu1 %v14378_v1  ;;  %v14463_v0 = vld [vmem:[%s16786_s12 + $0x368] ss:$16 sps:$4 sm:$0xff]   ;;  %v14468_v1 = vld [vmem:[%s16786_s12 + $0x384] ss:$16 sps:$4 sm:$0xff]  }
  0x4e   : > { %9893 = vmatpush1.bf16.msra.mxu0 %v14380_v2  ;;  %10877 = vmatpush1.bf16.msra.mxu1 %v14381_v3  ;;  %v14471_v2 = vld [vmem:[%s16786_s12 + $0x38c] ss:$16 sps:$4 sm:$0xff]   ;;  %v14466_v3 = vld [vmem:[%s16786_s12 + $0x380] ss:$16 sps:$4 sm:$0xff]  }
  0x4f   : > { %9894 = vmatprep.subr.bf16.mxu0 %v14382_v4  ;;  %10878 = vmatprep.subr.bf16.mxu1 %v14384_v5  ;;  %v14469_v4 = vld [vmem:[%s16786_s12 + $0x388] ss:$16 sps:$4 sm:$0xff]   ;;  %v14474_v5 = vld [vmem:[%s16786_s12 + $0x3a4] ss:$16 sps:$4 sm:$0xff]  }
  0x52   : > { %9895 = vmatpush1.bf16.msra.mxu0 %v14386_v6  ;;  %10879 = vmatpush1.bf16.msra.mxu1 %v14387_v7  ;;  %v14477_v6 = vld [vmem:[%s16786_s12 + $0x3ac] ss:$16 sps:$4 sm:$0xff]   ;;  %v14472_v7 = vld [vmem:[%s16786_s12 + $0x3a0] ss:$16 sps:$4 sm:$0xff]  }
  0x53   : > { %9896 = vmatprep.subr.bf16.mxu0 %v14388_v8  ;;  %10880 = vmatprep.subr.bf16.mxu1 %v14390_v9  ;;  %v14475_v8 = vld [vmem:[%s16786_s12 + $0x3a8] ss:$16 sps:$4 sm:$0xff]   ;;  %v14480_v9 = vld [vmem:[%s16786_s12 + $0x3c4] ss:$16 sps:$4 sm:$0xff]  }
  0x56   : > { %9897 = vmatpush1.bf16.msra.mxu0 %v14392_v10  ;;  %10881 = vmatpush1.bf16.msra.mxu1 %v14393_v11  ;;  %v14483_v10 = vld [vmem:[%s16786_s12 + $0x3cc] ss:$16 sps:$4 sm:$0xff]   ;;  %v1844_v11 = vcombine.high %v16841_v54, %v16841_v54  ;;  %v14487_v54 = vld [vmem:[%s16786_s12 + $0x3e8] ss:$16 sps:$4 sm:$0xff]  }
  0x57   : > { %9907 = vmatprep.subr.bf16.mxu0 %v14396_v12  ;;  %10891 = vmatprep.subr.bf16.mxu1 %v14399_v13  ;;  %v14478_v12 = vld [vmem:[%s16786_s12 + $0x3c0] ss:$16 sps:$4 sm:$0xff]   ;;  %v14481_v13 = vld [vmem:[%s16786_s12 + $0x3c8] ss:$16 sps:$4 sm:$0xff]  }
  0x59   : > { %9899 = vmatmul.mubr.bf16.vlgmr.msra.gmra.mrb[0].mxu0 %v16868_v15  ;;  %10883 = vmatmul.mubr.bf16.vlgmr.msra.gmra.mrb[0].mxu1 %v16868_v15 }
  0x5a   : > { %9908 = vmatpush1.bf16.msra.mxu0 %v14394_v14  ;;  %10892 = vmatpush1.bf16.msra.mxu1 %v14397_v16  ;;  %v14486_v14 = vld [vmem:[%s16786_s12 + $0x3e4] ss:$16 sps:$4 sm:$0xff]   ;;  %v14489_v16 = vld [vmem:[%s16786_s12 + $0x3ec] ss:$16 sps:$4 sm:$0xff]  }
  0x5b   : > { %9909 = vmatprep.subr.bf16.mxu0 %v14402_v17  ;;  %10893 = vmatprep.subr.bf16.mxu1 %v14405_v18  ;;  %v16934_v17 = vrot.slane %v1844_v11, %v16836_v51  ;;  %v14484_v18 = vld [vmem:[%s16786_s12 + $0x3e0] ss:$16 sps:$4 sm:$0xff]   ;;  %v14565_v11 = vld [vmem:[%s16786_s12 + $0x588] ss:$16 sps:$4 sm:$0xff]  }
  0x5c   : > { %9939 = vmatprep.mubr.bf16.mxu0 %v1891_v19  ;;  %10923 = vmatprep.mubr.bf16.mxu1 %v1891_v19  ;;  %v14492_v19 = vld [vmem:[%s16786_s12 + $0x404] ss:$16 sps:$4 sm:$0xff]  }
  0x5e   : > { %9910 = vmatpush1.bf16.msra.mxu0 %v14400_v20  ;;  %10894 = vmatpush1.bf16.msra.mxu1 %v14403_v21  ;;  %v14495_v20 = vld [vmem:[%s16786_s12 + $0x40c] ss:$16 sps:$4 sm:$0xff]   ;;  %v1860_v21 = vcombine.high %v16934_v17, %v16934_v17 }
  0x5f   : > { %9911 = vmatprep.subr.bf16.mxu0 %v14408_v22  ;;  %10895 = vmatprep.subr.bf16.mxu1 %v14411_v23  ;;  %v14490_v22 = vld [vmem:[%s16786_s12 + $0x400] ss:$16 sps:$4 sm:$0xff]   ;;  %v1889_v23 = vcombine.high %v16868_v15, %v16868_v15  ;;  %v14499_v15 = vld [vmem:[%s16786_s12 + $0x428] ss:$16 sps:$4 sm:$0xff]  }
  0x62   : > { %9912 = vmatpush1.bf16.msra.mxu0 %v14406_v24  ;;  %10896 = vmatpush1.bf16.msra.mxu1 %v14409_v25  ;;  %v14493_v24 = vld [vmem:[%s16786_s12 + $0x408] ss:$16 sps:$4 sm:$0xff]   ;;  %v14498_v25 = vld [vmem:[%s16786_s12 + $0x424] ss:$16 sps:$4 sm:$0xff]  }
  0x63   : > { %9913 = vmatprep.subr.bf16.mxu0 %v14414_v26  ;;  %10897 = vmatprep.subr.bf16.mxu1 %v14417_v27  ;;  %v14501_v26 = vld [vmem:[%s16786_s12 + $0x42c] ss:$16 sps:$4 sm:$0xff]   ;;  %v16949_v27 = vrot.slane %v1860_v21, %v16836_v51  ;;  %v14582_v21 = vld [vmem:[%s16786_s12 + $0x5e4] ss:$16 sps:$4 sm:$0xff]  }
  0x66   : > { %9914 = vmatpush1.bf16.msra.mxu0 %v14412_v28  ;;  %10898 = vmatpush1.bf16.msra.mxu1 %v14415_v29  ;;  %v14496_v28 = vld [vmem:[%s16786_s12 + $0x420] ss:$16 sps:$4 sm:$0xff]   ;;  %v14504_v29 = vld [vmem:[%s16786_s12 + $0x444] ss:$16 sps:$4 sm:$0xff]  }
  0x67   : > { %9915 = vmatprep.subr.bf16.mxu0 %v14420_v30  ;;  %10899 = vmatprep.subr.bf16.mxu1 %v14423_v31  ;;  %v14507_v30 = vld [vmem:[%s16786_s12 + $0x44c] ss:$16 sps:$4 sm:$0xff]   ;;  %v14502_v31 = vld [vmem:[%s16786_s12 + $0x440] ss:$16 sps:$4 sm:$0xff]  }
  0x6a   : > { %9916 = vmatpush1.bf16.msra.mxu0 %v14418_v32  ;;  %10900 = vmatpush1.bf16.msra.mxu1 %v14421_v33  ;;  %v14505_v32 = vld [vmem:[%s16786_s12 + $0x448] ss:$16 sps:$4 sm:$0xff]   ;;  %v14510_v33 = vld [vmem:[%s16786_s12 + $0x464] ss:$16 sps:$4 sm:$0xff]  }
  0x6b   : > { %9917 = vmatprep.subr.bf16.mxu0 %v14426_v34  ;;  %10901 = vmatprep.subr.bf16.mxu1 %v14429_v35  ;;  %v14513_v34 = vld [vmem:[%s16786_s12 + $0x46c] ss:$16 sps:$4 sm:$0xff]   ;;  %v14508_v35 = vld [vmem:[%s16786_s12 + $0x460] ss:$16 sps:$4 sm:$0xff]  }
  0x6e   : > { %9918 = vmatpush1.bf16.msra.mxu0 %v14424_v36  ;;  %10902 = vmatpush1.bf16.msra.mxu1 %v14427_v37  ;;  %v14511_v36 = vld [vmem:[%s16786_s12 + $0x468] ss:$16 sps:$4 sm:$0xff]   ;;  %v14516_v37 = vld [vmem:[%s16786_s12 + $0x484] ss:$16 sps:$4 sm:$0xff]  }
  0x6f   : > { %9919 = vmatprep.subr.bf16.mxu0 %v14432_v38  ;;  %10903 = vmatprep.subr.bf16.mxu1 %v14435_v39  ;;  %v14519_v38 = vld [vmem:[%s16786_s12 + $0x48c] ss:$16 sps:$4 sm:$0xff]   ;;  %v14514_v39 = vld [vmem:[%s16786_s12 + $0x480] ss:$16 sps:$4 sm:$0xff]  }
  0x72   : > { %9920 = vmatpush1.bf16.msra.mxu0 %v14430_v40  ;;  %10904 = vmatpush1.bf16.msra.mxu1 %v14433_v41  ;;  %v14517_v40 = vld [vmem:[%s16786_s12 + $0x488] ss:$16 sps:$4 sm:$0xff]   ;;  %v14522_v41 = vld [vmem:[%s16786_s12 + $0x4a4] ss:$16 sps:$4 sm:$0xff]  }
  0x73   : > { %9921 = vmatprep.subr.bf16.mxu0 %v14438_v42  ;;  %10905 = vmatprep.subr.bf16.mxu1 %v14441_v43  ;;  %v14525_v42 = vld [vmem:[%s16786_s12 + $0x4ac] ss:$16 sps:$4 sm:$0xff]   ;;  %v14520_v43 = vld [vmem:[%s16786_s12 + $0x4a0] ss:$16 sps:$4 sm:$0xff]  }
  0x76   : > { %9922 = vmatpush1.bf16.msra.mxu0 %v14436_v44  ;;  %10906 = vmatpush1.bf16.msra.mxu1 %v14439_v46  ;;  %v14523_v44 = vld [vmem:[%s16786_s12 + $0x4a8] ss:$16 sps:$4 sm:$0xff]   ;;  %v14528_v46 = vld [vmem:[%s16786_s12 + $0x4c4] ss:$16 sps:$4 sm:$0xff]  }
  0x77   : > { %9923 = vmatprep.subr.bf16.mxu0 %v14444_v47  ;;  %10907 = vmatprep.subr.bf16.mxu1 %v14447_v48  ;;  %v14531_v47 = vld [vmem:[%s16786_s12 + $0x4cc] ss:$16 sps:$4 sm:$0xff]   ;;  %v14526_v48 = vld [vmem:[%s16786_s12 + $0x4c0] ss:$16 sps:$4 sm:$0xff]  }
  0x7a   : > { %9924 = vmatpush1.bf16.msra.mxu0 %v14442_v49  ;;  %10908 = vmatpush1.bf16.msra.mxu1 %v14445_v50  ;;  %v14529_v49 = vld [vmem:[%s16786_s12 + $0x4c8] ss:$16 sps:$4 sm:$0xff]   ;;  %v14534_v50 = vld [vmem:[%s16786_s12 + $0x4e4] ss:$16 sps:$4 sm:$0xff]  }
  0x7b   : > { %9925 = vmatprep.subr.bf16.mxu0 %v14450_v52  ;;  %10909 = vmatprep.subr.bf16.mxu1 %v14453_v53  ;;  %v14537_v52 = vld [vmem:[%s16786_s12 + $0x4ec] ss:$16 sps:$4 sm:$0xff]   ;;  %v14532_v53 = vld [vmem:[%s16786_s12 + $0x4e0] ss:$16 sps:$4 sm:$0xff]  }
  0x7e   : > { %9926 = vmatpush1.bf16.msra.mxu0 %v14448_v55  ;;  %10910 = vmatpush1.bf16.msra.mxu1 %v14451_v56  ;;  %v14535_v55 = vld [vmem:[%s16786_s12 + $0x4e8] ss:$16 sps:$4 sm:$0xff]   ;;  %v14540_v56 = vld [vmem:[%s16786_s12 + $0x504] ss:$16 sps:$4 sm:$0xff]  }
  0x7f   : > { %9927 = vmatprep.subr.bf16.mxu0 %v14456_v57  ;;  %10911 = vmatprep.subr.bf16.mxu1 %v14459_v58  ;;  %v14543_v57 = vld [vmem:[%s16786_s12 + $0x50c] ss:$16 sps:$4 sm:$0xff]   ;;  %v14538_v58 = vld [vmem:[%s16786_s12 + $0x500] ss:$16 sps:$4 sm:$0xff]  }
  0x82   : > { %9928 = vmatpush1.bf16.msra.mxu0 %v14454_v59  ;;  %10912 = vmatpush1.bf16.msra.mxu1 %v14457_v60  ;;  %v14541_v59 = vld [vmem:[%s16786_s12 + $0x508] ss:$16 sps:$4 sm:$0xff]   ;;  %v14546_v60 = vld [vmem:[%s16786_s12 + $0x524] ss:$16 sps:$4 sm:$0xff]  }
  0x83   : > { %9929 = vmatprep.subr.bf16.mxu0 %v14462_v61  ;;  %10913 = vmatprep.subr.bf16.mxu1 %v14465_v62  ;;  %v14549_v61 = vld [vmem:[%s16786_s12 + $0x52c] ss:$16 sps:$4 sm:$0xff]   ;;  %v14544_v62 = vld [vmem:[%s16786_s12 + $0x520] ss:$16 sps:$4 sm:$0xff]  }
  0x86   : > { %9930 = vmatpush1.bf16.msra.mxu0 %v14460_v63  ;;  %10914 = vmatpush1.bf16.msra.mxu1 %v14463_v0  ;;  %v14547_v63 = vld [vmem:[%s16786_s12 + $0x528] ss:$16 sps:$4 sm:$0xff]   ;;  %v14552_v0 = vld [vmem:[%s16786_s12 + $0x544] ss:$16 sps:$4 sm:$0xff]  }
  0x87   : > { %9931 = vmatprep.subr.bf16.mxu0 %v14468_v1  ;;  %10915 = vmatprep.subr.bf16.mxu1 %v14471_v2  ;;  %v14555_v1 = vld [vmem:[%s16786_s12 + $0x54c] ss:$16 sps:$4 sm:$0xff]   ;;  %v14550_v2 = vld [vmem:[%s16786_s12 + $0x540] ss:$16 sps:$4 sm:$0xff]  }
  0x8a   : > { %9932 = vmatpush1.bf16.msra.mxu0 %v14466_v3  ;;  %10916 = vmatpush1.bf16.msra.mxu1 %v14469_v4  ;;  %v14553_v3 = vld [vmem:[%s16786_s12 + $0x548] ss:$16 sps:$4 sm:$0xff]   ;;  %v14558_v4 = vld [vmem:[%s16786_s12 + $0x564] ss:$16 sps:$4 sm:$0xff]  }
  0x8b   : > { %9933 = vmatprep.subr.bf16.mxu0 %v14474_v5  ;;  %10917 = vmatprep.subr.bf16.mxu1 %v14477_v6  ;;  %v14561_v5 = vld [vmem:[%s16786_s12 + $0x56c] ss:$16 sps:$4 sm:$0xff]   ;;  %v14556_v6 = vld [vmem:[%s16786_s12 + $0x560] ss:$16 sps:$4 sm:$0xff]  }
  0x8e   : > { %9934 = vmatpush1.bf16.msra.mxu0 %v14472_v7  ;;  %10918 = vmatpush1.bf16.msra.mxu1 %v14475_v8  ;;  %v14559_v7 = vld [vmem:[%s16786_s12 + $0x568] ss:$16 sps:$4 sm:$0xff]   ;;  %v14564_v8 = vld [vmem:[%s16786_s12 + $0x584] ss:$16 sps:$4 sm:$0xff]  }
  0x8f   : > { %9935 = vmatprep.subr.bf16.mxu0 %v14480_v9  ;;  %10919 = vmatprep.subr.bf16.mxu1 %v14483_v10  ;;  %v14567_v9 = vld [vmem:[%s16786_s12 + $0x58c] ss:$16 sps:$4 sm:$0xff]   ;;  %v14562_v10 = vld [vmem:[%s16786_s12 + $0x580] ss:$16 sps:$4 sm:$0xff]  }
  0x92   : > { %9936 = vmatpush1.bf16.msra.mxu0 %v14478_v12  ;;  %10920 = vmatpush1.bf16.msra.mxu1 %v14481_v13  ;;  %v14570_v12 = vld [vmem:[%s16786_s12 + $0x5a4] ss:$16 sps:$4 sm:$0xff]   ;;  %v14573_v13 = vld [vmem:[%s16786_s12 + $0x5ac] ss:$16 sps:$4 sm:$0xff]  }
  0x93   : > { %9937 = vmatprep.subr.bf16.mxu0 %v14486_v14  ;;  %10921 = vmatprep.subr.bf16.mxu1 %v14489_v16  ;;  %v14568_v14 = vld [vmem:[%s16786_s12 + $0x5a0] ss:$16 sps:$4 sm:$0xff]   ;;  %v14571_v16 = vld [vmem:[%s16786_s12 + $0x5a8] ss:$16 sps:$4 sm:$0xff]  }
  0x96   : > { %9938 = vmatpush1.bf16.msra.mxu0 %v14484_v18  ;;  %10922 = vmatpush1.bf16.msra.mxu1 %v14487_v54  ;;  %v14576_v18 = vld [vmem:[%s16786_s12 + $0x5c4] ss:$16 sps:$4 sm:$0xff]   ;;  %v14579_v54 = vld [vmem:[%s16786_s12 + $0x5cc] ss:$16 sps:$4 sm:$0xff]  }
  0x97   : > { %9948 = vmatprep.subr.bf16.mxu0 %v14492_v19  ;;  %10932 = vmatprep.subr.bf16.mxu1 %v14495_v20  ;;  %v14574_v19 = vld [vmem:[%s16786_s12 + $0x5c0] ss:$16 sps:$4 sm:$0xff]   ;;  %v14577_v20 = vld [vmem:[%s16786_s12 + $0x5c8] ss:$16 sps:$4 sm:$0xff]  }
  0x99   : > { %9940 = vmatmul.mubr.bf16.vlgmr.msra.gmra.mrb[0].mxu0 %v1889_v23  ;;  %10924 = vmatmul.mubr.bf16.vlgmr.msra.gmra.mrb[0].mxu1 %v1889_v23  ;;  %v14580_v23 = vld [vmem:[%s16786_s12 + $0x5e0] ss:$16 sps:$4 sm:$0xff]  }
  0x9a   : > { %9949 = vmatpush1.bf16.msra.mxu0 %v14490_v22  ;;  %10933 = vmatpush1.bf16.msra.mxu1 %v14493_v24  ;;  %v14585_v22 = vld [vmem:[%s16786_s12 + $0x5ec] ss:$16 sps:$4 sm:$0xff]   ;;  %v14583_v24 = vld [vmem:[%s16786_s12 + $0x5e8] ss:$16 sps:$4 sm:$0xff]  }
  0x9b   : > { %9950 = vmatprep.subr.bf16.mxu0 %v14498_v25  ;;  %10934 = vmatprep.subr.bf16.mxu1 %v14501_v26  ;;  %v14589_v25 = vld [vmem:[%s16786_s12 + $0x604] ss:$16 sps:$4 sm:$0xff]   ;;  %v14592_v26 = vld [vmem:[%s16786_s12 + $0x60c] ss:$16 sps:$4 sm:$0xff]  }
  0x9c   : > { %9980 = vmatprep.mubr.bf16.mxu0 %v16949_v27  ;;  %10964 = vmatprep.mubr.bf16.mxu1 %v16949_v27 }
  0x9e   : > { %9951 = vmatpush1.bf16.msra.mxu0 %v14496_v28  ;;  %10935 = vmatpush1.bf16.msra.mxu1 %v14499_v15  ;;  %v14587_v28 = vld [vmem:[%s16786_s12 + $0x600] ss:$16 sps:$4 sm:$0xff]   ;;  %v17016_v15 = vrot.slane %v16934_v17, %v16836_v51 }
  0x9f   : > { %9952 = vmatprep.subr.bf16.mxu0 %v14504_v29  ;;  %10936 = vmatprep.subr.bf16.mxu1 %v14507_v30  ;;  %v14590_v29 = vld [vmem:[%s16786_s12 + $0x608] ss:$16 sps:$4 sm:$0xff]   ;;  %v14595_v30 = vld [vmem:[%s16786_s12 + $0x624] ss:$16 sps:$4 sm:$0xff]   ;;  %v14593_v17 = vld [vmem:[%s16786_s12 + $0x620] ss:$16 sps:$4 sm:$0xff]  }
  0xa2   : > { %9953 = vmatpush1.bf16.msra.mxu0 %v14502_v31  ;;  %10937 = vmatpush1.bf16.msra.mxu1 %v14505_v32  ;;  %v14598_v31 = vld [vmem:[%s16786_s12 + $0x62c] ss:$16 sps:$4 sm:$0xff]   ;;  %v1892_v32 = vcombine.high %v16949_v27, %v16949_v27  ;;  %v14599_v27 = vld [vmem:[%s16786_s12 + $0x640] ss:$16 sps:$4 sm:$0xff]  }
  0xa3   : > { %9954 = vmatprep.subr.bf16.mxu0 %v14510_v33  ;;  %10938 = vmatprep.subr.bf16.mxu1 %v14513_v34  ;;  %v14596_v33 = vld [vmem:[%s16786_s12 + $0x628] ss:$16 sps:$4 sm:$0xff]   ;;  %v14601_v34 = vld [vmem:[%s16786_s12 + $0x644] ss:$16 sps:$4 sm:$0xff]  }
  0xa6   : > { %9955 = vmatpush1.bf16.msra.mxu0 %v14508_v35  ;;  %10939 = vmatpush1.bf16.msra.mxu1 %v14511_v36  ;;  %v14604_v35 = vld [vmem:[%s16786_s12 + $0x64c] ss:$16 sps:$4 sm:$0xff]   ;;  %v14602_v36 = vld [vmem:[%s16786_s12 + $0x648] ss:$16 sps:$4 sm:$0xff]  }
  0xa7   : > { %9956 = vmatprep.subr.bf16.mxu0 %v14516_v37  ;;  %10940 = vmatprep.subr.bf16.mxu1 %v14519_v38  ;;  %v14607_v37 = vld [vmem:[%s16786_s12 + $0x664] ss:$16 sps:$4 sm:$0xff]   ;;  %v14610_v38 = vld [vmem:[%s16786_s12 + $0x66c] ss:$16 sps:$4 sm:$0xff]  }
  0xaa   : > { %9957 = vmatpush1.bf16.msra.mxu0 %v14514_v39  ;;  %10941 = vmatpush1.bf16.msra.mxu1 %v14517_v40  ;;  %v14605_v39 = vld [vmem:[%s16786_s12 + $0x660] ss:$16 sps:$4 sm:$0xff]   ;;  %v14608_v40 = vld [vmem:[%s16786_s12 + $0x668] ss:$16 sps:$4 sm:$0xff]  }
  0xab   : > { %9958 = vmatprep.subr.bf16.mxu0 %v14522_v41  ;;  %10942 = vmatprep.subr.bf16.mxu1 %v14525_v42  ;;  %v14613_v41 = vld [vmem:[%s16786_s12 + $0x684] ss:$16 sps:$4 sm:$0xff]   ;;  %v14616_v42 = vld [vmem:[%s16786_s12 + $0x68c] ss:$16 sps:$4 sm:$0xff]  }
  0xae   : > { %9959 = vmatpush1.bf16.msra.mxu0 %v14520_v43  ;;  %10943 = vmatpush1.bf16.msra.mxu1 %v14523_v44  ;;  %v14611_v43 = vld [vmem:[%s16786_s12 + $0x680] ss:$16 sps:$4 sm:$0xff]   ;;  %v14614_v44 = vld [vmem:[%s16786_s12 + $0x688] ss:$16 sps:$4 sm:$0xff]  }
  0xaf   : > { %9960 = vmatprep.subr.bf16.mxu0 %v14528_v46  ;;  %10944 = vmatprep.subr.bf16.mxu1 %v14531_v47  ;;  %v14619_v46 = vld [vmem:[%s16786_s12 + $0x6a4] ss:$16 sps:$4 sm:$0xff]   ;;  %v14622_v47 = vld [vmem:[%s16786_s12 + $0x6ac] ss:$16 sps:$4 sm:$0xff]  }
  0xb2   : > { %9961 = vmatpush1.bf16.msra.mxu0 %v14526_v48  ;;  %10945 = vmatpush1.bf16.msra.mxu1 %v14529_v49  ;;  %v14617_v48 = vld [vmem:[%s16786_s12 + $0x6a0] ss:$16 sps:$4 sm:$0xff]   ;;  %v14620_v49 = vld [vmem:[%s16786_s12 + $0x6a8] ss:$16 sps:$4 sm:$0xff]  }
  0xb3   : > { %9962 = vmatprep.subr.bf16.mxu0 %v14534_v50  ;;  %10946 = vmatprep.subr.bf16.mxu1 %v14537_v52  ;;  %v14625_v50 = vld [vmem:[%s16786_s12 + $0x6c4] ss:$16 sps:$4 sm:$0xff]   ;;  %v14628_v52 = vld [vmem:[%s16786_s12 + $0x6cc] ss:$16 sps:$4 sm:$0xff]  }
  0xb6   : > { %9963 = vmatpush1.bf16.msra.mxu0 %v14532_v53  ;;  %10947 = vmatpush1.bf16.msra.mxu1 %v14535_v55  ;;  %v14623_v53 = vld [vmem:[%s16786_s12 + $0x6c0] ss:$16 sps:$4 sm:$0xff]   ;;  %v14626_v55 = vld [vmem:[%s16786_s12 + $0x6c8] ss:$16 sps:$4 sm:$0xff]  }
  0xb7   : > { %9964 = vmatprep.subr.bf16.mxu0 %v14540_v56  ;;  %10948 = vmatprep.subr.bf16.mxu1 %v14543_v57  ;;  %v14631_v56 = vld [vmem:[%s16786_s12 + $0x6e4] ss:$16 sps:$4 sm:$0xff]   ;;  %v14634_v57 = vld [vmem:[%s16786_s12 + $0x6ec] ss:$16 sps:$4 sm:$0xff]  }
  0xba   : > { %9965 = vmatpush1.bf16.msra.mxu0 %v14538_v58  ;;  %10949 = vmatpush1.bf16.msra.mxu1 %v14541_v59  ;;  %v14629_v58 = vld [vmem:[%s16786_s12 + $0x6e0] ss:$16 sps:$4 sm:$0xff]   ;;  %v14632_v59 = vld [vmem:[%s16786_s12 + $0x6e8] ss:$16 sps:$4 sm:$0xff]  }
  0xbb   : > { %9966 = vmatprep.subr.bf16.mxu0 %v14546_v60  ;;  %10950 = vmatprep.subr.bf16.mxu1 %v14549_v61  ;;  %v14637_v60 = vld [vmem:[%s16786_s12 + $0x704] ss:$16 sps:$4 sm:$0xff]   ;;  %v14640_v61 = vld [vmem:[%s16786_s12 + $0x70c] ss:$16 sps:$4 sm:$0xff]  }
  0xbe   : > { %9967 = vmatpush1.bf16.msra.mxu0 %v14544_v62  ;;  %10951 = vmatpush1.bf16.msra.mxu1 %v14547_v63  ;;  %v14635_v62 = vld [vmem:[%s16786_s12 + $0x700] ss:$16 sps:$4 sm:$0xff]   ;;  %v14638_v63 = vld [vmem:[%s16786_s12 + $0x708] ss:$16 sps:$4 sm:$0xff]  }
  0xbf   : > { %9968 = vmatprep.subr.bf16.mxu0 %v14552_v0  ;;  %10952 = vmatprep.subr.bf16.mxu1 %v14555_v1  ;;  %v14643_v0 = vld [vmem:[%s16786_s12 + $0x724] ss:$16 sps:$4 sm:$0xff]   ;;  %v14646_v1 = vld [vmem:[%s16786_s12 + $0x72c] ss:$16 sps:$4 sm:$0xff]  }
  0xc2   : > { %9969 = vmatpush1.bf16.msra.mxu0 %v14550_v2  ;;  %10953 = vmatpush1.bf16.msra.mxu1 %v14553_v3  ;;  %v14641_v2 = vld [vmem:[%s16786_s12 + $0x720] ss:$16 sps:$4 sm:$0xff]   ;;  %v14644_v3 = vld [vmem:[%s16786_s12 + $0x728] ss:$16 sps:$4 sm:$0xff]  }
  0xc3   : > { %9970 = vmatprep.subr.bf16.mxu0 %v14558_v4  ;;  %10954 = vmatprep.subr.bf16.mxu1 %v14561_v5  ;;  %v14649_v4 = vld [vmem:[%s16786_s12 + $0x744] ss:$16 sps:$4 sm:$0xff]   ;;  %v14652_v5 = vld [vmem:[%s16786_s12 + $0x74c] ss:$16 sps:$4 sm:$0xff]  }
  0xc6   : > { %9971 = vmatpush1.bf16.msra.mxu0 %v14556_v6  ;;  %10955 = vmatpush1.bf16.msra.mxu1 %v14559_v7  ;;  %v14647_v6 = vld [vmem:[%s16786_s12 + $0x740] ss:$16 sps:$4 sm:$0xff]   ;;  %v14650_v7 = vld [vmem:[%s16786_s12 + $0x748] ss:$16 sps:$4 sm:$0xff]  }
  0xc7   : > { %9972 = vmatprep.subr.bf16.mxu0 %v14564_v8  ;;  %10956 = vmatprep.subr.bf16.mxu1 %v14567_v9  ;;  %v14655_v8 = vld [vmem:[%s16786_s12 + $0x764] ss:$16 sps:$4 sm:$0xff]   ;;  %v14658_v9 = vld [vmem:[%s16786_s12 + $0x76c] ss:$16 sps:$4 sm:$0xff]  }
  0xca   : > { %9973 = vmatpush1.bf16.msra.mxu0 %v14562_v10  ;;  %10957 = vmatpush1.bf16.msra.mxu1 %v14565_v11  ;;  %v14653_v10 = vld [vmem:[%s16786_s12 + $0x760] ss:$16 sps:$4 sm:$0xff]   ;;  %v14656_v11 = vld [vmem:[%s16786_s12 + $0x768] ss:$16 sps:$4 sm:$0xff]  }
  0xcb   : > { %9974 = vmatprep.subr.bf16.mxu0 %v14570_v12  ;;  %10958 = vmatprep.subr.bf16.mxu1 %v14573_v13  ;;  %v14661_v12 = vld [vmem:[%s16786_s12 + $0x784] ss:$16 sps:$4 sm:$0xff]   ;;  %v14664_v13 = vld [vmem:[%s16786_s12 + $0x78c] ss:$16 sps:$4 sm:$0xff]  }
  0xce   : > { %9975 = vmatpush1.bf16.msra.mxu0 %v14568_v14  ;;  %10959 = vmatpush1.bf16.msra.mxu1 %v14571_v16  ;;  %v14659_v14 = vld [vmem:[%s16786_s12 + $0x780] ss:$16 sps:$4 sm:$0xff]   ;;  %v14662_v16 = vld [vmem:[%s16786_s12 + $0x788] ss:$16 sps:$4 sm:$0xff]  }
  0xcf   : > { %9976 = vmatprep.subr.bf16.mxu0 %v14576_v18  ;;  %10960 = vmatprep.subr.bf16.mxu1 %v14579_v54  ;;  %v14667_v18 = vld [vmem:[%s16786_s12 + $0x7a4] ss:$16 sps:$4 sm:$0xff]   ;;  %v14670_v54 = vld [vmem:[%s16786_s12 + $0x7ac] ss:$16 sps:$4 sm:$0xff]  }
  0xd2   : > { %9977 = vmatpush1.bf16.msra.mxu0 %v14574_v19  ;;  %10961 = vmatpush1.bf16.msra.mxu1 %v14577_v20  ;;  %v14665_v19 = vld [vmem:[%s16786_s12 + $0x7a0] ss:$16 sps:$4 sm:$0xff]   ;;  %v14668_v20 = vld [vmem:[%s16786_s12 + $0x7a8] ss:$16 sps:$4 sm:$0xff]  }
  0xd3   : > { %9978 = vmatprep.subr.bf16.mxu0 %v14582_v21  ;;  %10962 = vmatprep.subr.bf16.mxu1 %v14585_v22  ;;  %v14673_v21 = vld [vmem:[%s16786_s12 + $0x7c4] ss:$16 sps:$4 sm:$0xff]   ;;  %v14676_v22 = vld [vmem:[%s16786_s12 + $0x7cc] ss:$16 sps:$4 sm:$0xff]  }
  0xd6   : > { %9979 = vmatpush1.bf16.msra.mxu0 %v14580_v23  ;;  %10963 = vmatpush1.bf16.msra.mxu1 %v14583_v24  ;;  %v17078_v23 = vld.sshfl [vmem:[%s16781_s8 + $0x8] sm:$0xff pattern:$0x75316420]  ;;  %v14671_v24 = vld [vmem:[%s16786_s12 + $0x7c0] ss:$16 sps:$4 sm:$0xff]  }
  0xd7   : > { %9989 = vmatprep.subr.bf16.mxu0 %v14589_v25  ;;  %10973 = vmatprep.subr.bf16.mxu1 %v14592_v26  ;;  %v14674_v25 = vld [vmem:[%s16786_s12 + $0x7c8] ss:$16 sps:$4 sm:$0xff]   ;;  %v14679_v26 = vld [vmem:[%s16786_s12 + $0x7e4] ss:$16 sps:$4 sm:$0xff]  }
  0xd9   : > { %9981 = vmatmul.mubr.bf16.vlgmr.msra.gmra.mrb[0].mxu0 %v17016_v15  ;;  %10965 = vmatmul.mubr.bf16.vlgmr.msra.gmra.mrb[0].mxu1 %v17016_v15 }
  0xda   : > { %9990 = vmatpush1.bf16.msra.mxu0 %v14587_v28  ;;  %10974 = vmatpush1.bf16.msra.mxu1 %v14590_v29  ;;  %v14682_v28 = vld [vmem:[%s16786_s12 + $0x7ec] ss:$16 sps:$4 sm:$0xff]   ;;  %v14677_v29 = vld [vmem:[%s16786_s12 + $0x7e0] ss:$16 sps:$4 sm:$0xff]  }
  0xdb   : > { %9991 = vmatprep.subr.bf16.mxu0 %v14595_v30  ;;  %10975 = vmatprep.subr.bf16.mxu1 %v14598_v31  ;;  %v14680_v30 = vld [vmem:[%s16786_s12 + $0x7e8] ss:$16 sps:$4 sm:$0xff]   ;;  %v14685_v31 = vld [vmem:[%s16786_s12 + $0x804] ss:$16 sps:$4 sm:$0xff]  }
  0xdc   : > { %10021 = vmatprep.mubr.bf16.mxu0 %v1892_v32  ;;  %11005 = vmatprep.mubr.bf16.mxu1 %v1892_v32  ;;  %v14688_v32 = vld [vmem:[%s16786_s12 + $0x80c] ss:$16 sps:$4 sm:$0xff]  }
  0xde   : > { %9992 = vmatpush1.bf16.msra.mxu0 %v14593_v17  ;;  %10976 = vmatpush1.bf16.msra.mxu1 %v14596_v33  ;;  %v1908_v17 = vcombine.high %v17078_v23, %v17078_v23  ;;  %v1890_v33 = vcombine.high %v17016_v15, %v17016_v15  ;;  %v14689_v15 = vld [vmem:[%s16786_s12 + $0x820] ss:$16 sps:$4 sm:$0xff]  }
  0xdf   : > { %9993 = vmatprep.subr.bf16.mxu0 %v14601_v34  ;;  %10977 = vmatprep.subr.bf16.mxu1 %v14604_v35  ;;  %v14683_v34 = vld [vmem:[%s16786_s12 + $0x800] ss:$16 sps:$4 sm:$0xff]   ;;  %v14686_v35 = vld [vmem:[%s16786_s12 + $0x808] ss:$16 sps:$4 sm:$0xff]  }
  0xe2   : > { %9994 = vmatpush1.bf16.msra.mxu0 %v14599_v27  ;;  %10978 = vmatpush1.bf16.msra.mxu1 %v14602_v36  ;;  %v14691_v27 = vld [vmem:[%s16786_s12 + $0x824] ss:$16 sps:$4 sm:$0xff]   ;;  %v14694_v36 = vld [vmem:[%s16786_s12 + $0x82c] ss:$16 sps:$4 sm:$0xff]  }
  0xe3   : > { %9995 = vmatprep.subr.bf16.mxu0 %v14607_v37  ;;  %10979 = vmatprep.subr.bf16.mxu1 %v14610_v38  ;;  %v17097_v37 = vrot.slane %v1908_v17, %v16836_v51  ;;  %v14692_v38 = vld [vmem:[%s16786_s12 + $0x828] ss:$16 sps:$4 sm:$0xff]   ;;  %v14775_v17 = vld [vmem:[%s16786_s12 + $0x9e4] ss:$16 sps:$4 sm:$0xff]  }
  0xe6   : > { %9996 = vmatpush1.bf16.msra.mxu0 %v14605_v39  ;;  %10980 = vmatpush1.bf16.msra.mxu1 %v14608_v40  ;;  %v14697_v39 = vld [vmem:[%s16786_s12 + $0x844] ss:$16 sps:$4 sm:$0xff]   ;;  %v14700_v40 = vld [vmem:[%s16786_s12 + $0x84c] ss:$16 sps:$4 sm:$0xff]  }
  0xe7   : > { %9997 = vmatprep.subr.bf16.mxu0 %v14613_v41  ;;  %10981 = vmatprep.subr.bf16.mxu1 %v14616_v42  ;;  %v14695_v41 = vld [vmem:[%s16786_s12 + $0x840] ss:$16 sps:$4 sm:$0xff]   ;;  %v14698_v42 = vld [vmem:[%s16786_s12 + $0x848] ss:$16 sps:$4 sm:$0xff]  }
  0xea   : > { %9998 = vmatpush1.bf16.msra.mxu0 %v14611_v43  ;;  %10982 = vmatpush1.bf16.msra.mxu1 %v14614_v44  ;;  %v14703_v43 = vld [vmem:[%s16786_s12 + $0x864] ss:$16 sps:$4 sm:$0xff]   ;;  %v14706_v44 = vld [vmem:[%s16786_s12 + $0x86c] ss:$16 sps:$4 sm:$0xff]  }
  0xeb   : > { %9999 = vmatprep.subr.bf16.mxu0 %v14619_v46  ;;  %10983 = vmatprep.subr.bf16.mxu1 %v14622_v47  ;;  %v14701_v46 = vld [vmem:[%s16786_s12 + $0x860] ss:$16 sps:$4 sm:$0xff]   ;;  %v14704_v47 = vld [vmem:[%s16786_s12 + $0x868] ss:$16 sps:$4 sm:$0xff]  }
  0xee   : > { %10000 = vmatpush1.bf16.msra.mxu0 %v14617_v48  ;;  %10984 = vmatpush1.bf16.msra.mxu1 %v14620_v49  ;;  %v14709_v48 = vld [vmem:[%s16786_s12 + $0x884] ss:$16 sps:$4 sm:$0xff]   ;;  %v14712_v49 = vld [vmem:[%s16786_s12 + $0x88c] ss:$16 sps:$4 sm:$0xff]  }
  0xef   : > { %10001 = vmatprep.subr.bf16.mxu0 %v14625_v50  ;;  %10985 = vmatprep.subr.bf16.mxu1 %v14628_v52  ;;  %v14707_v50 = vld [vmem:[%s16786_s12 + $0x880] ss:$16 sps:$4 sm:$0xff]   ;;  %v14710_v52 = vld [vmem:[%s16786_s12 + $0x888] ss:$16 sps:$4 sm:$0xff]  }
  0xf2   : > { %10002 = vmatpush1.bf16.msra.mxu0 %v14623_v53  ;;  %10986 = vmatpush1.bf16.msra.mxu1 %v14626_v55  ;;  %v14715_v53 = vld [vmem:[%s16786_s12 + $0x8a4] ss:$16 sps:$4 sm:$0xff]   ;;  %v14718_v55 = vld [vmem:[%s16786_s12 + $0x8ac] ss:$16 sps:$4 sm:$0xff]  }
  0xf3   : > { %10003 = vmatprep.subr.bf16.mxu0 %v14631_v56  ;;  %10987 = vmatprep.subr.bf16.mxu1 %v14634_v57  ;;  %v14713_v56 = vld [vmem:[%s16786_s12 + $0x8a0] ss:$16 sps:$4 sm:$0xff]   ;;  %v14716_v57 = vld [vmem:[%s16786_s12 + $0x8a8] ss:$16 sps:$4 sm:$0xff]  }
  0xf6   : > { %10004 = vmatpush1.bf16.msra.mxu0 %v14629_v58  ;;  %10988 = vmatpush1.bf16.msra.mxu1 %v14632_v59  ;;  %v14721_v58 = vld [vmem:[%s16786_s12 + $0x8c4] ss:$16 sps:$4 sm:$0xff]   ;;  %v14724_v59 = vld [vmem:[%s16786_s12 + $0x8cc] ss:$16 sps:$4 sm:$0xff]  }
  0xf7   : > { %10005 = vmatprep.subr.bf16.mxu0 %v14637_v60  ;;  %10989 = vmatprep.subr.bf16.mxu1 %v14640_v61  ;;  %v14719_v60 = vld [vmem:[%s16786_s12 + $0x8c0] ss:$16 sps:$4 sm:$0xff]   ;;  %v14722_v61 = vld [vmem:[%s16786_s12 + $0x8c8] ss:$16 sps:$4 sm:$0xff]  }
  0xfa   : > { %10006 = vmatpush1.bf16.msra.mxu0 %v14635_v62  ;;  %10990 = vmatpush1.bf16.msra.mxu1 %v14638_v63  ;;  %v14727_v62 = vld [vmem:[%s16786_s12 + $0x8e4] ss:$16 sps:$4 sm:$0xff]   ;;  %v14730_v63 = vld [vmem:[%s16786_s12 + $0x8ec] ss:$16 sps:$4 sm:$0xff]  }
  0xfb   : > { %10007 = vmatprep.subr.bf16.mxu0 %v14643_v0  ;;  %10991 = vmatprep.subr.bf16.mxu1 %v14646_v1  ;;  %v14725_v0 = vld [vmem:[%s16786_s12 + $0x8e0] ss:$16 sps:$4 sm:$0xff]   ;;  %v14728_v1 = vld [vmem:[%s16786_s12 + $0x8e8] ss:$16 sps:$4 sm:$0xff]  }
  0xfe   : > { %10008 = vmatpush1.bf16.msra.mxu0 %v14641_v2  ;;  %10992 = vmatpush1.bf16.msra.mxu1 %v14644_v3  ;;  %v14733_v2 = vld [vmem:[%s16786_s12 + $0x904] ss:$16 sps:$4 sm:$0xff]   ;;  %v14736_v3 = vld [vmem:[%s16786_s12 + $0x90c] ss:$16 sps:$4 sm:$0xff]  }
  0xff   : > { %10009 = vmatprep.subr.bf16.mxu0 %v14649_v4  ;;  %10993 = vmatprep.subr.bf16.mxu1 %v14652_v5  ;;  %v14731_v4 = vld [vmem:[%s16786_s12 + $0x900] ss:$16 sps:$4 sm:$0xff]   ;;  %v14734_v5 = vld [vmem:[%s16786_s12 + $0x908] ss:$16 sps:$4 sm:$0xff]  }
 0x102   : > { %10010 = vmatpush1.bf16.msra.mxu0 %v14647_v6  ;;  %10994 = vmatpush1.bf16.msra.mxu1 %v14650_v7  ;;  %v14739_v6 = vld [vmem:[%s16786_s12 + $0x924] ss:$16 sps:$4 sm:$0xff]   ;;  %v14742_v7 = vld [vmem:[%s16786_s12 + $0x92c] ss:$16 sps:$4 sm:$0xff]  }
 0x103   : > { %10011 = vmatprep.subr.bf16.mxu0 %v14655_v8  ;;  %10995 = vmatprep.subr.bf16.mxu1 %v14658_v9  ;;  %v14737_v8 = vld [vmem:[%s16786_s12 + $0x920] ss:$16 sps:$4 sm:$0xff]   ;;  %v14740_v9 = vld [vmem:[%s16786_s12 + $0x928] ss:$16 sps:$4 sm:$0xff]  }
 0x106   : > { %10012 = vmatpush1.bf16.msra.mxu0 %v14653_v10  ;;  %10996 = vmatpush1.bf16.msra.mxu1 %v14656_v11  ;;  %v14745_v10 = vld [vmem:[%s16786_s12 + $0x944] ss:$16 sps:$4 sm:$0xff]   ;;  %v14748_v11 = vld [vmem:[%s16786_s12 + $0x94c] ss:$16 sps:$4 sm:$0xff]  }
 0x107   : > { %10013 = vmatprep.subr.bf16.mxu0 %v14661_v12  ;;  %10997 = vmatprep.subr.bf16.mxu1 %v14664_v13  ;;  %v14743_v12 = vld [vmem:[%s16786_s12 + $0x940] ss:$16 sps:$4 sm:$0xff]   ;;  %v14746_v13 = vld [vmem:[%s16786_s12 + $0x948] ss:$16 sps:$4 sm:$0xff]  }
 0x10a   : > { %10014 = vmatpush1.bf16.msra.mxu0 %v14659_v14  ;;  %10998 = vmatpush1.bf16.msra.mxu1 %v14662_v16  ;;  %v14751_v14 = vld [vmem:[%s16786_s12 + $0x964] ss:$16 sps:$4 sm:$0xff]   ;;  %v14754_v16 = vld [vmem:[%s16786_s12 + $0x96c] ss:$16 sps:$4 sm:$0xff]  }
 0x10b   : > { %10015 = vmatprep.subr.bf16.mxu0 %v14667_v18  ;;  %10999 = vmatprep.subr.bf16.mxu1 %v14670_v54  ;;  %v14749_v18 = vld [vmem:[%s16786_s12 + $0x960] ss:$16 sps:$4 sm:$0xff]   ;;  %v14752_v54 = vld [vmem:[%s16786_s12 + $0x968] ss:$16 sps:$4 sm:$0xff]  }
 0x10e   : > { %10016 = vmatpush1.bf16.msra.mxu0 %v14665_v19  ;;  %11000 = vmatpush1.bf16.msra.mxu1 %v14668_v20  ;;  %v14757_v19 = vld [vmem:[%s16786_s12 + $0x984] ss:$16 sps:$4 sm:$0xff]   ;;  %v14760_v20 = vld [vmem:[%s16786_s12 + $0x98c] ss:$16 sps:$4 sm:$0xff]  }
 0x10f   : > { %10017 = vmatprep.subr.bf16.mxu0 %v14673_v21  ;;  %11001 = vmatprep.subr.bf16.mxu1 %v14676_v22  ;;  %v14755_v21 = vld [vmem:[%s16786_s12 + $0x980] ss:$16 sps:$4 sm:$0xff]   ;;  %v14758_v22 = vld [vmem:[%s16786_s12 + $0x988] ss:$16 sps:$4 sm:$0xff]  }
 0x112   : > { %10018 = vmatpush1.bf16.msra.mxu0 %v14671_v24  ;;  %11002 = vmatpush1.bf16.msra.mxu1 %v14674_v25  ;;  %v14763_v24 = vld [vmem:[%s16786_s12 + $0x9a4] ss:$16 sps:$4 sm:$0xff]   ;;  %v14766_v25 = vld [vmem:[%s16786_s12 + $0x9ac] ss:$16 sps:$4 sm:$0xff]  }
 0x113   : > { %10019 = vmatprep.subr.bf16.mxu0 %v14679_v26  ;;  %11003 = vmatprep.subr.bf16.mxu1 %v14682_v28  ;;  %v14761_v26 = vld [vmem:[%s16786_s12 + $0x9a0] ss:$16 sps:$4 sm:$0xff]   ;;  %v14764_v28 = vld [vmem:[%s16786_s12 + $0x9a8] ss:$16 sps:$4 sm:$0xff]  }
 0x116   : > { %10020 = vmatpush1.bf16.msra.mxu0 %v14677_v29  ;;  %11004 = vmatpush1.bf16.msra.mxu1 %v14680_v30  ;;  %v14769_v29 = vld [vmem:[%s16786_s12 + $0x9c4] ss:$16 sps:$4 sm:$0xff]   ;;  %v14772_v30 = vld [vmem:[%s16786_s12 + $0x9cc] ss:$16 sps:$4 sm:$0xff]  }
 0x117   : > { %10030 = vmatprep.subr.bf16.mxu0 %v14685_v31  ;;  %11014 = vmatprep.subr.bf16.mxu1 %v14688_v32  ;;  %v14767_v31 = vld [vmem:[%s16786_s12 + $0x9c0] ss:$16 sps:$4 sm:$0xff]   ;;  %v14770_v32 = vld [vmem:[%s16786_s12 + $0x9c8] ss:$16 sps:$4 sm:$0xff]  }
 0x119   : > { %10022 = vmatmul.mubr.bf16.vlgmr.msra.gmra.mrb[0].mxu0 %v1890_v33  ;;  %11006 = vmatmul.mubr.bf16.vlgmr.msra.gmra.mrb[0].mxu1 %v1890_v33  ;;  %v14778_v33 = vld [vmem:[%s16786_s12 + $0x9ec] ss:$16 sps:$4 sm:$0xff]  }
 0x11a   : > { %10031 = vmatpush1.bf16.msra.mxu0 %v14683_v34  ;;  %11015 = vmatpush1.bf16.msra.mxu1 %v14686_v35  ;;  %v14773_v34 = vld [vmem:[%s16786_s12 + $0x9e0] ss:$16 sps:$4 sm:$0xff]   ;;  %v14776_v35 = vld [vmem:[%s16786_s12 + $0x9e8] ss:$16 sps:$4 sm:$0xff]  }
 0x11b   : > { %10032 = vmatprep.subr.bf16.mxu0 %v14691_v27  ;;  %11016 = vmatprep.subr.bf16.mxu1 %v14694_v36  ;;  %v14781_v27 = vld [vmem:[%s16786_s12 + $0xa04] ss:$16 sps:$4 sm:$0xff]   ;;  %v14784_v36 = vld [vmem:[%s16786_s12 + $0xa0c] ss:$16 sps:$4 sm:$0xff]  }
 0x11c   : > { %10062 = vmatprep.mubr.bf16.mxu0 %v17097_v37  ;;  %11046 = vmatprep.mubr.bf16.mxu1 %v17097_v37 }
 0x11e   : > { %10033 = vmatpush1.bf16.msra.mxu0 %v14689_v15  ;;  %11017 = vmatpush1.bf16.msra.mxu1 %v14692_v38  ;;  %v17163_v15 = vrot.slane %v17078_v23, %v16836_v51  ;;  %v14779_v38 = vld [vmem:[%s16786_s12 + $0xa00] ss:$16 sps:$4 sm:$0xff]  }
 0x11f   : > { %10034 = vmatprep.subr.bf16.mxu0 %v14697_v39  ;;  %11018 = vmatprep.subr.bf16.mxu1 %v14700_v40  ;;  %v14782_v39 = vld [vmem:[%s16786_s12 + $0xa08] ss:$16 sps:$4 sm:$0xff]   ;;  %v14787_v40 = vld [vmem:[%s16786_s12 + $0xa24] ss:$16 sps:$4 sm:$0xff]   ;;  %v14785_v23 = vld [vmem:[%s16786_s12 + $0xa20] ss:$16 sps:$4 sm:$0xff]  }
 0x122   : > { %10035 = vmatpush1.bf16.msra.mxu0 %v14695_v41  ;;  %11019 = vmatpush1.bf16.msra.mxu1 %v14698_v42  ;;  %v14790_v41 = vld [vmem:[%s16786_s12 + $0xa2c] ss:$16 sps:$4 sm:$0xff]   ;;  %v1940_v42 = vcombine.high %v17097_v37, %v17097_v37  ;;  %v14791_v37 = vld [vmem:[%s16786_s12 + $0xa40] ss:$16 sps:$4 sm:$0xff]  }
 0x123   : > { %10036 = vmatprep.subr.bf16.mxu0 %v14703_v43  ;;  %11020 = vmatprep.subr.bf16.mxu1 %v14706_v44  ;;  %v14788_v43 = vld [vmem:[%s16786_s12 + $0xa28] ss:$16 sps:$4 sm:$0xff]   ;;  %v14793_v44 = vld [vmem:[%s16786_s12 + $0xa44] ss:$16 sps:$4 sm:$0xff]  }
 0x126   : > { %10037 = vmatpush1.bf16.msra.mxu0 %v14701_v46  ;;  %11021 = vmatpush1.bf16.msra.mxu1 %v14704_v47  ;;  %v14796_v46 = vld [vmem:[%s16786_s12 + $0xa4c] ss:$16 sps:$4 sm:$0xff]   ;;  %v14794_v47 = vld [vmem:[%s16786_s12 + $0xa48] ss:$16 sps:$4 sm:$0xff]  }
 0x127   : > { %10038 = vmatprep.subr.bf16.mxu0 %v14709_v48  ;;  %11022 = vmatprep.subr.bf16.mxu1 %v14712_v49  ;;  %v14799_v48 = vld [vmem:[%s16786_s12 + $0xa64] ss:$16 sps:$4 sm:$0xff]   ;;  %v14802_v49 = vld [vmem:[%s16786_s12 + $0xa6c] ss:$16 sps:$4 sm:$0xff]  }
 0x12a   : > { %10039 = vmatpush1.bf16.msra.mxu0 %v14707_v50  ;;  %11023 = vmatpush1.bf16.msra.mxu1 %v14710_v52  ;;  %v14797_v50 = vld [vmem:[%s16786_s12 + $0xa60] ss:$16 sps:$4 sm:$0xff]   ;;  %v14800_v52 = vld [vmem:[%s16786_s12 + $0xa68] ss:$16 sps:$4 sm:$0xff]  }
 0x12b   : > { %10040 = vmatprep.subr.bf16.mxu0 %v14715_v53  ;;  %11024 = vmatprep.subr.bf16.mxu1 %v14718_v55  ;;  %v14805_v53 = vld [vmem:[%s16786_s12 + $0xa84] ss:$16 sps:$4 sm:$0xff]   ;;  %v14808_v55 = vld [vmem:[%s16786_s12 + $0xa8c] ss:$16 sps:$4 sm:$0xff]  }
 0x12e   : > { %10041 = vmatpush1.bf16.msra.mxu0 %v14713_v56  ;;  %11025 = vmatpush1.bf16.msra.mxu1 %v14716_v57  ;;  %v14803_v56 = vld [vmem:[%s16786_s12 + $0xa80] ss:$16 sps:$4 sm:$0xff]   ;;  %v14806_v57 = vld [vmem:[%s16786_s12 + $0xa88] ss:$16 sps:$4 sm:$0xff]  }
 0x12f   : > { %10042 = vmatprep.subr.bf16.mxu0 %v14721_v58  ;;  %11026 = vmatprep.subr.bf16.mxu1 %v14724_v59  ;;  %v14811_v58 = vld [vmem:[%s16786_s12 + $0xaa4] ss:$16 sps:$4 sm:$0xff]   ;;  %v14814_v59 = vld [vmem:[%s16786_s12 + $0xaac] ss:$16 sps:$4 sm:$0xff]  }
 0x132   : > { %10043 = vmatpush1.bf16.msra.mxu0 %v14719_v60  ;;  %11027 = vmatpush1.bf16.msra.mxu1 %v14722_v61  ;;  %v14809_v60 = vld [vmem:[%s16786_s12 + $0xaa0] ss:$16 sps:$4 sm:$0xff]   ;;  %v14812_v61 = vld [vmem:[%s16786_s12 + $0xaa8] ss:$16 sps:$4 sm:$0xff]  }
 0x133   : > { %10044 = vmatprep.subr.bf16.mxu0 %v14727_v62  ;;  %11028 = vmatprep.subr.bf16.mxu1 %v14730_v63  ;;  %v14817_v62 = vld [vmem:[%s16786_s12 + $0xac4] ss:$16 sps:$4 sm:$0xff]   ;;  %v14820_v63 = vld [vmem:[%s16786_s12 + $0xacc] ss:$16 sps:$4 sm:$0xff]  }
 0x136   : > { %10045 = vmatpush1.bf16.msra.mxu0 %v14725_v0  ;;  %11029 = vmatpush1.bf16.msra.mxu1 %v14728_v1  ;;  %v14815_v0 = vld [vmem:[%s16786_s12 + $0xac0] ss:$16 sps:$4 sm:$0xff]   ;;  %v14818_v1 = vld [vmem:[%s16786_s12 + $0xac8] ss:$16 sps:$4 sm:$0xff]  }
 0x137   : > { %10046 = vmatprep.subr.bf16.mxu0 %v14733_v2  ;;  %11030 = vmatprep.subr.bf16.mxu1 %v14736_v3  ;;  %v14823_v2 = vld [vmem:[%s16786_s12 + $0xae4] ss:$16 sps:$4 sm:$0xff]   ;;  %v14826_v3 = vld [vmem:[%s16786_s12 + $0xaec] ss:$16 sps:$4 sm:$0xff]  }
 0x13a   : > { %10047 = vmatpush1.bf16.msra.mxu0 %v14731_v4  ;;  %11031 = vmatpush1.bf16.msra.mxu1 %v14734_v5  ;;  %v14821_v4 = vld [vmem:[%s16786_s12 + $0xae0] ss:$16 sps:$4 sm:$0xff]   ;;  %v14824_v5 = vld [vmem:[%s16786_s12 + $0xae8] ss:$16 sps:$4 sm:$0xff]  }
 0x13b   : > { %10048 = vmatprep.subr.bf16.mxu0 %v14739_v6  ;;  %11032 = vmatprep.subr.bf16.mxu1 %v14742_v7  ;;  %v14829_v6 = vld [vmem:[%s16786_s12 + $0xb04] ss:$16 sps:$4 sm:$0xff]   ;;  %v14832_v7 = vld [vmem:[%s16786_s12 + $0xb0c] ss:$16 sps:$4 sm:$0xff]  }
 0x13e   : > { %10049 = vmatpush1.bf16.msra.mxu0 %v14737_v8  ;;  %11033 = vmatpush1.bf16.msra.mxu1 %v14740_v9  ;;  %v14827_v8 = vld [vmem:[%s16786_s12 + $0xb00] ss:$16 sps:$4 sm:$0xff]   ;;  %v14830_v9 = vld [vmem:[%s16786_s12 + $0xb08] ss:$16 sps:$4 sm:$0xff]  }
 0x13f   : > { %10050 = vmatprep.subr.bf16.mxu0 %v14745_v10  ;;  %11034 = vmatprep.subr.bf16.mxu1 %v14748_v11  ;;  %v14835_v10 = vld [vmem:[%s16786_s12 + $0xb24] ss:$16 sps:$4 sm:$0xff]   ;;  %v14838_v11 = vld [vmem:[%s16786_s12 + $0xb2c] ss:$16 sps:$4 sm:$0xff]  }
 0x142   : > { %10051 = vmatpush1.bf16.msra.mxu0 %v14743_v12  ;;  %11035 = vmatpush1.bf16.msra.mxu1 %v14746_v13  ;;  %v14833_v12 = vld [vmem:[%s16786_s12 + $0xb20] ss:$16 sps:$4 sm:$0xff]   ;;  %v14836_v13 = vld [vmem:[%s16786_s12 + $0xb28] ss:$16 sps:$4 sm:$0xff]  }
 0x143   : > { %10052 = vmatprep.subr.bf16.mxu0 %v14751_v14  ;;  %11036 = vmatprep.subr.bf16.mxu1 %v14754_v16  ;;  %v14841_v14 = vld [vmem:[%s16786_s12 + $0xb44] ss:$16 sps:$4 sm:$0xff]   ;;  %v14844_v16 = vld [vmem:[%s16786_s12 + $0xb4c] ss:$16 sps:$4 sm:$0xff]  }
 0x146   : > { %10053 = vmatpush1.bf16.msra.mxu0 %v14749_v18  ;;  %11037 = vmatpush1.bf16.msra.mxu1 %v14752_v54  ;;  %v14839_v18 = vld [vmem:[%s16786_s12 + $0xb40] ss:$16 sps:$4 sm:$0xff]   ;;  %v14842_v54 = vld [vmem:[%s16786_s12 + $0xb48] ss:$16 sps:$4 sm:$0xff]  }
 0x147   : > { %10054 = vmatprep.subr.bf16.mxu0 %v14757_v19  ;;  %11038 = vmatprep.subr.bf16.mxu1 %v14760_v20  ;;  %v14847_v19 = vld [vmem:[%s16786_s12 + $0xb64] ss:$16 sps:$4 sm:$0xff]   ;;  %v14850_v20 = vld [vmem:[%s16786_s12 + $0xb6c] ss:$16 sps:$4 sm:$0xff]  }
 0x14a   : > { %10055 = vmatpush1.bf16.msra.mxu0 %v14755_v21  ;;  %11039 = vmatpush1.bf16.msra.mxu1 %v14758_v22  ;;  %v14845_v21 = vld [vmem:[%s16786_s12 + $0xb60] ss:$16 sps:$4 sm:$0xff]   ;;  %v14848_v22 = vld [vmem:[%s16786_s12 + $0xb68] ss:$16 sps:$4 sm:$0xff]  }
 0x14b   : > { %10056 = vmatprep.subr.bf16.mxu0 %v14763_v24  ;;  %11040 = vmatprep.subr.bf16.mxu1 %v14766_v25  ;;  %v14853_v24 = vld [vmem:[%s16786_s12 + $0xb84] ss:$16 sps:$4 sm:$0xff]   ;;  %v14856_v25 = vld [vmem:[%s16786_s12 + $0xb8c] ss:$16 sps:$4 sm:$0xff]  }
 0x14e   : > { %10057 = vmatpush1.bf16.msra.mxu0 %v14761_v26  ;;  %11041 = vmatpush1.bf16.msra.mxu1 %v14764_v28  ;;  %v14851_v26 = vld [vmem:[%s16786_s12 + $0xb80] ss:$16 sps:$4 sm:$0xff]   ;;  %v14854_v28 = vld [vmem:[%s16786_s12 + $0xb88] ss:$16 sps:$4 sm:$0xff]  }
 0x14f   : > { %10058 = vmatprep.subr.bf16.mxu0 %v14769_v29  ;;  %11042 = vmatprep.subr.bf16.mxu1 %v14772_v30  ;;  %v14859_v29 = vld [vmem:[%s16786_s12 + $0xba4] ss:$16 sps:$4 sm:$0xff]   ;;  %v14862_v30 = vld [vmem:[%s16786_s12 + $0xbac] ss:$16 sps:$4 sm:$0xff]  }
 0x152   : > { %10059 = vmatpush1.bf16.msra.mxu0 %v14767_v31  ;;  %11043 = vmatpush1.bf16.msra.mxu1 %v14770_v32  ;;  %v14857_v31 = vld [vmem:[%s16786_s12 + $0xba0] ss:$16 sps:$4 sm:$0xff]   ;;  %v14860_v32 = vld [vmem:[%s16786_s12 + $0xba8] ss:$16 sps:$4 sm:$0xff]  }
 0x153   : > { %10060 = vmatprep.subr.bf16.mxu0 %v14775_v17  ;;  %11044 = vmatprep.subr.bf16.mxu1 %v14778_v33  ;;  %v14865_v17 = vld [vmem:[%s16786_s12 + $0xbc4] ss:$16 sps:$4 sm:$0xff]   ;;  %v14868_v33 = vld [vmem:[%s16786_s12 + $0xbcc] ss:$16 sps:$4 sm:$0xff]  }
 0x156   : > { %10061 = vmatpush1.bf16.msra.mxu0 %v14773_v34  ;;  %11045 = vmatpush1.bf16.msra.mxu1 %v14776_v35  ;;  %v16608_v34 = vld [vmem:[%s16781_s8 + $0x8] sm:$0xff] }
 0x157   : > { %10071 = vmatprep.subr.bf16.mxu0 %v14781_v27  ;;  %11055 = vmatprep.subr.bf16.mxu1 %v14784_v36  ;;  %v1893_v35 = vcombine.high %v16608_v34, %v16608_v34  ;;  %v14863_v27 = vld [vmem:[%s16786_s12 + $0xbc0] ss:$16 sps:$4 sm:$0xff]   ;;  %v14866_v36 = vld [vmem:[%s16786_s12 + $0xbc8] ss:$16 sps:$4 sm:$0xff]  }
 0x158   : > { %v14947_v34 = vld [vmem:[%s16786_s12 + $0xd80] ss:$16 sps:$4 sm:$0xff]  }
 0x159   : > { %10063 = vmatmul.mubr.bf16.vlgmr.msra.gmra.mrb[0].mxu0 %v17163_v15  ;;  %11047 = vmatmul.mubr.bf16.vlgmr.msra.gmra.mrb[0].mxu1 %v17163_v15 }
 0x15a   : > { %10072 = vmatpush1.bf16.msra.mxu0 %v14779_v38  ;;  %11056 = vmatpush1.bf16.msra.mxu1 %v14782_v39  ;;  %v14871_v38 = vld [vmem:[%s16786_s12 + $0xbe4] ss:$16 sps:$4 sm:$0xff]   ;;  %v14874_v39 = vld [vmem:[%s16786_s12 + $0xbec] ss:$16 sps:$4 sm:$0xff]  }
 0x15b   : > { %10073 = vmatprep.subr.bf16.mxu0 %v14787_v40  ;;  %11057 = vmatprep.subr.bf16.mxu1 %v14790_v41  ;;  %v17231_v40 = vrot.slane %v1893_v35, %v16836_v51  ;;  %v14869_v41 = vld [vmem:[%s16786_s12 + $0xbe0] ss:$16 sps:$4 sm:$0xff]   ;;  %v14950_v35 = vld [vmem:[%s16786_s12 + $0xd88] ss:$16 sps:$4 sm:$0xff]  }
 0x15c   : > { %10103 = vmatprep.mubr.bf16.mxu0 %v1940_v42  ;;  %11087 = vmatprep.mubr.bf16.mxu1 %v1940_v42  ;;  %v14872_v42 = vld [vmem:[%s16786_s12 + $0xbe8] ss:$16 sps:$4 sm:$0xff]  }
 0x15e   : > { %10074 = vmatpush1.bf16.msra.mxu0 %v14785_v23  ;;  %11058 = vmatpush1.bf16.msra.mxu1 %v14788_v43  ;;  %v14877_v23 = vld [vmem:[%s16786_s12 + $0xc04] ss:$16 sps:$4 sm:$0xff]   ;;  %v14880_v43 = vld [vmem:[%s16786_s12 + $0xc0c] ss:$16 sps:$4 sm:$0xff]  }
 0x15f   : > { %10075 = vmatprep.subr.bf16.mxu0 %v14793_v44  ;;  %11059 = vmatprep.subr.bf16.mxu1 %v14796_v46  ;;  %v1909_v44 = vcombine.high %v17231_v40, %v17231_v40  ;;  %v1938_v46 = vcombine.high %v17163_v15, %v17163_v15  ;;  %v14881_v15 = vld [vmem:[%s16786_s12 + $0xc20] ss:$16 sps:$4 sm:$0xff]  }
 0x162   : > { %10076 = vmatpush1.bf16.msra.mxu0 %v14791_v37  ;;  %11060 = vmatpush1.bf16.msra.mxu1 %v14794_v47  ;;  %v14875_v37 = vld [vmem:[%s16786_s12 + $0xc00] ss:$16 sps:$4 sm:$0xff]   ;;  %v14878_v47 = vld [vmem:[%s16786_s12 + $0xc08] ss:$16 sps:$4 sm:$0xff]  }
 0x163   : > { %10077 = vmatprep.subr.bf16.mxu0 %v14799_v48  ;;  %11061 = vmatprep.subr.bf16.mxu1 %v14802_v49  ;;  %v14883_v48 = vld [vmem:[%s16786_s12 + $0xc24] ss:$16 sps:$4 sm:$0xff]   ;;  %v14886_v49 = vld [vmem:[%s16786_s12 + $0xc2c] ss:$16 sps:$4 sm:$0xff]  }
 0x166   : > { %10078 = vmatpush1.bf16.msra.mxu0 %v14797_v50  ;;  %11062 = vmatpush1.bf16.msra.mxu1 %v14800_v52  ;;  %v17246_v50 = vrot.slane %v1909_v44, %v16836_v51  ;;  %v14884_v52 = vld [vmem:[%s16786_s12 + $0xc28] ss:$16 sps:$4 sm:$0xff]   ;;  %v14967_v44 = vld [vmem:[%s16786_s12 + $0xde4] ss:$16 sps:$4 sm:$0xff]  }
 0x167   : > { %10079 = vmatprep.subr.bf16.mxu0 %v14805_v53  ;;  %11063 = vmatprep.subr.bf16.mxu1 %v14808_v55  ;;  %v14889_v53 = vld [vmem:[%s16786_s12 + $0xc44] ss:$16 sps:$4 sm:$0xff]   ;;  %v14892_v55 = vld [vmem:[%s16786_s12 + $0xc4c] ss:$16 sps:$4 sm:$0xff]  }
 0x16a   : > { %10080 = vmatpush1.bf16.msra.mxu0 %v14803_v56  ;;  %11064 = vmatpush1.bf16.msra.mxu1 %v14806_v57  ;;  %v14887_v56 = vld [vmem:[%s16786_s12 + $0xc40] ss:$16 sps:$4 sm:$0xff]   ;;  %v14890_v57 = vld [vmem:[%s16786_s12 + $0xc48] ss:$16 sps:$4 sm:$0xff]  }
 0x16b   : > { %10081 = vmatprep.subr.bf16.mxu0 %v14811_v58  ;;  %11065 = vmatprep.subr.bf16.mxu1 %v14814_v59  ;;  %v14895_v58 = vld [vmem:[%s16786_s12 + $0xc64] ss:$16 sps:$4 sm:$0xff]   ;;  %v14898_v59 = vld [vmem:[%s16786_s12 + $0xc6c] ss:$16 sps:$4 sm:$0xff]  }
 0x16e   : > { %10082 = vmatpush1.bf16.msra.mxu0 %v14809_v60  ;;  %11066 = vmatpush1.bf16.msra.mxu1 %v14812_v61  ;;  %v14893_v60 = vld [vmem:[%s16786_s12 + $0xc60] ss:$16 sps:$4 sm:$0xff]   ;;  %v14896_v61 = vld [vmem:[%s16786_s12 + $0xc68] ss:$16 sps:$4 sm:$0xff]  }
 0x16f   : > { %10083 = vmatprep.subr.bf16.mxu0 %v14817_v62  ;;  %11067 = vmatprep.subr.bf16.mxu1 %v14820_v63  ;;  %v14901_v62 = vld [vmem:[%s16786_s12 + $0xc84] ss:$16 sps:$4 sm:$0xff]   ;;  %v14904_v63 = vld [vmem:[%s16786_s12 + $0xc8c] ss:$16 sps:$4 sm:$0xff]  }
 0x172   : > { %10084 = vmatpush1.bf16.msra.mxu0 %v14815_v0  ;;  %11068 = vmatpush1.bf16.msra.mxu1 %v14818_v1  ;;  %v14899_v0 = vld [vmem:[%s16786_s12 + $0xc80] ss:$16 sps:$4 sm:$0xff]   ;;  %v14902_v1 = vld [vmem:[%s16786_s12 + $0xc88] ss:$16 sps:$4 sm:$0xff]  }
 0x173   : > { %10085 = vmatprep.subr.bf16.mxu0 %v14823_v2  ;;  %11069 = vmatprep.subr.bf16.mxu1 %v14826_v3  ;;  %v14907_v2 = vld [vmem:[%s16786_s12 + $0xca4] ss:$16 sps:$4 sm:$0xff]   ;;  %v14910_v3 = vld [vmem:[%s16786_s12 + $0xcac] ss:$16 sps:$4 sm:$0xff]  }
 0x176   : > { %10086 = vmatpush1.bf16.msra.mxu0 %v14821_v4  ;;  %11070 = vmatpush1.bf16.msra.mxu1 %v14824_v5  ;;  %v14905_v4 = vld [vmem:[%s16786_s12 + $0xca0] ss:$16 sps:$4 sm:$0xff]   ;;  %v14908_v5 = vld [vmem:[%s16786_s12 + $0xca8] ss:$16 sps:$4 sm:$0xff]  }
 0x177   : > { %10087 = vmatprep.subr.bf16.mxu0 %v14829_v6  ;;  %11071 = vmatprep.subr.bf16.mxu1 %v14832_v7  ;;  %v14913_v6 = vld [vmem:[%s16786_s12 + $0xcc4] ss:$16 sps:$4 sm:$0xff]   ;;  %v14916_v7 = vld [vmem:[%s16786_s12 + $0xccc] ss:$16 sps:$4 sm:$0xff]  }
 0x17a   : > { %10088 = vmatpush1.bf16.msra.mxu0 %v14827_v8  ;;  %11072 = vmatpush1.bf16.msra.mxu1 %v14830_v9  ;;  %v14911_v8 = vld [vmem:[%s16786_s12 + $0xcc0] ss:$16 sps:$4 sm:$0xff]   ;;  %v14914_v9 = vld [vmem:[%s16786_s12 + $0xcc8] ss:$16 sps:$4 sm:$0xff]  }
 0x17b   : > { %10089 = vmatprep.subr.bf16.mxu0 %v14835_v10  ;;  %11073 = vmatprep.subr.bf16.mxu1 %v14838_v11  ;;  %v14919_v10 = vld [vmem:[%s16786_s12 + $0xce4] ss:$16 sps:$4 sm:$0xff]   ;;  %v14922_v11 = vld [vmem:[%s16786_s12 + $0xcec] ss:$16 sps:$4 sm:$0xff]  }
 0x17e   : > { %10090 = vmatpush1.bf16.msra.mxu0 %v14833_v12  ;;  %11074 = vmatpush1.bf16.msra.mxu1 %v14836_v13  ;;  %v14917_v12 = vld [vmem:[%s16786_s12 + $0xce0] ss:$16 sps:$4 sm:$0xff]   ;;  %v14920_v13 = vld [vmem:[%s16786_s12 + $0xce8] ss:$16 sps:$4 sm:$0xff]  }
 0x17f   : > { %10091 = vmatprep.subr.bf16.mxu0 %v14841_v14  ;;  %11075 = vmatprep.subr.bf16.mxu1 %v14844_v16  ;;  %v14925_v14 = vld [vmem:[%s16786_s12 + $0xd04] ss:$16 sps:$4 sm:$0xff]   ;;  %v14928_v16 = vld [vmem:[%s16786_s12 + $0xd0c] ss:$16 sps:$4 sm:$0xff]  }
 0x182   : > { %10092 = vmatpush1.bf16.msra.mxu0 %v14839_v18  ;;  %11076 = vmatpush1.bf16.msra.mxu1 %v14842_v54  ;;  %v14923_v18 = vld [vmem:[%s16786_s12 + $0xd00] ss:$16 sps:$4 sm:$0xff]   ;;  %v14926_v54 = vld [vmem:[%s16786_s12 + $0xd08] ss:$16 sps:$4 sm:$0xff]  }
 0x183   : > { %10093 = vmatprep.subr.bf16.mxu0 %v14847_v19  ;;  %11077 = vmatprep.subr.bf16.mxu1 %v14850_v20  ;;  %v14931_v19 = vld [vmem:[%s16786_s12 + $0xd24] ss:$16 sps:$4 sm:$0xff]   ;;  %v14934_v20 = vld [vmem:[%s16786_s12 + $0xd2c] ss:$16 sps:$4 sm:$0xff]  }
 0x186   : > { %10094 = vmatpush1.bf16.msra.mxu0 %v14845_v21  ;;  %11078 = vmatpush1.bf16.msra.mxu1 %v14848_v22  ;;  %v14929_v21 = vld [vmem:[%s16786_s12 + $0xd20] ss:$16 sps:$4 sm:$0xff]   ;;  %v14932_v22 = vld [vmem:[%s16786_s12 + $0xd28] ss:$16 sps:$4 sm:$0xff]  }
 0x187   : > { %10095 = vmatprep.subr.bf16.mxu0 %v14853_v24  ;;  %11079 = vmatprep.subr.bf16.mxu1 %v14856_v25  ;;  %v14937_v24 = vld [vmem:[%s16786_s12 + $0xd44] ss:$16 sps:$4 sm:$0xff]   ;;  %v14940_v25 = vld [vmem:[%s16786_s12 + $0xd4c] ss:$16 sps:$4 sm:$0xff]  }
 0x18a   : > { %10096 = vmatpush1.bf16.msra.mxu0 %v14851_v26  ;;  %11080 = vmatpush1.bf16.msra.mxu1 %v14854_v28  ;;  %v14935_v26 = vld [vmem:[%s16786_s12 + $0xd40] ss:$16 sps:$4 sm:$0xff]   ;;  %v14938_v28 = vld [vmem:[%s16786_s12 + $0xd48] ss:$16 sps:$4 sm:$0xff]  }
 0x18b   : > { %10097 = vmatprep.subr.bf16.mxu0 %v14859_v29  ;;  %11081 = vmatprep.subr.bf16.mxu1 %v14862_v30  ;;  %v14943_v29 = vld [vmem:[%s16786_s12 + $0xd64] ss:$16 sps:$4 sm:$0xff]   ;;  %v14946_v30 = vld [vmem:[%s16786_s12 + $0xd6c] ss:$16 sps:$4 sm:$0xff]  }
 0x18e   : > { %10098 = vmatpush1.bf16.msra.mxu0 %v14857_v31  ;;  %11082 = vmatpush1.bf16.msra.mxu1 %v14860_v32  ;;  %v14941_v31 = vld [vmem:[%s16786_s12 + $0xd60] ss:$16 sps:$4 sm:$0xff]   ;;  %v14944_v32 = vld [vmem:[%s16786_s12 + $0xd68] ss:$16 sps:$4 sm:$0xff]  }
 0x18f   : > { %10099 = vmatprep.subr.bf16.mxu0 %v14865_v17  ;;  %11083 = vmatprep.subr.bf16.mxu1 %v14868_v33  ;;  %v14949_v17 = vld [vmem:[%s16786_s12 + $0xd84] ss:$16 sps:$4 sm:$0xff]   ;;  %v14952_v33 = vld [vmem:[%s16786_s12 + $0xd8c] ss:$16 sps:$4 sm:$0xff]  }
 0x192   : > { %10100 = vmatpush1.bf16.msra.mxu0 %v14863_v27  ;;  %11084 = vmatpush1.bf16.msra.mxu1 %v14866_v36  ;;  %v14955_v27 = vld [vmem:[%s16786_s12 + $0xda4] ss:$16 sps:$4 sm:$0xff]   ;;  %v14958_v36 = vld [vmem:[%s16786_s12 + $0xdac] ss:$16 sps:$4 sm:$0xff]  }
 0x193   : > { %10101 = vmatprep.subr.bf16.mxu0 %v14871_v38  ;;  %11085 = vmatprep.subr.bf16.mxu1 %v14874_v39  ;;  %v14953_v38 = vld [vmem:[%s16786_s12 + $0xda0] ss:$16 sps:$4 sm:$0xff]   ;;  %v14956_v39 = vld [vmem:[%s16786_s12 + $0xda8] ss:$16 sps:$4 sm:$0xff]  }
 0x196   : > { %10102 = vmatpush1.bf16.msra.mxu0 %v14869_v41  ;;  %11086 = vmatpush1.bf16.msra.mxu1 %v14872_v42  ;;  %v14961_v41 = vld [vmem:[%s16786_s12 + $0xdc4] ss:$16 sps:$4 sm:$0xff]   ;;  %v14964_v42 = vld [vmem:[%s16786_s12 + $0xdcc] ss:$16 sps:$4 sm:$0xff]  }
 0x197   : > { %10112 = vmatprep.subr.bf16.mxu0 %v14877_v23  ;;  %11096 = vmatprep.subr.bf16.mxu1 %v14880_v43  ;;  %v14959_v23 = vld [vmem:[%s16786_s12 + $0xdc0] ss:$16 sps:$4 sm:$0xff]   ;;  %v14962_v43 = vld [vmem:[%s16786_s12 + $0xdc8] ss:$16 sps:$4 sm:$0xff]  }
 0x199   : > { %10104 = vmatmul.mubr.bf16.vlgmr.msra.gmra.mrb[0].mxu0 %v1938_v46  ;;  %11088 = vmatmul.mubr.bf16.vlgmr.msra.gmra.mrb[0].mxu1 %v1938_v46  ;;  %v14970_v46 = vld [vmem:[%s16786_s12 + $0xdec] ss:$16 sps:$4 sm:$0xff]  }
 0x19a   : > { %10113 = vmatpush1.bf16.msra.mxu0 %v14875_v37  ;;  %11097 = vmatpush1.bf16.msra.mxu1 %v14878_v47  ;;  %v14965_v37 = vld [vmem:[%s16786_s12 + $0xde0] ss:$16 sps:$4 sm:$0xff]   ;;  %v14968_v47 = vld [vmem:[%s16786_s12 + $0xde8] ss:$16 sps:$4 sm:$0xff]  }
 0x19b   : > { %10114 = vmatprep.subr.bf16.mxu0 %v14883_v48  ;;  %11098 = vmatprep.subr.bf16.mxu1 %v14886_v49  ;;  %v14974_v48 = vld [vmem:[%s16786_s12 + $0xe04] ss:$16 sps:$4 sm:$0xff]   ;;  %v14977_v49 = vld [vmem:[%s16786_s12 + $0xe0c] ss:$16 sps:$4 sm:$0xff]  }
 0x19c   : > { %10144 = vmatprep.mubr.bf16.mxu0 %v17246_v50  ;;  %11128 = vmatprep.mubr.bf16.mxu1 %v17246_v50 }
 0x19e   : > { %10115 = vmatpush1.bf16.msra.mxu0 %v14881_v15  ;;  %11099 = vmatpush1.bf16.msra.mxu1 %v14884_v52  ;;  %v17312_v15 = vrot.slane %v17231_v40, %v16836_v51  ;;  %v14972_v52 = vld [vmem:[%s16786_s12 + $0xe00] ss:$16 sps:$4 sm:$0xff]  }
 0x19f   : > { %10116 = vmatprep.subr.bf16.mxu0 %v14889_v53  ;;  %11100 = vmatprep.subr.bf16.mxu1 %v14892_v55  ;;  %v14975_v53 = vld [vmem:[%s16786_s12 + $0xe08] ss:$16 sps:$4 sm:$0xff]   ;;  %v14980_v55 = vld [vmem:[%s16786_s12 + $0xe24] ss:$16 sps:$4 sm:$0xff]   ;;  %v14978_v40 = vld [vmem:[%s16786_s12 + $0xe20] ss:$16 sps:$4 sm:$0xff]  }
 0x1a2   : > { %10117 = vmatpush1.bf16.msra.mxu0 %v14887_v56  ;;  %11101 = vmatpush1.bf16.msra.mxu1 %v14890_v57  ;;  %v14983_v56 = vld [vmem:[%s16786_s12 + $0xe2c] ss:$16 sps:$4 sm:$0xff]   ;;  %v1941_v57 = vcombine.high %v17246_v50, %v17246_v50  ;;  %v14984_v50 = vld [vmem:[%s16786_s12 + $0xe40] ss:$16 sps:$4 sm:$0xff]  }
 0x1a3   : > { %10118 = vmatprep.subr.bf16.mxu0 %v14895_v58  ;;  %11102 = vmatprep.subr.bf16.mxu1 %v14898_v59  ;;  %v14981_v58 = vld [vmem:[%s16786_s12 + $0xe28] ss:$16 sps:$4 sm:$0xff]   ;;  %v14986_v59 = vld [vmem:[%s16786_s12 + $0xe44] ss:$16 sps:$4 sm:$0xff]  }
 0x1a6   : > { %10119 = vmatpush1.bf16.msra.mxu0 %v14893_v60  ;;  %11103 = vmatpush1.bf16.msra.mxu1 %v14896_v61  ;;  %v14989_v60 = vld [vmem:[%s16786_s12 + $0xe4c] ss:$16 sps:$4 sm:$0xff]   ;;  %v14987_v61 = vld [vmem:[%s16786_s12 + $0xe48] ss:$16 sps:$4 sm:$0xff]  }
 0x1a7   : > { %10120 = vmatprep.subr.bf16.mxu0 %v14901_v62  ;;  %11104 = vmatprep.subr.bf16.mxu1 %v14904_v63  ;;  %v14992_v62 = vld [vmem:[%s16786_s12 + $0xe64] ss:$16 sps:$4 sm:$0xff]   ;;  %v14995_v63 = vld [vmem:[%s16786_s12 + $0xe6c] ss:$16 sps:$4 sm:$0xff]  }
 0x1aa   : > { %10121 = vmatpush1.bf16.msra.mxu0 %v14899_v0  ;;  %11105 = vmatpush1.bf16.msra.mxu1 %v14902_v1  ;;  %v14990_v0 = vld [vmem:[%s16786_s12 + $0xe60] ss:$16 sps:$4 sm:$0xff]   ;;  %v14993_v1 = vld [vmem:[%s16786_s12 + $0xe68] ss:$16 sps:$4 sm:$0xff]  }
 0x1ab   : > { %10122 = vmatprep.subr.bf16.mxu0 %v14907_v2  ;;  %11106 = vmatprep.subr.bf16.mxu1 %v14910_v3  ;;  %v14998_v2 = vld [vmem:[%s16786_s12 + $0xe84] ss:$16 sps:$4 sm:$0xff]   ;;  %v15001_v3 = vld [vmem:[%s16786_s12 + $0xe8c] ss:$16 sps:$4 sm:$0xff]  }
 0x1ae   : > { %10123 = vmatpush1.bf16.msra.mxu0 %v14905_v4  ;;  %11107 = vmatpush1.bf16.msra.mxu1 %v14908_v5  ;;  %v14996_v4 = vld [vmem:[%s16786_s12 + $0xe80] ss:$16 sps:$4 sm:$0xff]   ;;  %v14999_v5 = vld [vmem:[%s16786_s12 + $0xe88] ss:$16 sps:$4 sm:$0xff]  }
 0x1af   : > { %10124 = vmatprep.subr.bf16.mxu0 %v14913_v6  ;;  %11108 = vmatprep.subr.bf16.mxu1 %v14916_v7  ;;  %v15004_v6 = vld [vmem:[%s16786_s12 + $0xea4] ss:$16 sps:$4 sm:$0xff]   ;;  %v15007_v7 = vld [vmem:[%s16786_s12 + $0xeac] ss:$16 sps:$4 sm:$0xff]  }
 0x1b2   : > { %10125 = vmatpush1.bf16.msra.mxu0 %v14911_v8  ;;  %11109 = vmatpush1.bf16.msra.mxu1 %v14914_v9  ;;  %v15002_v8 = vld [vmem:[%s16786_s12 + $0xea0] ss:$16 sps:$4 sm:$0xff]   ;;  %v15005_v9 = vld [vmem:[%s16786_s12 + $0xea8] ss:$16 sps:$4 sm:$0xff]  }
 0x1b3   : > { %10126 = vmatprep.subr.bf16.mxu0 %v14919_v10  ;;  %11110 = vmatprep.subr.bf16.mxu1 %v14922_v11  ;;  %v15010_v10 = vld [vmem:[%s16786_s12 + $0xec4] ss:$16 sps:$4 sm:$0xff]   ;;  %v15013_v11 = vld [vmem:[%s16786_s12 + $0xecc] ss:$16 sps:$4 sm:$0xff]  }
 0x1b6   : > { %10127 = vmatpush1.bf16.msra.mxu0 %v14917_v12  ;;  %11111 = vmatpush1.bf16.msra.mxu1 %v14920_v13  ;;  %v15008_v12 = vld [vmem:[%s16786_s12 + $0xec0] ss:$16 sps:$4 sm:$0xff]   ;;  %v15011_v13 = vld [vmem:[%s16786_s12 + $0xec8] ss:$16 sps:$4 sm:$0xff]  }
 0x1b7   : > { %10128 = vmatprep.subr.bf16.mxu0 %v14925_v14  ;;  %11112 = vmatprep.subr.bf16.mxu1 %v14928_v16  ;;  %v15016_v14 = vld [vmem:[%s16786_s12 + $0xee4] ss:$16 sps:$4 sm:$0xff]   ;;  %v15019_v16 = vld [vmem:[%s16786_s12 + $0xeec] ss:$16 sps:$4 sm:$0xff]  }
 0x1ba   : > { %10129 = vmatpush1.bf16.msra.mxu0 %v14923_v18  ;;  %11113 = vmatpush1.bf16.msra.mxu1 %v14926_v54  ;;  %v15014_v18 = vld [vmem:[%s16786_s12 + $0xee0] ss:$16 sps:$4 sm:$0xff]   ;;  %v15017_v54 = vld [vmem:[%s16786_s12 + $0xee8] ss:$16 sps:$4 sm:$0xff]  }
 0x1bb   : > { %10130 = vmatprep.subr.bf16.mxu0 %v14931_v19  ;;  %11114 = vmatprep.subr.bf16.mxu1 %v14934_v20  ;;  %v15022_v19 = vld [vmem:[%s16786_s12 + $0xf04] ss:$16 sps:$4 sm:$0xff]   ;;  %v15025_v20 = vld [vmem:[%s16786_s12 + $0xf0c] ss:$16 sps:$4 sm:$0xff]  }
 0x1be   : > { %10131 = vmatpush1.bf16.msra.mxu0 %v14929_v21  ;;  %11115 = vmatpush1.bf16.msra.mxu1 %v14932_v22  ;;  %v15020_v21 = vld [vmem:[%s16786_s12 + $0xf00] ss:$16 sps:$4 sm:$0xff]   ;;  %v15023_v22 = vld [vmem:[%s16786_s12 + $0xf08] ss:$16 sps:$4 sm:$0xff]  }
 0x1bf   : > { %10132 = vmatprep.subr.bf16.mxu0 %v14937_v24  ;;  %11116 = vmatprep.subr.bf16.mxu1 %v14940_v25  ;;  %v15028_v24 = vld [vmem:[%s16786_s12 + $0xf24] ss:$16 sps:$4 sm:$0xff]   ;;  %v15031_v25 = vld [vmem:[%s16786_s12 + $0xf2c] ss:$16 sps:$4 sm:$0xff]  }
 0x1c2   : > { %10133 = vmatpush1.bf16.msra.mxu0 %v14935_v26  ;;  %11117 = vmatpush1.bf16.msra.mxu1 %v14938_v28  ;;  %v15026_v26 = vld [vmem:[%s16786_s12 + $0xf20] ss:$16 sps:$4 sm:$0xff]   ;;  %v15029_v28 = vld [vmem:[%s16786_s12 + $0xf28] ss:$16 sps:$4 sm:$0xff]  }
 0x1c3   : > { %10134 = vmatprep.subr.bf16.mxu0 %v14943_v29  ;;  %11118 = vmatprep.subr.bf16.mxu1 %v14946_v30  ;;  %v15034_v29 = vld [vmem:[%s16786_s12 + $0xf44] ss:$16 sps:$4 sm:$0xff]   ;;  %v15037_v30 = vld [vmem:[%s16786_s12 + $0xf4c] ss:$16 sps:$4 sm:$0xff]  }
 0x1c6   : > { %10135 = vmatpush1.bf16.msra.mxu0 %v14941_v31  ;;  %11119 = vmatpush1.bf16.msra.mxu1 %v14944_v32  ;;  %v15032_v31 = vld [vmem:[%s16786_s12 + $0xf40] ss:$16 sps:$4 sm:$0xff]   ;;  %v15035_v32 = vld [vmem:[%s16786_s12 + $0xf48] ss:$16 sps:$4 sm:$0xff]  }
 0x1c7   : > { %10136 = vmatprep.subr.bf16.mxu0 %v14949_v17  ;;  %11120 = vmatprep.subr.bf16.mxu1 %v14952_v33  ;;  %v15040_v17 = vld [vmem:[%s16786_s12 + $0xf64] ss:$16 sps:$4 sm:$0xff]   ;;  %v15043_v33 = vld [vmem:[%s16786_s12 + $0xf6c] ss:$16 sps:$4 sm:$0xff]  }
 0x1ca   : > { %10137 = vmatpush1.bf16.msra.mxu0 %v14947_v34  ;;  %11121 = vmatpush1.bf16.msra.mxu1 %v14950_v35  ;;  %v15038_v34 = vld [vmem:[%s16786_s12 + $0xf60] ss:$16 sps:$4 sm:$0xff]   ;;  %v15041_v35 = vld [vmem:[%s16786_s12 + $0xf68] ss:$16 sps:$4 sm:$0xff]  }
 0x1cb   : > { %10138 = vmatprep.subr.bf16.mxu0 %v14955_v27  ;;  %11122 = vmatprep.subr.bf16.mxu1 %v14958_v36  ;;  %v15046_v27 = vld [vmem:[%s16786_s12 + $0xf84] ss:$16 sps:$4 sm:$0xff]   ;;  %v15049_v36 = vld [vmem:[%s16786_s12 + $0xf8c] ss:$16 sps:$4 sm:$0xff]  }
 0x1ce   : > { %10139 = vmatpush1.bf16.msra.mxu0 %v14953_v38  ;;  %11123 = vmatpush1.bf16.msra.mxu1 %v14956_v39  ;;  %v15044_v38 = vld [vmem:[%s16786_s12 + $0xf80] ss:$16 sps:$4 sm:$0xff]   ;;  %v15047_v39 = vld [vmem:[%s16786_s12 + $0xf88] ss:$16 sps:$4 sm:$0xff]  }
 0x1cf   : > { %10140 = vmatprep.subr.bf16.mxu0 %v14961_v41  ;;  %11124 = vmatprep.subr.bf16.mxu1 %v14964_v42  ;;  %v15052_v41 = vld [vmem:[%s16786_s12 + $0xfa4] ss:$16 sps:$4 sm:$0xff]   ;;  %v15055_v42 = vld [vmem:[%s16786_s12 + $0xfac] ss:$16 sps:$4 sm:$0xff]  }
 0x1d2   : > { %10141 = vmatpush1.bf16.msra.mxu0 %v14959_v23  ;;  %11125 = vmatpush1.bf16.msra.mxu1 %v14962_v43  ;;  %v15050_v23 = vld [vmem:[%s16786_s12 + $0xfa0] ss:$16 sps:$4 sm:$0xff]   ;;  %v15053_v43 = vld [vmem:[%s16786_s12 + $0xfa8] ss:$16 sps:$4 sm:$0xff]  }
 0x1d3   : > { %10142 = vmatprep.subr.bf16.mxu0 %v14967_v44  ;;  %11126 = vmatprep.subr.bf16.mxu1 %v14970_v46  ;;  %v15058_v44 = vld [vmem:[%s16786_s12 + $0xfc4] ss:$16 sps:$4 sm:$0xff]   ;;  %v15061_v46 = vld [vmem:[%s16786_s12 + $0xfcc] ss:$16 sps:$4 sm:$0xff]  }
 0x1d6   : > { %10143 = vmatpush1.bf16.msra.mxu0 %v14965_v37  ;;  %11127 = vmatpush1.bf16.msra.mxu1 %v14968_v47  ;;  %v17375_v37 = vld.sshfl [vmem:[%s16781_s8 + $0x10] sm:$0xff pattern:$0x75316420] }
 0x1d7   : > { %10153 = vmatprep.subr.bf16.mxu0 %v14974_v48  ;;  %11137 = vmatprep.subr.bf16.mxu1 %v14977_v49  ;;  %v15056_v47 = vld [vmem:[%s16786_s12 + $0xfc0] ss:$16 sps:$4 sm:$0xff]   ;;  %v15059_v48 = vld [vmem:[%s16786_s12 + $0xfc8] ss:$16 sps:$4 sm:$0xff]   ;;  %v15064_v49 = vld [vmem:[%s16786_s12 + $0xfe4] ss:$16 sps:$4 sm:$0xff]  }
 0x1d9   : > { %10145 = vmatmul.mubr.bf16.vlgmr.msra.gmra.mrb[0].mxu0 %v17312_v15  ;;  %11129 = vmatmul.mubr.bf16.vlgmr.msra.gmra.mrb[0].mxu1 %v17312_v15 }
 0x1da   : > { %10154 = vmatpush1.bf16.msra.mxu0 %v14972_v52  ;;  %11138 = vmatpush1.bf16.msra.mxu1 %v14975_v53  ;;  %v15067_v52 = vld [vmem:[%s16786_s12 + $0xfec] ss:$16 sps:$4 sm:$0xff]   ;;  %v15062_v53 = vld [vmem:[%s16786_s12 + $0xfe0] ss:$16 sps:$4 sm:$0xff]  }
 0x1db   : > { %10155 = vmatprep.subr.bf16.mxu0 %v14980_v55  ;;  %11139 = vmatprep.subr.bf16.mxu1 %v14983_v56  ;;  %v15065_v55 = vld [vmem:[%s16786_s12 + $0xfe8] ss:$16 sps:$4 sm:$0xff]   ;;  %v15070_v56 = vld [vmem:[%s16786_s12 + $0x1004] ss:$16 sps:$4 sm:$0xff]  }
 0x1dc   : > { %10185 = vmatprep.mubr.bf16.mxu0 %v1941_v57  ;;  %11169 = vmatprep.mubr.bf16.mxu1 %v1941_v57  ;;  %v15073_v57 = vld [vmem:[%s16786_s12 + $0x100c] ss:$16 sps:$4 sm:$0xff]  }
 0x1de   : > { %10156 = vmatpush1.bf16.msra.mxu0 %v14978_v40  ;;  %11140 = vmatpush1.bf16.msra.mxu1 %v14981_v58  ;;  %v1957_v40 = vcombine.high %v17375_v37, %v17375_v37  ;;  %v1939_v58 = vcombine.high %v17312_v15, %v17312_v15  ;;  %v15074_v15 = vld [vmem:[%s16786_s12 + $0x1020] ss:$16 sps:$4 sm:$0xff]  }
 0x1df   : > { %10157 = vmatprep.subr.bf16.mxu0 %v14986_v59  ;;  %11141 = vmatprep.subr.bf16.mxu1 %v14989_v60  ;;  %v15068_v59 = vld [vmem:[%s16786_s12 + $0x1000] ss:$16 sps:$4 sm:$0xff]   ;;  %v15071_v60 = vld [vmem:[%s16786_s12 + $0x1008] ss:$16 sps:$4 sm:$0xff]  }
 0x1e2   : > { %10158 = vmatpush1.bf16.msra.mxu0 %v14984_v50  ;;  %11142 = vmatpush1.bf16.msra.mxu1 %v14987_v61  ;;  %v15076_v50 = vld [vmem:[%s16786_s12 + $0x1024] ss:$16 sps:$4 sm:$0xff]   ;;  %v15079_v61 = vld [vmem:[%s16786_s12 + $0x102c] ss:$16 sps:$4 sm:$0xff]  }
 0x1e3   : > { %10159 = vmatprep.subr.bf16.mxu0 %v14992_v62  ;;  %11143 = vmatprep.subr.bf16.mxu1 %v14995_v63  ;;  %v17394_v62 = vrot.slane %v1957_v40, %v16836_v51  ;;  %v15077_v63 = vld [vmem:[%s16786_s12 + $0x1028] ss:$16 sps:$4 sm:$0xff]   ;;  %v15160_v40 = vld [vmem:[%s16786_s12 + $0x11e4] ss:$16 sps:$4 sm:$0xff]  }
 0x1e6   : > { %10160 = vmatpush1.bf16.msra.mxu0 %v14990_v0  ;;  %11144 = vmatpush1.bf16.msra.mxu1 %v14993_v1  ;;  %v15082_v0 = vld [vmem:[%s16786_s12 + $0x1044] ss:$16 sps:$4 sm:$0xff]   ;;  %v15085_v1 = vld [vmem:[%s16786_s12 + $0x104c] ss:$16 sps:$4 sm:$0xff]  }
 0x1e7   : > { %10161 = vmatprep.subr.bf16.mxu0 %v14998_v2  ;;  %11145 = vmatprep.subr.bf16.mxu1 %v15001_v3  ;;  %v15080_v2 = vld [vmem:[%s16786_s12 + $0x1040] ss:$16 sps:$4 sm:$0xff]   ;;  %v15083_v3 = vld [vmem:[%s16786_s12 + $0x1048] ss:$16 sps:$4 sm:$0xff]  }
 0x1ea   : > { %10162 = vmatpush1.bf16.msra.mxu0 %v14996_v4  ;;  %11146 = vmatpush1.bf16.msra.mxu1 %v14999_v5  ;;  %v15088_v4 = vld [vmem:[%s16786_s12 + $0x1064] ss:$16 sps:$4 sm:$0xff]   ;;  %v15091_v5 = vld [vmem:[%s16786_s12 + $0x106c] ss:$16 sps:$4 sm:$0xff]  }
 0x1eb   : > { %10163 = vmatprep.subr.bf16.mxu0 %v15004_v6  ;;  %11147 = vmatprep.subr.bf16.mxu1 %v15007_v7  ;;  %v15086_v6 = vld [vmem:[%s16786_s12 + $0x1060] ss:$16 sps:$4 sm:$0xff]   ;;  %v15089_v7 = vld [vmem:[%s16786_s12 + $0x1068] ss:$16 sps:$4 sm:$0xff]  }
 0x1ee   : > { %10164 = vmatpush1.bf16.msra.mxu0 %v15002_v8  ;;  %11148 = vmatpush1.bf16.msra.mxu1 %v15005_v9  ;;  %v15094_v8 = vld [vmem:[%s16786_s12 + $0x1084] ss:$16 sps:$4 sm:$0xff]   ;;  %v15097_v9 = vld [vmem:[%s16786_s12 + $0x108c] ss:$16 sps:$4 sm:$0xff]  }
 0x1ef   : > { %10165 = vmatprep.subr.bf16.mxu0 %v15010_v10  ;;  %11149 = vmatprep.subr.bf16.mxu1 %v15013_v11  ;;  %v15092_v10 = vld [vmem:[%s16786_s12 + $0x1080] ss:$16 sps:$4 sm:$0xff]   ;;  %v15095_v11 = vld [vmem:[%s16786_s12 + $0x1088] ss:$16 sps:$4 sm:$0xff]  }
 0x1f2   : > { %10166 = vmatpush1.bf16.msra.mxu0 %v15008_v12  ;;  %11150 = vmatpush1.bf16.msra.mxu1 %v15011_v13  ;;  %v15100_v12 = vld [vmem:[%s16786_s12 + $0x10a4] ss:$16 sps:$4 sm:$0xff]   ;;  %v15103_v13 = vld [vmem:[%s16786_s12 + $0x10ac] ss:$16 sps:$4 sm:$0xff]  }
 0x1f3   : > { %10167 = vmatprep.subr.bf16.mxu0 %v15016_v14  ;;  %11151 = vmatprep.subr.bf16.mxu1 %v15019_v16  ;;  %v15098_v14 = vld [vmem:[%s16786_s12 + $0x10a0] ss:$16 sps:$4 sm:$0xff]   ;;  %v15101_v16 = vld [vmem:[%s16786_s12 + $0x10a8] ss:$16 sps:$4 sm:$0xff]  }
 0x1f6   : > { %10168 = vmatpush1.bf16.msra.mxu0 %v15014_v18  ;;  %11152 = vmatpush1.bf16.msra.mxu1 %v15017_v54  ;;  %v15106_v18 = vld [vmem:[%s16786_s12 + $0x10c4] ss:$16 sps:$4 sm:$0xff]   ;;  %v15109_v54 = vld [vmem:[%s16786_s12 + $0x10cc] ss:$16 sps:$4 sm:$0xff]  }
 0x1f7   : > { %10169 = vmatprep.subr.bf16.mxu0 %v15022_v19  ;;  %11153 = vmatprep.subr.bf16.mxu1 %v15025_v20  ;;  %v15104_v19 = vld [vmem:[%s16786_s12 + $0x10c0] ss:$16 sps:$4 sm:$0xff]   ;;  %v15107_v20 = vld [vmem:[%s16786_s12 + $0x10c8] ss:$16 sps:$4 sm:$0xff]  }
 0x1fa   : > { %10170 = vmatpush1.bf16.msra.mxu0 %v15020_v21  ;;  %11154 = vmatpush1.bf16.msra.mxu1 %v15023_v22  ;;  %v15112_v21 = vld [vmem:[%s16786_s12 + $0x10e4] ss:$16 sps:$4 sm:$0xff]   ;;  %v15115_v22 = vld [vmem:[%s16786_s12 + $0x10ec] ss:$16 sps:$4 sm:$0xff]  }
 0x1fb   : > { %10171 = vmatprep.subr.bf16.mxu0 %v15028_v24  ;;  %11155 = vmatprep.subr.bf16.mxu1 %v15031_v25  ;;  %v15110_v24 = vld [vmem:[%s16786_s12 + $0x10e0] ss:$16 sps:$4 sm:$0xff]   ;;  %v15113_v25 = vld [vmem:[%s16786_s12 + $0x10e8] ss:$16 sps:$4 sm:$0xff]  }
 0x1fe   : > { %10172 = vmatpush1.bf16.msra.mxu0 %v15026_v26  ;;  %11156 = vmatpush1.bf16.msra.mxu1 %v15029_v28  ;;  %v15118_v26 = vld [vmem:[%s16786_s12 + $0x1104] ss:$16 sps:$4 sm:$0xff]   ;;  %v15121_v28 = vld [vmem:[%s16786_s12 + $0x110c] ss:$16 sps:$4 sm:$0xff]  }
 0x1ff   : > { %10173 = vmatprep.subr.bf16.mxu0 %v15034_v29  ;;  %11157 = vmatprep.subr.bf16.mxu1 %v15037_v30  ;;  %v15116_v29 = vld [vmem:[%s16786_s12 + $0x1100] ss:$16 sps:$4 sm:$0xff]   ;;  %v15119_v30 = vld [vmem:[%s16786_s12 + $0x1108] ss:$16 sps:$4 sm:$0xff]  }
 0x202   : > { %10174 = vmatpush1.bf16.msra.mxu0 %v15032_v31  ;;  %11158 = vmatpush1.bf16.msra.mxu1 %v15035_v32  ;;  %v15124_v31 = vld [vmem:[%s16786_s12 + $0x1124] ss:$16 sps:$4 sm:$0xff]   ;;  %v15127_v32 = vld [vmem:[%s16786_s12 + $0x112c] ss:$16 sps:$4 sm:$0xff]  }
 0x203   : > { %10175 = vmatprep.subr.bf16.mxu0 %v15040_v17  ;;  %11159 = vmatprep.subr.bf16.mxu1 %v15043_v33  ;;  %v15122_v17 = vld [vmem:[%s16786_s12 + $0x1120] ss:$16 sps:$4 sm:$0xff]   ;;  %v15125_v33 = vld [vmem:[%s16786_s12 + $0x1128] ss:$16 sps:$4 sm:$0xff]  }
 0x206   : > { %10176 = vmatpush1.bf16.msra.mxu0 %v15038_v34  ;;  %11160 = vmatpush1.bf16.msra.mxu1 %v15041_v35  ;;  %v15130_v34 = vld [vmem:[%s16786_s12 + $0x1144] ss:$16 sps:$4 sm:$0xff]   ;;  %v15133_v35 = vld [vmem:[%s16786_s12 + $0x114c] ss:$16 sps:$4 sm:$0xff]  }
 0x207   : > { %10177 = vmatprep.subr.bf16.mxu0 %v15046_v27  ;;  %11161 = vmatprep.subr.bf16.mxu1 %v15049_v36  ;;  %v15128_v27 = vld [vmem:[%s16786_s12 + $0x1140] ss:$16 sps:$4 sm:$0xff]   ;;  %v15131_v36 = vld [vmem:[%s16786_s12 + $0x1148] ss:$16 sps:$4 sm:$0xff]  }
 0x20a   : > { %10178 = vmatpush1.bf16.msra.mxu0 %v15044_v38  ;;  %11162 = vmatpush1.bf16.msra.mxu1 %v15047_v39  ;;  %v15136_v38 = vld [vmem:[%s16786_s12 + $0x1164] ss:$16 sps:$4 sm:$0xff]   ;;  %v15139_v39 = vld [vmem:[%s16786_s12 + $0x116c] ss:$16 sps:$4 sm:$0xff]  }
 0x20b   : > { %10179 = vmatprep.subr.bf16.mxu0 %v15052_v41  ;;  %11163 = vmatprep.subr.bf16.mxu1 %v15055_v42  ;;  %v15134_v41 = vld [vmem:[%s16786_s12 + $0x1160] ss:$16 sps:$4 sm:$0xff]   ;;  %v15137_v42 = vld [vmem:[%s16786_s12 + $0x1168] ss:$16 sps:$4 sm:$0xff]  }
 0x20e   : > { %10180 = vmatpush1.bf16.msra.mxu0 %v15050_v23  ;;  %11164 = vmatpush1.bf16.msra.mxu1 %v15053_v43  ;;  %v15142_v23 = vld [vmem:[%s16786_s12 + $0x1184] ss:$16 sps:$4 sm:$0xff]   ;;  %v15145_v43 = vld [vmem:[%s16786_s12 + $0x118c] ss:$16 sps:$4 sm:$0xff]  }
 0x20f   : > { %10181 = vmatprep.subr.bf16.mxu0 %v15058_v44  ;;  %11165 = vmatprep.subr.bf16.mxu1 %v15061_v46  ;;  %v15140_v44 = vld [vmem:[%s16786_s12 + $0x1180] ss:$16 sps:$4 sm:$0xff]   ;;  %v15143_v46 = vld [vmem:[%s16786_s12 + $0x1188] ss:$16 sps:$4 sm:$0xff]  }
 0x212   : > { %10182 = vmatpush1.bf16.msra.mxu0 %v15056_v47  ;;  %11166 = vmatpush1.bf16.msra.mxu1 %v15059_v48  ;;  %v15148_v47 = vld [vmem:[%s16786_s12 + $0x11a4] ss:$16 sps:$4 sm:$0xff]   ;;  %v15151_v48 = vld [vmem:[%s16786_s12 + $0x11ac] ss:$16 sps:$4 sm:$0xff]  }
 0x213   : > { %10183 = vmatprep.subr.bf16.mxu0 %v15064_v49  ;;  %11167 = vmatprep.subr.bf16.mxu1 %v15067_v52  ;;  %v15146_v49 = vld [vmem:[%s16786_s12 + $0x11a0] ss:$16 sps:$4 sm:$0xff]   ;;  %v15149_v52 = vld [vmem:[%s16786_s12 + $0x11a8] ss:$16 sps:$4 sm:$0xff]  }
 0x216   : > { %10184 = vmatpush1.bf16.msra.mxu0 %v15062_v53  ;;  %11168 = vmatpush1.bf16.msra.mxu1 %v15065_v55  ;;  %v15154_v53 = vld [vmem:[%s16786_s12 + $0x11c4] ss:$16 sps:$4 sm:$0xff]   ;;  %v15157_v55 = vld [vmem:[%s16786_s12 + $0x11cc] ss:$16 sps:$4 sm:$0xff]  }
 0x217   : > { %10194 = vmatprep.subr.bf16.mxu0 %v15070_v56  ;;  %11178 = vmatprep.subr.bf16.mxu1 %v15073_v57  ;;  %v15152_v56 = vld [vmem:[%s16786_s12 + $0x11c0] ss:$16 sps:$4 sm:$0xff]   ;;  %v15155_v57 = vld [vmem:[%s16786_s12 + $0x11c8] ss:$16 sps:$4 sm:$0xff]  }
 0x219   : > { %10186 = vmatmul.mubr.bf16.vlgmr.msra.gmra.mrb[0].mxu0 %v1939_v58  ;;  %11170 = vmatmul.mubr.bf16.vlgmr.msra.gmra.mrb[0].mxu1 %v1939_v58  ;;  %v15163_v58 = vld [vmem:[%s16786_s12 + $0x11ec] ss:$16 sps:$4 sm:$0xff]  }
 0x21a   : > { %10195 = vmatpush1.bf16.msra.mxu0 %v15068_v59  ;;  %11179 = vmatpush1.bf16.msra.mxu1 %v15071_v60  ;;  %v15158_v59 = vld [vmem:[%s16786_s12 + $0x11e0] ss:$16 sps:$4 sm:$0xff]   ;;  %v15161_v60 = vld [vmem:[%s16786_s12 + $0x11e8] ss:$16 sps:$4 sm:$0xff]  }
 0x21b   : > { %10196 = vmatprep.subr.bf16.mxu0 %v15076_v50  ;;  %11180 = vmatprep.subr.bf16.mxu1 %v15079_v61  ;;  %v15166_v50 = vld [vmem:[%s16786_s12 + $0x1204] ss:$16 sps:$4 sm:$0xff]   ;;  %v15169_v61 = vld [vmem:[%s16786_s12 + $0x120c] ss:$16 sps:$4 sm:$0xff]  }
 0x21c   : > { %10226 = vmatprep.mubr.bf16.mxu0 %v17394_v62  ;;  %11210 = vmatprep.mubr.bf16.mxu1 %v17394_v62 }
 0x21e   : > { %10197 = vmatpush1.bf16.msra.mxu0 %v15074_v15  ;;  %11181 = vmatpush1.bf16.msra.mxu1 %v15077_v63  ;;  %v17460_v15 = vrot.slane %v17375_v37, %v16836_v51  ;;  %v15164_v63 = vld [vmem:[%s16786_s12 + $0x1200] ss:$16 sps:$4 sm:$0xff]  }
 0x21f   : > { %10198 = vmatprep.subr.bf16.mxu0 %v15082_v0  ;;  %11182 = vmatprep.subr.bf16.mxu1 %v15085_v1  ;;  %v15167_v0 = vld [vmem:[%s16786_s12 + $0x1208] ss:$16 sps:$4 sm:$0xff]   ;;  %v15172_v1 = vld [vmem:[%s16786_s12 + $0x1224] ss:$16 sps:$4 sm:$0xff]   ;;  %v15170_v37 = vld [vmem:[%s16786_s12 + $0x1220] ss:$16 sps:$4 sm:$0xff]  }
 0x222   : > { %10199 = vmatpush1.bf16.msra.mxu0 %v15080_v2  ;;  %11183 = vmatpush1.bf16.msra.mxu1 %v15083_v3  ;;  %v15175_v2 = vld [vmem:[%s16786_s12 + $0x122c] ss:$16 sps:$4 sm:$0xff]   ;;  %v1989_v3 = vcombine.high %v17394_v62, %v17394_v62  ;;  %v15176_v62 = vld [vmem:[%s16786_s12 + $0x1240] ss:$16 sps:$4 sm:$0xff]  }
 0x223   : > { %10200 = vmatprep.subr.bf16.mxu0 %v15088_v4  ;;  %11184 = vmatprep.subr.bf16.mxu1 %v15091_v5  ;;  %v15173_v4 = vld [vmem:[%s16786_s12 + $0x1228] ss:$16 sps:$4 sm:$0xff]   ;;  %v15178_v5 = vld [vmem:[%s16786_s12 + $0x1244] ss:$16 sps:$4 sm:$0xff]  }
 0x226   : > { %10201 = vmatpush1.bf16.msra.mxu0 %v15086_v6  ;;  %11185 = vmatpush1.bf16.msra.mxu1 %v15089_v7  ;;  %v15181_v6 = vld [vmem:[%s16786_s12 + $0x124c] ss:$16 sps:$4 sm:$0xff]   ;;  %v15179_v7 = vld [vmem:[%s16786_s12 + $0x1248] ss:$16 sps:$4 sm:$0xff]  }
 0x227   : > { %10202 = vmatprep.subr.bf16.mxu0 %v15094_v8  ;;  %11186 = vmatprep.subr.bf16.mxu1 %v15097_v9  ;;  %v15184_v8 = vld [vmem:[%s16786_s12 + $0x1264] ss:$16 sps:$4 sm:$0xff]   ;;  %v15187_v9 = vld [vmem:[%s16786_s12 + $0x126c] ss:$16 sps:$4 sm:$0xff]  }
 0x22a   : > { %10203 = vmatpush1.bf16.msra.mxu0 %v15092_v10  ;;  %11187 = vmatpush1.bf16.msra.mxu1 %v15095_v11  ;;  %v15182_v10 = vld [vmem:[%s16786_s12 + $0x1260] ss:$16 sps:$4 sm:$0xff]   ;;  %v15185_v11 = vld [vmem:[%s16786_s12 + $0x1268] ss:$16 sps:$4 sm:$0xff]  }
 0x22b   : > { %10204 = vmatprep.subr.bf16.mxu0 %v15100_v12  ;;  %11188 = vmatprep.subr.bf16.mxu1 %v15103_v13  ;;  %v15190_v12 = vld [vmem:[%s16786_s12 + $0x1284] ss:$16 sps:$4 sm:$0xff]   ;;  %v15193_v13 = vld [vmem:[%s16786_s12 + $0x128c] ss:$16 sps:$4 sm:$0xff]  }
 0x22e   : > { %10205 = vmatpush1.bf16.msra.mxu0 %v15098_v14  ;;  %11189 = vmatpush1.bf16.msra.mxu1 %v15101_v16  ;;  %v15188_v14 = vld [vmem:[%s16786_s12 + $0x1280] ss:$16 sps:$4 sm:$0xff]   ;;  %v15191_v16 = vld [vmem:[%s16786_s12 + $0x1288] ss:$16 sps:$4 sm:$0xff]  }
 0x22f   : > { %10206 = vmatprep.subr.bf16.mxu0 %v15106_v18  ;;  %11190 = vmatprep.subr.bf16.mxu1 %v15109_v54  ;;  %v15196_v18 = vld [vmem:[%s16786_s12 + $0x12a4] ss:$16 sps:$4 sm:$0xff]   ;;  %v15199_v54 = vld [vmem:[%s16786_s12 + $0x12ac] ss:$16 sps:$4 sm:$0xff]  }
 0x232   : > { %10207 = vmatpush1.bf16.msra.mxu0 %v15104_v19  ;;  %11191 = vmatpush1.bf16.msra.mxu1 %v15107_v20  ;;  %v15194_v19 = vld [vmem:[%s16786_s12 + $0x12a0] ss:$16 sps:$4 sm:$0xff]   ;;  %v15197_v20 = vld [vmem:[%s16786_s12 + $0x12a8] ss:$16 sps:$4 sm:$0xff]  }
 0x233   : > { %10208 = vmatprep.subr.bf16.mxu0 %v15112_v21  ;;  %11192 = vmatprep.subr.bf16.mxu1 %v15115_v22  ;;  %v15202_v21 = vld [vmem:[%s16786_s12 + $0x12c4] ss:$16 sps:$4 sm:$0xff]   ;;  %v15205_v22 = vld [vmem:[%s16786_s12 + $0x12cc] ss:$16 sps:$4 sm:$0xff]  }
 0x236   : > { %10209 = vmatpush1.bf16.msra.mxu0 %v15110_v24  ;;  %11193 = vmatpush1.bf16.msra.mxu1 %v15113_v25  ;;  %v15200_v24 = vld [vmem:[%s16786_s12 + $0x12c0] ss:$16 sps:$4 sm:$0xff]   ;;  %v15203_v25 = vld [vmem:[%s16786_s12 + $0x12c8] ss:$16 sps:$4 sm:$0xff]  }
 0x237   : > { %10210 = vmatprep.subr.bf16.mxu0 %v15118_v26  ;;  %11194 = vmatprep.subr.bf16.mxu1 %v15121_v28  ;;  %v15208_v26 = vld [vmem:[%s16786_s12 + $0x12e4] ss:$16 sps:$4 sm:$0xff]   ;;  %v15211_v28 = vld [vmem:[%s16786_s12 + $0x12ec] ss:$16 sps:$4 sm:$0xff]  }
 0x23a   : > { %10211 = vmatpush1.bf16.msra.mxu0 %v15116_v29  ;;  %11195 = vmatpush1.bf16.msra.mxu1 %v15119_v30  ;;  %v15206_v29 = vld [vmem:[%s16786_s12 + $0x12e0] ss:$16 sps:$4 sm:$0xff]   ;;  %v15209_v30 = vld [vmem:[%s16786_s12 + $0x12e8] ss:$16 sps:$4 sm:$0xff]  }
 0x23b   : > { %10212 = vmatprep.subr.bf16.mxu0 %v15124_v31  ;;  %11196 = vmatprep.subr.bf16.mxu1 %v15127_v32  ;;  %v15214_v31 = vld [vmem:[%s16786_s12 + $0x1304] ss:$16 sps:$4 sm:$0xff]   ;;  %v15217_v32 = vld [vmem:[%s16786_s12 + $0x130c] ss:$16 sps:$4 sm:$0xff]  }
 0x23e   : > { %10213 = vmatpush1.bf16.msra.mxu0 %v15122_v17  ;;  %11197 = vmatpush1.bf16.msra.mxu1 %v15125_v33  ;;  %v15212_v17 = vld [vmem:[%s16786_s12 + $0x1300] ss:$16 sps:$4 sm:$0xff]   ;;  %v15215_v33 = vld [vmem:[%s16786_s12 + $0x1308] ss:$16 sps:$4 sm:$0xff]  }
 0x23f   : > { %10214 = vmatprep.subr.bf16.mxu0 %v15130_v34  ;;  %11198 = vmatprep.subr.bf16.mxu1 %v15133_v35  ;;  %v15220_v34 = vld [vmem:[%s16786_s12 + $0x1324] ss:$16 sps:$4 sm:$0xff]   ;;  %v15223_v35 = vld [vmem:[%s16786_s12 + $0x132c] ss:$16 sps:$4 sm:$0xff]  }
 0x242   : > { %10215 = vmatpush1.bf16.msra.mxu0 %v15128_v27  ;;  %11199 = vmatpush1.bf16.msra.mxu1 %v15131_v36  ;;  %v15218_v27 = vld [vmem:[%s16786_s12 + $0x1320] ss:$16 sps:$4 sm:$0xff]   ;;  %v15221_v36 = vld [vmem:[%s16786_s12 + $0x1328] ss:$16 sps:$4 sm:$0xff]  }
 0x243   : > { %10216 = vmatprep.subr.bf16.mxu0 %v15136_v38  ;;  %11200 = vmatprep.subr.bf16.mxu1 %v15139_v39  ;;  %v15226_v38 = vld [vmem:[%s16786_s12 + $0x1344] ss:$16 sps:$4 sm:$0xff]   ;;  %v15229_v39 = vld [vmem:[%s16786_s12 + $0x134c] ss:$16 sps:$4 sm:$0xff]  }
 0x246   : > { %10217 = vmatpush1.bf16.msra.mxu0 %v15134_v41  ;;  %11201 = vmatpush1.bf16.msra.mxu1 %v15137_v42  ;;  %v15224_v41 = vld [vmem:[%s16786_s12 + $0x1340] ss:$16 sps:$4 sm:$0xff]   ;;  %v15227_v42 = vld [vmem:[%s16786_s12 + $0x1348] ss:$16 sps:$4 sm:$0xff]  }
 0x247   : > { %10218 = vmatprep.subr.bf16.mxu0 %v15142_v23  ;;  %11202 = vmatprep.subr.bf16.mxu1 %v15145_v43  ;;  %v15232_v23 = vld [vmem:[%s16786_s12 + $0x1364] ss:$16 sps:$4 sm:$0xff]   ;;  %v15235_v43 = vld [vmem:[%s16786_s12 + $0x136c] ss:$16 sps:$4 sm:$0xff]  }
 0x24a   : > { %10219 = vmatpush1.bf16.msra.mxu0 %v15140_v44  ;;  %11203 = vmatpush1.bf16.msra.mxu1 %v15143_v46  ;;  %v15230_v44 = vld [vmem:[%s16786_s12 + $0x1360] ss:$16 sps:$4 sm:$0xff]   ;;  %v15233_v46 = vld [vmem:[%s16786_s12 + $0x1368] ss:$16 sps:$4 sm:$0xff]  }
 0x24b   : > { %10220 = vmatprep.subr.bf16.mxu0 %v15148_v47  ;;  %11204 = vmatprep.subr.bf16.mxu1 %v15151_v48  ;;  %v15238_v47 = vld [vmem:[%s16786_s12 + $0x1384] ss:$16 sps:$4 sm:$0xff]   ;;  %v15241_v48 = vld [vmem:[%s16786_s12 + $0x138c] ss:$16 sps:$4 sm:$0xff]  }
 0x24e   : > { %10221 = vmatpush1.bf16.msra.mxu0 %v15146_v49  ;;  %11205 = vmatpush1.bf16.msra.mxu1 %v15149_v52  ;;  %v15236_v49 = vld [vmem:[%s16786_s12 + $0x1380] ss:$16 sps:$4 sm:$0xff]   ;;  %v15239_v52 = vld [vmem:[%s16786_s12 + $0x1388] ss:$16 sps:$4 sm:$0xff]  }
 0x24f   : > { %10222 = vmatprep.subr.bf16.mxu0 %v15154_v53  ;;  %11206 = vmatprep.subr.bf16.mxu1 %v15157_v55  ;;  %v15244_v53 = vld [vmem:[%s16786_s12 + $0x13a4] ss:$16 sps:$4 sm:$0xff]   ;;  %v15247_v55 = vld [vmem:[%s16786_s12 + $0x13ac] ss:$16 sps:$4 sm:$0xff]  }
 0x252   : > { %10223 = vmatpush1.bf16.msra.mxu0 %v15152_v56  ;;  %11207 = vmatpush1.bf16.msra.mxu1 %v15155_v57  ;;  %v15242_v56 = vld [vmem:[%s16786_s12 + $0x13a0] ss:$16 sps:$4 sm:$0xff]   ;;  %v15245_v57 = vld [vmem:[%s16786_s12 + $0x13a8] ss:$16 sps:$4 sm:$0xff]  }
 0x253   : > { %10224 = vmatprep.subr.bf16.mxu0 %v15160_v40  ;;  %11208 = vmatprep.subr.bf16.mxu1 %v15163_v58  ;;  %v15250_v40 = vld [vmem:[%s16786_s12 + $0x13c4] ss:$16 sps:$4 sm:$0xff]   ;;  %v15253_v58 = vld [vmem:[%s16786_s12 + $0x13cc] ss:$16 sps:$4 sm:$0xff]  }
 0x256   : > { %10225 = vmatpush1.bf16.msra.mxu0 %v15158_v59  ;;  %11209 = vmatpush1.bf16.msra.mxu1 %v15161_v60  ;;  %v16609_v59 = vld [vmem:[%s16781_s8 + $0x10] sm:$0xff] }
 0x257   : > { %10235 = vmatprep.subr.bf16.mxu0 %v15166_v50  ;;  %11219 = vmatprep.subr.bf16.mxu1 %v15169_v61  ;;  %v1942_v60 = vcombine.high %v16609_v59, %v16609_v59  ;;  %v15248_v50 = vld [vmem:[%s16786_s12 + $0x13c0] ss:$16 sps:$4 sm:$0xff]   ;;  %v15251_v61 = vld [vmem:[%s16786_s12 + $0x13c8] ss:$16 sps:$4 sm:$0xff]  }
 0x258   : > { %v15332_v59 = vld [vmem:[%s16786_s12 + $0x1580] ss:$16 sps:$4 sm:$0xff]  }
 0x259   : > { %10227 = vmatmul.mubr.bf16.vlgmr.msra.gmra.mrb[0].mxu0 %v17460_v15  ;;  %11211 = vmatmul.mubr.bf16.vlgmr.msra.gmra.mrb[0].mxu1 %v17460_v15 }
 0x25a   : > { %10236 = vmatpush1.bf16.msra.mxu0 %v15164_v63  ;;  %11220 = vmatpush1.bf16.msra.mxu1 %v15167_v0  ;;  %v15256_v63 = vld [vmem:[%s16786_s12 + $0x13e4] ss:$16 sps:$4 sm:$0xff]   ;;  %v15259_v0 = vld [vmem:[%s16786_s12 + $0x13ec] ss:$16 sps:$4 sm:$0xff]  }
 0x25b   : > { %10237 = vmatprep.subr.bf16.mxu0 %v15172_v1  ;;  %11221 = vmatprep.subr.bf16.mxu1 %v15175_v2  ;;  %v17528_v1 = vrot.slane %v1942_v60, %v16836_v51  ;;  %v15254_v2 = vld [vmem:[%s16786_s12 + $0x13e0] ss:$16 sps:$4 sm:$0xff]   ;;  %v15335_v60 = vld [vmem:[%s16786_s12 + $0x1588] ss:$16 sps:$4 sm:$0xff]  }
 0x25c   : > { %10267 = vmatprep.mubr.bf16.mxu0 %v1989_v3  ;;  %11251 = vmatprep.mubr.bf16.mxu1 %v1989_v3  ;;  %v15257_v3 = vld [vmem:[%s16786_s12 + $0x13e8] ss:$16 sps:$4 sm:$0xff]  }
 0x25e   : > { %10238 = vmatpush1.bf16.msra.mxu0 %v15170_v37  ;;  %11222 = vmatpush1.bf16.msra.mxu1 %v15173_v4  ;;  %v15262_v37 = vld [vmem:[%s16786_s12 + $0x1404] ss:$16 sps:$4 sm:$0xff]   ;;  %v15265_v4 = vld [vmem:[%s16786_s12 + $0x140c] ss:$16 sps:$4 sm:$0xff]  }
 0x25f   : > { %10239 = vmatprep.subr.bf16.mxu0 %v15178_v5  ;;  %11223 = vmatprep.subr.bf16.mxu1 %v15181_v6  ;;  %v1958_v5 = vcombine.high %v17528_v1, %v17528_v1  ;;  %v1987_v6 = vcombine.high %v17460_v15, %v17460_v15  ;;  %v15266_v15 = vld [vmem:[%s16786_s12 + $0x1420] ss:$16 sps:$4 sm:$0xff]  }
 0x262   : > { %10240 = vmatpush1.bf16.msra.mxu0 %v15176_v62  ;;  %11224 = vmatpush1.bf16.msra.mxu1 %v15179_v7  ;;  %v15260_v62 = vld [vmem:[%s16786_s12 + $0x1400] ss:$16 sps:$4 sm:$0xff]   ;;  %v15263_v7 = vld [vmem:[%s16786_s12 + $0x1408] ss:$16 sps:$4 sm:$0xff]  }
 0x263   : > { %10241 = vmatprep.subr.bf16.mxu0 %v15184_v8  ;;  %11225 = vmatprep.subr.bf16.mxu1 %v15187_v9  ;;  %v15268_v8 = vld [vmem:[%s16786_s12 + $0x1424] ss:$16 sps:$4 sm:$0xff]   ;;  %v15271_v9 = vld [vmem:[%s16786_s12 + $0x142c] ss:$16 sps:$4 sm:$0xff]  }
 0x266   : > { %10242 = vmatpush1.bf16.msra.mxu0 %v15182_v10  ;;  %11226 = vmatpush1.bf16.msra.mxu1 %v15185_v11  ;;  %v17543_v10 = vrot.slane %v1958_v5, %v16836_v51  ;;  %v15269_v11 = vld [vmem:[%s16786_s12 + $0x1428] ss:$16 sps:$4 sm:$0xff]   ;;  %v15352_v5 = vld [vmem:[%s16786_s12 + $0x15e4] ss:$16 sps:$4 sm:$0xff]  }
 0x267   : > { %10243 = vmatprep.subr.bf16.mxu0 %v15190_v12  ;;  %11227 = vmatprep.subr.bf16.mxu1 %v15193_v13  ;;  %v15274_v12 = vld [vmem:[%s16786_s12 + $0x1444] ss:$16 sps:$4 sm:$0xff]   ;;  %v15277_v13 = vld [vmem:[%s16786_s12 + $0x144c] ss:$16 sps:$4 sm:$0xff]  }
 0x26a   : > { %10244 = vmatpush1.bf16.msra.mxu0 %v15188_v14  ;;  %11228 = vmatpush1.bf16.msra.mxu1 %v15191_v16  ;;  %v15272_v14 = vld [vmem:[%s16786_s12 + $0x1440] ss:$16 sps:$4 sm:$0xff]   ;;  %v15275_v16 = vld [vmem:[%s16786_s12 + $0x1448] ss:$16 sps:$4 sm:$0xff]  }
 0x26b   : > { %10245 = vmatprep.subr.bf16.mxu0 %v15196_v18  ;;  %11229 = vmatprep.subr.bf16.mxu1 %v15199_v54  ;;  %v15280_v18 = vld [vmem:[%s16786_s12 + $0x1464] ss:$16 sps:$4 sm:$0xff]   ;;  %v15283_v54 = vld [vmem:[%s16786_s12 + $0x146c] ss:$16 sps:$4 sm:$0xff]  }
 0x26e   : > { %10246 = vmatpush1.bf16.msra.mxu0 %v15194_v19  ;;  %11230 = vmatpush1.bf16.msra.mxu1 %v15197_v20  ;;  %v15278_v19 = vld [vmem:[%s16786_s12 + $0x1460] ss:$16 sps:$4 sm:$0xff]   ;;  %v15281_v20 = vld [vmem:[%s16786_s12 + $0x1468] ss:$16 sps:$4 sm:$0xff]  }
 0x26f   : > { %10247 = vmatprep.subr.bf16.mxu0 %v15202_v21  ;;  %11231 = vmatprep.subr.bf16.mxu1 %v15205_v22  ;;  %v15286_v21 = vld [vmem:[%s16786_s12 + $0x1484] ss:$16 sps:$4 sm:$0xff]   ;;  %v15289_v22 = vld [vmem:[%s16786_s12 + $0x148c] ss:$16 sps:$4 sm:$0xff]  }
 0x272   : > { %10248 = vmatpush1.bf16.msra.mxu0 %v15200_v24  ;;  %11232 = vmatpush1.bf16.msra.mxu1 %v15203_v25  ;;  %v15284_v24 = vld [vmem:[%s16786_s12 + $0x1480] ss:$16 sps:$4 sm:$0xff]   ;;  %v15287_v25 = vld [vmem:[%s16786_s12 + $0x1488] ss:$16 sps:$4 sm:$0xff]  }
 0x273   : > { %10249 = vmatprep.subr.bf16.mxu0 %v15208_v26  ;;  %11233 = vmatprep.subr.bf16.mxu1 %v15211_v28  ;;  %v15292_v26 = vld [vmem:[%s16786_s12 + $0x14a4] ss:$16 sps:$4 sm:$0xff]   ;;  %v15295_v28 = vld [vmem:[%s16786_s12 + $0x14ac] ss:$16 sps:$4 sm:$0xff]  }
 0x276   : > { %10250 = vmatpush1.bf16.msra.mxu0 %v15206_v29  ;;  %11234 = vmatpush1.bf16.msra.mxu1 %v15209_v30  ;;  %v15290_v29 = vld [vmem:[%s16786_s12 + $0x14a0] ss:$16 sps:$4 sm:$0xff]   ;;  %v15293_v30 = vld [vmem:[%s16786_s12 + $0x14a8] ss:$16 sps:$4 sm:$0xff]  }
 0x277   : > { %10251 = vmatprep.subr.bf16.mxu0 %v15214_v31  ;;  %11235 = vmatprep.subr.bf16.mxu1 %v15217_v32  ;;  %v15298_v31 = vld [vmem:[%s16786_s12 + $0x14c4] ss:$16 sps:$4 sm:$0xff]   ;;  %v15301_v32 = vld [vmem:[%s16786_s12 + $0x14cc] ss:$16 sps:$4 sm:$0xff]  }
 0x27a   : > { %10252 = vmatpush1.bf16.msra.mxu0 %v15212_v17  ;;  %11236 = vmatpush1.bf16.msra.mxu1 %v15215_v33  ;;  %v15296_v17 = vld [vmem:[%s16786_s12 + $0x14c0] ss:$16 sps:$4 sm:$0xff]   ;;  %v15299_v33 = vld [vmem:[%s16786_s12 + $0x14c8] ss:$16 sps:$4 sm:$0xff]  }
 0x27b   : > { %10253 = vmatprep.subr.bf16.mxu0 %v15220_v34  ;;  %11237 = vmatprep.subr.bf16.mxu1 %v15223_v35  ;;  %v15304_v34 = vld [vmem:[%s16786_s12 + $0x14e4] ss:$16 sps:$4 sm:$0xff]   ;;  %v15307_v35 = vld [vmem:[%s16786_s12 + $0x14ec] ss:$16 sps:$4 sm:$0xff]  }
 0x27e   : > { %10254 = vmatpush1.bf16.msra.mxu0 %v15218_v27  ;;  %11238 = vmatpush1.bf16.msra.mxu1 %v15221_v36  ;;  %v15302_v27 = vld [vmem:[%s16786_s12 + $0x14e0] ss:$16 sps:$4 sm:$0xff]   ;;  %v15305_v36 = vld [vmem:[%s16786_s12 + $0x14e8] ss:$16 sps:$4 sm:$0xff]  }
 0x27f   : > { %10255 = vmatprep.subr.bf16.mxu0 %v15226_v38  ;;  %11239 = vmatprep.subr.bf16.mxu1 %v15229_v39  ;;  %v15310_v38 = vld [vmem:[%s16786_s12 + $0x1504] ss:$16 sps:$4 sm:$0xff]   ;;  %v15313_v39 = vld [vmem:[%s16786_s12 + $0x150c] ss:$16 sps:$4 sm:$0xff]  }
 0x282   : > { %10256 = vmatpush1.bf16.msra.mxu0 %v15224_v41  ;;  %11240 = vmatpush1.bf16.msra.mxu1 %v15227_v42  ;;  %v15308_v41 = vld [vmem:[%s16786_s12 + $0x1500] ss:$16 sps:$4 sm:$0xff]   ;;  %v15311_v42 = vld [vmem:[%s16786_s12 + $0x1508] ss:$16 sps:$4 sm:$0xff]  }
 0x283   : > { %10257 = vmatprep.subr.bf16.mxu0 %v15232_v23  ;;  %11241 = vmatprep.subr.bf16.mxu1 %v15235_v43  ;;  %v15316_v23 = vld [vmem:[%s16786_s12 + $0x1524] ss:$16 sps:$4 sm:$0xff]   ;;  %v15319_v43 = vld [vmem:[%s16786_s12 + $0x152c] ss:$16 sps:$4 sm:$0xff]  }
 0x286   : > { %10258 = vmatpush1.bf16.msra.mxu0 %v15230_v44  ;;  %11242 = vmatpush1.bf16.msra.mxu1 %v15233_v46  ;;  %v15314_v44 = vld [vmem:[%s16786_s12 + $0x1520] ss:$16 sps:$4 sm:$0xff]   ;;  %v15317_v46 = vld [vmem:[%s16786_s12 + $0x1528] ss:$16 sps:$4 sm:$0xff]  }
 0x287   : > { %10259 = vmatprep.subr.bf16.mxu0 %v15238_v47  ;;  %11243 = vmatprep.subr.bf16.mxu1 %v15241_v48  ;;  %v15322_v47 = vld [vmem:[%s16786_s12 + $0x1544] ss:$16 sps:$4 sm:$0xff]   ;;  %v15325_v48 = vld [vmem:[%s16786_s12 + $0x154c] ss:$16 sps:$4 sm:$0xff]  }
 0x28a   : > { %10260 = vmatpush1.bf16.msra.mxu0 %v15236_v49  ;;  %11244 = vmatpush1.bf16.msra.mxu1 %v15239_v52  ;;  %v15320_v49 = vld [vmem:[%s16786_s12 + $0x1540] ss:$16 sps:$4 sm:$0xff]   ;;  %v15323_v52 = vld [vmem:[%s16786_s12 + $0x1548] ss:$16 sps:$4 sm:$0xff]  }
 0x28b   : > { %10261 = vmatprep.subr.bf16.mxu0 %v15244_v53  ;;  %11245 = vmatprep.subr.bf16.mxu1 %v15247_v55  ;;  %v15328_v53 = vld [vmem:[%s16786_s12 + $0x1564] ss:$16 sps:$4 sm:$0xff]   ;;  %v15331_v55 = vld [vmem:[%s16786_s12 + $0x156c] ss:$16 sps:$4 sm:$0xff]  }
 0x28e   : > { %10262 = vmatpush1.bf16.msra.mxu0 %v15242_v56  ;;  %11246 = vmatpush1.bf16.msra.mxu1 %v15245_v57  ;;  %v15326_v56 = vld [vmem:[%s16786_s12 + $0x1560] ss:$16 sps:$4 sm:$0xff]   ;;  %v15329_v57 = vld [vmem:[%s16786_s12 + $0x1568] ss:$16 sps:$4 sm:$0xff]  }
 0x28f   : > { %10263 = vmatprep.subr.bf16.mxu0 %v15250_v40  ;;  %11247 = vmatprep.subr.bf16.mxu1 %v15253_v58  ;;  %v15334_v40 = vld [vmem:[%s16786_s12 + $0x1584] ss:$16 sps:$4 sm:$0xff]   ;;  %v15337_v58 = vld [vmem:[%s16786_s12 + $0x158c] ss:$16 sps:$4 sm:$0xff]  }
 0x292   : > { %10264 = vmatpush1.bf16.msra.mxu0 %v15248_v50  ;;  %11248 = vmatpush1.bf16.msra.mxu1 %v15251_v61  ;;  %v15340_v50 = vld [vmem:[%s16786_s12 + $0x15a4] ss:$16 sps:$4 sm:$0xff]   ;;  %v15343_v61 = vld [vmem:[%s16786_s12 + $0x15ac] ss:$16 sps:$4 sm:$0xff]  }
 0x293   : > { %10265 = vmatprep.subr.bf16.mxu0 %v15256_v63  ;;  %11249 = vmatprep.subr.bf16.mxu1 %v15259_v0  ;;  %v15338_v63 = vld [vmem:[%s16786_s12 + $0x15a0] ss:$16 sps:$4 sm:$0xff]   ;;  %v15341_v0 = vld [vmem:[%s16786_s12 + $0x15a8] ss:$16 sps:$4 sm:$0xff]  }
 0x296   : > { %10266 = vmatpush1.bf16.msra.mxu0 %v15254_v2  ;;  %11250 = vmatpush1.bf16.msra.mxu1 %v15257_v3  ;;  %v15346_v2 = vld [vmem:[%s16786_s12 + $0x15c4] ss:$16 sps:$4 sm:$0xff]   ;;  %v15349_v3 = vld [vmem:[%s16786_s12 + $0x15cc] ss:$16 sps:$4 sm:$0xff]  }
 0x297   : > { %10276 = vmatprep.subr.bf16.mxu0 %v15262_v37  ;;  %11260 = vmatprep.subr.bf16.mxu1 %v15265_v4  ;;  %v15344_v37 = vld [vmem:[%s16786_s12 + $0x15c0] ss:$16 sps:$4 sm:$0xff]   ;;  %v15347_v4 = vld [vmem:[%s16786_s12 + $0x15c8] ss:$16 sps:$4 sm:$0xff]  }
 0x299   : > { %10268 = vmatmul.mubr.bf16.vlgmr.msra.gmra.mrb[0].mxu0 %v1987_v6  ;;  %11252 = vmatmul.mubr.bf16.vlgmr.msra.gmra.mrb[0].mxu1 %v1987_v6  ;;  %v15355_v6 = vld [vmem:[%s16786_s12 + $0x15ec] ss:$16 sps:$4 sm:$0xff]  }
 0x29a   : > { %10277 = vmatpush1.bf16.msra.mxu0 %v15260_v62  ;;  %11261 = vmatpush1.bf16.msra.mxu1 %v15263_v7  ;;  %v15350_v62 = vld [vmem:[%s16786_s12 + $0x15e0] ss:$16 sps:$4 sm:$0xff]   ;;  %v15353_v7 = vld [vmem:[%s16786_s12 + $0x15e8] ss:$16 sps:$4 sm:$0xff]  }
 0x29b   : > { %10278 = vmatprep.subr.bf16.mxu0 %v15268_v8  ;;  %11262 = vmatprep.subr.bf16.mxu1 %v15271_v9  ;;  %v15359_v8 = vld [vmem:[%s16786_s12 + $0x1604] ss:$16 sps:$4 sm:$0xff]   ;;  %v15362_v9 = vld [vmem:[%s16786_s12 + $0x160c] ss:$16 sps:$4 sm:$0xff]  }
 0x29c   : > { %10308 = vmatprep.mubr.bf16.mxu0 %v17543_v10  ;;  %11292 = vmatprep.mubr.bf16.mxu1 %v17543_v10 }
 0x29e   : > { %10279 = vmatpush1.bf16.msra.mxu0 %v15266_v15  ;;  %11263 = vmatpush1.bf16.msra.mxu1 %v15269_v11  ;;  %v17609_v15 = vrot.slane %v17528_v1, %v16836_v51  ;;  %v15357_v11 = vld [vmem:[%s16786_s12 + $0x1600] ss:$16 sps:$4 sm:$0xff]  }
 0x29f   : > { %10280 = vmatprep.subr.bf16.mxu0 %v15274_v12  ;;  %11264 = vmatprep.subr.bf16.mxu1 %v15277_v13  ;;  %v15360_v12 = vld [vmem:[%s16786_s12 + $0x1608] ss:$16 sps:$4 sm:$0xff]   ;;  %v15365_v13 = vld [vmem:[%s16786_s12 + $0x1624] ss:$16 sps:$4 sm:$0xff]   ;;  %v15363_v1 = vld [vmem:[%s16786_s12 + $0x1620] ss:$16 sps:$4 sm:$0xff]  }
 0x2a2   : > { %10281 = vmatpush1.bf16.msra.mxu0 %v15272_v14  ;;  %11265 = vmatpush1.bf16.msra.mxu1 %v15275_v16  ;;  %v15368_v14 = vld [vmem:[%s16786_s12 + $0x162c] ss:$16 sps:$4 sm:$0xff]   ;;  %v1990_v16 = vcombine.high %v17543_v10, %v17543_v10  ;;  %v15369_v10 = vld [vmem:[%s16786_s12 + $0x1640] ss:$16 sps:$4 sm:$0xff]  }
 0x2a3   : > { %10282 = vmatprep.subr.bf16.mxu0 %v15280_v18  ;;  %11266 = vmatprep.subr.bf16.mxu1 %v15283_v54  ;;  %v15366_v18 = vld [vmem:[%s16786_s12 + $0x1628] ss:$16 sps:$4 sm:$0xff]   ;;  %v15371_v54 = vld [vmem:[%s16786_s12 + $0x1644] ss:$16 sps:$4 sm:$0xff]  }
 0x2a6   : > { %10283 = vmatpush1.bf16.msra.mxu0 %v15278_v19  ;;  %11267 = vmatpush1.bf16.msra.mxu1 %v15281_v20  ;;  %v15374_v19 = vld [vmem:[%s16786_s12 + $0x164c] ss:$16 sps:$4 sm:$0xff]   ;;  %v15372_v20 = vld [vmem:[%s16786_s12 + $0x1648] ss:$16 sps:$4 sm:$0xff]  }
 0x2a7   : > { %10284 = vmatprep.subr.bf16.mxu0 %v15286_v21  ;;  %11268 = vmatprep.subr.bf16.mxu1 %v15289_v22  ;;  %v15377_v21 = vld [vmem:[%s16786_s12 + $0x1664] ss:$16 sps:$4 sm:$0xff]   ;;  %v15380_v22 = vld [vmem:[%s16786_s12 + $0x166c] ss:$16 sps:$4 sm:$0xff]  }
 0x2aa   : > { %10285 = vmatpush1.bf16.msra.mxu0 %v15284_v24  ;;  %11269 = vmatpush1.bf16.msra.mxu1 %v15287_v25  ;;  %v15375_v24 = vld [vmem:[%s16786_s12 + $0x1660] ss:$16 sps:$4 sm:$0xff]   ;;  %v15378_v25 = vld [vmem:[%s16786_s12 + $0x1668] ss:$16 sps:$4 sm:$0xff]  }
 0x2ab   : > { %10286 = vmatprep.subr.bf16.mxu0 %v15292_v26  ;;  %11270 = vmatprep.subr.bf16.mxu1 %v15295_v28  ;;  %v15383_v26 = vld [vmem:[%s16786_s12 + $0x1684] ss:$16 sps:$4 sm:$0xff]   ;;  %v15386_v28 = vld [vmem:[%s16786_s12 + $0x168c] ss:$16 sps:$4 sm:$0xff]  }
 0x2ae   : > { %10287 = vmatpush1.bf16.msra.mxu0 %v15290_v29  ;;  %11271 = vmatpush1.bf16.msra.mxu1 %v15293_v30  ;;  %v15381_v29 = vld [vmem:[%s16786_s12 + $0x1680] ss:$16 sps:$4 sm:$0xff]   ;;  %v15384_v30 = vld [vmem:[%s16786_s12 + $0x1688] ss:$16 sps:$4 sm:$0xff]  }
 0x2af   : > { %10288 = vmatprep.subr.bf16.mxu0 %v15298_v31  ;;  %11272 = vmatprep.subr.bf16.mxu1 %v15301_v32  ;;  %v15389_v31 = vld [vmem:[%s16786_s12 + $0x16a4] ss:$16 sps:$4 sm:$0xff]   ;;  %v15392_v32 = vld [vmem:[%s16786_s12 + $0x16ac] ss:$16 sps:$4 sm:$0xff]  }
 0x2b2   : > { %10289 = vmatpush1.bf16.msra.mxu0 %v15296_v17  ;;  %11273 = vmatpush1.bf16.msra.mxu1 %v15299_v33  ;;  %v15387_v17 = vld [vmem:[%s16786_s12 + $0x16a0] ss:$16 sps:$4 sm:$0xff]   ;;  %v15390_v33 = vld [vmem:[%s16786_s12 + $0x16a8] ss:$16 sps:$4 sm:$0xff]  }
 0x2b3   : > { %10290 = vmatprep.subr.bf16.mxu0 %v15304_v34  ;;  %11274 = vmatprep.subr.bf16.mxu1 %v15307_v35  ;;  %v15395_v34 = vld [vmem:[%s16786_s12 + $0x16c4] ss:$16 sps:$4 sm:$0xff]   ;;  %v15398_v35 = vld [vmem:[%s16786_s12 + $0x16cc] ss:$16 sps:$4 sm:$0xff]  }
 0x2b6   : > { %10291 = vmatpush1.bf16.msra.mxu0 %v15302_v27  ;;  %11275 = vmatpush1.bf16.msra.mxu1 %v15305_v36  ;;  %v15393_v27 = vld [vmem:[%s16786_s12 + $0x16c0] ss:$16 sps:$4 sm:$0xff]   ;;  %v15396_v36 = vld [vmem:[%s16786_s12 + $0x16c8] ss:$16 sps:$4 sm:$0xff]  }
 0x2b7   : > { %10292 = vmatprep.subr.bf16.mxu0 %v15310_v38  ;;  %11276 = vmatprep.subr.bf16.mxu1 %v15313_v39  ;;  %v15401_v38 = vld [vmem:[%s16786_s12 + $0x16e4] ss:$16 sps:$4 sm:$0xff]   ;;  %v15404_v39 = vld [vmem:[%s16786_s12 + $0x16ec] ss:$16 sps:$4 sm:$0xff]  }
 0x2ba   : > { %10293 = vmatpush1.bf16.msra.mxu0 %v15308_v41  ;;  %11277 = vmatpush1.bf16.msra.mxu1 %v15311_v42  ;;  %v15399_v41 = vld [vmem:[%s16786_s12 + $0x16e0] ss:$16 sps:$4 sm:$0xff]   ;;  %v15402_v42 = vld [vmem:[%s16786_s12 + $0x16e8] ss:$16 sps:$4 sm:$0xff]  }
 0x2bb   : > { %10294 = vmatprep.subr.bf16.mxu0 %v15316_v23  ;;  %11278 = vmatprep.subr.bf16.mxu1 %v15319_v43  ;;  %v15407_v23 = vld [vmem:[%s16786_s12 + $0x1704] ss:$16 sps:$4 sm:$0xff]   ;;  %v15410_v43 = vld [vmem:[%s16786_s12 + $0x170c] ss:$16 sps:$4 sm:$0xff]  }
 0x2be   : > { %10295 = vmatpush1.bf16.msra.mxu0 %v15314_v44  ;;  %11279 = vmatpush1.bf16.msra.mxu1 %v15317_v46  ;;  %v15405_v44 = vld [vmem:[%s16786_s12 + $0x1700] ss:$16 sps:$4 sm:$0xff]   ;;  %v15408_v46 = vld [vmem:[%s16786_s12 + $0x1708] ss:$16 sps:$4 sm:$0xff]  }
 0x2bf   : > { %10296 = vmatprep.subr.bf16.mxu0 %v15322_v47  ;;  %11280 = vmatprep.subr.bf16.mxu1 %v15325_v48  ;;  %v15413_v47 = vld [vmem:[%s16786_s12 + $0x1724] ss:$16 sps:$4 sm:$0xff]   ;;  %v15416_v48 = vld [vmem:[%s16786_s12 + $0x172c] ss:$16 sps:$4 sm:$0xff]  }
 0x2c2   : > { %10297 = vmatpush1.bf16.msra.mxu0 %v15320_v49  ;;  %11281 = vmatpush1.bf16.msra.mxu1 %v15323_v52  ;;  %v15411_v49 = vld [vmem:[%s16786_s12 + $0x1720] ss:$16 sps:$4 sm:$0xff]   ;;  %v15414_v52 = vld [vmem:[%s16786_s12 + $0x1728] ss:$16 sps:$4 sm:$0xff]  }
 0x2c3   : > { %10298 = vmatprep.subr.bf16.mxu0 %v15328_v53  ;;  %11282 = vmatprep.subr.bf16.mxu1 %v15331_v55  ;;  %v15419_v53 = vld [vmem:[%s16786_s12 + $0x1744] ss:$16 sps:$4 sm:$0xff]   ;;  %v15422_v55 = vld [vmem:[%s16786_s12 + $0x174c] ss:$16 sps:$4 sm:$0xff]  }
 0x2c6   : > { %10299 = vmatpush1.bf16.msra.mxu0 %v15326_v56  ;;  %11283 = vmatpush1.bf16.msra.mxu1 %v15329_v57  ;;  %v15417_v56 = vld [vmem:[%s16786_s12 + $0x1740] ss:$16 sps:$4 sm:$0xff]   ;;  %v15420_v57 = vld [vmem:[%s16786_s12 + $0x1748] ss:$16 sps:$4 sm:$0xff]  }
 0x2c7   : > { %10300 = vmatprep.subr.bf16.mxu0 %v15334_v40  ;;  %11284 = vmatprep.subr.bf16.mxu1 %v15337_v58  ;;  %v15425_v40 = vld [vmem:[%s16786_s12 + $0x1764] ss:$16 sps:$4 sm:$0xff]   ;;  %v15428_v58 = vld [vmem:[%s16786_s12 + $0x176c] ss:$16 sps:$4 sm:$0xff]  }
 0x2ca   : > { %10301 = vmatpush1.bf16.msra.mxu0 %v15332_v59  ;;  %11285 = vmatpush1.bf16.msra.mxu1 %v15335_v60  ;;  %v15423_v59 = vld [vmem:[%s16786_s12 + $0x1760] ss:$16 sps:$4 sm:$0xff]   ;;  %v15426_v60 = vld [vmem:[%s16786_s12 + $0x1768] ss:$16 sps:$4 sm:$0xff]  }
 0x2cb   : > { %10302 = vmatprep.subr.bf16.mxu0 %v15340_v50  ;;  %11286 = vmatprep.subr.bf16.mxu1 %v15343_v61  ;;  %v15431_v50 = vld [vmem:[%s16786_s12 + $0x1784] ss:$16 sps:$4 sm:$0xff]   ;;  %v15434_v61 = vld [vmem:[%s16786_s12 + $0x178c] ss:$16 sps:$4 sm:$0xff]  }
 0x2ce   : > { %10303 = vmatpush1.bf16.msra.mxu0 %v15338_v63  ;;  %11287 = vmatpush1.bf16.msra.mxu1 %v15341_v0  ;;  %v15429_v63 = vld [vmem:[%s16786_s12 + $0x1780] ss:$16 sps:$4 sm:$0xff]   ;;  %v15432_v0 = vld [vmem:[%s16786_s12 + $0x1788] ss:$16 sps:$4 sm:$0xff]  }
 0x2cf   : > { %10304 = vmatprep.subr.bf16.mxu0 %v15346_v2  ;;  %11288 = vmatprep.subr.bf16.mxu1 %v15349_v3  ;;  %v15437_v2 = vld [vmem:[%s16786_s12 + $0x17a4] ss:$16 sps:$4 sm:$0xff]   ;;  %v15440_v3 = vld [vmem:[%s16786_s12 + $0x17ac] ss:$16 sps:$4 sm:$0xff]  }
 0x2d2   : > { %10305 = vmatpush1.bf16.msra.mxu0 %v15344_v37  ;;  %11289 = vmatpush1.bf16.msra.mxu1 %v15347_v4  ;;  %v15435_v37 = vld [vmem:[%s16786_s12 + $0x17a0] ss:$16 sps:$4 sm:$0xff]   ;;  %v15438_v4 = vld [vmem:[%s16786_s12 + $0x17a8] ss:$16 sps:$4 sm:$0xff]  }
 0x2d3   : > { %10306 = vmatprep.subr.bf16.mxu0 %v15352_v5  ;;  %11290 = vmatprep.subr.bf16.mxu1 %v15355_v6  ;;  %v15443_v5 = vld [vmem:[%s16786_s12 + $0x17c4] ss:$16 sps:$4 sm:$0xff]   ;;  %v15446_v6 = vld [vmem:[%s16786_s12 + $0x17cc] ss:$16 sps:$4 sm:$0xff]  }
 0x2d6   : > { %10307 = vmatpush1.bf16.msra.mxu0 %v15350_v62  ;;  %11291 = vmatpush1.bf16.msra.mxu1 %v15353_v7  ;;  %v17672_v62 = vld [vmem:[%s16781_s8 + $0x18] sm:$0xff]  ;;  %v15441_v7 = vld [vmem:[%s16786_s12 + $0x17c0] ss:$16 sps:$4 sm:$0xff]  }
 0x2d7   : > { %10317 = vmatprep.subr.bf16.mxu0 %v15359_v8  ;;  %11301 = vmatprep.subr.bf16.mxu1 %v15362_v9  ;;  %v15444_v8 = vld [vmem:[%s16786_s12 + $0x17c8] ss:$16 sps:$4 sm:$0xff]   ;;  %v15449_v9 = vld [vmem:[%s16786_s12 + $0x17e4] ss:$16 sps:$4 sm:$0xff]  }
 0x2d9   : > { %10309 = vmatmul.mubr.bf16.vlgmr.msra.gmra.mrb[0].mxu0 %v17609_v15  ;;  %11293 = vmatmul.mubr.bf16.vlgmr.msra.gmra.mrb[0].mxu1 %v17609_v15 }
 0x2da   : > { %10318 = vmatpush1.bf16.msra.mxu0 %v15357_v11  ;;  %11302 = vmatpush1.bf16.msra.mxu1 %v15360_v12  ;;  %v15452_v11 = vld [vmem:[%s16786_s12 + $0x17ec] ss:$16 sps:$4 sm:$0xff]   ;;  %v17680_v12 = vrot.slane %v17672_v62, %v16836_v51 }
 0x2db   : > { %10319 = vmatprep.subr.bf16.mxu0 %v15365_v13  ;;  %11303 = vmatprep.subr.bf16.mxu1 %v15368_v14  ;;  %v15447_v13 = vld [vmem:[%s16786_s12 + $0x17e0] ss:$16 sps:$4 sm:$0xff]   ;;  %v15450_v14 = vld [vmem:[%s16786_s12 + $0x17e8] ss:$16 sps:$4 sm:$0xff]  }
 0x2dc   : > { %10349 = vmatprep.mubr.bf16.mxu0 %v1990_v16  ;;  %11333 = vmatprep.mubr.bf16.mxu1 %v1990_v16  ;;  %v15455_v16 = vld [vmem:[%s16786_s12 + $0x1804] ss:$16 sps:$4 sm:$0xff]  }
 0x2de   : > { %10320 = vmatpush1.bf16.msra.mxu0 %v15363_v1  ;;  %11304 = vmatpush1.bf16.msra.mxu1 %v15366_v18  ;;  %v15458_v1 = vld [vmem:[%s16786_s12 + $0x180c] ss:$16 sps:$4 sm:$0xff]   ;;  %v2006_v18 = vcombine.high %v17680_v12, %v17680_v12 }
 0x2df   : > { %10321 = vmatprep.subr.bf16.mxu0 %v15371_v54  ;;  %11305 = vmatprep.subr.bf16.mxu1 %v15374_v19  ;;  %v1988_v54 = vcombine.high %v17609_v15, %v17609_v15  ;;  %v15453_v19 = vld [vmem:[%s16786_s12 + $0x1800] ss:$16 sps:$4 sm:$0xff]  }
 0x2e0   : > { %v15459_v15 = vld [vmem:[%s16786_s12 + $0x1820] ss:$16 sps:$4 sm:$0xff]  }
 0x2e2   : > { %10322 = vmatpush1.bf16.msra.mxu0 %v15369_v10  ;;  %11306 = vmatpush1.bf16.msra.mxu1 %v15372_v20  ;;  %v15456_v10 = vld [vmem:[%s16786_s12 + $0x1808] ss:$16 sps:$4 sm:$0xff]   ;;  %v15461_v20 = vld [vmem:[%s16786_s12 + $0x1824] ss:$16 sps:$4 sm:$0xff]  }
 0x2e3   : > { %10323 = vmatprep.subr.bf16.mxu0 %v15377_v21  ;;  %11307 = vmatprep.subr.bf16.mxu1 %v15380_v22  ;;  %v15464_v21 = vld [vmem:[%s16786_s12 + $0x182c] ss:$16 sps:$4 sm:$0xff]   ;;  %v17695_v22 = vrot.slane %v2006_v18, %v16836_v51  ;;  %v15540_v18 = vld [vmem:[%s16786_s12 + $0x19c8] ss:$16 sps:$4 sm:$0xff]  }
 0x2e6   : > { %10324 = vmatpush1.bf16.msra.mxu0 %v15375_v24  ;;  %11308 = vmatpush1.bf16.msra.mxu1 %v15378_v25  ;;  %v15462_v24 = vld [vmem:[%s16786_s12 + $0x1828] ss:$16 sps:$4 sm:$0xff]   ;;  %v15467_v25 = vld [vmem:[%s16786_s12 + $0x1844] ss:$16 sps:$4 sm:$0xff]  }
 0x2e7   : > { %10325 = vmatprep.subr.bf16.mxu0 %v15383_v26  ;;  %11309 = vmatprep.subr.bf16.mxu1 %v15386_v28  ;;  %v15470_v26 = vld [vmem:[%s16786_s12 + $0x184c] ss:$16 sps:$4 sm:$0xff]   ;;  %v15465_v28 = vld [vmem:[%s16786_s12 + $0x1840] ss:$16 sps:$4 sm:$0xff]  }
 0x2ea   : > { %10326 = vmatpush1.bf16.msra.mxu0 %v15381_v29  ;;  %11310 = vmatpush1.bf16.msra.mxu1 %v15384_v30  ;;  %v15468_v29 = vld [vmem:[%s16786_s12 + $0x1848] ss:$16 sps:$4 sm:$0xff]   ;;  %v15473_v30 = vld [vmem:[%s16786_s12 + $0x1864] ss:$16 sps:$4 sm:$0xff]  }
 0x2eb   : > { %10327 = vmatprep.subr.bf16.mxu0 %v15389_v31  ;;  %11311 = vmatprep.subr.bf16.mxu1 %v15392_v32  ;;  %v15476_v31 = vld [vmem:[%s16786_s12 + $0x186c] ss:$16 sps:$4 sm:$0xff]   ;;  %v15471_v32 = vld [vmem:[%s16786_s12 + $0x1860] ss:$16 sps:$4 sm:$0xff]  }
 0x2ee   : > { %10328 = vmatpush1.bf16.msra.mxu0 %v15387_v17  ;;  %11312 = vmatpush1.bf16.msra.mxu1 %v15390_v33  ;;  %v15474_v17 = vld [vmem:[%s16786_s12 + $0x1868] ss:$16 sps:$4 sm:$0xff]   ;;  %v15479_v33 = vld [vmem:[%s16786_s12 + $0x1884] ss:$16 sps:$4 sm:$0xff]  }
 0x2ef   : > { %10329 = vmatprep.subr.bf16.mxu0 %v15395_v34  ;;  %11313 = vmatprep.subr.bf16.mxu1 %v15398_v35  ;;  %v15482_v34 = vld [vmem:[%s16786_s12 + $0x188c] ss:$16 sps:$4 sm:$0xff]   ;;  %v15477_v35 = vld [vmem:[%s16786_s12 + $0x1880] ss:$16 sps:$4 sm:$0xff]  }
 0x2f2   : > { %10330 = vmatpush1.bf16.msra.mxu0 %v15393_v27  ;;  %11314 = vmatpush1.bf16.msra.mxu1 %v15396_v36  ;;  %v15480_v27 = vld [vmem:[%s16786_s12 + $0x1888] ss:$16 sps:$4 sm:$0xff]   ;;  %v15485_v36 = vld [vmem:[%s16786_s12 + $0x18a4] ss:$16 sps:$4 sm:$0xff]  }
 0x2f3   : > { %10331 = vmatprep.subr.bf16.mxu0 %v15401_v38  ;;  %11315 = vmatprep.subr.bf16.mxu1 %v15404_v39  ;;  %v15488_v38 = vld [vmem:[%s16786_s12 + $0x18ac] ss:$16 sps:$4 sm:$0xff]   ;;  %v15483_v39 = vld [vmem:[%s16786_s12 + $0x18a0] ss:$16 sps:$4 sm:$0xff]  }
 0x2f6   : > { %10332 = vmatpush1.bf16.msra.mxu0 %v15399_v41  ;;  %11316 = vmatpush1.bf16.msra.mxu1 %v15402_v42  ;;  %v15486_v41 = vld [vmem:[%s16786_s12 + $0x18a8] ss:$16 sps:$4 sm:$0xff]   ;;  %v15491_v42 = vld [vmem:[%s16786_s12 + $0x18c4] ss:$16 sps:$4 sm:$0xff]  }
 0x2f7   : > { %10333 = vmatprep.subr.bf16.mxu0 %v15407_v23  ;;  %11317 = vmatprep.subr.bf16.mxu1 %v15410_v43  ;;  %v15494_v23 = vld [vmem:[%s16786_s12 + $0x18cc] ss:$16 sps:$4 sm:$0xff]   ;;  %v15489_v43 = vld [vmem:[%s16786_s12 + $0x18c0] ss:$16 sps:$4 sm:$0xff]  }
 0x2fa   : > { %10334 = vmatpush1.bf16.msra.mxu0 %v15405_v44  ;;  %11318 = vmatpush1.bf16.msra.mxu1 %v15408_v46  ;;  %v15492_v44 = vld [vmem:[%s16786_s12 + $0x18c8] ss:$16 sps:$4 sm:$0xff]   ;;  %v15497_v46 = vld [vmem:[%s16786_s12 + $0x18e4] ss:$16 sps:$4 sm:$0xff]  }
 0x2fb   : > { %10335 = vmatprep.subr.bf16.mxu0 %v15413_v47  ;;  %11319 = vmatprep.subr.bf16.mxu1 %v15416_v48  ;;  %v15500_v47 = vld [vmem:[%s16786_s12 + $0x18ec] ss:$16 sps:$4 sm:$0xff]   ;;  %v15495_v48 = vld [vmem:[%s16786_s12 + $0x18e0] ss:$16 sps:$4 sm:$0xff]  }
 0x2fe   : > { %10336 = vmatpush1.bf16.msra.mxu0 %v15411_v49  ;;  %11320 = vmatpush1.bf16.msra.mxu1 %v15414_v52  ;;  %v15498_v49 = vld [vmem:[%s16786_s12 + $0x18e8] ss:$16 sps:$4 sm:$0xff]   ;;  %v15503_v52 = vld [vmem:[%s16786_s12 + $0x1904] ss:$16 sps:$4 sm:$0xff]  }
 0x2ff   : > { %10337 = vmatprep.subr.bf16.mxu0 %v15419_v53  ;;  %11321 = vmatprep.subr.bf16.mxu1 %v15422_v55  ;;  %v15506_v53 = vld [vmem:[%s16786_s12 + $0x190c] ss:$16 sps:$4 sm:$0xff]   ;;  %v15501_v55 = vld [vmem:[%s16786_s12 + $0x1900] ss:$16 sps:$4 sm:$0xff]  }
 0x302   : > { %10338 = vmatpush1.bf16.msra.mxu0 %v15417_v56  ;;  %11322 = vmatpush1.bf16.msra.mxu1 %v15420_v57  ;;  %v15504_v56 = vld [vmem:[%s16786_s12 + $0x1908] ss:$16 sps:$4 sm:$0xff]   ;;  %v15509_v57 = vld [vmem:[%s16786_s12 + $0x1924] ss:$16 sps:$4 sm:$0xff]  }
 0x303   : > { %10339 = vmatprep.subr.bf16.mxu0 %v15425_v40  ;;  %11323 = vmatprep.subr.bf16.mxu1 %v15428_v58  ;;  %v15512_v40 = vld [vmem:[%s16786_s12 + $0x192c] ss:$16 sps:$4 sm:$0xff]   ;;  %v15507_v58 = vld [vmem:[%s16786_s12 + $0x1920] ss:$16 sps:$4 sm:$0xff]  }
 0x306   : > { %10340 = vmatpush1.bf16.msra.mxu0 %v15423_v59  ;;  %11324 = vmatpush1.bf16.msra.mxu1 %v15426_v60  ;;  %v15510_v59 = vld [vmem:[%s16786_s12 + $0x1928] ss:$16 sps:$4 sm:$0xff]   ;;  %v15515_v60 = vld [vmem:[%s16786_s12 + $0x1944] ss:$16 sps:$4 sm:$0xff]  }
 0x307   : > { %10341 = vmatprep.subr.bf16.mxu0 %v15431_v50  ;;  %11325 = vmatprep.subr.bf16.mxu1 %v15434_v61  ;;  %v15518_v50 = vld [vmem:[%s16786_s12 + $0x194c] ss:$16 sps:$4 sm:$0xff]   ;;  %v15513_v61 = vld [vmem:[%s16786_s12 + $0x1940] ss:$16 sps:$4 sm:$0xff]  }
 0x30a   : > { %10342 = vmatpush1.bf16.msra.mxu0 %v15429_v63  ;;  %11326 = vmatpush1.bf16.msra.mxu1 %v15432_v0  ;;  %v15516_v63 = vld [vmem:[%s16786_s12 + $0x1948] ss:$16 sps:$4 sm:$0xff]   ;;  %v15521_v0 = vld [vmem:[%s16786_s12 + $0x1964] ss:$16 sps:$4 sm:$0xff]  }
 0x30b   : > { %10343 = vmatprep.subr.bf16.mxu0 %v15437_v2  ;;  %11327 = vmatprep.subr.bf16.mxu1 %v15440_v3  ;;  %v15524_v2 = vld [vmem:[%s16786_s12 + $0x196c] ss:$16 sps:$4 sm:$0xff]   ;;  %v15519_v3 = vld [vmem:[%s16786_s12 + $0x1960] ss:$16 sps:$4 sm:$0xff]  }
 0x30e   : > { %10344 = vmatpush1.bf16.msra.mxu0 %v15435_v37  ;;  %11328 = vmatpush1.bf16.msra.mxu1 %v15438_v4  ;;  %v15522_v37 = vld [vmem:[%s16786_s12 + $0x1968] ss:$16 sps:$4 sm:$0xff]   ;;  %v15527_v4 = vld [vmem:[%s16786_s12 + $0x1984] ss:$16 sps:$4 sm:$0xff]  }
 0x30f   : > { %10345 = vmatprep.subr.bf16.mxu0 %v15443_v5  ;;  %11329 = vmatprep.subr.bf16.mxu1 %v15446_v6  ;;  %v15530_v5 = vld [vmem:[%s16786_s12 + $0x198c] ss:$16 sps:$4 sm:$0xff]   ;;  %v15525_v6 = vld [vmem:[%s16786_s12 + $0x1980] ss:$16 sps:$4 sm:$0xff]  }
 0x312   : > { %10346 = vmatpush1.bf16.msra.mxu0 %v15441_v7  ;;  %11330 = vmatpush1.bf16.msra.mxu1 %v15444_v8  ;;  %v15528_v7 = vld [vmem:[%s16786_s12 + $0x1988] ss:$16 sps:$4 sm:$0xff]   ;;  %v15533_v8 = vld [vmem:[%s16786_s12 + $0x19a4] ss:$16 sps:$4 sm:$0xff]  }
 0x313   : > { %10347 = vmatprep.subr.bf16.mxu0 %v15449_v9  ;;  %11331 = vmatprep.subr.bf16.mxu1 %v15452_v11  ;;  %v15536_v9 = vld [vmem:[%s16786_s12 + $0x19ac] ss:$16 sps:$4 sm:$0xff]   ;;  %v15531_v11 = vld [vmem:[%s16786_s12 + $0x19a0] ss:$16 sps:$4 sm:$0xff]  }
 0x316   : > { %10348 = vmatpush1.bf16.msra.mxu0 %v15447_v13  ;;  %11332 = vmatpush1.bf16.msra.mxu1 %v15450_v14  ;;  %v15534_v13 = vld [vmem:[%s16786_s12 + $0x19a8] ss:$16 sps:$4 sm:$0xff]   ;;  %v15539_v14 = vld [vmem:[%s16786_s12 + $0x19c4] ss:$16 sps:$4 sm:$0xff]  }
 0x317   : > { %10358 = vmatprep.subr.bf16.mxu0 %v15455_v16  ;;  %11342 = vmatprep.subr.bf16.mxu1 %v15458_v1  ;;  %v15542_v16 = vld [vmem:[%s16786_s12 + $0x19cc] ss:$16 sps:$4 sm:$0xff]   ;;  %v15537_v1 = vld [vmem:[%s16786_s12 + $0x19c0] ss:$16 sps:$4 sm:$0xff]  }
 0x319   : > { %10350 = vmatmul.mubr.bf16.vlgmr.msra.gmra.mrb[0].mxu0 %v1988_v54  ;;  %11334 = vmatmul.mubr.bf16.vlgmr.msra.gmra.mrb[0].mxu1 %v1988_v54  ;;  %v15545_v54 = vld [vmem:[%s16786_s12 + $0x19e4] ss:$16 sps:$4 sm:$0xff]  }
 0x31a   : > { %10359 = vmatpush1.bf16.msra.mxu0 %v15453_v19  ;;  %11343 = vmatpush1.bf16.msra.mxu1 %v15456_v10  ;;  %v15548_v19 = vld [vmem:[%s16786_s12 + $0x19ec] ss:$16 sps:$4 sm:$0xff]   ;;  %v15543_v10 = vld [vmem:[%s16786_s12 + $0x19e0] ss:$16 sps:$4 sm:$0xff]  }
 0x31b   : > { %10360 = vmatprep.subr.bf16.mxu0 %v15461_v20  ;;  %11344 = vmatprep.subr.bf16.mxu1 %v15464_v21  ;;  %v15546_v20 = vld [vmem:[%s16786_s12 + $0x19e8] ss:$16 sps:$4 sm:$0xff]   ;;  %v15551_v21 = vld [vmem:[%s16786_s12 + $0x1a04] ss:$16 sps:$4 sm:$0xff]  }
 0x31c   : > { %10390 = vmatprep.mubr.bf16.mxu0 %v17695_v22  ;;  %11374 = vmatprep.mubr.bf16.mxu1 %v17695_v22 }
 0x31e   : > { %10361 = vmatpush1.bf16.msra.mxu0 %v15459_v15  ;;  %11345 = vmatpush1.bf16.msra.mxu1 %v15462_v24  ;;  %v15554_v15 = vld [vmem:[%s16786_s12 + $0x1a0c] ss:$16 sps:$4 sm:$0xff]   ;;  %v17761_v24 = vrot.slane %v17680_v12, %v16836_v51  ;;  %v15555_v12 = vld [vmem:[%s16786_s12 + $0x1a20] ss:$16 sps:$4 sm:$0xff]  }
 0x31f   : > { %10362 = vmatprep.subr.bf16.mxu0 %v15467_v25  ;;  %11346 = vmatprep.subr.bf16.mxu1 %v15470_v26  ;;  %v15549_v25 = vld [vmem:[%s16786_s12 + $0x1a00] ss:$16 sps:$4 sm:$0xff]   ;;  %v15552_v26 = vld [vmem:[%s16786_s12 + $0x1a08] ss:$16 sps:$4 sm:$0xff]  }
 0x322   : > { %10363 = vmatpush1.bf16.msra.mxu0 %v15465_v28  ;;  %11347 = vmatpush1.bf16.msra.mxu1 %v15468_v29  ;;  %v15557_v28 = vld [vmem:[%s16786_s12 + $0x1a24] ss:$16 sps:$4 sm:$0xff]   ;;  %v15560_v29 = vld [vmem:[%s16786_s12 + $0x1a2c] ss:$16 sps:$4 sm:$0xff]  }
 0x323   : > { %10364 = vmatprep.subr.bf16.mxu0 %v15473_v30  ;;  %11348 = vmatprep.subr.bf16.mxu1 %v15476_v31  ;;  %v2038_v30 = vcombine.high %v17695_v22, %v17695_v22  ;;  %v15558_v31 = vld [vmem:[%s16786_s12 + $0x1a28] ss:$16 sps:$4 sm:$0xff]   ;;  %v15561_v22 = vld [vmem:[%s16786_s12 + $0x1a40] ss:$16 sps:$4 sm:$0xff]  }
 0x326   : > { %10365 = vmatpush1.bf16.msra.mxu0 %v15471_v32  ;;  %11349 = vmatpush1.bf16.msra.mxu1 %v15474_v17  ;;  %v15563_v32 = vld [vmem:[%s16786_s12 + $0x1a44] ss:$16 sps:$4 sm:$0xff]   ;;  %v15566_v17 = vld [vmem:[%s16786_s12 + $0x1a4c] ss:$16 sps:$4 sm:$0xff]  }
 0x327   : > { %10366 = vmatprep.subr.bf16.mxu0 %v15479_v33  ;;  %11350 = vmatprep.subr.bf16.mxu1 %v15482_v34  ;;  %v15564_v33 = vld [vmem:[%s16786_s12 + $0x1a48] ss:$16 sps:$4 sm:$0xff]   ;;  %v15569_v34 = vld [vmem:[%s16786_s12 + $0x1a64] ss:$16 sps:$4 sm:$0xff]  }
 0x32a   : > { %10367 = vmatpush1.bf16.msra.mxu0 %v15477_v35  ;;  %11351 = vmatpush1.bf16.msra.mxu1 %v15480_v27  ;;  %v15572_v35 = vld [vmem:[%s16786_s12 + $0x1a6c] ss:$16 sps:$4 sm:$0xff]   ;;  %v15567_v27 = vld [vmem:[%s16786_s12 + $0x1a60] ss:$16 sps:$4 sm:$0xff]  }
 0x32b   : > { %10368 = vmatprep.subr.bf16.mxu0 %v15485_v36  ;;  %11352 = vmatprep.subr.bf16.mxu1 %v15488_v38  ;;  %v15570_v36 = vld [vmem:[%s16786_s12 + $0x1a68] ss:$16 sps:$4 sm:$0xff]   ;;  %v15575_v38 = vld [vmem:[%s16786_s12 + $0x1a84] ss:$16 sps:$4 sm:$0xff]  }
 0x32e   : > { %10369 = vmatpush1.bf16.msra.mxu0 %v15483_v39  ;;  %11353 = vmatpush1.bf16.msra.mxu1 %v15486_v41  ;;  %v15578_v39 = vld [vmem:[%s16786_s12 + $0x1a8c] ss:$16 sps:$4 sm:$0xff]   ;;  %v15573_v41 = vld [vmem:[%s16786_s12 + $0x1a80] ss:$16 sps:$4 sm:$0xff]  }
 0x32f   : > { %10370 = vmatprep.subr.bf16.mxu0 %v15491_v42  ;;  %11354 = vmatprep.subr.bf16.mxu1 %v15494_v23  ;;  %v15576_v42 = vld [vmem:[%s16786_s12 + $0x1a88] ss:$16 sps:$4 sm:$0xff]   ;;  %v15581_v23 = vld [vmem:[%s16786_s12 + $0x1aa4] ss:$16 sps:$4 sm:$0xff]  }
 0x332   : > { %10371 = vmatpush1.bf16.msra.mxu0 %v15489_v43  ;;  %11355 = vmatpush1.bf16.msra.mxu1 %v15492_v44  ;;  %v15584_v43 = vld [vmem:[%s16786_s12 + $0x1aac] ss:$16 sps:$4 sm:$0xff]   ;;  %v15579_v44 = vld [vmem:[%s16786_s12 + $0x1aa0] ss:$16 sps:$4 sm:$0xff]  }
 0x333   : > { %10372 = vmatprep.subr.bf16.mxu0 %v15497_v46  ;;  %11356 = vmatprep.subr.bf16.mxu1 %v15500_v47  ;;  %v15582_v46 = vld [vmem:[%s16786_s12 + $0x1aa8] ss:$16 sps:$4 sm:$0xff]   ;;  %v15587_v47 = vld [vmem:[%s16786_s12 + $0x1ac4] ss:$16 sps:$4 sm:$0xff]  }
 0x336   : > { %10373 = vmatpush1.bf16.msra.mxu0 %v15495_v48  ;;  %11357 = vmatpush1.bf16.msra.mxu1 %v15498_v49  ;;  %v15590_v48 = vld [vmem:[%s16786_s12 + $0x1acc] ss:$16 sps:$4 sm:$0xff]   ;;  %v15585_v49 = vld [vmem:[%s16786_s12 + $0x1ac0] ss:$16 sps:$4 sm:$0xff]  }
 0x337   : > { %10374 = vmatprep.subr.bf16.mxu0 %v15503_v52  ;;  %11358 = vmatprep.subr.bf16.mxu1 %v15506_v53  ;;  %v15588_v52 = vld [vmem:[%s16786_s12 + $0x1ac8] ss:$16 sps:$4 sm:$0xff]   ;;  %v15593_v53 = vld [vmem:[%s16786_s12 + $0x1ae4] ss:$16 sps:$4 sm:$0xff]  }
 0x33a   : > { %10375 = vmatpush1.bf16.msra.mxu0 %v15501_v55  ;;  %11359 = vmatpush1.bf16.msra.mxu1 %v15504_v56  ;;  %v15596_v55 = vld [vmem:[%s16786_s12 + $0x1aec] ss:$16 sps:$4 sm:$0xff]   ;;  %v15591_v56 = vld [vmem:[%s16786_s12 + $0x1ae0] ss:$16 sps:$4 sm:$0xff]  }
 0x33b   : > { %10376 = vmatprep.subr.bf16.mxu0 %v15509_v57  ;;  %11360 = vmatprep.subr.bf16.mxu1 %v15512_v40  ;;  %v15594_v57 = vld [vmem:[%s16786_s12 + $0x1ae8] ss:$16 sps:$4 sm:$0xff]   ;;  %v15599_v40 = vld [vmem:[%s16786_s12 + $0x1b04] ss:$16 sps:$4 sm:$0xff]  }
 0x33e   : > { %10377 = vmatpush1.bf16.msra.mxu0 %v15507_v58  ;;  %11361 = vmatpush1.bf16.msra.mxu1 %v15510_v59  ;;  %v15602_v58 = vld [vmem:[%s16786_s12 + $0x1b0c] ss:$16 sps:$4 sm:$0xff]   ;;  %v15597_v59 = vld [vmem:[%s16786_s12 + $0x1b00] ss:$16 sps:$4 sm:$0xff]  }
 0x33f   : > { %10378 = vmatprep.subr.bf16.mxu0 %v15515_v60  ;;  %11362 = vmatprep.subr.bf16.mxu1 %v15518_v50  ;;  %v15600_v60 = vld [vmem:[%s16786_s12 + $0x1b08] ss:$16 sps:$4 sm:$0xff]   ;;  %v15605_v50 = vld [vmem:[%s16786_s12 + $0x1b24] ss:$16 sps:$4 sm:$0xff]  }
 0x342   : > { %10379 = vmatpush1.bf16.msra.mxu0 %v15513_v61  ;;  %11363 = vmatpush1.bf16.msra.mxu1 %v15516_v63  ;;  %v15608_v61 = vld [vmem:[%s16786_s12 + $0x1b2c] ss:$16 sps:$4 sm:$0xff]   ;;  %v15603_v63 = vld [vmem:[%s16786_s12 + $0x1b20] ss:$16 sps:$4 sm:$0xff]  }
 0x343   : > { %10380 = vmatprep.subr.bf16.mxu0 %v15521_v0  ;;  %11364 = vmatprep.subr.bf16.mxu1 %v15524_v2  ;;  %v15606_v0 = vld [vmem:[%s16786_s12 + $0x1b28] ss:$16 sps:$4 sm:$0xff]   ;;  %v15611_v2 = vld [vmem:[%s16786_s12 + $0x1b44] ss:$16 sps:$4 sm:$0xff]  }
 0x346   : > { %10381 = vmatpush1.bf16.msra.mxu0 %v15519_v3  ;;  %11365 = vmatpush1.bf16.msra.mxu1 %v15522_v37  ;;  %v15614_v3 = vld [vmem:[%s16786_s12 + $0x1b4c] ss:$16 sps:$4 sm:$0xff]   ;;  %v15609_v37 = vld [vmem:[%s16786_s12 + $0x1b40] ss:$16 sps:$4 sm:$0xff]  }
 0x347   : > { %10382 = vmatprep.subr.bf16.mxu0 %v15527_v4  ;;  %11366 = vmatprep.subr.bf16.mxu1 %v15530_v5  ;;  %v15612_v4 = vld [vmem:[%s16786_s12 + $0x1b48] ss:$16 sps:$4 sm:$0xff]   ;;  %v15617_v5 = vld [vmem:[%s16786_s12 + $0x1b64] ss:$16 sps:$4 sm:$0xff]  }
 0x34a   : > { %10383 = vmatpush1.bf16.msra.mxu0 %v15525_v6  ;;  %11367 = vmatpush1.bf16.msra.mxu1 %v15528_v7  ;;  %v15620_v6 = vld [vmem:[%s16786_s12 + $0x1b6c] ss:$16 sps:$4 sm:$0xff]   ;;  %v15615_v7 = vld [vmem:[%s16786_s12 + $0x1b60] ss:$16 sps:$4 sm:$0xff]  }
 0x34b   : > { %10384 = vmatprep.subr.bf16.mxu0 %v15533_v8  ;;  %11368 = vmatprep.subr.bf16.mxu1 %v15536_v9  ;;  %v15618_v8 = vld [vmem:[%s16786_s12 + $0x1b68] ss:$16 sps:$4 sm:$0xff]   ;;  %v15623_v9 = vld [vmem:[%s16786_s12 + $0x1b84] ss:$16 sps:$4 sm:$0xff]  }
 0x34e   : > { %10385 = vmatpush1.bf16.msra.mxu0 %v15531_v11  ;;  %11369 = vmatpush1.bf16.msra.mxu1 %v15534_v13  ;;  %v15626_v11 = vld [vmem:[%s16786_s12 + $0x1b8c] ss:$16 sps:$4 sm:$0xff]   ;;  %v15621_v13 = vld [vmem:[%s16786_s12 + $0x1b80] ss:$16 sps:$4 sm:$0xff]  }
 0x34f   : > { %10386 = vmatprep.subr.bf16.mxu0 %v15539_v14  ;;  %11370 = vmatprep.subr.bf16.mxu1 %v15542_v16  ;;  %v15624_v14 = vld [vmem:[%s16786_s12 + $0x1b88] ss:$16 sps:$4 sm:$0xff]   ;;  %v15629_v16 = vld [vmem:[%s16786_s12 + $0x1ba4] ss:$16 sps:$4 sm:$0xff]  }
 0x352   : > { %10387 = vmatpush1.bf16.msra.mxu0 %v15537_v1  ;;  %11371 = vmatpush1.bf16.msra.mxu1 %v15540_v18  ;;  %v15632_v1 = vld [vmem:[%s16786_s12 + $0x1bac] ss:$16 sps:$4 sm:$0xff]   ;;  %v15627_v18 = vld [vmem:[%s16786_s12 + $0x1ba0] ss:$16 sps:$4 sm:$0xff]  }
 0x353   : > { %10388 = vmatprep.subr.bf16.mxu0 %v15545_v54  ;;  %11372 = vmatprep.subr.bf16.mxu1 %v15548_v19  ;;  %v15630_v54 = vld [vmem:[%s16786_s12 + $0x1ba8] ss:$16 sps:$4 sm:$0xff]   ;;  %v15635_v19 = vld [vmem:[%s16786_s12 + $0x1bc4] ss:$16 sps:$4 sm:$0xff]  }
 0x356   : > { %10389 = vmatpush1.bf16.msra.mxu0 %v15543_v10  ;;  %11373 = vmatpush1.bf16.msra.mxu1 %v15546_v20  ;;  %v15638_v10 = vld [vmem:[%s16786_s12 + $0x1bcc] ss:$16 sps:$4 sm:$0xff]   ;;  %v1991_v20 = vcombine.high %v17672_v62, %v17672_v62  ;;  %v15639_v62 = vld [vmem:[%s16786_s12 + $0x1be0] ss:$16 sps:$4 sm:$0xff]  }
 0x357   : > { %10399 = vmatprep.subr.bf16.mxu0 %v15551_v21  ;;  %11383 = vmatprep.subr.bf16.mxu1 %v15554_v15  ;;  %v15633_v21 = vld [vmem:[%s16786_s12 + $0x1bc0] ss:$16 sps:$4 sm:$0xff]   ;;  %v15636_v15 = vld [vmem:[%s16786_s12 + $0x1bc8] ss:$16 sps:$4 sm:$0xff]  }
 0x359   : > { %10391 = vmatmul.mubr.bf16.vlgmr.msra.gmra.mrb[0].mxu0 %v17761_v24  ;;  %11375 = vmatmul.mubr.bf16.vlgmr.msra.gmra.mrb[0].mxu1 %v17761_v24 }
 0x35a   : > { %10400 = vmatpush1.bf16.msra.mxu0 %v15549_v25  ;;  %11384 = vmatpush1.bf16.msra.mxu1 %v15552_v26  ;;  %v15641_v25 = vld [vmem:[%s16786_s12 + $0x1be4] ss:$16 sps:$4 sm:$0xff]   ;;  %v15644_v26 = vld [vmem:[%s16786_s12 + $0x1bec] ss:$16 sps:$4 sm:$0xff]  }
 0x35b   : > { %10401 = vmatprep.subr.bf16.mxu0 %v15557_v28  ;;  %11385 = vmatprep.subr.bf16.mxu1 %v15560_v29  ;;  %v17830_v28 = vrot.slane %v1991_v20, %v16836_v51  ;;  %v15642_v29 = vld [vmem:[%s16786_s12 + $0x1be8] ss:$16 sps:$4 sm:$0xff]  }
 0x35c   : > { %10431 = vmatprep.mubr.bf16.mxu0 %v2038_v30  ;;  %11415 = vmatprep.mubr.bf16.mxu1 %v2038_v30  ;;  %v15647_v30 = vld [vmem:[%s16786_s12 + $0x1c04] ss:$16 sps:$4 sm:$0xff]   ;;  %v15720_v20 = vld [vmem:[%s16786_s12 + $0x1d88] ss:$16 sps:$4 sm:$0xff]  }
 0x35e   : > { %10402 = vmatpush1.bf16.msra.mxu0 %v15555_v12  ;;  %11386 = vmatpush1.bf16.msra.mxu1 %v15558_v31  ;;  %v15650_v12 = vld [vmem:[%s16786_s12 + $0x1c0c] ss:$16 sps:$4 sm:$0xff]   ;;  %v2007_v31 = vcombine.high %v17830_v28, %v17830_v28 }
 0x35f   : > { %10403 = vmatprep.subr.bf16.mxu0 %v15563_v32  ;;  %11387 = vmatprep.subr.bf16.mxu1 %v15566_v17  ;;  %v2036_v32 = vcombine.high %v17761_v24, %v17761_v24  ;;  %v15645_v17 = vld [vmem:[%s16786_s12 + $0x1c00] ss:$16 sps:$4 sm:$0xff]  }
 0x360   : > { %v15651_v24 = vld [vmem:[%s16786_s12 + $0x1c20] ss:$16 sps:$4 sm:$0xff]  }
 0x362   : > { %10404 = vmatpush1.bf16.msra.mxu0 %v15561_v22  ;;  %11388 = vmatpush1.bf16.msra.mxu1 %v15564_v33  ;;  %v15648_v22 = vld [vmem:[%s16786_s12 + $0x1c08] ss:$16 sps:$4 sm:$0xff]   ;;  %v15653_v33 = vld [vmem:[%s16786_s12 + $0x1c24] ss:$16 sps:$4 sm:$0xff]  }
 0x363   : > { %10405 = vmatprep.subr.bf16.mxu0 %v15569_v34  ;;  %11389 = vmatprep.subr.bf16.mxu1 %v15572_v35  ;;  %v15656_v34 = vld [vmem:[%s16786_s12 + $0x1c2c] ss:$16 sps:$4 sm:$0xff]   ;;  %v17845_v35 = vrot.slane %v2007_v31, %v16836_v51  ;;  %v15737_v31 = vld [vmem:[%s16786_s12 + $0x1de4] ss:$16 sps:$4 sm:$0xff]  }
 0x366   : > { %10406 = vmatpush1.bf16.msra.mxu0 %v15567_v27  ;;  %11390 = vmatpush1.bf16.msra.mxu1 %v15570_v36  ;;  %v15654_v27 = vld [vmem:[%s16786_s12 + $0x1c28] ss:$16 sps:$4 sm:$0xff]   ;;  %v15659_v36 = vld [vmem:[%s16786_s12 + $0x1c44] ss:$16 sps:$4 sm:$0xff]  }
 0x367   : > { %10407 = vmatprep.subr.bf16.mxu0 %v15575_v38  ;;  %11391 = vmatprep.subr.bf16.mxu1 %v15578_v39  ;;  %v15662_v38 = vld [vmem:[%s16786_s12 + $0x1c4c] ss:$16 sps:$4 sm:$0xff]   ;;  %v15657_v39 = vld [vmem:[%s16786_s12 + $0x1c40] ss:$16 sps:$4 sm:$0xff]  }
 0x36a   : > { %10408 = vmatpush1.bf16.msra.mxu0 %v15573_v41  ;;  %11392 = vmatpush1.bf16.msra.mxu1 %v15576_v42  ;;  %v15660_v41 = vld [vmem:[%s16786_s12 + $0x1c48] ss:$16 sps:$4 sm:$0xff]   ;;  %v15665_v42 = vld [vmem:[%s16786_s12 + $0x1c64] ss:$16 sps:$4 sm:$0xff]  }
 0x36b   : > { %10409 = vmatprep.subr.bf16.mxu0 %v15581_v23  ;;  %11393 = vmatprep.subr.bf16.mxu1 %v15584_v43  ;;  %v15668_v23 = vld [vmem:[%s16786_s12 + $0x1c6c] ss:$16 sps:$4 sm:$0xff]   ;;  %v15663_v43 = vld [vmem:[%s16786_s12 + $0x1c60] ss:$16 sps:$4 sm:$0xff]  }
 0x36e   : > { %10410 = vmatpush1.bf16.msra.mxu0 %v15579_v44  ;;  %11394 = vmatpush1.bf16.msra.mxu1 %v15582_v46  ;;  %v15666_v44 = vld [vmem:[%s16786_s12 + $0x1c68] ss:$16 sps:$4 sm:$0xff]   ;;  %v15671_v46 = vld [vmem:[%s16786_s12 + $0x1c84] ss:$16 sps:$4 sm:$0xff]  }
 0x36f   : > { %10411 = vmatprep.subr.bf16.mxu0 %v15587_v47  ;;  %11395 = vmatprep.subr.bf16.mxu1 %v15590_v48  ;;  %v15674_v47 = vld [vmem:[%s16786_s12 + $0x1c8c] ss:$16 sps:$4 sm:$0xff]   ;;  %v15669_v48 = vld [vmem:[%s16786_s12 + $0x1c80] ss:$16 sps:$4 sm:$0xff]  }
 0x372   : > { %10412 = vmatpush1.bf16.msra.mxu0 %v15585_v49  ;;  %11396 = vmatpush1.bf16.msra.mxu1 %v15588_v52  ;;  %v15672_v49 = vld [vmem:[%s16786_s12 + $0x1c88] ss:$16 sps:$4 sm:$0xff]   ;;  %v15677_v52 = vld [vmem:[%s16786_s12 + $0x1ca4] ss:$16 sps:$4 sm:$0xff]  }
 0x373   : > { %10413 = vmatprep.subr.bf16.mxu0 %v15593_v53  ;;  %11397 = vmatprep.subr.bf16.mxu1 %v15596_v55  ;;  %v15680_v53 = vld [vmem:[%s16786_s12 + $0x1cac] ss:$16 sps:$4 sm:$0xff]   ;;  %v15675_v55 = vld [vmem:[%s16786_s12 + $0x1ca0] ss:$16 sps:$4 sm:$0xff]  }
 0x376   : > { %10414 = vmatpush1.bf16.msra.mxu0 %v15591_v56  ;;  %11398 = vmatpush1.bf16.msra.mxu1 %v15594_v57  ;;  %v15678_v56 = vld [vmem:[%s16786_s12 + $0x1ca8] ss:$16 sps:$4 sm:$0xff]   ;;  %v15683_v57 = vld [vmem:[%s16786_s12 + $0x1cc4] ss:$16 sps:$4 sm:$0xff]  }
 0x377   : > { %10415 = vmatprep.subr.bf16.mxu0 %v15599_v40  ;;  %11399 = vmatprep.subr.bf16.mxu1 %v15602_v58  ;;  %v15686_v40 = vld [vmem:[%s16786_s12 + $0x1ccc] ss:$16 sps:$4 sm:$0xff]   ;;  %v15681_v58 = vld [vmem:[%s16786_s12 + $0x1cc0] ss:$16 sps:$4 sm:$0xff]  }
 0x37a   : > { %10416 = vmatpush1.bf16.msra.mxu0 %v15597_v59  ;;  %11400 = vmatpush1.bf16.msra.mxu1 %v15600_v60  ;;  %v15684_v59 = vld [vmem:[%s16786_s12 + $0x1cc8] ss:$16 sps:$4 sm:$0xff]   ;;  %v15689_v60 = vld [vmem:[%s16786_s12 + $0x1ce4] ss:$16 sps:$4 sm:$0xff]  }
 0x37b   : > { %10417 = vmatprep.subr.bf16.mxu0 %v15605_v50  ;;  %11401 = vmatprep.subr.bf16.mxu1 %v15608_v61  ;;  %v15692_v50 = vld [vmem:[%s16786_s12 + $0x1cec] ss:$16 sps:$4 sm:$0xff]   ;;  %v15687_v61 = vld [vmem:[%s16786_s12 + $0x1ce0] ss:$16 sps:$4 sm:$0xff]  }
 0x37e   : > { %10418 = vmatpush1.bf16.msra.mxu0 %v15603_v63  ;;  %11402 = vmatpush1.bf16.msra.mxu1 %v15606_v0  ;;  %v15690_v63 = vld [vmem:[%s16786_s12 + $0x1ce8] ss:$16 sps:$4 sm:$0xff]   ;;  %v15695_v0 = vld [vmem:[%s16786_s12 + $0x1d04] ss:$16 sps:$4 sm:$0xff]  }
 0x37f   : > { %10419 = vmatprep.subr.bf16.mxu0 %v15611_v2  ;;  %11403 = vmatprep.subr.bf16.mxu1 %v15614_v3  ;;  %v15698_v2 = vld [vmem:[%s16786_s12 + $0x1d0c] ss:$16 sps:$4 sm:$0xff]   ;;  %v15693_v3 = vld [vmem:[%s16786_s12 + $0x1d00] ss:$16 sps:$4 sm:$0xff]  }
 0x382   : > { %10420 = vmatpush1.bf16.msra.mxu0 %v15609_v37  ;;  %11404 = vmatpush1.bf16.msra.mxu1 %v15612_v4  ;;  %v15696_v37 = vld [vmem:[%s16786_s12 + $0x1d08] ss:$16 sps:$4 sm:$0xff]   ;;  %v15701_v4 = vld [vmem:[%s16786_s12 + $0x1d24] ss:$16 sps:$4 sm:$0xff]  }
 0x383   : > { %10421 = vmatprep.subr.bf16.mxu0 %v15617_v5  ;;  %11405 = vmatprep.subr.bf16.mxu1 %v15620_v6  ;;  %v15704_v5 = vld [vmem:[%s16786_s12 + $0x1d2c] ss:$16 sps:$4 sm:$0xff]   ;;  %v15699_v6 = vld [vmem:[%s16786_s12 + $0x1d20] ss:$16 sps:$4 sm:$0xff]  }
 0x386   : > { %10422 = vmatpush1.bf16.msra.mxu0 %v15615_v7  ;;  %11406 = vmatpush1.bf16.msra.mxu1 %v15618_v8  ;;  %v15702_v7 = vld [vmem:[%s16786_s12 + $0x1d28] ss:$16 sps:$4 sm:$0xff]   ;;  %v15707_v8 = vld [vmem:[%s16786_s12 + $0x1d44] ss:$16 sps:$4 sm:$0xff]  }
 0x387   : > { %10423 = vmatprep.subr.bf16.mxu0 %v15623_v9  ;;  %11407 = vmatprep.subr.bf16.mxu1 %v15626_v11  ;;  %v15710_v9 = vld [vmem:[%s16786_s12 + $0x1d4c] ss:$16 sps:$4 sm:$0xff]   ;;  %v15705_v11 = vld [vmem:[%s16786_s12 + $0x1d40] ss:$16 sps:$4 sm:$0xff]  }
 0x38a   : > { %10424 = vmatpush1.bf16.msra.mxu0 %v15621_v13  ;;  %11408 = vmatpush1.bf16.msra.mxu1 %v15624_v14  ;;  %v15708_v13 = vld [vmem:[%s16786_s12 + $0x1d48] ss:$16 sps:$4 sm:$0xff]   ;;  %v15713_v14 = vld [vmem:[%s16786_s12 + $0x1d64] ss:$16 sps:$4 sm:$0xff]  }
 0x38b   : > { %10425 = vmatprep.subr.bf16.mxu0 %v15629_v16  ;;  %11409 = vmatprep.subr.bf16.mxu1 %v15632_v1  ;;  %v15716_v16 = vld [vmem:[%s16786_s12 + $0x1d6c] ss:$16 sps:$4 sm:$0xff]   ;;  %v15711_v1 = vld [vmem:[%s16786_s12 + $0x1d60] ss:$16 sps:$4 sm:$0xff]  }
 0x38e   : > { %10426 = vmatpush1.bf16.msra.mxu0 %v15627_v18  ;;  %11410 = vmatpush1.bf16.msra.mxu1 %v15630_v54  ;;  %v15714_v18 = vld [vmem:[%s16786_s12 + $0x1d68] ss:$16 sps:$4 sm:$0xff]   ;;  %v15719_v54 = vld [vmem:[%s16786_s12 + $0x1d84] ss:$16 sps:$4 sm:$0xff]  }
 0x38f   : > { %10427 = vmatprep.subr.bf16.mxu0 %v15635_v19  ;;  %11411 = vmatprep.subr.bf16.mxu1 %v15638_v10  ;;  %v15722_v19 = vld [vmem:[%s16786_s12 + $0x1d8c] ss:$16 sps:$4 sm:$0xff]   ;;  %v15717_v10 = vld [vmem:[%s16786_s12 + $0x1d80] ss:$16 sps:$4 sm:$0xff]  }
 0x392   : > { %10428 = vmatpush1.bf16.msra.mxu0 %v15633_v21  ;;  %11412 = vmatpush1.bf16.msra.mxu1 %v15636_v15  ;;  %v15725_v21 = vld [vmem:[%s16786_s12 + $0x1da4] ss:$16 sps:$4 sm:$0xff]   ;;  %v15728_v15 = vld [vmem:[%s16786_s12 + $0x1dac] ss:$16 sps:$4 sm:$0xff]  }
 0x393   : > { %10429 = vmatprep.subr.bf16.mxu0 %v15641_v25  ;;  %11413 = vmatprep.subr.bf16.mxu1 %v15644_v26  ;;  %v15723_v25 = vld [vmem:[%s16786_s12 + $0x1da0] ss:$16 sps:$4 sm:$0xff]   ;;  %v15726_v26 = vld [vmem:[%s16786_s12 + $0x1da8] ss:$16 sps:$4 sm:$0xff]  }
 0x396   : > { %10430 = vmatpush1.bf16.msra.mxu0 %v15639_v62  ;;  %11414 = vmatpush1.bf16.msra.mxu1 %v15642_v29  ;;  %v15731_v62 = vld [vmem:[%s16786_s12 + $0x1dc4] ss:$16 sps:$4 sm:$0xff]   ;;  %v15734_v29 = vld [vmem:[%s16786_s12 + $0x1dcc] ss:$16 sps:$4 sm:$0xff]  }
 0x397   : > { %10440 = vmatprep.subr.bf16.mxu0 %v15647_v30  ;;  %11424 = vmatprep.subr.bf16.mxu1 %v15650_v12  ;;  %v15729_v30 = vld [vmem:[%s16786_s12 + $0x1dc0] ss:$16 sps:$4 sm:$0xff]   ;;  %v15732_v12 = vld [vmem:[%s16786_s12 + $0x1dc8] ss:$16 sps:$4 sm:$0xff]  }
 0x399   : > { %10432 = vmatmul.mubr.bf16.vlgmr.msra.gmra.mrb[0].mxu0 %v2036_v32  ;;  %11416 = vmatmul.mubr.bf16.vlgmr.msra.gmra.mrb[0].mxu1 %v2036_v32  ;;  %v15740_v32 = vld [vmem:[%s16786_s12 + $0x1dec] ss:$16 sps:$4 sm:$0xff]  }
 0x39a   : > { %10441 = vmatpush1.bf16.msra.mxu0 %v15645_v17  ;;  %11425 = vmatpush1.bf16.msra.mxu1 %v15648_v22  ;;  %v15735_v17 = vld [vmem:[%s16786_s12 + $0x1de0] ss:$16 sps:$4 sm:$0xff]   ;;  %v15738_v22 = vld [vmem:[%s16786_s12 + $0x1de8] ss:$16 sps:$4 sm:$0xff]  }
 0x39b   : > { %10442 = vmatprep.subr.bf16.mxu0 %v15653_v33  ;;  %11426 = vmatprep.subr.bf16.mxu1 %v15656_v34  ;;  %v15744_v33 = vld [vmem:[%s16786_s12 + $0x1e04] ss:$16 sps:$4 sm:$0xff]   ;;  %v15747_v34 = vld [vmem:[%s16786_s12 + $0x1e0c] ss:$16 sps:$4 sm:$0xff]  }
 0x39c   : > { %10472 = vmatprep.mubr.bf16.mxu0 %v17845_v35  ;;  %11456 = vmatprep.mubr.bf16.mxu1 %v17845_v35 }
 0x39e   : > { %10443 = vmatpush1.bf16.msra.mxu0 %v15651_v24  ;;  %11427 = vmatpush1.bf16.msra.mxu1 %v15654_v27  ;;  %v17911_v24 = vrot.slane %v17830_v28, %v16836_v51  ;;  %v15742_v27 = vld [vmem:[%s16786_s12 + $0x1e00] ss:$16 sps:$4 sm:$0xff]  }
 0x39f   : > { %10444 = vmatprep.subr.bf16.mxu0 %v15659_v36  ;;  %11428 = vmatprep.subr.bf16.mxu1 %v15662_v38  ;;  %v15745_v36 = vld [vmem:[%s16786_s12 + $0x1e08] ss:$16 sps:$4 sm:$0xff]   ;;  %v15750_v38 = vld [vmem:[%s16786_s12 + $0x1e24] ss:$16 sps:$4 sm:$0xff]   ;;  %v15748_v28 = vld [vmem:[%s16786_s12 + $0x1e20] ss:$16 sps:$4 sm:$0xff]  }
 0x3a2   : > { %10445 = vmatpush1.bf16.msra.mxu0 %v15657_v39  ;;  %11429 = vmatpush1.bf16.msra.mxu1 %v15660_v41  ;;  %v15753_v39 = vld [vmem:[%s16786_s12 + $0x1e2c] ss:$16 sps:$4 sm:$0xff]   ;;  %v2039_v41 = vcombine.high %v17845_v35, %v17845_v35  ;;  %v15754_v35 = vld [vmem:[%s16786_s12 + $0x1e40] ss:$16 sps:$4 sm:$0xff]  }
 0x3a3   : > { %10446 = vmatprep.subr.bf16.mxu0 %v15665_v42  ;;  %11430 = vmatprep.subr.bf16.mxu1 %v15668_v23  ;;  %v15751_v42 = vld [vmem:[%s16786_s12 + $0x1e28] ss:$16 sps:$4 sm:$0xff]   ;;  %v15756_v23 = vld [vmem:[%s16786_s12 + $0x1e44] ss:$16 sps:$4 sm:$0xff]  }
 0x3a6   : > { %10447 = vmatpush1.bf16.msra.mxu0 %v15663_v43  ;;  %11431 = vmatpush1.bf16.msra.mxu1 %v15666_v44  ;;  %v15759_v43 = vld [vmem:[%s16786_s12 + $0x1e4c] ss:$16 sps:$4 sm:$0xff]   ;;  %v15757_v44 = vld [vmem:[%s16786_s12 + $0x1e48] ss:$16 sps:$4 sm:$0xff]  }
 0x3a7   : > { %10448 = vmatprep.subr.bf16.mxu0 %v15671_v46  ;;  %11432 = vmatprep.subr.bf16.mxu1 %v15674_v47  ;;  %v15762_v46 = vld [vmem:[%s16786_s12 + $0x1e64] ss:$16 sps:$4 sm:$0xff]   ;;  %v15765_v47 = vld [vmem:[%s16786_s12 + $0x1e6c] ss:$16 sps:$4 sm:$0xff]  }
 0x3aa   : > { %10449 = vmatpush1.bf16.msra.mxu0 %v15669_v48  ;;  %11433 = vmatpush1.bf16.msra.mxu1 %v15672_v49  ;;  %v15760_v48 = vld [vmem:[%s16786_s12 + $0x1e60] ss:$16 sps:$4 sm:$0xff]   ;;  %v15763_v49 = vld [vmem:[%s16786_s12 + $0x1e68] ss:$16 sps:$4 sm:$0xff]  }
 0x3ab   : > { %10450 = vmatprep.subr.bf16.mxu0 %v15677_v52  ;;  %11434 = vmatprep.subr.bf16.mxu1 %v15680_v53  ;;  %v15768_v52 = vld [vmem:[%s16786_s12 + $0x1e84] ss:$16 sps:$4 sm:$0xff]   ;;  %v15771_v53 = vld [vmem:[%s16786_s12 + $0x1e8c] ss:$16 sps:$4 sm:$0xff]  }
 0x3ae   : > { %10451 = vmatpush1.bf16.msra.mxu0 %v15675_v55  ;;  %11435 = vmatpush1.bf16.msra.mxu1 %v15678_v56  ;;  %v15766_v55 = vld [vmem:[%s16786_s12 + $0x1e80] ss:$16 sps:$4 sm:$0xff]   ;;  %v15769_v56 = vld [vmem:[%s16786_s12 + $0x1e88] ss:$16 sps:$4 sm:$0xff]  }
 0x3af   : > { %10452 = vmatprep.subr.bf16.mxu0 %v15683_v57  ;;  %11436 = vmatprep.subr.bf16.mxu1 %v15686_v40  ;;  %v15774_v57 = vld [vmem:[%s16786_s12 + $0x1ea4] ss:$16 sps:$4 sm:$0xff]   ;;  %v15777_v40 = vld [vmem:[%s16786_s12 + $0x1eac] ss:$16 sps:$4 sm:$0xff]  }
 0x3b2   : > { %10453 = vmatpush1.bf16.msra.mxu0 %v15681_v58  ;;  %11437 = vmatpush1.bf16.msra.mxu1 %v15684_v59  ;;  %v15772_v58 = vld [vmem:[%s16786_s12 + $0x1ea0] ss:$16 sps:$4 sm:$0xff]   ;;  %v15775_v59 = vld [vmem:[%s16786_s12 + $0x1ea8] ss:$16 sps:$4 sm:$0xff]  }
 0x3b3   : > { %10454 = vmatprep.subr.bf16.mxu0 %v15689_v60  ;;  %11438 = vmatprep.subr.bf16.mxu1 %v15692_v50  ;;  %v15780_v60 = vld [vmem:[%s16786_s12 + $0x1ec4] ss:$16 sps:$4 sm:$0xff]   ;;  %v15783_v50 = vld [vmem:[%s16786_s12 + $0x1ecc] ss:$16 sps:$4 sm:$0xff]  }
 0x3b6   : > { %10455 = vmatpush1.bf16.msra.mxu0 %v15687_v61  ;;  %11439 = vmatpush1.bf16.msra.mxu1 %v15690_v63  ;;  %v15778_v61 = vld [vmem:[%s16786_s12 + $0x1ec0] ss:$16 sps:$4 sm:$0xff]   ;;  %v15781_v63 = vld [vmem:[%s16786_s12 + $0x1ec8] ss:$16 sps:$4 sm:$0xff]  }
 0x3b7   : > { %10456 = vmatprep.subr.bf16.mxu0 %v15695_v0  ;;  %11440 = vmatprep.subr.bf16.mxu1 %v15698_v2  ;;  %v15786_v0 = vld [vmem:[%s16786_s12 + $0x1ee4] ss:$16 sps:$4 sm:$0xff]   ;;  %v15789_v2 = vld [vmem:[%s16786_s12 + $0x1eec] ss:$16 sps:$4 sm:$0xff]  }
 0x3ba   : > { %10457 = vmatpush1.bf16.msra.mxu0 %v15693_v3  ;;  %11441 = vmatpush1.bf16.msra.mxu1 %v15696_v37  ;;  %v15784_v3 = vld [vmem:[%s16786_s12 + $0x1ee0] ss:$16 sps:$4 sm:$0xff]   ;;  %v15787_v37 = vld [vmem:[%s16786_s12 + $0x1ee8] ss:$16 sps:$4 sm:$0xff]  }
 0x3bb   : > { %10458 = vmatprep.subr.bf16.mxu0 %v15701_v4  ;;  %11442 = vmatprep.subr.bf16.mxu1 %v15704_v5  ;;  %v15792_v4 = vld [vmem:[%s16786_s12 + $0x1f04] ss:$16 sps:$4 sm:$0xff]   ;;  %v15795_v5 = vld [vmem:[%s16786_s12 + $0x1f0c] ss:$16 sps:$4 sm:$0xff]  }
 0x3be   : > { %10459 = vmatpush1.bf16.msra.mxu0 %v15699_v6  ;;  %11443 = vmatpush1.bf16.msra.mxu1 %v15702_v7  ;;  %v15790_v6 = vld [vmem:[%s16786_s12 + $0x1f00] ss:$16 sps:$4 sm:$0xff]   ;;  %v15793_v7 = vld [vmem:[%s16786_s12 + $0x1f08] ss:$16 sps:$4 sm:$0xff]  }
 0x3bf   : > { %10460 = vmatprep.subr.bf16.mxu0 %v15707_v8  ;;  %11444 = vmatprep.subr.bf16.mxu1 %v15710_v9  ;;  %v15798_v8 = vld [vmem:[%s16786_s12 + $0x1f24] ss:$16 sps:$4 sm:$0xff]   ;;  %v15801_v9 = vld [vmem:[%s16786_s12 + $0x1f2c] ss:$16 sps:$4 sm:$0xff]  }
 0x3c2   : > { %10461 = vmatpush1.bf16.msra.mxu0 %v15705_v11  ;;  %11445 = vmatpush1.bf16.msra.mxu1 %v15708_v13  ;;  %v15796_v11 = vld [vmem:[%s16786_s12 + $0x1f20] ss:$16 sps:$4 sm:$0xff]   ;;  %v15799_v13 = vld [vmem:[%s16786_s12 + $0x1f28] ss:$16 sps:$4 sm:$0xff]  }
 0x3c3   : > { %10462 = vmatprep.subr.bf16.mxu0 %v15713_v14  ;;  %11446 = vmatprep.subr.bf16.mxu1 %v15716_v16  ;;  %v15804_v14 = vld [vmem:[%s16786_s12 + $0x1f44] ss:$16 sps:$4 sm:$0xff]   ;;  %v15807_v16 = vld [vmem:[%s16786_s12 + $0x1f4c] ss:$16 sps:$4 sm:$0xff]  }
 0x3c6   : > { %10463 = vmatpush1.bf16.msra.mxu0 %v15711_v1  ;;  %11447 = vmatpush1.bf16.msra.mxu1 %v15714_v18  ;;  %v15802_v1 = vld [vmem:[%s16786_s12 + $0x1f40] ss:$16 sps:$4 sm:$0xff]   ;;  %v15805_v18 = vld [vmem:[%s16786_s12 + $0x1f48] ss:$16 sps:$4 sm:$0xff]  }
 0x3c7   : > { %10464 = vmatprep.subr.bf16.mxu0 %v15719_v54  ;;  %11448 = vmatprep.subr.bf16.mxu1 %v15722_v19  ;;  %v15810_v54 = vld [vmem:[%s16786_s12 + $0x1f64] ss:$16 sps:$4 sm:$0xff]   ;;  %v15813_v19 = vld [vmem:[%s16786_s12 + $0x1f6c] ss:$16 sps:$4 sm:$0xff]  }
 0x3ca   : > { %10465 = vmatpush1.bf16.msra.mxu0 %v15717_v10  ;;  %11449 = vmatpush1.bf16.msra.mxu1 %v15720_v20  ;;  %v15808_v10 = vld [vmem:[%s16786_s12 + $0x1f60] ss:$16 sps:$4 sm:$0xff]   ;;  %v15811_v20 = vld [vmem:[%s16786_s12 + $0x1f68] ss:$16 sps:$4 sm:$0xff]  }
 0x3cb   : > { %10466 = vmatprep.subr.bf16.mxu0 %v15725_v21  ;;  %11450 = vmatprep.subr.bf16.mxu1 %v15728_v15  ;;  %v15816_v21 = vld [vmem:[%s16786_s12 + $0x1f84] ss:$16 sps:$4 sm:$0xff]   ;;  %v15819_v15 = vld [vmem:[%s16786_s12 + $0x1f8c] ss:$16 sps:$4 sm:$0xff]  }
 0x3ce   : > { %10467 = vmatpush1.bf16.msra.mxu0 %v15723_v25  ;;  %11451 = vmatpush1.bf16.msra.mxu1 %v15726_v26  ;;  %v15814_v25 = vld [vmem:[%s16786_s12 + $0x1f80] ss:$16 sps:$4 sm:$0xff]   ;;  %v15817_v26 = vld [vmem:[%s16786_s12 + $0x1f88] ss:$16 sps:$4 sm:$0xff]  }
 0x3cf   : > { %10468 = vmatprep.subr.bf16.mxu0 %v15731_v62  ;;  %11452 = vmatprep.subr.bf16.mxu1 %v15734_v29  ;;  %v15822_v62 = vld [vmem:[%s16786_s12 + $0x1fa4] ss:$16 sps:$4 sm:$0xff]   ;;  %v15825_v29 = vld [vmem:[%s16786_s12 + $0x1fac] ss:$16 sps:$4 sm:$0xff]  }
 0x3d2   : > { %10469 = vmatpush1.bf16.msra.mxu0 %v15729_v30  ;;  %11453 = vmatpush1.bf16.msra.mxu1 %v15732_v12  ;;  %v15820_v30 = vld [vmem:[%s16786_s12 + $0x1fa0] ss:$16 sps:$4 sm:$0xff]   ;;  %v15823_v12 = vld [vmem:[%s16786_s12 + $0x1fa8] ss:$16 sps:$4 sm:$0xff]  }
 0x3d3   : > { %10470 = vmatprep.subr.bf16.mxu0 %v15737_v31  ;;  %11454 = vmatprep.subr.bf16.mxu1 %v15740_v32  ;;  %v15828_v31 = vld [vmem:[%s16786_s12 + $0x1fc4] ss:$16 sps:$4 sm:$0xff]   ;;  %v15831_v32 = vld [vmem:[%s16786_s12 + $0x1fcc] ss:$16 sps:$4 sm:$0xff]  }
 0x3d6   : > { %10471 = vmatpush1.bf16.msra.mxu0 %v15735_v17  ;;  %11455 = vmatpush1.bf16.msra.mxu1 %v15738_v22  ;;  %v17974_v17 = vld [vmem:[%s16781_s8 + $0x20] sm:$0xff] }
 0x3d7   : > { %10481 = vmatprep.subr.bf16.mxu0 %v15744_v33  ;;  %11465 = vmatprep.subr.bf16.mxu1 %v15747_v34  ;;  %v15826_v22 = vld [vmem:[%s16786_s12 + $0x1fc0] ss:$16 sps:$4 sm:$0xff]   ;;  %v15829_v33 = vld [vmem:[%s16786_s12 + $0x1fc8] ss:$16 sps:$4 sm:$0xff]   ;;  %v15834_v34 = vld [vmem:[%s16786_s12 + $0x1fe4] ss:$16 sps:$4 sm:$0xff]  }
 0x3d9   : > { %10473 = vmatmul.mubr.bf16.vlgmr.msra.gmra.mrb[0].mxu0 %v17911_v24  ;;  %11457 = vmatmul.mubr.bf16.vlgmr.msra.gmra.mrb[0].mxu1 %v17911_v24 }
 0x3da   : > { %10482 = vmatpush1.bf16.msra.mxu0 %v15742_v27  ;;  %11466 = vmatpush1.bf16.msra.mxu1 %v15745_v36  ;;  %v15837_v27 = vld [vmem:[%s16786_s12 + $0x1fec] ss:$16 sps:$4 sm:$0xff]   ;;  %v17982_v36 = vrot.slane %v17974_v17, %v16836_v51 }
 0x3db   : > { %10483 = vmatprep.subr.bf16.mxu0 %v15750_v38  ;;  %11467 = vmatprep.subr.bf16.mxu1 %v15753_v39  ;;  %v15832_v38 = vld [vmem:[%s16786_s12 + $0x1fe0] ss:$16 sps:$4 sm:$0xff]   ;;  %v15835_v39 = vld [vmem:[%s16786_s12 + $0x1fe8] ss:$16 sps:$4 sm:$0xff]  }
 0x3dc   : > { %10513 = vmatprep.mubr.bf16.mxu0 %v2039_v41  ;;  %11497 = vmatprep.mubr.bf16.mxu1 %v2039_v41  ;;  %v15840_v41 = vld [vmem:[%s16786_s12 + $0x2004] ss:$16 sps:$4 sm:$0xff]  }
 0x3de   : > { %10484 = vmatpush1.bf16.msra.mxu0 %v15748_v28  ;;  %11468 = vmatpush1.bf16.msra.mxu1 %v15751_v42  ;;  %v15843_v28 = vld [vmem:[%s16786_s12 + $0x200c] ss:$16 sps:$4 sm:$0xff]   ;;  %v2055_v42 = vcombine.high %v17982_v36, %v17982_v36 }
 0x3df   : > { %10485 = vmatprep.subr.bf16.mxu0 %v15756_v23  ;;  %11469 = vmatprep.subr.bf16.mxu1 %v15759_v43  ;;  %v2037_v23 = vcombine.high %v17911_v24, %v17911_v24  ;;  %v15838_v43 = vld [vmem:[%s16786_s12 + $0x2000] ss:$16 sps:$4 sm:$0xff]  }
 0x3e0   : > { %v15844_v24 = vld [vmem:[%s16786_s12 + $0x2020] ss:$16 sps:$4 sm:$0xff]  }
 0x3e2   : > { %10486 = vmatpush1.bf16.msra.mxu0 %v15754_v35  ;;  %11470 = vmatpush1.bf16.msra.mxu1 %v15757_v44  ;;  %v15841_v35 = vld [vmem:[%s16786_s12 + $0x2008] ss:$16 sps:$4 sm:$0xff]   ;;  %v15846_v44 = vld [vmem:[%s16786_s12 + $0x2024] ss:$16 sps:$4 sm:$0xff]  }
 0x3e3   : > { %10487 = vmatprep.subr.bf16.mxu0 %v15762_v46  ;;  %11471 = vmatprep.subr.bf16.mxu1 %v15765_v47  ;;  %v15849_v46 = vld [vmem:[%s16786_s12 + $0x202c] ss:$16 sps:$4 sm:$0xff]   ;;  %v17997_v47 = vrot.slane %v2055_v42, %v16836_v51  ;;  %v15925_v42 = vld [vmem:[%s16786_s12 + $0x21c8] ss:$16 sps:$4 sm:$0xff]  }
 0x3e6   : > { %10488 = vmatpush1.bf16.msra.mxu0 %v15760_v48  ;;  %11472 = vmatpush1.bf16.msra.mxu1 %v15763_v49  ;;  %v15847_v48 = vld [vmem:[%s16786_s12 + $0x2028] ss:$16 sps:$4 sm:$0xff]   ;;  %v15852_v49 = vld [vmem:[%s16786_s12 + $0x2044] ss:$16 sps:$4 sm:$0xff]  }
 0x3e7   : > { %10489 = vmatprep.subr.bf16.mxu0 %v15768_v52  ;;  %11473 = vmatprep.subr.bf16.mxu1 %v15771_v53  ;;  %v15855_v52 = vld [vmem:[%s16786_s12 + $0x204c] ss:$16 sps:$4 sm:$0xff]   ;;  %v15850_v53 = vld [vmem:[%s16786_s12 + $0x2040] ss:$16 sps:$4 sm:$0xff]  }
 0x3ea   : > { %10490 = vmatpush1.bf16.msra.mxu0 %v15766_v55  ;;  %11474 = vmatpush1.bf16.msra.mxu1 %v15769_v56  ;;  %v15853_v55 = vld [vmem:[%s16786_s12 + $0x2048] ss:$16 sps:$4 sm:$0xff]   ;;  %v15858_v56 = vld [vmem:[%s16786_s12 + $0x2064] ss:$16 sps:$4 sm:$0xff]  }
 0x3eb   : > { %10491 = vmatprep.subr.bf16.mxu0 %v15774_v57  ;;  %11475 = vmatprep.subr.bf16.mxu1 %v15777_v40  ;;  %v15861_v57 = vld [vmem:[%s16786_s12 + $0x206c] ss:$16 sps:$4 sm:$0xff]   ;;  %v15856_v40 = vld [vmem:[%s16786_s12 + $0x2060] ss:$16 sps:$4 sm:$0xff]  }
 0x3ee   : > { %10492 = vmatpush1.bf16.msra.mxu0 %v15772_v58  ;;  %11476 = vmatpush1.bf16.msra.mxu1 %v15775_v59  ;;  %v15859_v58 = vld [vmem:[%s16786_s12 + $0x2068] ss:$16 sps:$4 sm:$0xff]   ;;  %v15864_v59 = vld [vmem:[%s16786_s12 + $0x2084] ss:$16 sps:$4 sm:$0xff]  }
 0x3ef   : > { %10493 = vmatprep.subr.bf16.mxu0 %v15780_v60  ;;  %11477 = vmatprep.subr.bf16.mxu1 %v15783_v50  ;;  %v15867_v60 = vld [vmem:[%s16786_s12 + $0x208c] ss:$16 sps:$4 sm:$0xff]   ;;  %v15862_v50 = vld [vmem:[%s16786_s12 + $0x2080] ss:$16 sps:$4 sm:$0xff]  }
 0x3f2   : > { %10494 = vmatpush1.bf16.msra.mxu0 %v15778_v61  ;;  %11478 = vmatpush1.bf16.msra.mxu1 %v15781_v63  ;;  %v15865_v61 = vld [vmem:[%s16786_s12 + $0x2088] ss:$16 sps:$4 sm:$0xff]   ;;  %v15870_v63 = vld [vmem:[%s16786_s12 + $0x20a4] ss:$16 sps:$4 sm:$0xff]  }
 0x3f3   : > { %10495 = vmatprep.subr.bf16.mxu0 %v15786_v0  ;;  %11479 = vmatprep.subr.bf16.mxu1 %v15789_v2  ;;  %v15873_v0 = vld [vmem:[%s16786_s12 + $0x20ac] ss:$16 sps:$4 sm:$0xff]   ;;  %v15868_v2 = vld [vmem:[%s16786_s12 + $0x20a0] ss:$16 sps:$4 sm:$0xff]  }
 0x3f6   : > { %10496 = vmatpush1.bf16.msra.mxu0 %v15784_v3  ;;  %11480 = vmatpush1.bf16.msra.mxu1 %v15787_v37  ;;  %v15871_v3 = vld [vmem:[%s16786_s12 + $0x20a8] ss:$16 sps:$4 sm:$0xff]   ;;  %v15876_v37 = vld [vmem:[%s16786_s12 + $0x20c4] ss:$16 sps:$4 sm:$0xff]  }
 0x3f7   : > { %10497 = vmatprep.subr.bf16.mxu0 %v15792_v4  ;;  %11481 = vmatprep.subr.bf16.mxu1 %v15795_v5  ;;  %v15879_v4 = vld [vmem:[%s16786_s12 + $0x20cc] ss:$16 sps:$4 sm:$0xff]   ;;  %v15874_v5 = vld [vmem:[%s16786_s12 + $0x20c0] ss:$16 sps:$4 sm:$0xff]  }
 0x3fa   : > { %10498 = vmatpush1.bf16.msra.mxu0 %v15790_v6  ;;  %11482 = vmatpush1.bf16.msra.mxu1 %v15793_v7  ;;  %v15877_v6 = vld [vmem:[%s16786_s12 + $0x20c8] ss:$16 sps:$4 sm:$0xff]   ;;  %v15882_v7 = vld [vmem:[%s16786_s12 + $0x20e4] ss:$16 sps:$4 sm:$0xff]  }
 0x3fb   : > { %10499 = vmatprep.subr.bf16.mxu0 %v15798_v8  ;;  %11483 = vmatprep.subr.bf16.mxu1 %v15801_v9  ;;  %v15885_v8 = vld [vmem:[%s16786_s12 + $0x20ec] ss:$16 sps:$4 sm:$0xff]   ;;  %v15880_v9 = vld [vmem:[%s16786_s12 + $0x20e0] ss:$16 sps:$4 sm:$0xff]  }
 0x3fe   : > { %10500 = vmatpush1.bf16.msra.mxu0 %v15796_v11  ;;  %11484 = vmatpush1.bf16.msra.mxu1 %v15799_v13  ;;  %v15883_v11 = vld [vmem:[%s16786_s12 + $0x20e8] ss:$16 sps:$4 sm:$0xff]   ;;  %v15888_v13 = vld [vmem:[%s16786_s12 + $0x2104] ss:$16 sps:$4 sm:$0xff]  }
 0x3ff   : > { %10501 = vmatprep.subr.bf16.mxu0 %v15804_v14  ;;  %11485 = vmatprep.subr.bf16.mxu1 %v15807_v16  ;;  %v15891_v14 = vld [vmem:[%s16786_s12 + $0x210c] ss:$16 sps:$4 sm:$0xff]   ;;  %v15886_v16 = vld [vmem:[%s16786_s12 + $0x2100] ss:$16 sps:$4 sm:$0xff]  }
 0x402   : > { %10502 = vmatpush1.bf16.msra.mxu0 %v15802_v1  ;;  %11486 = vmatpush1.bf16.msra.mxu1 %v15805_v18  ;;  %v15889_v1 = vld [vmem:[%s16786_s12 + $0x2108] ss:$16 sps:$4 sm:$0xff]   ;;  %v15894_v18 = vld [vmem:[%s16786_s12 + $0x2124] ss:$16 sps:$4 sm:$0xff]  }
 0x403   : > { %10503 = vmatprep.subr.bf16.mxu0 %v15810_v54  ;;  %11487 = vmatprep.subr.bf16.mxu1 %v15813_v19  ;;  %v15897_v54 = vld [vmem:[%s16786_s12 + $0x212c] ss:$16 sps:$4 sm:$0xff]   ;;  %v15892_v19 = vld [vmem:[%s16786_s12 + $0x2120] ss:$16 sps:$4 sm:$0xff]  }
 0x406   : > { %10504 = vmatpush1.bf16.msra.mxu0 %v15808_v10  ;;  %11488 = vmatpush1.bf16.msra.mxu1 %v15811_v20  ;;  %v15895_v10 = vld [vmem:[%s16786_s12 + $0x2128] ss:$16 sps:$4 sm:$0xff]   ;;  %v15900_v20 = vld [vmem:[%s16786_s12 + $0x2144] ss:$16 sps:$4 sm:$0xff]  }
 0x407   : > { %10505 = vmatprep.subr.bf16.mxu0 %v15816_v21  ;;  %11489 = vmatprep.subr.bf16.mxu1 %v15819_v15  ;;  %v15903_v21 = vld [vmem:[%s16786_s12 + $0x214c] ss:$16 sps:$4 sm:$0xff]   ;;  %v15898_v15 = vld [vmem:[%s16786_s12 + $0x2140] ss:$16 sps:$4 sm:$0xff]  }
 0x40a   : > { %10506 = vmatpush1.bf16.msra.mxu0 %v15814_v25  ;;  %11490 = vmatpush1.bf16.msra.mxu1 %v15817_v26  ;;  %v15901_v25 = vld [vmem:[%s16786_s12 + $0x2148] ss:$16 sps:$4 sm:$0xff]   ;;  %v15906_v26 = vld [vmem:[%s16786_s12 + $0x2164] ss:$16 sps:$4 sm:$0xff]  }
 0x40b   : > { %10507 = vmatprep.subr.bf16.mxu0 %v15822_v62  ;;  %11491 = vmatprep.subr.bf16.mxu1 %v15825_v29  ;;  %v15909_v62 = vld [vmem:[%s16786_s12 + $0x216c] ss:$16 sps:$4 sm:$0xff]   ;;  %v15904_v29 = vld [vmem:[%s16786_s12 + $0x2160] ss:$16 sps:$4 sm:$0xff]  }
 0x40e   : > { %10508 = vmatpush1.bf16.msra.mxu0 %v15820_v30  ;;  %11492 = vmatpush1.bf16.msra.mxu1 %v15823_v12  ;;  %v15907_v30 = vld [vmem:[%s16786_s12 + $0x2168] ss:$16 sps:$4 sm:$0xff]   ;;  %v15912_v12 = vld [vmem:[%s16786_s12 + $0x2184] ss:$16 sps:$4 sm:$0xff]  }
 0x40f   : > { %10509 = vmatprep.subr.bf16.mxu0 %v15828_v31  ;;  %11493 = vmatprep.subr.bf16.mxu1 %v15831_v32  ;;  %v15915_v31 = vld [vmem:[%s16786_s12 + $0x218c] ss:$16 sps:$4 sm:$0xff]   ;;  %v15910_v32 = vld [vmem:[%s16786_s12 + $0x2180] ss:$16 sps:$4 sm:$0xff]  }
 0x412   : > { %10510 = vmatpush1.bf16.msra.mxu0 %v15826_v22  ;;  %11494 = vmatpush1.bf16.msra.mxu1 %v15829_v33  ;;  %v15913_v22 = vld [vmem:[%s16786_s12 + $0x2188] ss:$16 sps:$4 sm:$0xff]   ;;  %v15918_v33 = vld [vmem:[%s16786_s12 + $0x21a4] ss:$16 sps:$4 sm:$0xff]  }
 0x413   : > { %10511 = vmatprep.subr.bf16.mxu0 %v15834_v34  ;;  %11495 = vmatprep.subr.bf16.mxu1 %v15837_v27  ;;  %v15921_v34 = vld [vmem:[%s16786_s12 + $0x21ac] ss:$16 sps:$4 sm:$0xff]   ;;  %v15916_v27 = vld [vmem:[%s16786_s12 + $0x21a0] ss:$16 sps:$4 sm:$0xff]  }
 0x416   : > { %10512 = vmatpush1.bf16.msra.mxu0 %v15832_v38  ;;  %11496 = vmatpush1.bf16.msra.mxu1 %v15835_v39  ;;  %v15919_v38 = vld [vmem:[%s16786_s12 + $0x21a8] ss:$16 sps:$4 sm:$0xff]   ;;  %v15924_v39 = vld [vmem:[%s16786_s12 + $0x21c4] ss:$16 sps:$4 sm:$0xff]  }
 0x417   : > { %10522 = vmatprep.subr.bf16.mxu0 %v15840_v41  ;;  %11506 = vmatprep.subr.bf16.mxu1 %v15843_v28  ;;  %v15927_v41 = vld [vmem:[%s16786_s12 + $0x21cc] ss:$16 sps:$4 sm:$0xff]   ;;  %v15922_v28 = vld [vmem:[%s16786_s12 + $0x21c0] ss:$16 sps:$4 sm:$0xff]  }
 0x419   : > { %10514 = vmatmul.mubr.bf16.vlgmr.msra.gmra.mrb[0].mxu0 %v2037_v23  ;;  %11498 = vmatmul.mubr.bf16.vlgmr.msra.gmra.mrb[0].mxu1 %v2037_v23  ;;  %v15930_v23 = vld [vmem:[%s16786_s12 + $0x21e4] ss:$16 sps:$4 sm:$0xff]  }
 0x41a   : > { %10523 = vmatpush1.bf16.msra.mxu0 %v15838_v43  ;;  %11507 = vmatpush1.bf16.msra.mxu1 %v15841_v35  ;;  %v15933_v43 = vld [vmem:[%s16786_s12 + $0x21ec] ss:$16 sps:$4 sm:$0xff]   ;;  %v15928_v35 = vld [vmem:[%s16786_s12 + $0x21e0] ss:$16 sps:$4 sm:$0xff]  }
 0x41b   : > { %10524 = vmatprep.subr.bf16.mxu0 %v15846_v44  ;;  %11508 = vmatprep.subr.bf16.mxu1 %v15849_v46  ;;  %v15931_v44 = vld [vmem:[%s16786_s12 + $0x21e8] ss:$16 sps:$4 sm:$0xff]   ;;  %v15936_v46 = vld [vmem:[%s16786_s12 + $0x2204] ss:$16 sps:$4 sm:$0xff]  }
 0x41c   : > { %10554 = vmatprep.mubr.bf16.mxu0 %v17997_v47  ;;  %11538 = vmatprep.mubr.bf16.mxu1 %v17997_v47 }
 0x41e   : > { %10525 = vmatpush1.bf16.msra.mxu0 %v15844_v24  ;;  %11509 = vmatpush1.bf16.msra.mxu1 %v15847_v48  ;;  %v15939_v24 = vld [vmem:[%s16786_s12 + $0x220c] ss:$16 sps:$4 sm:$0xff]   ;;  %v18063_v48 = vrot.slane %v17982_v36, %v16836_v51  ;;  %v15940_v36 = vld [vmem:[%s16786_s12 + $0x2220] ss:$16 sps:$4 sm:$0xff]  }
 0x41f   : > { %10526 = vmatprep.subr.bf16.mxu0 %v15852_v49  ;;  %11510 = vmatprep.subr.bf16.mxu1 %v15855_v52  ;;  %v15934_v49 = vld [vmem:[%s16786_s12 + $0x2200] ss:$16 sps:$4 sm:$0xff]   ;;  %v15937_v52 = vld [vmem:[%s16786_s12 + $0x2208] ss:$16 sps:$4 sm:$0xff]  }
 0x422   : > { %10527 = vmatpush1.bf16.msra.mxu0 %v15850_v53  ;;  %11511 = vmatpush1.bf16.msra.mxu1 %v15853_v55  ;;  %v15942_v53 = vld [vmem:[%s16786_s12 + $0x2224] ss:$16 sps:$4 sm:$0xff]   ;;  %v15945_v55 = vld [vmem:[%s16786_s12 + $0x222c] ss:$16 sps:$4 sm:$0xff]  }
 0x423   : > { %10528 = vmatprep.subr.bf16.mxu0 %v15858_v56  ;;  %11512 = vmatprep.subr.bf16.mxu1 %v15861_v57  ;;  %v2087_v56 = vcombine.high %v17997_v47, %v17997_v47  ;;  %v15943_v57 = vld [vmem:[%s16786_s12 + $0x2228] ss:$16 sps:$4 sm:$0xff]   ;;  %v15946_v47 = vld [vmem:[%s16786_s12 + $0x2240] ss:$16 sps:$4 sm:$0xff]  }
 0x426   : > { %10529 = vmatpush1.bf16.msra.mxu0 %v15856_v40  ;;  %11513 = vmatpush1.bf16.msra.mxu1 %v15859_v58  ;;  %v15948_v40 = vld [vmem:[%s16786_s12 + $0x2244] ss:$16 sps:$4 sm:$0xff]   ;;  %v15951_v58 = vld [vmem:[%s16786_s12 + $0x224c] ss:$16 sps:$4 sm:$0xff]  }
 0x427   : > { %10530 = vmatprep.subr.bf16.mxu0 %v15864_v59  ;;  %11514 = vmatprep.subr.bf16.mxu1 %v15867_v60  ;;  %v15949_v59 = vld [vmem:[%s16786_s12 + $0x2248] ss:$16 sps:$4 sm:$0xff]   ;;  %v15954_v60 = vld [vmem:[%s16786_s12 + $0x2264] ss:$16 sps:$4 sm:$0xff]  }
 0x42a   : > { %10531 = vmatpush1.bf16.msra.mxu0 %v15862_v50  ;;  %11515 = vmatpush1.bf16.msra.mxu1 %v15865_v61  ;;  %v15957_v50 = vld [vmem:[%s16786_s12 + $0x226c] ss:$16 sps:$4 sm:$0xff]   ;;  %v15952_v61 = vld [vmem:[%s16786_s12 + $0x2260] ss:$16 sps:$4 sm:$0xff]  }
 0x42b   : > { %10532 = vmatprep.subr.bf16.mxu0 %v15870_v63  ;;  %11516 = vmatprep.subr.bf16.mxu1 %v15873_v0  ;;  %v15955_v63 = vld [vmem:[%s16786_s12 + $0x2268] ss:$16 sps:$4 sm:$0xff]   ;;  %v15960_v0 = vld [vmem:[%s16786_s12 + $0x2284] ss:$16 sps:$4 sm:$0xff]  }
 0x42e   : > { %10533 = vmatpush1.bf16.msra.mxu0 %v15868_v2  ;;  %11517 = vmatpush1.bf16.msra.mxu1 %v15871_v3  ;;  %v15963_v2 = vld [vmem:[%s16786_s12 + $0x228c] ss:$16 sps:$4 sm:$0xff]   ;;  %v15958_v3 = vld [vmem:[%s16786_s12 + $0x2280] ss:$16 sps:$4 sm:$0xff]  }
 0x42f   : > { %10534 = vmatprep.subr.bf16.mxu0 %v15876_v37  ;;  %11518 = vmatprep.subr.bf16.mxu1 %v15879_v4  ;;  %v15961_v37 = vld [vmem:[%s16786_s12 + $0x2288] ss:$16 sps:$4 sm:$0xff]   ;;  %v15966_v4 = vld [vmem:[%s16786_s12 + $0x22a4] ss:$16 sps:$4 sm:$0xff]  }
 0x432   : > { %10535 = vmatpush1.bf16.msra.mxu0 %v15874_v5  ;;  %11519 = vmatpush1.bf16.msra.mxu1 %v15877_v6  ;;  %v15969_v5 = vld [vmem:[%s16786_s12 + $0x22ac] ss:$16 sps:$4 sm:$0xff]   ;;  %v15964_v6 = vld [vmem:[%s16786_s12 + $0x22a0] ss:$16 sps:$4 sm:$0xff]  }
 0x433   : > { %10536 = vmatprep.subr.bf16.mxu0 %v15882_v7  ;;  %11520 = vmatprep.subr.bf16.mxu1 %v15885_v8  ;;  %v15967_v7 = vld [vmem:[%s16786_s12 + $0x22a8] ss:$16 sps:$4 sm:$0xff]   ;;  %v15972_v8 = vld [vmem:[%s16786_s12 + $0x22c4] ss:$16 sps:$4 sm:$0xff]  }
 0x436   : > { %10537 = vmatpush1.bf16.msra.mxu0 %v15880_v9  ;;  %11521 = vmatpush1.bf16.msra.mxu1 %v15883_v11  ;;  %v15975_v9 = vld [vmem:[%s16786_s12 + $0x22cc] ss:$16 sps:$4 sm:$0xff]   ;;  %v15970_v11 = vld [vmem:[%s16786_s12 + $0x22c0] ss:$16 sps:$4 sm:$0xff]  }
 0x437   : > { %10538 = vmatprep.subr.bf16.mxu0 %v15888_v13  ;;  %11522 = vmatprep.subr.bf16.mxu1 %v15891_v14  ;;  %v15973_v13 = vld [vmem:[%s16786_s12 + $0x22c8] ss:$16 sps:$4 sm:$0xff]   ;;  %v15978_v14 = vld [vmem:[%s16786_s12 + $0x22e4] ss:$16 sps:$4 sm:$0xff]  }
 0x43a   : > { %10539 = vmatpush1.bf16.msra.mxu0 %v15886_v16  ;;  %11523 = vmatpush1.bf16.msra.mxu1 %v15889_v1  ;;  %v15981_v16 = vld [vmem:[%s16786_s12 + $0x22ec] ss:$16 sps:$4 sm:$0xff]   ;;  %v15976_v1 = vld [vmem:[%s16786_s12 + $0x22e0] ss:$16 sps:$4 sm:$0xff]  }
 0x43b   : > { %10540 = vmatprep.subr.bf16.mxu0 %v15894_v18  ;;  %11524 = vmatprep.subr.bf16.mxu1 %v15897_v54  ;;  %v15979_v18 = vld [vmem:[%s16786_s12 + $0x22e8] ss:$16 sps:$4 sm:$0xff]   ;;  %v15984_v54 = vld [vmem:[%s16786_s12 + $0x2304] ss:$16 sps:$4 sm:$0xff]  }
 0x43e   : > { %10541 = vmatpush1.bf16.msra.mxu0 %v15892_v19  ;;  %11525 = vmatpush1.bf16.msra.mxu1 %v15895_v10  ;;  %v15987_v19 = vld [vmem:[%s16786_s12 + $0x230c] ss:$16 sps:$4 sm:$0xff]   ;;  %v15982_v10 = vld [vmem:[%s16786_s12 + $0x2300] ss:$16 sps:$4 sm:$0xff]  }
 0x43f   : > { %10542 = vmatprep.subr.bf16.mxu0 %v15900_v20  ;;  %11526 = vmatprep.subr.bf16.mxu1 %v15903_v21  ;;  %v15985_v20 = vld [vmem:[%s16786_s12 + $0x2308] ss:$16 sps:$4 sm:$0xff]   ;;  %v15990_v21 = vld [vmem:[%s16786_s12 + $0x2324] ss:$16 sps:$4 sm:$0xff]  }
 0x442   : > { %10543 = vmatpush1.bf16.msra.mxu0 %v15898_v15  ;;  %11527 = vmatpush1.bf16.msra.mxu1 %v15901_v25  ;;  %v15993_v15 = vld [vmem:[%s16786_s12 + $0x232c] ss:$16 sps:$4 sm:$0xff]   ;;  %v15988_v25 = vld [vmem:[%s16786_s12 + $0x2320] ss:$16 sps:$4 sm:$0xff]  }
 0x443   : > { %10544 = vmatprep.subr.bf16.mxu0 %v15906_v26  ;;  %11528 = vmatprep.subr.bf16.mxu1 %v15909_v62  ;;  %v15991_v26 = vld [vmem:[%s16786_s12 + $0x2328] ss:$16 sps:$4 sm:$0xff]   ;;  %v15996_v62 = vld [vmem:[%s16786_s12 + $0x2344] ss:$16 sps:$4 sm:$0xff]  }
 0x446   : > { %10545 = vmatpush1.bf16.msra.mxu0 %v15904_v29  ;;  %11529 = vmatpush1.bf16.msra.mxu1 %v15907_v30  ;;  %v15999_v29 = vld [vmem:[%s16786_s12 + $0x234c] ss:$16 sps:$4 sm:$0xff]   ;;  %v15994_v30 = vld [vmem:[%s16786_s12 + $0x2340] ss:$16 sps:$4 sm:$0xff]  }
 0x447   : > { %10546 = vmatprep.subr.bf16.mxu0 %v15912_v12  ;;  %11530 = vmatprep.subr.bf16.mxu1 %v15915_v31  ;;  %v15997_v12 = vld [vmem:[%s16786_s12 + $0x2348] ss:$16 sps:$4 sm:$0xff]   ;;  %v16002_v31 = vld [vmem:[%s16786_s12 + $0x2364] ss:$16 sps:$4 sm:$0xff]  }
 0x44a   : > { %10547 = vmatpush1.bf16.msra.mxu0 %v15910_v32  ;;  %11531 = vmatpush1.bf16.msra.mxu1 %v15913_v22  ;;  %v16005_v32 = vld [vmem:[%s16786_s12 + $0x236c] ss:$16 sps:$4 sm:$0xff]   ;;  %v16000_v22 = vld [vmem:[%s16786_s12 + $0x2360] ss:$16 sps:$4 sm:$0xff]  }
 0x44b   : > { %10548 = vmatprep.subr.bf16.mxu0 %v15918_v33  ;;  %11532 = vmatprep.subr.bf16.mxu1 %v15921_v34  ;;  %v16003_v33 = vld [vmem:[%s16786_s12 + $0x2368] ss:$16 sps:$4 sm:$0xff]   ;;  %v16008_v34 = vld [vmem:[%s16786_s12 + $0x2384] ss:$16 sps:$4 sm:$0xff]  }
 0x44e   : > { %10549 = vmatpush1.bf16.msra.mxu0 %v15916_v27  ;;  %11533 = vmatpush1.bf16.msra.mxu1 %v15919_v38  ;;  %v16011_v27 = vld [vmem:[%s16786_s12 + $0x238c] ss:$16 sps:$4 sm:$0xff]   ;;  %v16006_v38 = vld [vmem:[%s16786_s12 + $0x2380] ss:$16 sps:$4 sm:$0xff]  }
 0x44f   : > { %10550 = vmatprep.subr.bf16.mxu0 %v15924_v39  ;;  %11534 = vmatprep.subr.bf16.mxu1 %v15927_v41  ;;  %v16009_v39 = vld [vmem:[%s16786_s12 + $0x2388] ss:$16 sps:$4 sm:$0xff]   ;;  %v16014_v41 = vld [vmem:[%s16786_s12 + $0x23a4] ss:$16 sps:$4 sm:$0xff]  }
 0x452   : > { %10551 = vmatpush1.bf16.msra.mxu0 %v15922_v28  ;;  %11535 = vmatpush1.bf16.msra.mxu1 %v15925_v42  ;;  %v16017_v28 = vld [vmem:[%s16786_s12 + $0x23ac] ss:$16 sps:$4 sm:$0xff]   ;;  %v16012_v42 = vld [vmem:[%s16786_s12 + $0x23a0] ss:$16 sps:$4 sm:$0xff]  }
 0x453   : > { %10552 = vmatprep.subr.bf16.mxu0 %v15930_v23  ;;  %11536 = vmatprep.subr.bf16.mxu1 %v15933_v43  ;;  %v16015_v23 = vld [vmem:[%s16786_s12 + $0x23a8] ss:$16 sps:$4 sm:$0xff]   ;;  %v16020_v43 = vld [vmem:[%s16786_s12 + $0x23c4] ss:$16 sps:$4 sm:$0xff]  }
 0x456   : > { %10553 = vmatpush1.bf16.msra.mxu0 %v15928_v35  ;;  %11537 = vmatpush1.bf16.msra.mxu1 %v15931_v44  ;;  %v16023_v35 = vld [vmem:[%s16786_s12 + $0x23cc] ss:$16 sps:$4 sm:$0xff]   ;;  %v2040_v44 = vcombine.high %v17974_v17, %v17974_v17  ;;  %v16024_v17 = vld [vmem:[%s16786_s12 + $0x23e0] ss:$16 sps:$4 sm:$0xff]  }
 0x457   : > { %10563 = vmatprep.subr.bf16.mxu0 %v15936_v46  ;;  %11547 = vmatprep.subr.bf16.mxu1 %v15939_v24  ;;  %v16018_v46 = vld [vmem:[%s16786_s12 + $0x23c0] ss:$16 sps:$4 sm:$0xff]   ;;  %v16021_v24 = vld [vmem:[%s16786_s12 + $0x23c8] ss:$16 sps:$4 sm:$0xff]  }
 0x459   : > { %10555 = vmatmul.mubr.bf16.vlgmr.msra.gmra.mrb[0].mxu0 %v18063_v48  ;;  %11539 = vmatmul.mubr.bf16.vlgmr.msra.gmra.mrb[0].mxu1 %v18063_v48 }
 0x45a   : > { %10564 = vmatpush1.bf16.msra.mxu0 %v15934_v49  ;;  %11548 = vmatpush1.bf16.msra.mxu1 %v15937_v52  ;;  %v16026_v49 = vld [vmem:[%s16786_s12 + $0x23e4] ss:$16 sps:$4 sm:$0xff]   ;;  %v16029_v52 = vld [vmem:[%s16786_s12 + $0x23ec] ss:$16 sps:$4 sm:$0xff]  }
 0x45b   : > { %10565 = vmatprep.subr.bf16.mxu0 %v15942_v53  ;;  %11549 = vmatprep.subr.bf16.mxu1 %v15945_v55  ;;  %v18132_v53 = vrot.slane %v2040_v44, %v16836_v51  ;;  %v16027_v55 = vld [vmem:[%s16786_s12 + $0x23e8] ss:$16 sps:$4 sm:$0xff]  }
 0x45c   : > { %10595 = vmatprep.mubr.bf16.mxu0 %v2087_v56  ;;  %11579 = vmatprep.mubr.bf16.mxu1 %v2087_v56  ;;  %v16032_v56 = vld [vmem:[%s16786_s12 + $0x2404] ss:$16 sps:$4 sm:$0xff]   ;;  %v16105_v44 = vld [vmem:[%s16786_s12 + $0x2588] ss:$16 sps:$4 sm:$0xff]  }
 0x45e   : > { %10566 = vmatpush1.bf16.msra.mxu0 %v15940_v36  ;;  %11550 = vmatpush1.bf16.msra.mxu1 %v15943_v57  ;;  %v16035_v36 = vld [vmem:[%s16786_s12 + $0x240c] ss:$16 sps:$4 sm:$0xff]   ;;  %v2056_v57 = vcombine.high %v18132_v53, %v18132_v53 }
 0x45f   : > { %10567 = vmatprep.subr.bf16.mxu0 %v15948_v40  ;;  %11551 = vmatprep.subr.bf16.mxu1 %v15951_v58  ;;  %v2085_v40 = vcombine.high %v18063_v48, %v18063_v48  ;;  %v16030_v58 = vld [vmem:[%s16786_s12 + $0x2400] ss:$16 sps:$4 sm:$0xff]  }
 0x460   : > { %v16036_v48 = vld [vmem:[%s16786_s12 + $0x2420] ss:$16 sps:$4 sm:$0xff]  }
 0x462   : > { %10568 = vmatpush1.bf16.msra.mxu0 %v15946_v47  ;;  %11552 = vmatpush1.bf16.msra.mxu1 %v15949_v59  ;;  %v16033_v47 = vld [vmem:[%s16786_s12 + $0x2408] ss:$16 sps:$4 sm:$0xff]   ;;  %v16038_v59 = vld [vmem:[%s16786_s12 + $0x2424] ss:$16 sps:$4 sm:$0xff]  }
 0x463   : > { %10569 = vmatprep.subr.bf16.mxu0 %v15954_v60  ;;  %11553 = vmatprep.subr.bf16.mxu1 %v15957_v50  ;;  %v16041_v60 = vld [vmem:[%s16786_s12 + $0x242c] ss:$16 sps:$4 sm:$0xff]   ;;  %v18147_v50 = vrot.slane %v2056_v57, %v16836_v51  ;;  %v16122_v57 = vld [vmem:[%s16786_s12 + $0x25e4] ss:$16 sps:$4 sm:$0xff]  }
 0x466   : > { %10570 = vmatpush1.bf16.msra.mxu0 %v15952_v61  ;;  %11554 = vmatpush1.bf16.msra.mxu1 %v15955_v63  ;;  %v16039_v61 = vld [vmem:[%s16786_s12 + $0x2428] ss:$16 sps:$4 sm:$0xff]   ;;  %v16044_v63 = vld [vmem:[%s16786_s12 + $0x2444] ss:$16 sps:$4 sm:$0xff]  }
 0x467   : > { %10571 = vmatprep.subr.bf16.mxu0 %v15960_v0  ;;  %11555 = vmatprep.subr.bf16.mxu1 %v15963_v2  ;;  %v16047_v0 = vld [vmem:[%s16786_s12 + $0x244c] ss:$16 sps:$4 sm:$0xff]   ;;  %v16042_v2 = vld [vmem:[%s16786_s12 + $0x2440] ss:$16 sps:$4 sm:$0xff]  }
 0x46a   : > { %10572 = vmatpush1.bf16.msra.mxu0 %v15958_v3  ;;  %11556 = vmatpush1.bf16.msra.mxu1 %v15961_v37  ;;  %v16045_v3 = vld [vmem:[%s16786_s12 + $0x2448] ss:$16 sps:$4 sm:$0xff]   ;;  %v16050_v37 = vld [vmem:[%s16786_s12 + $0x2464] ss:$16 sps:$4 sm:$0xff]  }
 0x46b   : > { %10573 = vmatprep.subr.bf16.mxu0 %v15966_v4  ;;  %11557 = vmatprep.subr.bf16.mxu1 %v15969_v5  ;;  %v16053_v4 = vld [vmem:[%s16786_s12 + $0x246c] ss:$16 sps:$4 sm:$0xff]   ;;  %v16048_v5 = vld [vmem:[%s16786_s12 + $0x2460] ss:$16 sps:$4 sm:$0xff]  }
 0x46e   : > { %10574 = vmatpush1.bf16.msra.mxu0 %v15964_v6  ;;  %11558 = vmatpush1.bf16.msra.mxu1 %v15967_v7  ;;  %v16051_v6 = vld [vmem:[%s16786_s12 + $0x2468] ss:$16 sps:$4 sm:$0xff]   ;;  %v16056_v7 = vld [vmem:[%s16786_s12 + $0x2484] ss:$16 sps:$4 sm:$0xff]  }
 0x46f   : > { %10575 = vmatprep.subr.bf16.mxu0 %v15972_v8  ;;  %11559 = vmatprep.subr.bf16.mxu1 %v15975_v9  ;;  %v16059_v8 = vld [vmem:[%s16786_s12 + $0x248c] ss:$16 sps:$4 sm:$0xff]   ;;  %v16054_v9 = vld [vmem:[%s16786_s12 + $0x2480] ss:$16 sps:$4 sm:$0xff]  }
 0x472   : > { %10576 = vmatpush1.bf16.msra.mxu0 %v15970_v11  ;;  %11560 = vmatpush1.bf16.msra.mxu1 %v15973_v13  ;;  %v16057_v11 = vld [vmem:[%s16786_s12 + $0x2488] ss:$16 sps:$4 sm:$0xff]   ;;  %v16062_v13 = vld [vmem:[%s16786_s12 + $0x24a4] ss:$16 sps:$4 sm:$0xff]  }
 0x473   : > { %10577 = vmatprep.subr.bf16.mxu0 %v15978_v14  ;;  %11561 = vmatprep.subr.bf16.mxu1 %v15981_v16  ;;  %v16065_v14 = vld [vmem:[%s16786_s12 + $0x24ac] ss:$16 sps:$4 sm:$0xff]   ;;  %v16060_v16 = vld [vmem:[%s16786_s12 + $0x24a0] ss:$16 sps:$4 sm:$0xff]  }
 0x476   : > { %10578 = vmatpush1.bf16.msra.mxu0 %v15976_v1  ;;  %11562 = vmatpush1.bf16.msra.mxu1 %v15979_v18  ;;  %v16063_v1 = vld [vmem:[%s16786_s12 + $0x24a8] ss:$16 sps:$4 sm:$0xff]   ;;  %v16068_v18 = vld [vmem:[%s16786_s12 + $0x24c4] ss:$16 sps:$4 sm:$0xff]  }
 0x477   : > { %10579 = vmatprep.subr.bf16.mxu0 %v15984_v54  ;;  %11563 = vmatprep.subr.bf16.mxu1 %v15987_v19  ;;  %v16071_v54 = vld [vmem:[%s16786_s12 + $0x24cc] ss:$16 sps:$4 sm:$0xff]   ;;  %v16066_v19 = vld [vmem:[%s16786_s12 + $0x24c0] ss:$16 sps:$4 sm:$0xff]  }
 0x47a   : > { %10580 = vmatpush1.bf16.msra.mxu0 %v15982_v10  ;;  %11564 = vmatpush1.bf16.msra.mxu1 %v15985_v20  ;;  %v16069_v10 = vld [vmem:[%s16786_s12 + $0x24c8] ss:$16 sps:$4 sm:$0xff]   ;;  %v16074_v20 = vld [vmem:[%s16786_s12 + $0x24e4] ss:$16 sps:$4 sm:$0xff]  }
 0x47b   : > { %10581 = vmatprep.subr.bf16.mxu0 %v15990_v21  ;;  %11565 = vmatprep.subr.bf16.mxu1 %v15993_v15  ;;  %v16077_v21 = vld [vmem:[%s16786_s12 + $0x24ec] ss:$16 sps:$4 sm:$0xff]   ;;  %v16072_v15 = vld [vmem:[%s16786_s12 + $0x24e0] ss:$16 sps:$4 sm:$0xff]  }
 0x47e   : > { %10582 = vmatpush1.bf16.msra.mxu0 %v15988_v25  ;;  %11566 = vmatpush1.bf16.msra.mxu1 %v15991_v26  ;;  %v16075_v25 = vld [vmem:[%s16786_s12 + $0x24e8] ss:$16 sps:$4 sm:$0xff]   ;;  %v16080_v26 = vld [vmem:[%s16786_s12 + $0x2504] ss:$16 sps:$4 sm:$0xff]  }
 0x47f   : > { %10583 = vmatprep.subr.bf16.mxu0 %v15996_v62  ;;  %11567 = vmatprep.subr.bf16.mxu1 %v15999_v29  ;;  %v16083_v62 = vld [vmem:[%s16786_s12 + $0x250c] ss:$16 sps:$4 sm:$0xff]   ;;  %v16078_v29 = vld [vmem:[%s16786_s12 + $0x2500] ss:$16 sps:$4 sm:$0xff]  }
 0x482   : > { %10584 = vmatpush1.bf16.msra.mxu0 %v15994_v30  ;;  %11568 = vmatpush1.bf16.msra.mxu1 %v15997_v12  ;;  %v16081_v30 = vld [vmem:[%s16786_s12 + $0x2508] ss:$16 sps:$4 sm:$0xff]   ;;  %v16086_v12 = vld [vmem:[%s16786_s12 + $0x2524] ss:$16 sps:$4 sm:$0xff]  }
 0x483   : > { %10585 = vmatprep.subr.bf16.mxu0 %v16002_v31  ;;  %11569 = vmatprep.subr.bf16.mxu1 %v16005_v32  ;;  %v16089_v31 = vld [vmem:[%s16786_s12 + $0x252c] ss:$16 sps:$4 sm:$0xff]   ;;  %v16084_v32 = vld [vmem:[%s16786_s12 + $0x2520] ss:$16 sps:$4 sm:$0xff]  }
 0x486   : > { %10586 = vmatpush1.bf16.msra.mxu0 %v16000_v22  ;;  %11570 = vmatpush1.bf16.msra.mxu1 %v16003_v33  ;;  %v16087_v22 = vld [vmem:[%s16786_s12 + $0x2528] ss:$16 sps:$4 sm:$0xff]   ;;  %v16092_v33 = vld [vmem:[%s16786_s12 + $0x2544] ss:$16 sps:$4 sm:$0xff]  }
 0x487   : > { %10587 = vmatprep.subr.bf16.mxu0 %v16008_v34  ;;  %11571 = vmatprep.subr.bf16.mxu1 %v16011_v27  ;;  %v16095_v34 = vld [vmem:[%s16786_s12 + $0x254c] ss:$16 sps:$4 sm:$0xff]   ;;  %v16090_v27 = vld [vmem:[%s16786_s12 + $0x2540] ss:$16 sps:$4 sm:$0xff]  }
 0x48a   : > { %10588 = vmatpush1.bf16.msra.mxu0 %v16006_v38  ;;  %11572 = vmatpush1.bf16.msra.mxu1 %v16009_v39  ;;  %v16093_v38 = vld [vmem:[%s16786_s12 + $0x2548] ss:$16 sps:$4 sm:$0xff]   ;;  %v16098_v39 = vld [vmem:[%s16786_s12 + $0x2564] ss:$16 sps:$4 sm:$0xff]  }
 0x48b   : > { %10589 = vmatprep.subr.bf16.mxu0 %v16014_v41  ;;  %11573 = vmatprep.subr.bf16.mxu1 %v16017_v28  ;;  %v16101_v41 = vld [vmem:[%s16786_s12 + $0x256c] ss:$16 sps:$4 sm:$0xff]   ;;  %v16096_v28 = vld [vmem:[%s16786_s12 + $0x2560] ss:$16 sps:$4 sm:$0xff]  }
 0x48e   : > { %10590 = vmatpush1.bf16.msra.mxu0 %v16012_v42  ;;  %11574 = vmatpush1.bf16.msra.mxu1 %v16015_v23  ;;  %v16099_v42 = vld [vmem:[%s16786_s12 + $0x2568] ss:$16 sps:$4 sm:$0xff]   ;;  %v16104_v23 = vld [vmem:[%s16786_s12 + $0x2584] ss:$16 sps:$4 sm:$0xff]  }
 0x48f   : > { %10591 = vmatprep.subr.bf16.mxu0 %v16020_v43  ;;  %11575 = vmatprep.subr.bf16.mxu1 %v16023_v35  ;;  %v16107_v43 = vld [vmem:[%s16786_s12 + $0x258c] ss:$16 sps:$4 sm:$0xff]   ;;  %v16102_v35 = vld [vmem:[%s16786_s12 + $0x2580] ss:$16 sps:$4 sm:$0xff]  }
 0x492   : > { %10592 = vmatpush1.bf16.msra.mxu0 %v16018_v46  ;;  %11576 = vmatpush1.bf16.msra.mxu1 %v16021_v24  ;;  %v16110_v46 = vld [vmem:[%s16786_s12 + $0x25a4] ss:$16 sps:$4 sm:$0xff]   ;;  %v16113_v24 = vld [vmem:[%s16786_s12 + $0x25ac] ss:$16 sps:$4 sm:$0xff]  }
 0x493   : > { %10593 = vmatprep.subr.bf16.mxu0 %v16026_v49  ;;  %11577 = vmatprep.subr.bf16.mxu1 %v16029_v52  ;;  %v16108_v49 = vld [vmem:[%s16786_s12 + $0x25a0] ss:$16 sps:$4 sm:$0xff]   ;;  %v16111_v52 = vld [vmem:[%s16786_s12 + $0x25a8] ss:$16 sps:$4 sm:$0xff]  }
 0x496   : > { %10594 = vmatpush1.bf16.msra.mxu0 %v16024_v17  ;;  %11578 = vmatpush1.bf16.msra.mxu1 %v16027_v55  ;;  %v16116_v17 = vld [vmem:[%s16786_s12 + $0x25c4] ss:$16 sps:$4 sm:$0xff]   ;;  %v16119_v55 = vld [vmem:[%s16786_s12 + $0x25cc] ss:$16 sps:$4 sm:$0xff]  }
 0x497   : > { %10604 = vmatprep.subr.bf16.mxu0 %v16032_v56  ;;  %11588 = vmatprep.subr.bf16.mxu1 %v16035_v36  ;;  %v16114_v56 = vld [vmem:[%s16786_s12 + $0x25c0] ss:$16 sps:$4 sm:$0xff]   ;;  %v16117_v36 = vld [vmem:[%s16786_s12 + $0x25c8] ss:$16 sps:$4 sm:$0xff]  }
 0x499   : > { %10596 = vmatmul.mubr.bf16.vlgmr.msra.gmra.mrb[0].mxu0 %v2085_v40  ;;  %11580 = vmatmul.mubr.bf16.vlgmr.msra.gmra.mrb[0].mxu1 %v2085_v40  ;;  %v16125_v40 = vld [vmem:[%s16786_s12 + $0x25ec] ss:$16 sps:$4 sm:$0xff]  }
 0x49a   : > { %10605 = vmatpush1.bf16.msra.mxu0 %v16030_v58  ;;  %11589 = vmatpush1.bf16.msra.mxu1 %v16033_v47  ;;  %v16120_v58 = vld [vmem:[%s16786_s12 + $0x25e0] ss:$16 sps:$4 sm:$0xff]   ;;  %v16123_v47 = vld [vmem:[%s16786_s12 + $0x25e8] ss:$16 sps:$4 sm:$0xff]  }
 0x49b   : > { %10606 = vmatprep.subr.bf16.mxu0 %v16038_v59  ;;  %11590 = vmatprep.subr.bf16.mxu1 %v16041_v60  ;;  %v16129_v59 = vld [vmem:[%s16786_s12 + $0x2604] ss:$16 sps:$4 sm:$0xff]   ;;  %v16132_v60 = vld [vmem:[%s16786_s12 + $0x260c] ss:$16 sps:$4 sm:$0xff]  }
 0x49c   : > { %10636 = vmatprep.mubr.bf16.mxu0 %v18147_v50  ;;  %11620 = vmatprep.mubr.bf16.mxu1 %v18147_v50 }
 0x49e   : > { %10607 = vmatpush1.bf16.msra.mxu0 %v16036_v48  ;;  %11591 = vmatpush1.bf16.msra.mxu1 %v16039_v61  ;;  %v18213_v48 = vrot.slane %v18132_v53, %v16836_v51  ;;  %v16127_v61 = vld [vmem:[%s16786_s12 + $0x2600] ss:$16 sps:$4 sm:$0xff]  }
 0x49f   : > { %10608 = vmatprep.subr.bf16.mxu0 %v16044_v63  ;;  %11592 = vmatprep.subr.bf16.mxu1 %v16047_v0  ;;  %v16130_v63 = vld [vmem:[%s16786_s12 + $0x2608] ss:$16 sps:$4 sm:$0xff]   ;;  %v16135_v0 = vld [vmem:[%s16786_s12 + $0x2624] ss:$16 sps:$4 sm:$0xff]   ;;  %v16133_v53 = vld [vmem:[%s16786_s12 + $0x2620] ss:$16 sps:$4 sm:$0xff]  }
 0x4a2   : > { %10609 = vmatpush1.bf16.msra.mxu0 %v16042_v2  ;;  %11593 = vmatpush1.bf16.msra.mxu1 %v16045_v3  ;;  %v16138_v2 = vld [vmem:[%s16786_s12 + $0x262c] ss:$16 sps:$4 sm:$0xff]   ;;  %v2088_v3 = vcombine.high %v18147_v50, %v18147_v50  ;;  %v16139_v50 = vld [vmem:[%s16786_s12 + $0x2640] ss:$16 sps:$4 sm:$0xff]  }
 0x4a3   : > { %10610 = vmatprep.subr.bf16.mxu0 %v16050_v37  ;;  %11594 = vmatprep.subr.bf16.mxu1 %v16053_v4  ;;  %v16136_v37 = vld [vmem:[%s16786_s12 + $0x2628] ss:$16 sps:$4 sm:$0xff]   ;;  %v16141_v4 = vld [vmem:[%s16786_s12 + $0x2644] ss:$16 sps:$4 sm:$0xff]  }
 0x4a6   : > { %10611 = vmatpush1.bf16.msra.mxu0 %v16048_v5  ;;  %11595 = vmatpush1.bf16.msra.mxu1 %v16051_v6  ;;  %v16144_v5 = vld [vmem:[%s16786_s12 + $0x264c] ss:$16 sps:$4 sm:$0xff]   ;;  %v16142_v6 = vld [vmem:[%s16786_s12 + $0x2648] ss:$16 sps:$4 sm:$0xff]  }
 0x4a7   : > { %10612 = vmatprep.subr.bf16.mxu0 %v16056_v7  ;;  %11596 = vmatprep.subr.bf16.mxu1 %v16059_v8  ;;  %v16147_v7 = vld [vmem:[%s16786_s12 + $0x2664] ss:$16 sps:$4 sm:$0xff]   ;;  %v16150_v8 = vld [vmem:[%s16786_s12 + $0x266c] ss:$16 sps:$4 sm:$0xff]  }
 0x4aa   : > { %10613 = vmatpush1.bf16.msra.mxu0 %v16054_v9  ;;  %11597 = vmatpush1.bf16.msra.mxu1 %v16057_v11  ;;  %v16145_v9 = vld [vmem:[%s16786_s12 + $0x2660] ss:$16 sps:$4 sm:$0xff]   ;;  %v16148_v11 = vld [vmem:[%s16786_s12 + $0x2668] ss:$16 sps:$4 sm:$0xff]  }
 0x4ab   : > { %10614 = vmatprep.subr.bf16.mxu0 %v16062_v13  ;;  %11598 = vmatprep.subr.bf16.mxu1 %v16065_v14  ;;  %v16153_v13 = vld [vmem:[%s16786_s12 + $0x2684] ss:$16 sps:$4 sm:$0xff]   ;;  %v16156_v14 = vld [vmem:[%s16786_s12 + $0x268c] ss:$16 sps:$4 sm:$0xff]  }
 0x4ae   : > { %10615 = vmatpush1.bf16.msra.mxu0 %v16060_v16  ;;  %11599 = vmatpush1.bf16.msra.mxu1 %v16063_v1  ;;  %v16151_v16 = vld [vmem:[%s16786_s12 + $0x2680] ss:$16 sps:$4 sm:$0xff]   ;;  %v16154_v1 = vld [vmem:[%s16786_s12 + $0x2688] ss:$16 sps:$4 sm:$0xff]  }
 0x4af   : > { %10616 = vmatprep.subr.bf16.mxu0 %v16068_v18  ;;  %11600 = vmatprep.subr.bf16.mxu1 %v16071_v54  ;;  %v16159_v18 = vld [vmem:[%s16786_s12 + $0x26a4] ss:$16 sps:$4 sm:$0xff]   ;;  %v16162_v54 = vld [vmem:[%s16786_s12 + $0x26ac] ss:$16 sps:$4 sm:$0xff]  }
 0x4b2   : > { %10617 = vmatpush1.bf16.msra.mxu0 %v16066_v19  ;;  %11601 = vmatpush1.bf16.msra.mxu1 %v16069_v10  ;;  %v16157_v19 = vld [vmem:[%s16786_s12 + $0x26a0] ss:$16 sps:$4 sm:$0xff]   ;;  %v16160_v10 = vld [vmem:[%s16786_s12 + $0x26a8] ss:$16 sps:$4 sm:$0xff]  }
 0x4b3   : > { %10618 = vmatprep.subr.bf16.mxu0 %v16074_v20  ;;  %11602 = vmatprep.subr.bf16.mxu1 %v16077_v21  ;;  %v16165_v20 = vld [vmem:[%s16786_s12 + $0x26c4] ss:$16 sps:$4 sm:$0xff]   ;;  %v16168_v21 = vld [vmem:[%s16786_s12 + $0x26cc] ss:$16 sps:$4 sm:$0xff]  }
 0x4b6   : > { %10619 = vmatpush1.bf16.msra.mxu0 %v16072_v15  ;;  %11603 = vmatpush1.bf16.msra.mxu1 %v16075_v25  ;;  %v16163_v15 = vld [vmem:[%s16786_s12 + $0x26c0] ss:$16 sps:$4 sm:$0xff]   ;;  %v16166_v25 = vld [vmem:[%s16786_s12 + $0x26c8] ss:$16 sps:$4 sm:$0xff]  }
 0x4b7   : > { %10620 = vmatprep.subr.bf16.mxu0 %v16080_v26  ;;  %11604 = vmatprep.subr.bf16.mxu1 %v16083_v62  ;;  %v16171_v26 = vld [vmem:[%s16786_s12 + $0x26e4] ss:$16 sps:$4 sm:$0xff]   ;;  %v16174_v62 = vld [vmem:[%s16786_s12 + $0x26ec] ss:$16 sps:$4 sm:$0xff]  }
 0x4ba   : > { %10621 = vmatpush1.bf16.msra.mxu0 %v16078_v29  ;;  %11605 = vmatpush1.bf16.msra.mxu1 %v16081_v30  ;;  %v16169_v29 = vld [vmem:[%s16786_s12 + $0x26e0] ss:$16 sps:$4 sm:$0xff]   ;;  %v16172_v30 = vld [vmem:[%s16786_s12 + $0x26e8] ss:$16 sps:$4 sm:$0xff]  }
 0x4bb   : > { %10622 = vmatprep.subr.bf16.mxu0 %v16086_v12  ;;  %11606 = vmatprep.subr.bf16.mxu1 %v16089_v31  ;;  %v16177_v12 = vld [vmem:[%s16786_s12 + $0x2704] ss:$16 sps:$4 sm:$0xff]   ;;  %v16180_v31 = vld [vmem:[%s16786_s12 + $0x270c] ss:$16 sps:$4 sm:$0xff]  }
 0x4be   : > { %10623 = vmatpush1.bf16.msra.mxu0 %v16084_v32  ;;  %11607 = vmatpush1.bf16.msra.mxu1 %v16087_v22  ;;  %v16175_v32 = vld [vmem:[%s16786_s12 + $0x2700] ss:$16 sps:$4 sm:$0xff]   ;;  %v16178_v22 = vld [vmem:[%s16786_s12 + $0x2708] ss:$16 sps:$4 sm:$0xff]  }
 0x4bf   : > { %10624 = vmatprep.subr.bf16.mxu0 %v16092_v33  ;;  %11608 = vmatprep.subr.bf16.mxu1 %v16095_v34  ;;  %v16183_v33 = vld [vmem:[%s16786_s12 + $0x2724] ss:$16 sps:$4 sm:$0xff]   ;;  %v16186_v34 = vld [vmem:[%s16786_s12 + $0x272c] ss:$16 sps:$4 sm:$0xff]  }
 0x4c2   : > { %10625 = vmatpush1.bf16.msra.mxu0 %v16090_v27  ;;  %11609 = vmatpush1.bf16.msra.mxu1 %v16093_v38  ;;  %v16181_v27 = vld [vmem:[%s16786_s12 + $0x2720] ss:$16 sps:$4 sm:$0xff]   ;;  %v16184_v38 = vld [vmem:[%s16786_s12 + $0x2728] ss:$16 sps:$4 sm:$0xff]  }
 0x4c3   : > { %10626 = vmatprep.subr.bf16.mxu0 %v16098_v39  ;;  %11610 = vmatprep.subr.bf16.mxu1 %v16101_v41  ;;  %v16189_v39 = vld [vmem:[%s16786_s12 + $0x2744] ss:$16 sps:$4 sm:$0xff]   ;;  %v16192_v41 = vld [vmem:[%s16786_s12 + $0x274c] ss:$16 sps:$4 sm:$0xff]  }
 0x4c6   : > { %10627 = vmatpush1.bf16.msra.mxu0 %v16096_v28  ;;  %11611 = vmatpush1.bf16.msra.mxu1 %v16099_v42  ;;  %v16187_v28 = vld [vmem:[%s16786_s12 + $0x2740] ss:$16 sps:$4 sm:$0xff]   ;;  %v16190_v42 = vld [vmem:[%s16786_s12 + $0x2748] ss:$16 sps:$4 sm:$0xff]  }
 0x4c7   : > { %10628 = vmatprep.subr.bf16.mxu0 %v16104_v23  ;;  %11612 = vmatprep.subr.bf16.mxu1 %v16107_v43  ;;  %v16195_v23 = vld [vmem:[%s16786_s12 + $0x2764] ss:$16 sps:$4 sm:$0xff]   ;;  %v16198_v43 = vld [vmem:[%s16786_s12 + $0x276c] ss:$16 sps:$4 sm:$0xff]  }
 0x4ca   : > { %10629 = vmatpush1.bf16.msra.mxu0 %v16102_v35  ;;  %11613 = vmatpush1.bf16.msra.mxu1 %v16105_v44  ;;  %v16193_v35 = vld [vmem:[%s16786_s12 + $0x2760] ss:$16 sps:$4 sm:$0xff]   ;;  %v16196_v44 = vld [vmem:[%s16786_s12 + $0x2768] ss:$16 sps:$4 sm:$0xff]  }
 0x4cb   : > { %10630 = vmatprep.subr.bf16.mxu0 %v16110_v46  ;;  %11614 = vmatprep.subr.bf16.mxu1 %v16113_v24  ;;  %v16201_v46 = vld [vmem:[%s16786_s12 + $0x2784] ss:$16 sps:$4 sm:$0xff]   ;;  %v16204_v24 = vld [vmem:[%s16786_s12 + $0x278c] ss:$16 sps:$4 sm:$0xff]  }
 0x4ce   : > { %10631 = vmatpush1.bf16.msra.mxu0 %v16108_v49  ;;  %11615 = vmatpush1.bf16.msra.mxu1 %v16111_v52  ;;  %v16199_v49 = vld [vmem:[%s16786_s12 + $0x2780] ss:$16 sps:$4 sm:$0xff]   ;;  %v16202_v52 = vld [vmem:[%s16786_s12 + $0x2788] ss:$16 sps:$4 sm:$0xff]  }
 0x4cf   : > { %10632 = vmatprep.subr.bf16.mxu0 %v16116_v17  ;;  %11616 = vmatprep.subr.bf16.mxu1 %v16119_v55  ;;  %v16207_v17 = vld [vmem:[%s16786_s12 + $0x27a4] ss:$16 sps:$4 sm:$0xff]   ;;  %v16210_v55 = vld [vmem:[%s16786_s12 + $0x27ac] ss:$16 sps:$4 sm:$0xff]  }
 0x4d2   : > { %10633 = vmatpush1.bf16.msra.mxu0 %v16114_v56  ;;  %11617 = vmatpush1.bf16.msra.mxu1 %v16117_v36  ;;  %v16205_v56 = vld [vmem:[%s16786_s12 + $0x27a0] ss:$16 sps:$4 sm:$0xff]   ;;  %v16208_v36 = vld [vmem:[%s16786_s12 + $0x27a8] ss:$16 sps:$4 sm:$0xff]  }
 0x4d3   : > { %10634 = vmatprep.subr.bf16.mxu0 %v16122_v57  ;;  %11618 = vmatprep.subr.bf16.mxu1 %v16125_v40  ;;  %v16213_v57 = vld [vmem:[%s16786_s12 + $0x27c4] ss:$16 sps:$4 sm:$0xff]   ;;  %v16216_v40 = vld [vmem:[%s16786_s12 + $0x27cc] ss:$16 sps:$4 sm:$0xff]  }
 0x4d6   : > { %10635 = vmatpush1.bf16.msra.mxu0 %v16120_v58  ;;  %11619 = vmatpush1.bf16.msra.mxu1 %v16123_v47  ;;  %v18276_v58 = vld [vmem:[%s16781_s8 + $0x28] sm:$0xff]  ;;  %v16211_v47 = vld [vmem:[%s16786_s12 + $0x27c0] ss:$16 sps:$4 sm:$0xff]  }
 0x4d7   : > { %10645 = vmatprep.subr.bf16.mxu0 %v16129_v59  ;;  %11629 = vmatprep.subr.bf16.mxu1 %v16132_v60  ;;  %v16214_v59 = vld [vmem:[%s16786_s12 + $0x27c8] ss:$16 sps:$4 sm:$0xff]   ;;  %v16219_v60 = vld [vmem:[%s16786_s12 + $0x27e4] ss:$16 sps:$4 sm:$0xff]  }
 0x4d9   : > { %10637 = vmatmul.mubr.bf16.vlgmr.msra.gmra.mrb[0].mxu0 %v18213_v48  ;;  %11621 = vmatmul.mubr.bf16.vlgmr.msra.gmra.mrb[0].mxu1 %v18213_v48 }
 0x4da   : > { %10646 = vmatpush1.bf16.msra.mxu0 %v16127_v61  ;;  %11630 = vmatpush1.bf16.msra.mxu1 %v16130_v63  ;;  %v16222_v61 = vld [vmem:[%s16786_s12 + $0x27ec] ss:$16 sps:$4 sm:$0xff]   ;;  %v18284_v63 = vrot.slane %v18276_v58, %v16836_v51 }
 0x4db   : > { %10647 = vmatprep.subr.bf16.mxu0 %v16135_v0  ;;  %11631 = vmatprep.subr.bf16.mxu1 %v16138_v2  ;;  %v16217_v0 = vld [vmem:[%s16786_s12 + $0x27e0] ss:$16 sps:$4 sm:$0xff]   ;;  %v16220_v2 = vld [vmem:[%s16786_s12 + $0x27e8] ss:$16 sps:$4 sm:$0xff]  }
 0x4dc   : > { %10677 = vmatprep.mubr.bf16.mxu0 %v2088_v3  ;;  %11661 = vmatprep.mubr.bf16.mxu1 %v2088_v3  ;;  %v16225_v3 = vld [vmem:[%s16786_s12 + $0x2804] ss:$16 sps:$4 sm:$0xff]  }
 0x4de   : > { %10648 = vmatpush1.bf16.msra.mxu0 %v16133_v53  ;;  %11632 = vmatpush1.bf16.msra.mxu1 %v16136_v37  ;;  %v16228_v53 = vld [vmem:[%s16786_s12 + $0x280c] ss:$16 sps:$4 sm:$0xff]   ;;  %v2104_v37 = vcombine.high %v18284_v63, %v18284_v63 }
 0x4df   : > { %10649 = vmatprep.subr.bf16.mxu0 %v16141_v4  ;;  %11633 = vmatprep.subr.bf16.mxu1 %v16144_v5  ;;  %v2086_v4 = vcombine.high %v18213_v48, %v18213_v48  ;;  %v16223_v5 = vld [vmem:[%s16786_s12 + $0x2800] ss:$16 sps:$4 sm:$0xff]  }
 0x4e0   : > { %v16229_v48 = vld [vmem:[%s16786_s12 + $0x2820] ss:$16 sps:$4 sm:$0xff]  }
 0x4e2   : > { %10650 = vmatpush1.bf16.msra.mxu0 %v16139_v50  ;;  %11634 = vmatpush1.bf16.msra.mxu1 %v16142_v6  ;;  %v16226_v50 = vld [vmem:[%s16786_s12 + $0x2808] ss:$16 sps:$4 sm:$0xff]   ;;  %v16231_v6 = vld [vmem:[%s16786_s12 + $0x2824] ss:$16 sps:$4 sm:$0xff]  }
 0x4e3   : > { %10651 = vmatprep.subr.bf16.mxu0 %v16147_v7  ;;  %11635 = vmatprep.subr.bf16.mxu1 %v16150_v8  ;;  %v16234_v7 = vld [vmem:[%s16786_s12 + $0x282c] ss:$16 sps:$4 sm:$0xff]   ;;  %v18299_v8 = vrot.slane %v2104_v37, %v16836_v51  ;;  %v16310_v37 = vld [vmem:[%s16786_s12 + $0x29c8] ss:$16 sps:$4 sm:$0xff]  }
 0x4e6   : > { %10652 = vmatpush1.bf16.msra.mxu0 %v16145_v9  ;;  %11636 = vmatpush1.bf16.msra.mxu1 %v16148_v11  ;;  %v16232_v9 = vld [vmem:[%s16786_s12 + $0x2828] ss:$16 sps:$4 sm:$0xff]   ;;  %v16237_v11 = vld [vmem:[%s16786_s12 + $0x2844] ss:$16 sps:$4 sm:$0xff]  }
 0x4e7   : > { %10653 = vmatprep.subr.bf16.mxu0 %v16153_v13  ;;  %11637 = vmatprep.subr.bf16.mxu1 %v16156_v14  ;;  %v16240_v13 = vld [vmem:[%s16786_s12 + $0x284c] ss:$16 sps:$4 sm:$0xff]   ;;  %v16235_v14 = vld [vmem:[%s16786_s12 + $0x2840] ss:$16 sps:$4 sm:$0xff]  }
 0x4ea   : > { %10654 = vmatpush1.bf16.msra.mxu0 %v16151_v16  ;;  %11638 = vmatpush1.bf16.msra.mxu1 %v16154_v1  ;;  %v16238_v16 = vld [vmem:[%s16786_s12 + $0x2848] ss:$16 sps:$4 sm:$0xff]   ;;  %v16243_v1 = vld [vmem:[%s16786_s12 + $0x2864] ss:$16 sps:$4 sm:$0xff]  }
 0x4eb   : > { %10655 = vmatprep.subr.bf16.mxu0 %v16159_v18  ;;  %11639 = vmatprep.subr.bf16.mxu1 %v16162_v54  ;;  %v16246_v18 = vld [vmem:[%s16786_s12 + $0x286c] ss:$16 sps:$4 sm:$0xff]   ;;  %v16241_v54 = vld [vmem:[%s16786_s12 + $0x2860] ss:$16 sps:$4 sm:$0xff]  }
 0x4ee   : > { %10656 = vmatpush1.bf16.msra.mxu0 %v16157_v19  ;;  %11640 = vmatpush1.bf16.msra.mxu1 %v16160_v10  ;;  %v16244_v19 = vld [vmem:[%s16786_s12 + $0x2868] ss:$16 sps:$4 sm:$0xff]   ;;  %v16249_v10 = vld [vmem:[%s16786_s12 + $0x2884] ss:$16 sps:$4 sm:$0xff]  }
 0x4ef   : > { %10657 = vmatprep.subr.bf16.mxu0 %v16165_v20  ;;  %11641 = vmatprep.subr.bf16.mxu1 %v16168_v21  ;;  %v16252_v20 = vld [vmem:[%s16786_s12 + $0x288c] ss:$16 sps:$4 sm:$0xff]   ;;  %v16247_v21 = vld [vmem:[%s16786_s12 + $0x2880] ss:$16 sps:$4 sm:$0xff]  }
 0x4f2   : > { %10658 = vmatpush1.bf16.msra.mxu0 %v16163_v15  ;;  %11642 = vmatpush1.bf16.msra.mxu1 %v16166_v25  ;;  %v16250_v15 = vld [vmem:[%s16786_s12 + $0x2888] ss:$16 sps:$4 sm:$0xff]   ;;  %v16255_v25 = vld [vmem:[%s16786_s12 + $0x28a4] ss:$16 sps:$4 sm:$0xff]  }
 0x4f3   : > { %10659 = vmatprep.subr.bf16.mxu0 %v16171_v26  ;;  %11643 = vmatprep.subr.bf16.mxu1 %v16174_v62  ;;  %v16258_v26 = vld [vmem:[%s16786_s12 + $0x28ac] ss:$16 sps:$4 sm:$0xff]   ;;  %v16253_v62 = vld [vmem:[%s16786_s12 + $0x28a0] ss:$16 sps:$4 sm:$0xff]  }
 0x4f6   : > { %10660 = vmatpush1.bf16.msra.mxu0 %v16169_v29  ;;  %11644 = vmatpush1.bf16.msra.mxu1 %v16172_v30  ;;  %v16256_v29 = vld [vmem:[%s16786_s12 + $0x28a8] ss:$16 sps:$4 sm:$0xff]   ;;  %v16261_v30 = vld [vmem:[%s16786_s12 + $0x28c4] ss:$16 sps:$4 sm:$0xff]  }
 0x4f7   : > { %10661 = vmatprep.subr.bf16.mxu0 %v16177_v12  ;;  %11645 = vmatprep.subr.bf16.mxu1 %v16180_v31  ;;  %v16264_v12 = vld [vmem:[%s16786_s12 + $0x28cc] ss:$16 sps:$4 sm:$0xff]   ;;  %v16259_v31 = vld [vmem:[%s16786_s12 + $0x28c0] ss:$16 sps:$4 sm:$0xff]  }
 0x4fa   : > { %10662 = vmatpush1.bf16.msra.mxu0 %v16175_v32  ;;  %11646 = vmatpush1.bf16.msra.mxu1 %v16178_v22  ;;  %v16262_v32 = vld [vmem:[%s16786_s12 + $0x28c8] ss:$16 sps:$4 sm:$0xff]   ;;  %v16267_v22 = vld [vmem:[%s16786_s12 + $0x28e4] ss:$16 sps:$4 sm:$0xff]  }
 0x4fb   : > { %10663 = vmatprep.subr.bf16.mxu0 %v16183_v33  ;;  %11647 = vmatprep.subr.bf16.mxu1 %v16186_v34  ;;  %v16270_v33 = vld [vmem:[%s16786_s12 + $0x28ec] ss:$16 sps:$4 sm:$0xff]   ;;  %v16265_v34 = vld [vmem:[%s16786_s12 + $0x28e0] ss:$16 sps:$4 sm:$0xff]  }
 0x4fe   : > { %10664 = vmatpush1.bf16.msra.mxu0 %v16181_v27  ;;  %11648 = vmatpush1.bf16.msra.mxu1 %v16184_v38  ;;  %v16268_v27 = vld [vmem:[%s16786_s12 + $0x28e8] ss:$16 sps:$4 sm:$0xff]   ;;  %v16273_v38 = vld [vmem:[%s16786_s12 + $0x2904] ss:$16 sps:$4 sm:$0xff]  }
 0x4ff   : > { %10665 = vmatprep.subr.bf16.mxu0 %v16189_v39  ;;  %11649 = vmatprep.subr.bf16.mxu1 %v16192_v41  ;;  %v16276_v39 = vld [vmem:[%s16786_s12 + $0x290c] ss:$16 sps:$4 sm:$0xff]   ;;  %v16271_v41 = vld [vmem:[%s16786_s12 + $0x2900] ss:$16 sps:$4 sm:$0xff]  }
 0x502   : > { %10666 = vmatpush1.bf16.msra.mxu0 %v16187_v28  ;;  %11650 = vmatpush1.bf16.msra.mxu1 %v16190_v42  ;;  %v16274_v28 = vld [vmem:[%s16786_s12 + $0x2908] ss:$16 sps:$4 sm:$0xff]   ;;  %v16279_v42 = vld [vmem:[%s16786_s12 + $0x2924] ss:$16 sps:$4 sm:$0xff]  }
 0x503   : > { %10667 = vmatprep.subr.bf16.mxu0 %v16195_v23  ;;  %11651 = vmatprep.subr.bf16.mxu1 %v16198_v43  ;;  %v16282_v23 = vld [vmem:[%s16786_s12 + $0x292c] ss:$16 sps:$4 sm:$0xff]   ;;  %v16277_v43 = vld [vmem:[%s16786_s12 + $0x2920] ss:$16 sps:$4 sm:$0xff]  }
 0x506   : > { %10668 = vmatpush1.bf16.msra.mxu0 %v16193_v35  ;;  %11652 = vmatpush1.bf16.msra.mxu1 %v16196_v44  ;;  %v16280_v35 = vld [vmem:[%s16786_s12 + $0x2928] ss:$16 sps:$4 sm:$0xff]   ;;  %v16285_v44 = vld [vmem:[%s16786_s12 + $0x2944] ss:$16 sps:$4 sm:$0xff]  }
 0x507   : > { %10669 = vmatprep.subr.bf16.mxu0 %v16201_v46  ;;  %11653 = vmatprep.subr.bf16.mxu1 %v16204_v24  ;;  %v16288_v46 = vld [vmem:[%s16786_s12 + $0x294c] ss:$16 sps:$4 sm:$0xff]   ;;  %v16283_v24 = vld [vmem:[%s16786_s12 + $0x2940] ss:$16 sps:$4 sm:$0xff]  }
 0x50a   : > { %10670 = vmatpush1.bf16.msra.mxu0 %v16199_v49  ;;  %11654 = vmatpush1.bf16.msra.mxu1 %v16202_v52  ;;  %v16286_v49 = vld [vmem:[%s16786_s12 + $0x2948] ss:$16 sps:$4 sm:$0xff]   ;;  %v16291_v52 = vld [vmem:[%s16786_s12 + $0x2964] ss:$16 sps:$4 sm:$0xff]  }
 0x50b   : > { %10671 = vmatprep.subr.bf16.mxu0 %v16207_v17  ;;  %11655 = vmatprep.subr.bf16.mxu1 %v16210_v55  ;;  %v16294_v17 = vld [vmem:[%s16786_s12 + $0x296c] ss:$16 sps:$4 sm:$0xff]   ;;  %v16289_v55 = vld [vmem:[%s16786_s12 + $0x2960] ss:$16 sps:$4 sm:$0xff]  }
 0x50e   : > { %10672 = vmatpush1.bf16.msra.mxu0 %v16205_v56  ;;  %11656 = vmatpush1.bf16.msra.mxu1 %v16208_v36  ;;  %v16292_v56 = vld [vmem:[%s16786_s12 + $0x2968] ss:$16 sps:$4 sm:$0xff]   ;;  %v16297_v36 = vld [vmem:[%s16786_s12 + $0x2984] ss:$16 sps:$4 sm:$0xff]  }
 0x50f   : > { %10673 = vmatprep.subr.bf16.mxu0 %v16213_v57  ;;  %11657 = vmatprep.subr.bf16.mxu1 %v16216_v40  ;;  %v16300_v57 = vld [vmem:[%s16786_s12 + $0x298c] ss:$16 sps:$4 sm:$0xff]   ;;  %v16295_v40 = vld [vmem:[%s16786_s12 + $0x2980] ss:$16 sps:$4 sm:$0xff]  }
 0x512   : > { %10674 = vmatpush1.bf16.msra.mxu0 %v16211_v47  ;;  %11658 = vmatpush1.bf16.msra.mxu1 %v16214_v59  ;;  %v16298_v47 = vld [vmem:[%s16786_s12 + $0x2988] ss:$16 sps:$4 sm:$0xff]   ;;  %v16303_v59 = vld [vmem:[%s16786_s12 + $0x29a4] ss:$16 sps:$4 sm:$0xff]  }
 0x513   : > { %10675 = vmatprep.subr.bf16.mxu0 %v16219_v60  ;;  %11659 = vmatprep.subr.bf16.mxu1 %v16222_v61  ;;  %v16306_v60 = vld [vmem:[%s16786_s12 + $0x29ac] ss:$16 sps:$4 sm:$0xff]   ;;  %v16301_v61 = vld [vmem:[%s16786_s12 + $0x29a0] ss:$16 sps:$4 sm:$0xff]  }
 0x516   : > { %10676 = vmatpush1.bf16.msra.mxu0 %v16217_v0  ;;  %11660 = vmatpush1.bf16.msra.mxu1 %v16220_v2  ;;  %v16304_v0 = vld [vmem:[%s16786_s12 + $0x29a8] ss:$16 sps:$4 sm:$0xff]   ;;  %v16309_v2 = vld [vmem:[%s16786_s12 + $0x29c4] ss:$16 sps:$4 sm:$0xff]  }
 0x517   : > { %10686 = vmatprep.subr.bf16.mxu0 %v16225_v3  ;;  %11670 = vmatprep.subr.bf16.mxu1 %v16228_v53  ;;  %v16312_v3 = vld [vmem:[%s16786_s12 + $0x29cc] ss:$16 sps:$4 sm:$0xff]   ;;  %v16307_v53 = vld [vmem:[%s16786_s12 + $0x29c0] ss:$16 sps:$4 sm:$0xff]  }
 0x519   : > { %10678 = vmatmul.mubr.bf16.vlgmr.msra.gmra.mrb[0].mxu0 %v2086_v4  ;;  %11662 = vmatmul.mubr.bf16.vlgmr.msra.gmra.mrb[0].mxu1 %v2086_v4  ;;  %v16315_v4 = vld [vmem:[%s16786_s12 + $0x29e4] ss:$16 sps:$4 sm:$0xff]  }
 0x51a   : > { %10687 = vmatpush1.bf16.msra.mxu0 %v16223_v5  ;;  %11671 = vmatpush1.bf16.msra.mxu1 %v16226_v50  ;;  %v16318_v5 = vld [vmem:[%s16786_s12 + $0x29ec] ss:$16 sps:$4 sm:$0xff]   ;;  %v16313_v50 = vld [vmem:[%s16786_s12 + $0x29e0] ss:$16 sps:$4 sm:$0xff]  }
 0x51b   : > { %10688 = vmatprep.subr.bf16.mxu0 %v16231_v6  ;;  %11672 = vmatprep.subr.bf16.mxu1 %v16234_v7  ;;  %v16316_v6 = vld [vmem:[%s16786_s12 + $0x29e8] ss:$16 sps:$4 sm:$0xff]   ;;  %v16321_v7 = vld [vmem:[%s16786_s12 + $0x2a04] ss:$16 sps:$4 sm:$0xff]  }
 0x51c   : > { %10718 = vmatprep.mubr.bf16.mxu0 %v18299_v8  ;;  %11702 = vmatprep.mubr.bf16.mxu1 %v18299_v8 }
 0x51e   : > { %10689 = vmatpush1.bf16.msra.mxu0 %v16229_v48  ;;  %11673 = vmatpush1.bf16.msra.mxu1 %v16232_v9  ;;  %v16324_v48 = vld [vmem:[%s16786_s12 + $0x2a0c] ss:$16 sps:$4 sm:$0xff]   ;;  %v18365_v9 = vrot.slane %v18284_v63, %v16836_v51  ;;  %v16325_v63 = vld [vmem:[%s16786_s12 + $0x2a20] ss:$16 sps:$4 sm:$0xff]  }
 0x51f   : > { %10690 = vmatprep.subr.bf16.mxu0 %v16237_v11  ;;  %11674 = vmatprep.subr.bf16.mxu1 %v16240_v13  ;;  %v16319_v11 = vld [vmem:[%s16786_s12 + $0x2a00] ss:$16 sps:$4 sm:$0xff]   ;;  %v16322_v13 = vld [vmem:[%s16786_s12 + $0x2a08] ss:$16 sps:$4 sm:$0xff]  }
 0x522   : > { %10691 = vmatpush1.bf16.msra.mxu0 %v16235_v14  ;;  %11675 = vmatpush1.bf16.msra.mxu1 %v16238_v16  ;;  %v16327_v14 = vld [vmem:[%s16786_s12 + $0x2a24] ss:$16 sps:$4 sm:$0xff]   ;;  %v16330_v16 = vld [vmem:[%s16786_s12 + $0x2a2c] ss:$16 sps:$4 sm:$0xff]  }
 0x523   : > { %10692 = vmatprep.subr.bf16.mxu0 %v16243_v1  ;;  %11676 = vmatprep.subr.bf16.mxu1 %v16246_v18  ;;  %v2136_v1 = vcombine.high %v18299_v8, %v18299_v8  ;;  %v16328_v18 = vld [vmem:[%s16786_s12 + $0x2a28] ss:$16 sps:$4 sm:$0xff]   ;;  %v16331_v8 = vld [vmem:[%s16786_s12 + $0x2a40] ss:$16 sps:$4 sm:$0xff]  }
 0x526   : > { %10693 = vmatpush1.bf16.msra.mxu0 %v16241_v54  ;;  %11677 = vmatpush1.bf16.msra.mxu1 %v16244_v19  ;;  %v16333_v54 = vld [vmem:[%s16786_s12 + $0x2a44] ss:$16 sps:$4 sm:$0xff]   ;;  %v16336_v19 = vld [vmem:[%s16786_s12 + $0x2a4c] ss:$16 sps:$4 sm:$0xff]  }
 0x527   : > { %10694 = vmatprep.subr.bf16.mxu0 %v16249_v10  ;;  %11678 = vmatprep.subr.bf16.mxu1 %v16252_v20  ;;  %v16334_v10 = vld [vmem:[%s16786_s12 + $0x2a48] ss:$16 sps:$4 sm:$0xff]   ;;  %v16339_v20 = vld [vmem:[%s16786_s12 + $0x2a64] ss:$16 sps:$4 sm:$0xff]  }
 0x52a   : > { %10695 = vmatpush1.bf16.msra.mxu0 %v16247_v21  ;;  %11679 = vmatpush1.bf16.msra.mxu1 %v16250_v15  ;;  %v16342_v21 = vld [vmem:[%s16786_s12 + $0x2a6c] ss:$16 sps:$4 sm:$0xff]   ;;  %v16337_v15 = vld [vmem:[%s16786_s12 + $0x2a60] ss:$16 sps:$4 sm:$0xff]  }
 0x52b   : > { %10696 = vmatprep.subr.bf16.mxu0 %v16255_v25  ;;  %11680 = vmatprep.subr.bf16.mxu1 %v16258_v26  ;;  %v16340_v25 = vld [vmem:[%s16786_s12 + $0x2a68] ss:$16 sps:$4 sm:$0xff]   ;;  %v16345_v26 = vld [vmem:[%s16786_s12 + $0x2a84] ss:$16 sps:$4 sm:$0xff]  }
 0x52e   : > { %10697 = vmatpush1.bf16.msra.mxu0 %v16253_v62  ;;  %11681 = vmatpush1.bf16.msra.mxu1 %v16256_v29  ;;  %v16348_v62 = vld [vmem:[%s16786_s12 + $0x2a8c] ss:$16 sps:$4 sm:$0xff]   ;;  %v16343_v29 = vld [vmem:[%s16786_s12 + $0x2a80] ss:$16 sps:$4 sm:$0xff]  }
 0x52f   : > { %10698 = vmatprep.subr.bf16.mxu0 %v16261_v30  ;;  %11682 = vmatprep.subr.bf16.mxu1 %v16264_v12  ;;  %v16346_v30 = vld [vmem:[%s16786_s12 + $0x2a88] ss:$16 sps:$4 sm:$0xff]   ;;  %v16351_v12 = vld [vmem:[%s16786_s12 + $0x2aa4] ss:$16 sps:$4 sm:$0xff]  }
 0x532   : > { %10699 = vmatpush1.bf16.msra.mxu0 %v16259_v31  ;;  %11683 = vmatpush1.bf16.msra.mxu1 %v16262_v32  ;;  %v16354_v31 = vld [vmem:[%s16786_s12 + $0x2aac] ss:$16 sps:$4 sm:$0xff]   ;;  %v16349_v32 = vld [vmem:[%s16786_s12 + $0x2aa0] ss:$16 sps:$4 sm:$0xff]  }
 0x533   : > { %10700 = vmatprep.subr.bf16.mxu0 %v16267_v22  ;;  %11684 = vmatprep.subr.bf16.mxu1 %v16270_v33  ;;  %v16352_v22 = vld [vmem:[%s16786_s12 + $0x2aa8] ss:$16 sps:$4 sm:$0xff]   ;;  %v16357_v33 = vld [vmem:[%s16786_s12 + $0x2ac4] ss:$16 sps:$4 sm:$0xff]  }
 0x536   : > { %10701 = vmatpush1.bf16.msra.mxu0 %v16265_v34  ;;  %11685 = vmatpush1.bf16.msra.mxu1 %v16268_v27  ;;  %v16360_v34 = vld [vmem:[%s16786_s12 + $0x2acc] ss:$16 sps:$4 sm:$0xff]   ;;  %v16355_v27 = vld [vmem:[%s16786_s12 + $0x2ac0] ss:$16 sps:$4 sm:$0xff]  }
 0x537   : > { %10702 = vmatprep.subr.bf16.mxu0 %v16273_v38  ;;  %11686 = vmatprep.subr.bf16.mxu1 %v16276_v39  ;;  %v16358_v38 = vld [vmem:[%s16786_s12 + $0x2ac8] ss:$16 sps:$4 sm:$0xff]   ;;  %v16363_v39 = vld [vmem:[%s16786_s12 + $0x2ae4] ss:$16 sps:$4 sm:$0xff]  }
 0x53a   : > { %10703 = vmatpush1.bf16.msra.mxu0 %v16271_v41  ;;  %11687 = vmatpush1.bf16.msra.mxu1 %v16274_v28  ;;  %v16366_v41 = vld [vmem:[%s16786_s12 + $0x2aec] ss:$16 sps:$4 sm:$0xff]   ;;  %v16361_v28 = vld [vmem:[%s16786_s12 + $0x2ae0] ss:$16 sps:$4 sm:$0xff]  }
 0x53b   : > { %10704 = vmatprep.subr.bf16.mxu0 %v16279_v42  ;;  %11688 = vmatprep.subr.bf16.mxu1 %v16282_v23  ;;  %v16364_v42 = vld [vmem:[%s16786_s12 + $0x2ae8] ss:$16 sps:$4 sm:$0xff]   ;;  %v16369_v23 = vld [vmem:[%s16786_s12 + $0x2b04] ss:$16 sps:$4 sm:$0xff]  }
 0x53e   : > { %10705 = vmatpush1.bf16.msra.mxu0 %v16277_v43  ;;  %11689 = vmatpush1.bf16.msra.mxu1 %v16280_v35  ;;  %v16372_v43 = vld [vmem:[%s16786_s12 + $0x2b0c] ss:$16 sps:$4 sm:$0xff]   ;;  %v16367_v35 = vld [vmem:[%s16786_s12 + $0x2b00] ss:$16 sps:$4 sm:$0xff]  }
 0x53f   : > { %10706 = vmatprep.subr.bf16.mxu0 %v16285_v44  ;;  %11690 = vmatprep.subr.bf16.mxu1 %v16288_v46  ;;  %v16370_v44 = vld [vmem:[%s16786_s12 + $0x2b08] ss:$16 sps:$4 sm:$0xff]   ;;  %v16375_v46 = vld [vmem:[%s16786_s12 + $0x2b24] ss:$16 sps:$4 sm:$0xff]  }
 0x542   : > { %10707 = vmatpush1.bf16.msra.mxu0 %v16283_v24  ;;  %11691 = vmatpush1.bf16.msra.mxu1 %v16286_v49  ;;  %v16378_v24 = vld [vmem:[%s16786_s12 + $0x2b2c] ss:$16 sps:$4 sm:$0xff]   ;;  %v16373_v49 = vld [vmem:[%s16786_s12 + $0x2b20] ss:$16 sps:$4 sm:$0xff]  }
 0x543   : > { %10708 = vmatprep.subr.bf16.mxu0 %v16291_v52  ;;  %11692 = vmatprep.subr.bf16.mxu1 %v16294_v17  ;;  %v16376_v52 = vld [vmem:[%s16786_s12 + $0x2b28] ss:$16 sps:$4 sm:$0xff]   ;;  %v16381_v17 = vld [vmem:[%s16786_s12 + $0x2b44] ss:$16 sps:$4 sm:$0xff]  }
 0x546   : > { %10709 = vmatpush1.bf16.msra.mxu0 %v16289_v55  ;;  %11693 = vmatpush1.bf16.msra.mxu1 %v16292_v56  ;;  %v16384_v55 = vld [vmem:[%s16786_s12 + $0x2b4c] ss:$16 sps:$4 sm:$0xff]   ;;  %v16379_v56 = vld [vmem:[%s16786_s12 + $0x2b40] ss:$16 sps:$4 sm:$0xff]  }
 0x547   : > { %10710 = vmatprep.subr.bf16.mxu0 %v16297_v36  ;;  %11694 = vmatprep.subr.bf16.mxu1 %v16300_v57  ;;  %v16382_v36 = vld [vmem:[%s16786_s12 + $0x2b48] ss:$16 sps:$4 sm:$0xff]   ;;  %v16387_v57 = vld [vmem:[%s16786_s12 + $0x2b64] ss:$16 sps:$4 sm:$0xff]  }
 0x54a   : > { %10711 = vmatpush1.bf16.msra.mxu0 %v16295_v40  ;;  %11695 = vmatpush1.bf16.msra.mxu1 %v16298_v47  ;;  %v16390_v40 = vld [vmem:[%s16786_s12 + $0x2b6c] ss:$16 sps:$4 sm:$0xff]   ;;  %v16385_v47 = vld [vmem:[%s16786_s12 + $0x2b60] ss:$16 sps:$4 sm:$0xff]  }
 0x54b   : > { %10712 = vmatprep.subr.bf16.mxu0 %v16303_v59  ;;  %11696 = vmatprep.subr.bf16.mxu1 %v16306_v60  ;;  %v16388_v59 = vld [vmem:[%s16786_s12 + $0x2b68] ss:$16 sps:$4 sm:$0xff]   ;;  %v16393_v60 = vld [vmem:[%s16786_s12 + $0x2b84] ss:$16 sps:$4 sm:$0xff]  }
 0x54e   : > { %10713 = vmatpush1.bf16.msra.mxu0 %v16301_v61  ;;  %11697 = vmatpush1.bf16.msra.mxu1 %v16304_v0  ;;  %v16396_v61 = vld [vmem:[%s16786_s12 + $0x2b8c] ss:$16 sps:$4 sm:$0xff]   ;;  %v16391_v0 = vld [vmem:[%s16786_s12 + $0x2b80] ss:$16 sps:$4 sm:$0xff]  }
 0x54f   : > { %10714 = vmatprep.subr.bf16.mxu0 %v16309_v2  ;;  %11698 = vmatprep.subr.bf16.mxu1 %v16312_v3  ;;  %v16394_v2 = vld [vmem:[%s16786_s12 + $0x2b88] ss:$16 sps:$4 sm:$0xff]   ;;  %v16399_v3 = vld [vmem:[%s16786_s12 + $0x2ba4] ss:$16 sps:$4 sm:$0xff]  }
 0x552   : > { %10715 = vmatpush1.bf16.msra.mxu0 %v16307_v53  ;;  %11699 = vmatpush1.bf16.msra.mxu1 %v16310_v37  ;;  %v16402_v53 = vld [vmem:[%s16786_s12 + $0x2bac] ss:$16 sps:$4 sm:$0xff]   ;;  %v16397_v37 = vld [vmem:[%s16786_s12 + $0x2ba0] ss:$16 sps:$4 sm:$0xff]  }
 0x553   : > { %10716 = vmatprep.subr.bf16.mxu0 %v16315_v4  ;;  %11700 = vmatprep.subr.bf16.mxu1 %v16318_v5  ;;  %v16400_v4 = vld [vmem:[%s16786_s12 + $0x2ba8] ss:$16 sps:$4 sm:$0xff]   ;;  %v16405_v5 = vld [vmem:[%s16786_s12 + $0x2bc4] ss:$16 sps:$4 sm:$0xff]  }
 0x556   : > { %10717 = vmatpush1.bf16.msra.mxu0 %v16313_v50  ;;  %11701 = vmatpush1.bf16.msra.mxu1 %v16316_v6  ;;  %v16408_v50 = vld [vmem:[%s16786_s12 + $0x2bcc] ss:$16 sps:$4 sm:$0xff]   ;;  %v2089_v6 = vcombine.high %v18276_v58, %v18276_v58  ;;  %v16409_v58 = vld [vmem:[%s16786_s12 + $0x2be0] ss:$16 sps:$4 sm:$0xff]  }
 0x557   : > { %10727 = vmatprep.subr.bf16.mxu0 %v16321_v7  ;;  %11711 = vmatprep.subr.bf16.mxu1 %v16324_v48  ;;  %v16403_v7 = vld [vmem:[%s16786_s12 + $0x2bc0] ss:$16 sps:$4 sm:$0xff]   ;;  %v16406_v48 = vld [vmem:[%s16786_s12 + $0x2bc8] ss:$16 sps:$4 sm:$0xff]  }
 0x559   : > { %10719 = vmatmul.mubr.bf16.vlgmr.msra.gmra.mrb[0].mxu0 %v18365_v9  ;;  %11703 = vmatmul.mubr.bf16.vlgmr.msra.gmra.mrb[0].mxu1 %v18365_v9 }
 0x55a   : > { %10728 = vmatpush1.bf16.msra.mxu0 %v16319_v11  ;;  %11712 = vmatpush1.bf16.msra.mxu1 %v16322_v13  ;;  %v16411_v11 = vld [vmem:[%s16786_s12 + $0x2be4] ss:$16 sps:$4 sm:$0xff]   ;;  %v16414_v13 = vld [vmem:[%s16786_s12 + $0x2bec] ss:$16 sps:$4 sm:$0xff]  }
 0x55b   : > { %10729 = vmatprep.subr.bf16.mxu0 %v16327_v14  ;;  %11713 = vmatprep.subr.bf16.mxu1 %v16330_v16  ;;  %v18434_v14 = vrot.slane %v2089_v6, %v16836_v51  ;;  %v16412_v16 = vld [vmem:[%s16786_s12 + $0x2be8] ss:$16 sps:$4 sm:$0xff]  }
 0x55c   : > { %10759 = vmatprep.mubr.bf16.mxu0 %v2136_v1  ;;  %11743 = vmatprep.mubr.bf16.mxu1 %v2136_v1  ;;  %v16417_v1 = vld [vmem:[%s16786_s12 + $0x2c04] ss:$16 sps:$4 sm:$0xff]   ;;  %v16490_v6 = vld [vmem:[%s16786_s12 + $0x2d88] ss:$16 sps:$4 sm:$0xff]  }
 0x55e   : > { %10730 = vmatpush1.bf16.msra.mxu0 %v16325_v63  ;;  %11714 = vmatpush1.bf16.msra.mxu1 %v16328_v18  ;;  %v16420_v63 = vld [vmem:[%s16786_s12 + $0x2c0c] ss:$16 sps:$4 sm:$0xff]   ;;  %v2105_v18 = vcombine.high %v18434_v14, %v18434_v14 }
 0x55f   : > { %10731 = vmatprep.subr.bf16.mxu0 %v16333_v54  ;;  %11715 = vmatprep.subr.bf16.mxu1 %v16336_v19  ;;  %v2134_v54 = vcombine.high %v18365_v9, %v18365_v9  ;;  %v16415_v19 = vld [vmem:[%s16786_s12 + $0x2c00] ss:$16 sps:$4 sm:$0xff]  }
 0x560   : > { %v16421_v9 = vld [vmem:[%s16786_s12 + $0x2c20] ss:$16 sps:$4 sm:$0xff]  }
 0x562   : > { %10732 = vmatpush1.bf16.msra.mxu0 %v16331_v8  ;;  %11716 = vmatpush1.bf16.msra.mxu1 %v16334_v10  ;;  %v16418_v8 = vld [vmem:[%s16786_s12 + $0x2c08] ss:$16 sps:$4 sm:$0xff]   ;;  %v16423_v10 = vld [vmem:[%s16786_s12 + $0x2c24] ss:$16 sps:$4 sm:$0xff]  }
 0x563   : > { %10733 = vmatprep.subr.bf16.mxu0 %v16339_v20  ;;  %11717 = vmatprep.subr.bf16.mxu1 %v16342_v21  ;;  %v16426_v20 = vld [vmem:[%s16786_s12 + $0x2c2c] ss:$16 sps:$4 sm:$0xff]   ;;  %v18449_v21 = vrot.slane %v2105_v18, %v16836_v51  ;;  %v16507_v18 = vld [vmem:[%s16786_s12 + $0x2de4] ss:$16 sps:$4 sm:$0xff]  }
 0x566   : > { %10734 = vmatpush1.bf16.msra.mxu0 %v16337_v15  ;;  %11718 = vmatpush1.bf16.msra.mxu1 %v16340_v25  ;;  %v16424_v15 = vld [vmem:[%s16786_s12 + $0x2c28] ss:$16 sps:$4 sm:$0xff]   ;;  %v16429_v25 = vld [vmem:[%s16786_s12 + $0x2c44] ss:$16 sps:$4 sm:$0xff]  }
 0x567   : > { %10735 = vmatprep.subr.bf16.mxu0 %v16345_v26  ;;  %11719 = vmatprep.subr.bf16.mxu1 %v16348_v62  ;;  %v16432_v26 = vld [vmem:[%s16786_s12 + $0x2c4c] ss:$16 sps:$4 sm:$0xff]   ;;  %v16427_v62 = vld [vmem:[%s16786_s12 + $0x2c40] ss:$16 sps:$4 sm:$0xff]  }
 0x56a   : > { %10736 = vmatpush1.bf16.msra.mxu0 %v16343_v29  ;;  %11720 = vmatpush1.bf16.msra.mxu1 %v16346_v30  ;;  %v16430_v29 = vld [vmem:[%s16786_s12 + $0x2c48] ss:$16 sps:$4 sm:$0xff]   ;;  %v16435_v30 = vld [vmem:[%s16786_s12 + $0x2c64] ss:$16 sps:$4 sm:$0xff]  }
 0x56b   : > { %10737 = vmatprep.subr.bf16.mxu0 %v16351_v12  ;;  %11721 = vmatprep.subr.bf16.mxu1 %v16354_v31  ;;  %v16438_v12 = vld [vmem:[%s16786_s12 + $0x2c6c] ss:$16 sps:$4 sm:$0xff]   ;;  %v16433_v31 = vld [vmem:[%s16786_s12 + $0x2c60] ss:$16 sps:$4 sm:$0xff]  }
 0x56e   : > { %10738 = vmatpush1.bf16.msra.mxu0 %v16349_v32  ;;  %11722 = vmatpush1.bf16.msra.mxu1 %v16352_v22  ;;  %v16436_v32 = vld [vmem:[%s16786_s12 + $0x2c68] ss:$16 sps:$4 sm:$0xff]   ;;  %v16441_v22 = vld [vmem:[%s16786_s12 + $0x2c84] ss:$16 sps:$4 sm:$0xff]  }
 0x56f   : > { %10739 = vmatprep.subr.bf16.mxu0 %v16357_v33  ;;  %11723 = vmatprep.subr.bf16.mxu1 %v16360_v34  ;;  %v16444_v33 = vld [vmem:[%s16786_s12 + $0x2c8c] ss:$16 sps:$4 sm:$0xff]   ;;  %v16439_v34 = vld [vmem:[%s16786_s12 + $0x2c80] ss:$16 sps:$4 sm:$0xff]  }
 0x572   : > { %10740 = vmatpush1.bf16.msra.mxu0 %v16355_v27  ;;  %11724 = vmatpush1.bf16.msra.mxu1 %v16358_v38  ;;  %v16442_v27 = vld [vmem:[%s16786_s12 + $0x2c88] ss:$16 sps:$4 sm:$0xff]   ;;  %v16447_v38 = vld [vmem:[%s16786_s12 + $0x2ca4] ss:$16 sps:$4 sm:$0xff]  }
 0x573   : > { %10741 = vmatprep.subr.bf16.mxu0 %v16363_v39  ;;  %11725 = vmatprep.subr.bf16.mxu1 %v16366_v41  ;;  %v16450_v39 = vld [vmem:[%s16786_s12 + $0x2cac] ss:$16 sps:$4 sm:$0xff]   ;;  %v16445_v41 = vld [vmem:[%s16786_s12 + $0x2ca0] ss:$16 sps:$4 sm:$0xff]  }
 0x576   : > { %10742 = vmatpush1.bf16.msra.mxu0 %v16361_v28  ;;  %11726 = vmatpush1.bf16.msra.mxu1 %v16364_v42  ;;  %v16448_v28 = vld [vmem:[%s16786_s12 + $0x2ca8] ss:$16 sps:$4 sm:$0xff]   ;;  %v16453_v42 = vld [vmem:[%s16786_s12 + $0x2cc4] ss:$16 sps:$4 sm:$0xff]  }
 0x577   : > { %10743 = vmatprep.subr.bf16.mxu0 %v16369_v23  ;;  %11727 = vmatprep.subr.bf16.mxu1 %v16372_v43  ;;  %v16456_v23 = vld [vmem:[%s16786_s12 + $0x2ccc] ss:$16 sps:$4 sm:$0xff]   ;;  %v16451_v43 = vld [vmem:[%s16786_s12 + $0x2cc0] ss:$16 sps:$4 sm:$0xff]  }
 0x57a   : > { %10744 = vmatpush1.bf16.msra.mxu0 %v16367_v35  ;;  %11728 = vmatpush1.bf16.msra.mxu1 %v16370_v44  ;;  %v16454_v35 = vld [vmem:[%s16786_s12 + $0x2cc8] ss:$16 sps:$4 sm:$0xff]   ;;  %v16459_v44 = vld [vmem:[%s16786_s12 + $0x2ce4] ss:$16 sps:$4 sm:$0xff]  }
 0x57b   : > { %10745 = vmatprep.subr.bf16.mxu0 %v16375_v46  ;;  %11729 = vmatprep.subr.bf16.mxu1 %v16378_v24  ;;  %v16462_v46 = vld [vmem:[%s16786_s12 + $0x2cec] ss:$16 sps:$4 sm:$0xff]   ;;  %v16457_v24 = vld [vmem:[%s16786_s12 + $0x2ce0] ss:$16 sps:$4 sm:$0xff]  }
 0x57e   : > { %10746 = vmatpush1.bf16.msra.mxu0 %v16373_v49  ;;  %11730 = vmatpush1.bf16.msra.mxu1 %v16376_v52  ;;  %v16460_v49 = vld [vmem:[%s16786_s12 + $0x2ce8] ss:$16 sps:$4 sm:$0xff]   ;;  %v16465_v52 = vld [vmem:[%s16786_s12 + $0x2d04] ss:$16 sps:$4 sm:$0xff]  }
 0x57f   : > { %10747 = vmatprep.subr.bf16.mxu0 %v16381_v17  ;;  %11731 = vmatprep.subr.bf16.mxu1 %v16384_v55  ;;  %v16468_v17 = vld [vmem:[%s16786_s12 + $0x2d0c] ss:$16 sps:$4 sm:$0xff]   ;;  %v16463_v55 = vld [vmem:[%s16786_s12 + $0x2d00] ss:$16 sps:$4 sm:$0xff]  }
 0x582   : > { %10748 = vmatpush1.bf16.msra.mxu0 %v16379_v56  ;;  %11732 = vmatpush1.bf16.msra.mxu1 %v16382_v36  ;;  %v16466_v56 = vld [vmem:[%s16786_s12 + $0x2d08] ss:$16 sps:$4 sm:$0xff]   ;;  %v16471_v36 = vld [vmem:[%s16786_s12 + $0x2d24] ss:$16 sps:$4 sm:$0xff]  }
 0x583   : > { %10749 = vmatprep.subr.bf16.mxu0 %v16387_v57  ;;  %11733 = vmatprep.subr.bf16.mxu1 %v16390_v40  ;;  %v16474_v57 = vld [vmem:[%s16786_s12 + $0x2d2c] ss:$16 sps:$4 sm:$0xff]   ;;  %v16469_v40 = vld [vmem:[%s16786_s12 + $0x2d20] ss:$16 sps:$4 sm:$0xff]  }
 0x586   : > { %10750 = vmatpush1.bf16.msra.mxu0 %v16385_v47  ;;  %11734 = vmatpush1.bf16.msra.mxu1 %v16388_v59  ;;  %v16472_v47 = vld [vmem:[%s16786_s12 + $0x2d28] ss:$16 sps:$4 sm:$0xff]   ;;  %v16477_v59 = vld [vmem:[%s16786_s12 + $0x2d44] ss:$16 sps:$4 sm:$0xff]  }
 0x587   : > { %10751 = vmatprep.subr.bf16.mxu0 %v16393_v60  ;;  %11735 = vmatprep.subr.bf16.mxu1 %v16396_v61  ;;  %v16480_v60 = vld [vmem:[%s16786_s12 + $0x2d4c] ss:$16 sps:$4 sm:$0xff]   ;;  %v16475_v61 = vld [vmem:[%s16786_s12 + $0x2d40] ss:$16 sps:$4 sm:$0xff]  }
 0x58a   : > { %10752 = vmatpush1.bf16.msra.mxu0 %v16391_v0  ;;  %11736 = vmatpush1.bf16.msra.mxu1 %v16394_v2  ;;  %v16478_v0 = vld [vmem:[%s16786_s12 + $0x2d48] ss:$16 sps:$4 sm:$0xff]   ;;  %v16483_v2 = vld [vmem:[%s16786_s12 + $0x2d64] ss:$16 sps:$4 sm:$0xff]  }
 0x58b   : > { %10753 = vmatprep.subr.bf16.mxu0 %v16399_v3  ;;  %11737 = vmatprep.subr.bf16.mxu1 %v16402_v53  ;;  %v16486_v3 = vld [vmem:[%s16786_s12 + $0x2d6c] ss:$16 sps:$4 sm:$0xff]   ;;  %v16481_v53 = vld [vmem:[%s16786_s12 + $0x2d60] ss:$16 sps:$4 sm:$0xff]  }
 0x58e   : > { %10754 = vmatpush1.bf16.msra.mxu0 %v16397_v37  ;;  %11738 = vmatpush1.bf16.msra.mxu1 %v16400_v4  ;;  %v16484_v37 = vld [vmem:[%s16786_s12 + $0x2d68] ss:$16 sps:$4 sm:$0xff]   ;;  %v16489_v4 = vld [vmem:[%s16786_s12 + $0x2d84] ss:$16 sps:$4 sm:$0xff]  }
 0x58f   : > { %10755 = vmatprep.subr.bf16.mxu0 %v16405_v5  ;;  %11739 = vmatprep.subr.bf16.mxu1 %v16408_v50  ;;  %v16492_v5 = vld [vmem:[%s16786_s12 + $0x2d8c] ss:$16 sps:$4 sm:$0xff]   ;;  %v16487_v50 = vld [vmem:[%s16786_s12 + $0x2d80] ss:$16 sps:$4 sm:$0xff]  }
 0x592   : > { %10756 = vmatpush1.bf16.msra.mxu0 %v16403_v7  ;;  %11740 = vmatpush1.bf16.msra.mxu1 %v16406_v48  ;;  %v16495_v7 = vld [vmem:[%s16786_s12 + $0x2da4] ss:$16 sps:$4 sm:$0xff]   ;;  %v16498_v48 = vld [vmem:[%s16786_s12 + $0x2dac] ss:$16 sps:$4 sm:$0xff]  }
 0x593   : > { %10757 = vmatprep.subr.bf16.mxu0 %v16411_v11  ;;  %11741 = vmatprep.subr.bf16.mxu1 %v16414_v13  ;;  %v16493_v11 = vld [vmem:[%s16786_s12 + $0x2da0] ss:$16 sps:$4 sm:$0xff]   ;;  %v16496_v13 = vld [vmem:[%s16786_s12 + $0x2da8] ss:$16 sps:$4 sm:$0xff]  }
 0x596   : > { %10758 = vmatpush1.bf16.msra.mxu0 %v16409_v58  ;;  %11742 = vmatpush1.bf16.msra.mxu1 %v16412_v16  ;;  %v16501_v58 = vld [vmem:[%s16786_s12 + $0x2dc4] ss:$16 sps:$4 sm:$0xff]   ;;  %v16504_v16 = vld [vmem:[%s16786_s12 + $0x2dcc] ss:$16 sps:$4 sm:$0xff]  }
 0x597   : > { %10768 = vmatprep.subr.bf16.mxu0 %v16417_v1  ;;  %11752 = vmatprep.subr.bf16.mxu1 %v16420_v63  ;;  %v16499_v1 = vld [vmem:[%s16786_s12 + $0x2dc0] ss:$16 sps:$4 sm:$0xff]   ;;  %v16502_v63 = vld [vmem:[%s16786_s12 + $0x2dc8] ss:$16 sps:$4 sm:$0xff]  }
 0x599   : > { %10760 = vmatmul.mubr.bf16.vlgmr.msra.gmra.mrb[0].mxu0 %v2134_v54  ;;  %11744 = vmatmul.mubr.bf16.vlgmr.msra.gmra.mrb[0].mxu1 %v2134_v54  ;;  %v16510_v54 = vld [vmem:[%s16786_s12 + $0x2dec] ss:$16 sps:$4 sm:$0xff]  }
 0x59a   : > { %10769 = vmatpush1.bf16.msra.mxu0 %v16415_v19  ;;  %11753 = vmatpush1.bf16.msra.mxu1 %v16418_v8  ;;  %v16505_v19 = vld [vmem:[%s16786_s12 + $0x2de0] ss:$16 sps:$4 sm:$0xff]   ;;  %v16508_v8 = vld [vmem:[%s16786_s12 + $0x2de8] ss:$16 sps:$4 sm:$0xff]  }
 0x59b   : > { %10770 = vmatprep.subr.bf16.mxu0 %v16423_v10  ;;  %11754 = vmatprep.subr.bf16.mxu1 %v16426_v20  ;;  %v16514_v10 = vld [vmem:[%s16786_s12 + $0x2e04] ss:$16 sps:$4 sm:$0xff]   ;;  %v16517_v20 = vld [vmem:[%s16786_s12 + $0x2e0c] ss:$16 sps:$4 sm:$0xff]  }
 0x59c   : > { %10800 = vmatprep.mubr.bf16.mxu0 %v18449_v21  ;;  %11784 = vmatprep.mubr.bf16.mxu1 %v18449_v21 }
 0x59e   : > { %10771 = vmatpush1.bf16.msra.mxu0 %v16421_v9  ;;  %11755 = vmatpush1.bf16.msra.mxu1 %v16424_v15  ;;  %v18515_v9 = vrot.slane %v18434_v14, %v16836_v51  ;;  %v16512_v15 = vld [vmem:[%s16786_s12 + $0x2e00] ss:$16 sps:$4 sm:$0xff]   ;;  %v16521_v14 = vld [vmem:[%s16786_s12 + $0x2e28] ss:$16 sps:$4 sm:$0xff]  }
 0x59f   : > { %10772 = vmatprep.subr.bf16.mxu0 %v16429_v25  ;;  %11756 = vmatprep.subr.bf16.mxu1 %v16432_v26  ;;  %v16515_v25 = vld [vmem:[%s16786_s12 + $0x2e08] ss:$16 sps:$4 sm:$0xff]   ;;  %v16520_v26 = vld [vmem:[%s16786_s12 + $0x2e24] ss:$16 sps:$4 sm:$0xff]   ;;  %v16518_v51 = vld [vmem:[%s16786_s12 + $0x2e20] ss:$16 sps:$4 sm:$0xff]  }
 0x5a2   : > { %10773 = vmatpush1.bf16.msra.mxu0 %v16427_v62  ;;  %11757 = vmatpush1.bf16.msra.mxu1 %v16430_v29  ;;  %v16523_v62 = vld [vmem:[%s16786_s12 + $0x2e2c] ss:$16 sps:$4 sm:$0xff]   ;;  %v2137_v29 = vcombine.high %v18449_v21, %v18449_v21  ;;  %v16524_v21 = vld [vmem:[%s16786_s12 + $0x2e40] ss:$16 sps:$4 sm:$0xff]  }
 0x5a3   : > { %10774 = vmatprep.subr.bf16.mxu0 %v16435_v30  ;;  %11758 = vmatprep.subr.bf16.mxu1 %v16438_v12  ;;  %v16526_v30 = vld [vmem:[%s16786_s12 + $0x2e44] ss:$16 sps:$4 sm:$0xff]   ;;  %v16529_v12 = vld [vmem:[%s16786_s12 + $0x2e4c] ss:$16 sps:$4 sm:$0xff]  }
 0x5a6   : > { %10775 = vmatpush1.bf16.msra.mxu0 %v16433_v31  ;;  %11759 = vmatpush1.bf16.msra.mxu1 %v16436_v32  ;;  %v16527_v31 = vld [vmem:[%s16786_s12 + $0x2e48] ss:$16 sps:$4 sm:$0xff]   ;;  %v16532_v32 = vld [vmem:[%s16786_s12 + $0x2e64] ss:$16 sps:$4 sm:$0xff]  }
 0x5a7   : > { %10776 = vmatprep.subr.bf16.mxu0 %v16441_v22  ;;  %11760 = vmatprep.subr.bf16.mxu1 %v16444_v33  ;;  %v16535_v22 = vld [vmem:[%s16786_s12 + $0x2e6c] ss:$16 sps:$4 sm:$0xff]   ;;  %v16530_v33 = vld [vmem:[%s16786_s12 + $0x2e60] ss:$16 sps:$4 sm:$0xff]  }
 0x5aa   : > { %10777 = vmatpush1.bf16.msra.mxu0 %v16439_v34  ;;  %11761 = vmatpush1.bf16.msra.mxu1 %v16442_v27  ;;  %v16533_v34 = vld [vmem:[%s16786_s12 + $0x2e68] ss:$16 sps:$4 sm:$0xff]   ;;  %v16538_v27 = vld [vmem:[%s16786_s12 + $0x2e84] ss:$16 sps:$4 sm:$0xff]  }
 0x5ab   : > { %10778 = vmatprep.subr.bf16.mxu0 %v16447_v38  ;;  %11762 = vmatprep.subr.bf16.mxu1 %v16450_v39  ;;  %v16541_v38 = vld [vmem:[%s16786_s12 + $0x2e8c] ss:$16 sps:$4 sm:$0xff]   ;;  %v16536_v39 = vld [vmem:[%s16786_s12 + $0x2e80] ss:$16 sps:$4 sm:$0xff]  }
 0x5ae   : > { %10779 = vmatpush1.bf16.msra.mxu0 %v16445_v41  ;;  %11763 = vmatpush1.bf16.msra.mxu1 %v16448_v28  ;;  %v16539_v41 = vld [vmem:[%s16786_s12 + $0x2e88] ss:$16 sps:$4 sm:$0xff]   ;;  %v16544_v28 = vld [vmem:[%s16786_s12 + $0x2ea4] ss:$16 sps:$4 sm:$0xff]  }
 0x5af   : > { %10780 = vmatprep.subr.bf16.mxu0 %v16453_v42  ;;  %11764 = vmatprep.subr.bf16.mxu1 %v16456_v23  ;;  %v16547_v42 = vld [vmem:[%s16786_s12 + $0x2eac] ss:$16 sps:$4 sm:$0xff]   ;;  %v16542_v23 = vld [vmem:[%s16786_s12 + $0x2ea0] ss:$16 sps:$4 sm:$0xff]  }
 0x5b2   : > { %10781 = vmatpush1.bf16.msra.mxu0 %v16451_v43  ;;  %11765 = vmatpush1.bf16.msra.mxu1 %v16454_v35  ;;  %v16545_v43 = vld [vmem:[%s16786_s12 + $0x2ea8] ss:$16 sps:$4 sm:$0xff]   ;;  %v16550_v35 = vld [vmem:[%s16786_s12 + $0x2ec4] ss:$16 sps:$4 sm:$0xff]  }
 0x5b3   : > { %10782 = vmatprep.subr.bf16.mxu0 %v16459_v44  ;;  %11766 = vmatprep.subr.bf16.mxu1 %v16462_v46  ;;  %v16553_v44 = vld [vmem:[%s16786_s12 + $0x2ecc] ss:$16 sps:$4 sm:$0xff]   ;;  %v16548_v46 = vld [vmem:[%s16786_s12 + $0x2ec0] ss:$16 sps:$4 sm:$0xff]  }
 0x5b6   : > { %10783 = vmatpush1.bf16.msra.mxu0 %v16457_v24  ;;  %11767 = vmatpush1.bf16.msra.mxu1 %v16460_v49  ;;  %v16551_v24 = vld [vmem:[%s16786_s12 + $0x2ec8] ss:$16 sps:$4 sm:$0xff]   ;;  %v16556_v49 = vld [vmem:[%s16786_s12 + $0x2ee4] ss:$16 sps:$4 sm:$0xff]  }
 0x5b7   : > { %10784 = vmatprep.subr.bf16.mxu0 %v16465_v52  ;;  %11768 = vmatprep.subr.bf16.mxu1 %v16468_v17  ;;  %v16559_v52 = vld [vmem:[%s16786_s12 + $0x2eec] ss:$16 sps:$4 sm:$0xff]   ;;  %v16554_v17 = vld [vmem:[%s16786_s12 + $0x2ee0] ss:$16 sps:$4 sm:$0xff]  }
 0x5ba   : > { %10785 = vmatpush1.bf16.msra.mxu0 %v16463_v55  ;;  %11769 = vmatpush1.bf16.msra.mxu1 %v16466_v56  ;;  %v16557_v55 = vld [vmem:[%s16786_s12 + $0x2ee8] ss:$16 sps:$4 sm:$0xff]   ;;  %v16562_v56 = vld [vmem:[%s16786_s12 + $0x2f04] ss:$16 sps:$4 sm:$0xff]  }
 0x5bb   : > { %10786 = vmatprep.subr.bf16.mxu0 %v16471_v36  ;;  %11770 = vmatprep.subr.bf16.mxu1 %v16474_v57  ;;  %v16565_v36 = vld [vmem:[%s16786_s12 + $0x2f0c] ss:$16 sps:$4 sm:$0xff]   ;;  %v16560_v57 = vld [vmem:[%s16786_s12 + $0x2f00] ss:$16 sps:$4 sm:$0xff]  }
 0x5be   : > { %10787 = vmatpush1.bf16.msra.mxu0 %v16469_v40  ;;  %11771 = vmatpush1.bf16.msra.mxu1 %v16472_v47  ;;  %v16563_v40 = vld [vmem:[%s16786_s12 + $0x2f08] ss:$16 sps:$4 sm:$0xff]   ;;  %v16568_v47 = vld [vmem:[%s16786_s12 + $0x2f24] ss:$16 sps:$4 sm:$0xff]  }
 0x5bf   : > { %10788 = vmatprep.subr.bf16.mxu0 %v16477_v59  ;;  %11772 = vmatprep.subr.bf16.mxu1 %v16480_v60  ;;  %v16571_v59 = vld [vmem:[%s16786_s12 + $0x2f2c] ss:$16 sps:$4 sm:$0xff]   ;;  %v16566_v60 = vld [vmem:[%s16786_s12 + $0x2f20] ss:$16 sps:$4 sm:$0xff]  }
 0x5c2   : > { %10789 = vmatpush1.bf16.msra.mxu0 %v16475_v61  ;;  %11773 = vmatpush1.bf16.msra.mxu1 %v16478_v0  ;;  %v16569_v61 = vld [vmem:[%s16786_s12 + $0x2f28] ss:$16 sps:$4 sm:$0xff]   ;;  %v16574_v0 = vld [vmem:[%s16786_s12 + $0x2f44] ss:$16 sps:$4 sm:$0xff]  }
 0x5c3   : > { %10790 = vmatprep.subr.bf16.mxu0 %v16483_v2  ;;  %11774 = vmatprep.subr.bf16.mxu1 %v16486_v3  ;;  %v16577_v2 = vld [vmem:[%s16786_s12 + $0x2f4c] ss:$16 sps:$4 sm:$0xff]   ;;  %v16572_v3 = vld [vmem:[%s16786_s12 + $0x2f40] ss:$16 sps:$4 sm:$0xff]  }
 0x5c6   : > { %10791 = vmatpush1.bf16.msra.mxu0 %v16481_v53  ;;  %11775 = vmatpush1.bf16.msra.mxu1 %v16484_v37  ;;  %v16575_v53 = vld [vmem:[%s16786_s12 + $0x2f48] ss:$16 sps:$4 sm:$0xff]   ;;  %v16580_v37 = vld [vmem:[%s16786_s12 + $0x2f64] ss:$16 sps:$4 sm:$0xff]  }
 0x5c7   : > { %10792 = vmatprep.subr.bf16.mxu0 %v16489_v4  ;;  %11776 = vmatprep.subr.bf16.mxu1 %v16492_v5  ;;  %v16583_v4 = vld [vmem:[%s16786_s12 + $0x2f6c] ss:$16 sps:$4 sm:$0xff]   ;;  %v16578_v5 = vld [vmem:[%s16786_s12 + $0x2f60] ss:$16 sps:$4 sm:$0xff]  }
 0x5ca   : > { %10793 = vmatpush1.bf16.msra.mxu0 %v16487_v50  ;;  %11777 = vmatpush1.bf16.msra.mxu1 %v16490_v6  ;;  %v16581_v50 = vld [vmem:[%s16786_s12 + $0x2f68] ss:$16 sps:$4 sm:$0xff]   ;;  %v16586_v6 = vld [vmem:[%s16786_s12 + $0x2f84] ss:$16 sps:$4 sm:$0xff]  }
 0x5cb   : > { %10794 = vmatprep.subr.bf16.mxu0 %v16495_v7  ;;  %11778 = vmatprep.subr.bf16.mxu1 %v16498_v48  ;;  %v16589_v7 = vld [vmem:[%s16786_s12 + $0x2f8c] ss:$16 sps:$4 sm:$0xff]   ;;  %v16584_v48 = vld [vmem:[%s16786_s12 + $0x2f80] ss:$16 sps:$4 sm:$0xff]  }
 0x5ce   : > { %10795 = vmatpush1.bf16.msra.mxu0 %v16493_v11  ;;  %11779 = vmatpush1.bf16.msra.mxu1 %v16496_v13  ;;  %v16587_v11 = vld [vmem:[%s16786_s12 + $0x2f88] ss:$16 sps:$4 sm:$0xff]   ;;  %v16592_v13 = vld [vmem:[%s16786_s12 + $0x2fa4] ss:$16 sps:$4 sm:$0xff]  }
 0x5cf   : > { %10796 = vmatprep.subr.bf16.mxu0 %v16501_v58  ;;  %11780 = vmatprep.subr.bf16.mxu1 %v16504_v16  ;;  %v16595_v58 = vld [vmem:[%s16786_s12 + $0x2fac] ss:$16 sps:$4 sm:$0xff]   ;;  %v16590_v16 = vld [vmem:[%s16786_s12 + $0x2fa0] ss:$16 sps:$4 sm:$0xff]  }
 0x5d2   : > { %10797 = vmatpush1.bf16.msra.mxu0 %v16499_v1  ;;  %11781 = vmatpush1.bf16.msra.mxu1 %v16502_v63  ;;  %v16593_v1 = vld [vmem:[%s16786_s12 + $0x2fa8] ss:$16 sps:$4 sm:$0xff]   ;;  %v16598_v63 = vld [vmem:[%s16786_s12 + $0x2fc4] ss:$16 sps:$4 sm:$0xff]  }
 0x5d3   : > { %10798 = vmatprep.subr.bf16.mxu0 %v16507_v18  ;;  %11782 = vmatprep.subr.bf16.mxu1 %v16510_v54  ;;  %v16601_v18 = vld [vmem:[%s16786_s12 + $0x2fcc] ss:$16 sps:$4 sm:$0xff]   ;;  %v16596_v54 = vld [vmem:[%s16786_s12 + $0x2fc0] ss:$16 sps:$4 sm:$0xff]  }
 0x5d6   : > { %10799 = vmatpush1.bf16.msra.mxu0 %v16505_v19  ;;  %11783 = vmatpush1.bf16.msra.mxu1 %v16508_v8  ;;  %v16599_v19 = vld [vmem:[%s16786_s12 + $0x2fc8] ss:$16 sps:$4 sm:$0xff]   ;;  %v16604_v8 = vld [vmem:[%s16786_s12 + $0x2fe4] ss:$16 sps:$4 sm:$0xff]  }
 0x5d7   : > { %10809 = vmatprep.subr.bf16.mxu0 %v16514_v10  ;;  %11793 = vmatprep.subr.bf16.mxu1 %v16517_v20  ;;  %v16607_v10 = vld [vmem:[%s16786_s12 + $0x2fec] ss:$16 sps:$4 sm:$0xff]   ;;  %v16602_v20 = vld [vmem:[%s16786_s12 + $0x2fe0] ss:$16 sps:$4 sm:$0xff]  }
 0x5d9   : > { %10801 = vmatmul.mubr.bf16.vlgmr.msra.gmra.mrb[0].mxu0 %v18515_v9  ;;  %11785 = vmatmul.mubr.bf16.vlgmr.msra.gmra.mrb[0].mxu1 %v18515_v9 }
 0x5da   : > { %10810 = vmatpush1.bf16.msra.mxu0 %v16512_v15  ;;  %11794 = vmatpush1.bf16.msra.mxu1 %v16515_v25  ;;  %v16605_v15 = vld [vmem:[%s16786_s12 + $0x2fe8] ss:$16 sps:$4 sm:$0xff]   ;;  %v2135_v25 = vcombine.high %v18515_v9, %v18515_v9 }
 0x5db   : > { %10811 = vmatprep.subr.bf16.mxu0 %v16520_v26  ;;  %11795 = vmatprep.subr.bf16.mxu1 %v16523_v62  ;;  %v16722_v26 = vmov 1983009808  }
 0x5dc   : > { %10841 = vmatprep.mubr.bf16.mxu0 %v2137_v29  ;;  %11825 = vmatprep.mubr.bf16.mxu1 %v2137_v29  ;;  %v11841_v62 = vunpack.c.l.s4 %v16722_v26  ;;  %v18724_v26 = vsub.s32 (!%p14029_p6), 0, %v16828_v45 }
 0x5de   : > { %10812 = vmatpush1.bf16.msra.mxu0 %v16518_v51  ;;  %11796 = vmatpush1.bf16.msra.mxu1 %v16521_v14  ;;  %v11842_v29 = vunpack.c.0.s8 %v11841_v62  ;;  %v16676_v62 = vld [vmem:[%s18819_s3 + $0xb4] ss:$8 sps:$4 sm:$0xff] (!%p14029_p6)  }
 0x5df   : > { %10813 = vmatprep.subr.bf16.mxu0 %v16526_v30  ;;  %11797 = vmatprep.subr.bf16.mxu1 %v16529_v12 }
 0x5e0   : > { %v18586_v30 = vsub.s32 %v11842_v29, %v16828_v45  ;;  %v18730_v29 = vsub.s32 (!%p14029_p6), 1, %v16828_v45 }
 0x5e2   : > { %10814 = vmatpush1.bf16.msra.mxu0 %v16524_v21  ;;  %11798 = vmatpush1.bf16.msra.mxu1 %v16527_v31 }
 0x5e3   : > { %10815 = vmatprep.subr.bf16.mxu0 %v16532_v32  ;;  %11799 = vmatprep.subr.bf16.mxu1 %v16535_v22 }
 0x5e6   : > { %10816 = vmatpush1.bf16.msra.mxu0 %v16530_v33  ;;  %11800 = vmatpush1.bf16.msra.mxu1 %v16533_v34 }
 0x5e7   : > { %10817 = vmatprep.subr.bf16.mxu0 %v16538_v27  ;;  %11801 = vmatprep.subr.bf16.mxu1 %v16541_v38 }
 0x5ea   : > { %10818 = vmatpush1.bf16.msra.mxu0 %v16536_v39  ;;  %11802 = vmatpush1.bf16.msra.mxu1 %v16539_v41  ;;  %v295_v39 = vld [vmem:[#allocation2] sm:$0xff] }
 0x5eb   : > { %10819 = vmatprep.subr.bf16.mxu0 %v16544_v28  ;;  %11803 = vmatprep.subr.bf16.mxu1 %v16547_v42  ;;  %v16610_v42 = vld [vmem:[%s18819_s3 + $0x4] ss:$8 sps:$4 sm:$0xff] (!%p14029_p6)  }
 0x5ee   : > { %10820 = vmatpush1.bf16.msra.mxu0 %v16542_v23  ;;  %11804 = vmatpush1.bf16.msra.mxu1 %v16545_v43  ;;  %v16612_v23 = vld [vmem:[%s18819_s3 + $0x104] ss:$8 sps:$4 sm:$0xff] (!%p14029_p6)   ;;  %v16614_v43 = vld [vmem:[%s18819_s3] ss:$8 sps:$4 sm:$0xff] (!%p14029_p6)  }
 0x5ef   : > { %10821 = vmatprep.subr.bf16.mxu0 %v16550_v35  ;;  %11805 = vmatprep.subr.bf16.mxu1 %v16553_v44  ;;  %v16615_v35 = vld [vmem:[%s18819_s3 + $0x100] ss:$8 sps:$4 sm:$0xff] (!%p14029_p6)   ;;  %v16616_v44 = vld [vmem:[%s18819_s3 + $0x14] ss:$8 sps:$4 sm:$0xff] (!%p14029_p6)  }
 0x5f2   : > { %10822 = vmatpush1.bf16.msra.mxu0 %v16548_v46  ;;  %11806 = vmatpush1.bf16.msra.mxu1 %v16551_v24  ;;  %v16618_v46 = vld [vmem:[%s18819_s3 + $0x114] ss:$8 sps:$4 sm:$0xff] (!%p14029_p6)   ;;  %v16620_v24 = vld [vmem:[%s18819_s3 + $0x10] ss:$8 sps:$4 sm:$0xff] (!%p14029_p6)  }
 0x5f3   : > { %10823 = vmatprep.subr.bf16.mxu0 %v16556_v49  ;;  %11807 = vmatprep.subr.bf16.mxu1 %v16559_v52  ;;  %v16621_v49 = vld [vmem:[%s18819_s3 + $0x110] ss:$8 sps:$4 sm:$0xff] (!%p14029_p6)   ;;  %v16622_v52 = vld [vmem:[%s18819_s3 + $0x24] ss:$8 sps:$4 sm:$0xff] (!%p14029_p6)  }
 0x5f6   : > { %10824 = vmatpush1.bf16.msra.mxu0 %v16554_v17  ;;  %11808 = vmatpush1.bf16.msra.mxu1 %v16557_v55  ;;  %v16624_v17 = vld [vmem:[%s18819_s3 + $0x124] ss:$8 sps:$4 sm:$0xff] (!%p14029_p6)   ;;  %v16626_v55 = vld [vmem:[%s18819_s3 + $0x20] ss:$8 sps:$4 sm:$0xff] (!%p14029_p6)  }
 0x5f7   : > { %10825 = vmatprep.subr.bf16.mxu0 %v16562_v56  ;;  %11809 = vmatprep.subr.bf16.mxu1 %v16565_v36  ;;  %v16627_v56 = vld [vmem:[%s18819_s3 + $0x120] ss:$8 sps:$4 sm:$0xff] (!%p14029_p6)   ;;  %v16628_v36 = vld [vmem:[%s18819_s3 + $0x34] ss:$8 sps:$4 sm:$0xff] (!%p14029_p6)  }
 0x5fa   : > { %10826 = vmatpush1.bf16.msra.mxu0 %v16560_v57  ;;  %11810 = vmatpush1.bf16.msra.mxu1 %v16563_v40  ;;  %v16630_v57 = vld [vmem:[%s18819_s3 + $0x134] ss:$8 sps:$4 sm:$0xff] (!%p14029_p6)   ;;  %v16632_v40 = vld [vmem:[%s18819_s3 + $0x30] ss:$8 sps:$4 sm:$0xff] (!%p14029_p6)  }
 0x5fb   : > { %10827 = vmatprep.subr.bf16.mxu0 %v16568_v47  ;;  %11811 = vmatprep.subr.bf16.mxu1 %v16571_v59  ;;  %v16633_v47 = vld [vmem:[%s18819_s3 + $0x130] ss:$8 sps:$4 sm:$0xff] (!%p14029_p6)   ;;  %v16634_v59 = vld [vmem:[%s18819_s3 + $0x44] ss:$8 sps:$4 sm:$0xff] (!%p14029_p6)  }
 0x5fe   : > { %10828 = vmatpush1.bf16.msra.mxu0 %v16566_v60  ;;  %11812 = vmatpush1.bf16.msra.mxu1 %v16569_v61  ;;  %v16636_v60 = vld [vmem:[%s18819_s3 + $0x144] ss:$8 sps:$4 sm:$0xff] (!%p14029_p6)   ;;  %v16638_v61 = vld [vmem:[%s18819_s3 + $0x40] ss:$8 sps:$4 sm:$0xff] (!%p14029_p6)  }
 0x5ff   : > { %10829 = vmatprep.subr.bf16.mxu0 %v16574_v0  ;;  %11813 = vmatprep.subr.bf16.mxu1 %v16577_v2  ;;  %v16639_v0 = vld [vmem:[%s18819_s3 + $0x140] ss:$8 sps:$4 sm:$0xff] (!%p14029_p6)   ;;  %v16640_v2 = vld [vmem:[%s18819_s3 + $0x54] ss:$8 sps:$4 sm:$0xff] (!%p14029_p6)  }
 0x602   : > { %10830 = vmatpush1.bf16.msra.mxu0 %v16572_v3  ;;  %11814 = vmatpush1.bf16.msra.mxu1 %v16575_v53  ;;  %v16642_v3 = vld [vmem:[%s18819_s3 + $0x154] ss:$8 sps:$4 sm:$0xff] (!%p14029_p6)   ;;  %v16644_v53 = vld [vmem:[%s18819_s3 + $0x50] ss:$8 sps:$4 sm:$0xff] (!%p14029_p6)  }
 0x603   : > { %10831 = vmatprep.subr.bf16.mxu0 %v16580_v37  ;;  %11815 = vmatprep.subr.bf16.mxu1 %v16583_v4  ;;  %v16645_v37 = vld [vmem:[%s18819_s3 + $0x150] ss:$8 sps:$4 sm:$0xff] (!%p14029_p6)   ;;  %v16646_v4 = vld [vmem:[%s18819_s3 + $0x64] ss:$8 sps:$4 sm:$0xff] (!%p14029_p6)  }
 0x606   : > { %10832 = vmatpush1.bf16.msra.mxu0 %v16578_v5  ;;  %11816 = vmatpush1.bf16.msra.mxu1 %v16581_v50  ;;  %v16648_v5 = vld [vmem:[%s18819_s3 + $0x164] ss:$8 sps:$4 sm:$0xff] (!%p14029_p6)   ;;  %v16650_v50 = vld [vmem:[%s18819_s3 + $0x60] ss:$8 sps:$4 sm:$0xff] (!%p14029_p6)  }
 0x607   : > { %10833 = vmatprep.subr.bf16.mxu0 %v16586_v6  ;;  %11817 = vmatprep.subr.bf16.mxu1 %v16589_v7  ;;  %v16651_v6 = vld [vmem:[%s18819_s3 + $0x160] ss:$8 sps:$4 sm:$0xff] (!%p14029_p6)   ;;  %v16652_v7 = vld [vmem:[%s18819_s3 + $0x74] ss:$8 sps:$4 sm:$0xff] (!%p14029_p6)  }
 0x60a   : > { %10834 = vmatpush1.bf16.msra.mxu0 %v16584_v48  ;;  %11818 = vmatpush1.bf16.msra.mxu1 %v16587_v11  ;;  %v16654_v48 = vld [vmem:[%s18819_s3 + $0x174] ss:$8 sps:$4 sm:$0xff] (!%p14029_p6)   ;;  %v16656_v11 = vld [vmem:[%s18819_s3 + $0x70] ss:$8 sps:$4 sm:$0xff] (!%p14029_p6)  }
 0x60b   : > { %10835 = vmatprep.subr.bf16.mxu0 %v16592_v13  ;;  %11819 = vmatprep.subr.bf16.mxu1 %v16595_v58  ;;  %v16657_v13 = vld [vmem:[%s18819_s3 + $0x170] ss:$8 sps:$4 sm:$0xff] (!%p14029_p6)   ;;  %v16658_v58 = vld [vmem:[%s18819_s3 + $0x84] ss:$8 sps:$4 sm:$0xff] (!%p14029_p6)  }
 0x60e   : > { %10836 = vmatpush1.bf16.msra.mxu0 %v16590_v16  ;;  %11820 = vmatpush1.bf16.msra.mxu1 %v16593_v1  ;;  %v16660_v16 = vld [vmem:[%s18819_s3 + $0x184] ss:$8 sps:$4 sm:$0xff] (!%p14029_p6)   ;;  %v16662_v1 = vld [vmem:[%s18819_s3 + $0x80] ss:$8 sps:$4 sm:$0xff] (!%p14029_p6)  }
 0x60f   : > { %10837 = vmatprep.subr.bf16.mxu0 %v16598_v63  ;;  %11821 = vmatprep.subr.bf16.mxu1 %v16601_v18  ;;  %v16663_v63 = vld [vmem:[%s18819_s3 + $0x180] ss:$8 sps:$4 sm:$0xff] (!%p14029_p6)   ;;  %v16664_v18 = vld [vmem:[%s18819_s3 + $0x94] ss:$8 sps:$4 sm:$0xff] (!%p14029_p6)  }
 0x612   : > { %10838 = vmatpush1.bf16.msra.mxu0 %v16596_v54  ;;  %11822 = vmatpush1.bf16.msra.mxu1 %v16599_v19  ;;  %v16666_v54 = vld [vmem:[%s18819_s3 + $0x194] ss:$8 sps:$4 sm:$0xff] (!%p14029_p6)   ;;  %v16668_v19 = vld [vmem:[%s18819_s3 + $0x90] ss:$8 sps:$4 sm:$0xff] (!%p14029_p6)  }
 0x613   : > { %10839 = vmatprep.subr.bf16.mxu0 %v16604_v8  ;;  %11823 = vmatprep.subr.bf16.mxu1 %v16607_v10  ;;  %v16669_v8 = vld [vmem:[%s18819_s3 + $0x190] ss:$8 sps:$4 sm:$0xff] (!%p14029_p6)   ;;  %v16670_v10 = vld [vmem:[%s18819_s3 + $0xa4] ss:$8 sps:$4 sm:$0xff] (!%p14029_p6)  }
 0x616   : > { %10840 = vmatpush1.bf16.msra.mxu0 %v16602_v20  ;;  %11824 = vmatpush1.bf16.msra.mxu1 %v16605_v15  ;;  %v16672_v20 = vld [vmem:[%s18819_s3 + $0x1a4] ss:$8 sps:$4 sm:$0xff] (!%p14029_p6)   ;;  %v16674_v15 = vld [vmem:[%s18819_s3 + $0xa0] ss:$8 sps:$4 sm:$0xff] (!%p14029_p6)  }
 0x617   : > { %12325 = vmatprep.subr.bf16.mxu1 (!%p14029_p6), %v16610_v42  ;;  %12366 = vmatprep.subr.bf16.mxu0 (!%p14029_p6), %v16612_v23  ;;  %v16688_v23 = vld [vmem:[%s18819_s3 + $0xd4] ss:$8 sps:$4 sm:$0xff] (!%p14029_p6)  }
 0x619   : > { %10842 = vmatmul.mubr.bf16.vlgmr.msra.gmra.mrb[0].mxu0 %v2135_v25  ;;  %11826 = vmatmul.mubr.bf16.vlgmr.msra.gmra.mrb[0].mxu1 %v2135_v25  ;;  %v16675_v25 = vld [vmem:[%s18819_s3 + $0x1a0] ss:$8 sps:$4 sm:$0xff] (!%p14029_p6)  }
 0x61a   : > { %12326 = vmatpush1.bf16.msra.mxu1 (!%p14029_p6), %v16614_v43  ;;  %12367 = vmatpush1.bf16.msra.mxu0 (!%p14029_p6), %v16615_v35  ;;  %v16690_v43 = vld [vmem:[%s18819_s3 + $0x1d4] ss:$8 sps:$4 sm:$0xff] (!%p14029_p6)  }
 0x61b   : > { %12327 = vmatprep.subr.bf16.mxu1 (!%p14029_p6), %v16616_v44  ;;  %12368 = vmatprep.subr.bf16.mxu0 (!%p14029_p6), %v16618_v46 }
 0x61e   : > { %12328 = vmatpush1.bf16.msra.mxu1 (!%p14029_p6), %v16620_v24  ;;  %12369 = vmatpush1.bf16.msra.mxu0 (!%p14029_p6), %v16621_v49  ;;  %v16692_v24 = vld [vmem:[%s18819_s3 + $0xd0] ss:$8 sps:$4 sm:$0xff] (!%p14029_p6)  }
 0x61f   : > { %12329 = vmatprep.subr.bf16.mxu1 (!%p14029_p6), %v16622_v52  ;;  %12370 = vmatprep.subr.bf16.mxu0 (!%p14029_p6), %v16624_v17  ;;  %v16693_v49 = vld [vmem:[%s18819_s3 + $0x1d0] ss:$8 sps:$4 sm:$0xff] (!%p14029_p6)   ;;  %v16694_v52 = vld [vmem:[%s18819_s3 + $0xe4] ss:$8 sps:$4 sm:$0xff] (!%p14029_p6)  }
 0x620   : > { %v16696_v17 = vld [vmem:[%s18819_s3 + $0x1e4] ss:$8 sps:$4 sm:$0xff] (!%p14029_p6)  }
 0x622   : > { %12330 = vmatpush1.bf16.msra.mxu1 (!%p14029_p6), %v16626_v55  ;;  %12371 = vmatpush1.bf16.msra.mxu0 (!%p14029_p6), %v16627_v56 }
 0x623   : > { %12331 = vmatprep.subr.bf16.mxu1 (!%p14029_p6), %v16628_v36  ;;  %12372 = vmatprep.subr.bf16.mxu0 (!%p14029_p6), %v16630_v57  ;;  %v16698_v36 = vld [vmem:[%s18819_s3 + $0xe0] ss:$8 sps:$4 sm:$0xff] (!%p14029_p6)  }
 0x624   : > { %v16699_v57 = vld [vmem:[%s18819_s3 + $0x1e0] ss:$8 sps:$4 sm:$0xff] (!%p14029_p6)  }
 0x626   : > { %12332 = vmatpush1.bf16.msra.mxu1 (!%p14029_p6), %v16632_v40  ;;  %12373 = vmatpush1.bf16.msra.mxu0 (!%p14029_p6), %v16633_v47  ;;  %v16700_v40 = vld [vmem:[%s18819_s3 + $0xf4] ss:$8 sps:$4 sm:$0xff] (!%p14029_p6)  }
 0x627   : > { %12333 = vmatprep.subr.bf16.mxu1 (!%p14029_p6), %v16634_v59  ;;  %12374 = vmatprep.subr.bf16.mxu0 (!%p14029_p6), %v16636_v60  ;;  %v16702_v47 = vld [vmem:[%s18819_s3 + $0x1f4] ss:$8 sps:$4 sm:$0xff] (!%p14029_p6)  }
 0x62a   : > { %12334 = vmatpush1.bf16.msra.mxu1 (!%p14029_p6), %v16638_v61  ;;  %12375 = vmatpush1.bf16.msra.mxu0 (!%p14029_p6), %v16639_v0  ;;  %v16704_v0 = vld [vmem:[%s18819_s3 + $0xf0] ss:$8 sps:$4 sm:$0xff] (!%p14029_p6)  }
 0x62b   : > { %12335 = vmatprep.subr.bf16.mxu1 (!%p14029_p6), %v16640_v2  ;;  %12376 = vmatprep.subr.bf16.mxu0 (!%p14029_p6), %v16642_v3  ;;  %v16705_v2 = vld [vmem:[%s18819_s3 + $0x1f0] ss:$8 sps:$4 sm:$0xff] (!%p14029_p6)  }
 0x62e   : > { %12336 = vmatpush1.bf16.msra.mxu1 (!%p14029_p6), %v16644_v53  ;;  %12377 = vmatpush1.bf16.msra.mxu0 (!%p14029_p6), %v16645_v37 }
 0x62f   : > { %12337 = vmatprep.subr.bf16.mxu1 (!%p14029_p6), %v16646_v4  ;;  %12378 = vmatprep.subr.bf16.mxu0 (!%p14029_p6), %v16648_v5 }
 0x632   : > { %12338 = vmatpush1.bf16.msra.mxu1 (!%p14029_p6), %v16650_v50  ;;  %12379 = vmatpush1.bf16.msra.mxu0 (!%p14029_p6), %v16651_v6 }
 0x633   : > { %12339 = vmatprep.subr.bf16.mxu1 (!%p14029_p6), %v16652_v7  ;;  %12380 = vmatprep.subr.bf16.mxu0 (!%p14029_p6), %v16654_v48  ;;  %v11993_v7 = vld [vmem:[%s18820_s4] sm:$0x3] (!%p14029_p6) }
 0x634   : > { %v11998_v48 = vrot.slane (!%p14029_p6), %v11993_v7, %v18724_v26 }
 0x636   : > { %12340 = vmatpush1.bf16.msra.mxu1 (!%p14029_p6), %v16656_v11  ;;  %12381 = vmatpush1.bf16.msra.mxu0 (!%p14029_p6), %v16657_v13 }
 0x637   : > { %12341 = vmatprep.subr.bf16.mxu1 (!%p14029_p6), %v16658_v58  ;;  %12382 = vmatprep.subr.bf16.mxu0 (!%p14029_p6), %v16660_v16 }
 0x63a   : > { %12342 = vmatpush1.bf16.msra.mxu1 (!%p14029_p6), %v16662_v1  ;;  %12383 = vmatpush1.bf16.msra.mxu0 (!%p14029_p6), %v16663_v63  ;;  %v12413_v63 = vld [vmem:[%s18821_s5] sm:$0x3] (!%p14029_p6) }
 0x63b   : > { %12343 = vmatprep.subr.bf16.mxu1 (!%p14029_p6), %v16664_v18  ;;  %12384 = vmatprep.subr.bf16.mxu0 (!%p14029_p6), %v16666_v54 }
 0x63e   : > { %12344 = vmatpush1.bf16.msra.mxu1 (!%p14029_p6), %v16668_v19  ;;  %12385 = vmatpush1.bf16.msra.mxu0 (!%p14029_p6), %v16669_v8 }
 0x63f   : > { %12345 = vmatprep.subr.bf16.mxu1 (!%p14029_p6), %v16670_v10  ;;  %12386 = vmatprep.subr.bf16.mxu0 (!%p14029_p6), %v16672_v20 }
 0x642   : > { %12346 = vmatpush1.bf16.msra.mxu1 (!%p14029_p6), %v16674_v15  ;;  %12387 = vmatpush1.bf16.msra.mxu0 (!%p14029_p6), %v16675_v25  ;;  %v12418_v25 = vrot.slane (!%p14029_p6), %v12413_v63, %v18724_v26 }
 0x643   : > { %12347 = vmatprep.subr.bf16.mxu1 (!%p14029_p6), %v16676_v62 }
 0x6ec   : > { %v10843_v51 = vpop.f32.mrb[0].mxu0  ;;  %v11827_v14 = vpop.f32.mrb[0].mxu1 }
 0x6ed   : > { %v10845_v12 = vpop.f32.mrb[1].mxu0  ;;  %v11829_v21 = vpop.f32.mrb[1].mxu1 }
 0x6ee   : > { %v11838_v31 = vcombine.low %v10843_v51, %v10845_v12  ;;  %v11839_v32 = vcombine.low %v11827_v14, %v11829_v21  ;;  %v10847_v22 = vpop.f32.mrb[2].mxu0  ;;  %v11831_v33 = vpop.f32.mrb[2].mxu1  ;;  %v11875_v51 = vsub.s32 (!%p14029_p6), 2, %v16828_v45  ;;  %v16678_v14 = vld [vmem:[%s18819_s3 + $0x1b4] ss:$8 sps:$4 sm:$0xff] (!%p14029_p6)   ;;  %v11879_v12 = vsub.s32 (!%p14029_p6), 3, %v16828_v45 }
 0x6ef   : > { %v10848_v34 = vpop.f32.mrb[3].mxu0  ;;  %v11832_v9 = vpop.f32.mrb[3].mxu1  ;;  %v11863_v21 = vld [vmem:[%s18818_s2] sm:$0xf] (!%p14029_p6)  ;;  %12388 = vmatprep.subr.bf16.mxu0 (!%p14029_p6), %v16678_v14  ;;  %v16682_v45 = vld [vmem:[%s18819_s3 + $0xc4] ss:$8 sps:$4 sm:$0xff] (!%p14029_p6)  }
 0x6f0   : > { %v11846_v27 = vrot.slane %v11838_v31, %v18586_v30  ;;  %v11853_v38 = vrot.slane %v11839_v32, %v18586_v30  ;;  %11861 = sbr.rel (%p14029_p6) target bundleno = 2198 (0x896), region = 56  ;;  %v16680_v31 = vld [vmem:[%s18819_s3 + $0xb0] ss:$8 sps:$4 sm:$0xff] (!%p14029_p6)   ;;  %v11868_v22 = vrot.slane (!%p14029_p6), %v11863_v21, %v18724_v26  ;;  %v11872_v33 = vrot.slane (!%p14029_p6), %v11863_v21, %v18730_v29  ;;  %v16684_v9 = vld [vmem:[%s18819_s3 + $0x1c4] ss:$8 sps:$4 sm:$0xff] (!%p14029_p6)  }
 0x6f1   : > { %v16681_v32 = vld [vmem:[%s18819_s3 + $0x1b0] ss:$8 sps:$4 sm:$0xff] (!%p14029_p6)   ;;  %v11876_v34 = vrot.slane (!%p14029_p6), %v11863_v21, %v11875_v51  ;;  %12348 = vmatpush1.bf16.msra.mxu1 (!%p14029_p6), %v16680_v31  ;;  %v12422_v51 = vrot.slane (!%p14029_p6), %v12413_v63, %v18730_v29 }
 0x6f2   : > { %v11854_v41 = vcombine.low %v11846_v27, %v11853_v38  ;;  %v11880_v27 = vrot.slane (!%p14029_p6), %v11863_v21, %v11879_v12  ;;  %v11881_v38 = vcombine.low (!%p14029_p6), %v11868_v22, %v11872_v33  ;;  %12389 = vmatpush1.bf16.msra.mxu0 (!%p14029_p6), %v16681_v32  ;;  %12349 = vmatprep.subr.bf16.mxu1 (!%p14029_p6), %v16682_v45  ;;  %v14094_v45 = vld [vmem:[#allocation3] ss:$0 sm:$0xff] (!%p14029_p6) }
 0x6f3   : > { %12390 = vmatprep.subr.bf16.mxu0 (!%p14029_p6), %v16684_v9 }
 0x6f4   : > { %v11856_v28 = vadd.f32 %v11854_v41, %v295_v39  ;;  %v11882_v39 = vcombine.low (!%p14029_p6), %v11876_v34, %v11880_v27  ;;  %v16686_v41 = vld [vmem:[%s18819_s3 + $0xc0] ss:$8 sps:$4 sm:$0xff] (!%p14029_p6)   ;;  %v11889_v42 = vrot.slane (!%p14029_p6), %v11881_v38, %v18586_v30 }
 0x6f5   : > { %12350 = vmatpush1.bf16.msra.mxu1 (!%p14029_p6), %v16686_v41 }
 0x6f6   : > { %11857 = vst [vmem:[#allocation2] sm:$0xff] %v11856_v28  ;;  %v16687_v28 = vld [vmem:[%s18819_s3 + $0x1c0] ss:$8 sps:$4 sm:$0xff] (!%p14029_p6)   ;;  %v11896_v35 = vrot.slane (!%p14029_p6), %v11882_v39, %v18586_v30  ;;  %12351 = vmatprep.subr.bf16.mxu1 (!%p14029_p6), %v16688_v23 }
 0x6f7   : > { %12391 = vmatpush1.bf16.msra.mxu0 %v16687_v28 }
 0x6f8   : > { %v11897_v46 = vcombine.low %v11889_v42, %v11896_v35  ;;  %12392 = vmatprep.subr.bf16.mxu0 %v16690_v43 }
 0x6f9   : > { %12352 = vmatpush1.bf16.msra.mxu1 %v16692_v24 }
 0x6fa   : > { %12353 = vmatprep.subr.bf16.mxu1 %v16694_v52 }
 0x6fb   : > { %12393 = vmatpush1.bf16.msra.mxu0 %v16693_v49 }
 0x6fc   : > { %12394 = vmatprep.subr.bf16.mxu0 %v16696_v17 }
 0x6fd   : > { %v11862_v44 = vld [vmem:[#allocation2] sm:$0xff]  ;;  %12354 = vmatpush1.bf16.msra.mxu1 %v16698_v36 }
 0x6fe   : > { %v11899_v55 = vadd.f32 %v11897_v46, %v11862_v44  ;;  %12355 = vmatprep.subr.bf16.mxu1 %v16700_v40 }
 0x6ff   : > { %12395 = vmatpush1.bf16.msra.mxu0 %v16699_v57 }
 0x700   : > { %vm11900_vm0 = vcmp.gt.f32.partialorder %v11899_v55, 0.0  ;;  %v11901_v56 = vmul.f32 0.2, %v11899_v55  ;;  %12396 = vmatprep.subr.bf16.mxu0 %v16702_v47 }
 0x701   : > { %12356 = vmatpush1.bf16.msra.mxu1 %v16704_v0 }
 0x702   : > { %v11902_v59 = vsel %vm11900_vm0, %v11899_v55, %v11901_v56 }
 0x703   : > { %v11911_v60 = vrot.slane %v11902_v59, %v18586_v30  ;;  %v11904_v61 = vcombine.high %v11902_v59, %v11902_v59  ;;  %12397 = vmatpush1.bf16.msra.mxu0 %v16705_v2 }
 0x705   : > { %v11919_v3 = vcombine.high %v11911_v60, %v11911_v60  ;;  %v11918_v53 = vrot.slane %v11904_v61, %v18586_v30  ;;  %v11925_v5 = vpack.c.bf16 %v11911_v60, %v11911_v60  ;;  %v12002_v30 = vrot.slane %v11993_v7, %v18730_v29 }
 0x707   : > { %v11926_v37 = vpack.c.bf16 %v11919_v3, %v11919_v3  ;;  %v11920_v4 = vcombine.high %v11918_v53, %v11918_v53  ;;  %v11927_v50 = vpack.c.bf16 %v11918_v53, %v11918_v53 }
 0x709   : > { %v11928_v6 = vpack.c.bf16 %v11920_v4, %v11920_v4  ;;  %12357 = vmatprep.mubr.bf16.mxu1 %v11926_v37 }
 0x70a   : > { %12358 = vmatmul.mubr.bf16.vlgmr.msra.gmra.mrb[0].mxu1 %v11925_v5 }
 0x70b   : > { %12398 = vmatprep.mubr.bf16.mxu0 %v11928_v6 }
 0x70c   : > { %12399 = vmatmul.mubr.bf16.vlgmr.msra.gmra.mrb[0].mxu0 %v11927_v50 }
 0x7dd   : > { %v12359_v11 = vpop.f32.mrb[0].mxu1 }
 0x7de   : > { %v12360_v58 = vadd.f32 %v12359_v11, %v11998_v48  ;;  %v12361_v16 = vpop.f32.mrb[1].mxu1 }
 0x7df   : > { %v12400_v13 = vpop.f32.mrb[0].mxu0  ;;  %v12362_v18 = vadd.f32 %v12361_v16, %v12002_v30  ;;  %v12363_v54 = vpop.f32.mrb[2].mxu1 }
 0x7e0   : > { %v12402_v1 = vpop.f32.mrb[1].mxu0  ;;  %v12401_v8 = vadd.f32 %v12400_v13, %v12360_v58  ;;  %v12364_v10 = vpop.f32.mrb[3].mxu1 }
 0x7e1   : > { %v12404_v19 = vpop.f32.mrb[2].mxu0  ;;  %v12403_v15 = vadd.f32 %v12402_v1, %v12362_v18 }
 0x7e2   : > { %v12405_v20 = vpop.f32.mrb[3].mxu0  ;;  %vm12407_vm1 = vcmp.gt.f32.partialorder %v12401_v8, 0.0  ;;  %v12409_v62 = vmul.f32 0.2, %v12401_v8 }
 0x7e3   : > { %vm12408_vm2 = vcmp.gt.f32.partialorder %v12403_v15, 0.0  ;;  %v12410_v14 = vmul.f32 0.2, %v12403_v15 }
 0x7e4   : > { %v12411_v12 = vsel %vm12407_vm1, %v12401_v8, %v12409_v62 }
 0x7e5   : > { %v12412_v21 = vsel %vm12408_vm2, %v12403_v15, %v12410_v14  ;;  %v12425_v31 = vmul.f32 %v12418_v25, %v12411_v12 }
 0x7e6   : > { %v12426_v32 = vmul.f32 %v12422_v51, %v12412_v21 }
 0x7e7   : > { %v12428_v22 = vsel %vm12427_vm3, %v12425_v31, 0.0 }
 0x7e8   : > { %v12429_v33 = vsel %vm12427_vm3, %v12426_v32, 0.0 }
 0x7e9   : > { %v12430_v34 = vadd.f32 %v12429_v33, %v12428_v22 }
 0x7eb   : > { %12431 = vadd.xlane.f32.xlu0 %v12430_v34 }
 0x878   : > { %v12432_v9 = vpop.xlane.xlu0 %12431 }
 0x879   : > { %v12440_v27 = vadd.f32 %v14094_v45, %v12432_v9 }
 0x87b   : > { %v14095_v38 = vmul.f32 -1.442695, %v12440_v27 }
 0x87d   : > { %16706 = vpow2.f32 %v14095_v38 }
 0x887   : > { %v16707_v26 = vpop.eup %16706 }
 0x888   : > { %v12444_v39 = vadd.f32 1.0, %v16707_v26 }
 0x88a   : > { %16708 = vrcp.f32 %v12444_v39 }
 0x894   : > { %v16709_v29 = vpop.eup %16708 }
 0x895   : > { %12448 = vst.msk [vmem:[%s18823_s7] sm:$0x3] %vm12447_vm4, %v16709_v29 }
 0x896 PF: > { %s19_s26 = sadd.s32 1, %s16718_s26  }
 0x897   : > { %p16_p7 = scmp.ge.s32.totalorder %s19_s26, 4  }
 0x899   :  { %18 = sbr.rel (!%p16_p7) target bundleno = 3 (0x3), region = 85 }

</bundles_post_ra>
